<compile_context>
chip_gen: v7x
topology: tpu7x:2x2x1
jax: 0.10.0
libtpu: 0.0.40
codegen_flags: <defaults>
</compile_context>

<pallas_src>
import math

import numpy as np

import jax
import jax.numpy as jnp
from jax.experimental import pallas as pl


# ----------------------------------------------------------------- in-kernel math helpers

def _mish(x):
    # Mish = x * tanh(softplus(x));  tanh(softplus(x)) = ((1+e^x)^2 - 1) / ((1+e^x)^2 + 1).
    # One EUP exp + one approx reciprocal (PyTorch softplus threshold 20 preserved).
    e = jnp.exp(jnp.minimum(x, 20.0))
    u = (1.0 + e) * (1.0 + e)
    t = (u - 1.0) * pl.reciprocal(u + 1.0, approx=True)
    return x * jnp.where(x > 20.0, 1.0, t)


# ----------------------------------------------------------------- host-side constants

def _group_avg_mat(c, groups):
    """[C, C] block-diagonal group-averaging matrix (GroupNorm groups)."""
    cpg = c // groups
    g = np.zeros((c, c), np.float32)
    for k in range(groups):
        g[k * cpg:(k + 1) * cpg, k * cpg:(k + 1) * cpg] = 1.0 / cpg
    return g


def _downsample_select_mat(b, h):
    """[B*Ho, B*H] 0/1 matrix selecting row 2*ho of each batch: Conv1d(k=3,s=2,p=1) output
    positions of the equivalent stride-1 'same' conv."""
    ho = (h + 2 - 3) // 2 + 1
    d = np.zeros((b * ho, b * h), np.float32)
    for bi in range(b):
        for o in range(ho):
            d[bi * ho + o, bi * h + 2 * o] = 1.0
    return d, ho


class _Slab:
    """Packs many small [r, ncols] parameter blocks into one contiguous, 8-row-aligned
    f32 slab (one HBM->VMEM DMA instead of one per parameter)."""

    def __init__(self, ncols):
        self.ncols, self.parts, self.off = ncols, [], 0

    def add(self, mat):
        mat = np.asarray(mat, np.float32)
        if mat.ndim == 1:
            mat = mat.reshape(1, -1)
        r, c = mat.shape
        assert c == self.ncols, (c, self.ncols)
        start = self.off
        self.parts.append(mat)
        self.off += r
        pad = (-self.off) % 8
        if pad:
            self.parts.append(np.zeros((pad, c), np.float32))
            self.off += pad
        return (start, r)

    def done(self):
        return jnp.asarray(np.concatenate(self.parts, axis=0))


# ----------------------------------------------------------------- builder (prepack once)

def build_temporal_value_forward(params, *, batch, horizon, transition_dim, dim,
                                 dim_mults=(1, 2, 4, 8), n_groups=8, eps=1e-5):
    """Prepacks parameters/constants once; returns a jitted forward(x, cond, time) -> [B, out]."""
    B = batch
    time_dim = dim
    dims = [transition_dim] + [dim * m for m in dim_mults]
    in_out = list(zip(dims[:-1], dims[1:]))
    n_lvl = len(in_out)

    def npf(a):
        return np.asarray(a, np.float32)

    # ---- time MLP slabs (row-vector layout: y = x @ W^T + b) ---------------------------
    tm = params['time_mlp']
    s_tm1 = _Slab(4 * dim)
    tm1_w = s_tm1.add(npf(tm[0]['w']).T)
    tm1_b = s_tm1.add(tm[0]['b'])
    s_tm2 = _Slab(dim)
    tm2_w = s_tm2.add(npf(tm[1]['w']).T)
    tm2_b = s_tm2.add(tm[1]['b'])

    # ---- per-level slabs + downsample row-select constants -----------------------------
    level_slabs, dsel_mats, plan = [], [], []
    H = horizon
    for (cin, cout), blk in zip(in_out, params['blocks']):
        s = _Slab(cout)

        def conv_taps(p, s=s):
            w = npf(p['w'])                               # torch layout [cout, cin, K]
            return tuple(s.add(w[:, :, k].T) for k in range(w.shape[2]))

        def pack_res(p, s=s):
            d = {'c0_taps': conv_taps(p['b0_conv']), 'c0_b': s.add(p['b0_conv']['b']),
                 'g0_w': s.add(p['b0_gn_w']), 'g0_b': s.add(p['b0_gn_b']),
                 'c1_taps': conv_taps(p['b1_conv']), 'c1_b': s.add(p['b1_conv']['b']),
                 'g1_w': s.add(p['b1_gn_w']), 'g1_b': s.add(p['b1_gn_b']),
                 't_w': s.add(npf(p['time']['w']).T), 't_b': s.add(p['time']['b'])}
            if p['res'] is not None:
                d['r_w'] = s.add(npf(p['res']['w'])[:, :, 0].T)
                d['r_b'] = s.add(p['res']['b'])
            else:
                d['r_w'] = d['r_b'] = None
            return d

        dmat, Ho = _downsample_select_mat(B, H)
        lvl = {'H': H, 'Ho': Ho,
               'res1': pack_res(blk['res1']),
               'res2': pack_res(blk['res2']),
               'down_taps': conv_taps(blk['down']),
               'down_b': s.add(blk['down']['b']),
               'G': s.add(_group_avg_mat(cout, n_groups))}
        level_slabs.append(s.done())
        dsel_mats.append(jnp.asarray(dmat))
        plan.append(lvl)
        H = Ho

    Hf, C_last = H, dims[-1]

    # ---- final head: x-part of Linear pre-permuted to the in-kernel (h, c) flatten ------
    f1w, f1b = npf(params['final'][0]['w']), npf(params['final'][0]['b'])
    n_hidden = f1w.shape[0]
    fc_dim = f1w.shape[1] - time_dim
    assert fc_dim == C_last * Hf, "horizon must survive len(dim_mults) halvings consistently"
    wx = (f1w[:, :fc_dim].reshape(n_hidden, C_last, Hf)
          .transpose(2, 1, 0).reshape(Hf * C_last, n_hidden))
    s_f1 = _Slab(n_hidden)
    fin_wx = s_f1.add(wx)
    fin_wt = s_f1.add(f1w[:, fc_dim:].T)
    fin_b1 = s_f1.add(f1b)
    f2w, f2b = npf(params['final'][1]['w']), npf(params['final'][1]['b'])
    out_dim = f2w.shape[0]
    s_f2 = _Slab(out_dim)
    fin_w2 = s_f2.add(f2w.T)
    fin_b2 = s_f2.add(f2b)

    operands = [s_tm1.done(), s_tm2.done(), *level_slabs, *dsel_mats, s_f1.done(), s_f2.done()]
    out_cols = -(-out_dim // 128) * 128                    # lane-dense output width

    # ------------------------------------------------------------------ fused kernel ----
    def kernel(*refs):
        x_ref, emb_ref, tm1_ref, tm2_ref = refs[:4]
        lvl_refs = refs[4:4 + n_lvl]
        dsel_refs = refs[4 + n_lvl:4 + 2 * n_lvl]
        fin1_ref, fin2_ref, o_ref = refs[4 + 2 * n_lvl:]

        def sec(ref, sl):                                  # static slice of a packed slab
            off, r = sl
            return ref[off:off + r, :]

        def dot(a, b):
            return jnp.dot(a, b, preferred_element_type=jnp.float32)

        # ---- time MLP: Linear -> Mish -> Linear (Mish(t) hoisted, shared by all blocks) ----
        h1 = _mish(dot(emb_ref[...], sec(tm1_ref, tm1_w)) + sec(tm1_ref, tm1_b))
        t = dot(h1, sec(tm2_ref, tm2_w)) + sec(tm2_ref, tm2_b)          # [B, time_dim]
        t_act = _mish(t)

        def conv1d_same(x3, ref, taps, b_sl, pad):
            """'same' Conv1d along H as per-tap sublane shifts + small matmuls."""
            Bc, Hc, Cin = x3.shape
            acc = None
            for k, t_sl in enumerate(taps):
                d = k - pad
                if abs(d) >= Hc:
                    continue                               # tap lies entirely in zero padding
                if d == 0:
                    xs = x3
                elif d > 0:
                    xs = jnp.concatenate(
                        [x3[:, d:, :], jnp.zeros((Bc, d, Cin), jnp.float32)], axis=1)
                else:
                    xs = jnp.concatenate(
                        [jnp.zeros((Bc, -d, Cin), jnp.float32), x3[:, :Hc + d, :]], axis=1)
                y = dot(xs.reshape(Bc * Hc, Cin), sec(ref, t_sl))        # [B*H, Cout]
                acc = y if acc is None else acc + y
            return acc.reshape(Bc, Hc, -1) + sec(ref, b_sl)[None, :, :]

        def conv_block(x3, ref, taps, b_sl, g_sl, gw_sl, gb_sl):
            """Conv1d(k=5,'same') -> GroupNorm (centered, biased var) -> Mish."""
            y3 = conv1d_same(x3, ref, taps, b_sl, pad=2)
            G = sec(ref, g_sl)                             # [Cout, Cout] group-average matrix
            m = dot(jnp.mean(y3, axis=1), G)               # [B, Cout] per-(batch,group) mean
            xc = y3 - m[:, None, :]
            v = dot(jnp.mean(xc * xc, axis=1), G)          # [B, Cout] biased group variance
            z = xc * jax.lax.rsqrt(v + eps)[:, None, :]
            return _mish(z * sec(ref, gw_sl)[None, :, :] + sec(ref, gb_sl)[None, :, :])

        def res_block(x3, ref, p, g_sl):
            out = conv_block(x3, ref, p['c0_taps'], p['c0_b'], g_sl, p['g0_w'], p['g0_b'])
            tproj = dot(t_act, sec(ref, p['t_w'])) + sec(ref, p['t_b'])  # [B, Cout]
            out = out + tproj[:, None, :]                                # broadcast over H
            out = conv_block(out, ref, p['c1_taps'], p['c1_b'], g_sl, p['g1_w'], p['g1_b'])
            if p['r_w'] is None:
                res = x3
            else:
                Bc, Hc, Cin = x3.shape
                res = (dot(x3.reshape(Bc * Hc, Cin), sec(ref, p['r_w']))
                       + sec(ref, p['r_b'])).reshape(Bc, Hc, -1)
            return out + res

        # ---- levels: (ResidualTemporalBlock x2 + Downsample1d), activations [B, H, C] ----
        x3 = x_ref[...]
        for li, lvl in enumerate(plan):
            ref = lvl_refs[li]
            x3 = res_block(x3, ref, lvl['res1'], lvl['G'])
            x3 = res_block(x3, ref, lvl['res2'], lvl['G'])
            # Downsample1d(k=3,s=2,p=1): stride-1 'same' conv + precomputed row selection.
            full = conv1d_same(x3, ref, lvl['down_taps'], lvl['down_b'], pad=1)
            Bc, Hc, Cout = full.shape
            x3 = dot(dsel_refs[li][...],
                     full.reshape(Bc * Hc, Cout)).reshape(B, lvl['Ho'], Cout)

        # ---- final head: cat([x.view(B,-1), t]) -> Linear -> Mish -> Linear --------------
        xf = x3.reshape(B, Hf * C_last)
        acc = (dot(xf, sec(fin1_ref, fin_wx)) + dot(t, sec(fin1_ref, fin_wt))
               + sec(fin1_ref, fin_b1))
        out = dot(_mish(acc), sec(fin2_ref, fin_w2)) + sec(fin2_ref, fin_b2)  # [B, out_dim]
        if out_cols != out_dim:                            # lane-dense epilogue store
            out = jnp.concatenate(
                [out, jnp.zeros((B, out_cols - out_dim), jnp.float32)], axis=-1)
        o_ref[...] = out.astype(o_ref.dtype)

    call = pl.pallas_call(
        kernel,
        out_shape=jax.ShapeDtypeStruct((B, out_cols), jnp.float32),
    )

    # SinusoidalPosEmb frequency table (parameter-free, precomputed once).
    half = dim // 2
    freqs = jnp.exp(-jnp.arange(half, dtype=jnp.float32) * (math.log(10000.0) / (half - 1)))

    def forward(x, cond, time):
        # x: [batch, horizon, transition]; cond is unused (matches TemporalValue.forward).
        del cond
        arg = time.astype(jnp.float32)[:, None] * freqs[None, :]
        emb = jnp.concatenate([jnp.sin(arg), jnp.cos(arg)], axis=-1)          # [B, dim]
        out = call(x.astype(jnp.float32), emb, *operands)
        return out[:, :out_dim]

    return jax.jit(forward)


# ----------------------------------------------------------------- deterministic init

def init_temporal_value_params(key, horizon, transition_dim, dim=8, dim_mults=(1, 2, 4, 8),
                               out_dim=1):
    time_dim = dim
    dims = [transition_dim] + [dim * m for m in dim_mults]
    in_out = list(zip(dims[:-1], dims[1:]))
    keys = iter(jax.random.split(key, 256))

    def lin(fin, fout):
        bound = 1.0 / math.sqrt(fin)
        return {'w': jax.random.uniform(next(keys), (fout, fin), jnp.float32, -bound, bound),
                'b': jax.random.uniform(next(keys), (fout,), jnp.float32, -bound, bound)}

    def conv(cin, cout, k):
        bound = 1.0 / math.sqrt(cin * k)
        return {'w': jax.random.uniform(next(keys), (cout, cin, k), jnp.float32, -bound, bound),
                'b': jax.random.uniform(next(keys), (cout,), jnp.float32, -bound, bound)}

    def resblock(ci, co):
        return {
            'b0_conv': conv(ci, co, 5), 'b0_gn_w': jnp.ones((co,), jnp.float32),
            'b0_gn_b': jnp.zeros((co,), jnp.float32),
            'b1_conv': conv(co, co, 5), 'b1_gn_w': jnp.ones((co,), jnp.float32),
            'b1_gn_b': jnp.zeros((co,), jnp.float32),
            'time': lin(time_dim, co),
            'res': conv(ci, co, 1) if ci != co else None,
        }

    params = {'time_mlp': [lin(dim, dim * 4), lin(dim * 4, dim)], 'blocks': []}
    h = horizon
    for cin, cout in in_out:
        params['blocks'].append({'res1': resblock(cin, cout),
                                 'res2': resblock(cout, cout),
                                 'down': conv(cout, cout, 3)})
        h = h // 2
    fc_dim = dims[-1] * max(h, 1)
    params['final'] = [lin(fc_dim + time_dim, fc_dim // 2), lin(fc_dim // 2, out_dim)]
    return params, dim


# ----------------------------------------------------------------- main

if __name__ == "__main__":
    B, horizon, transition_dim, dim = 2, 16, 4, 8
    key = jax.random.PRNGKey(0)
    kx, kt, kp = jax.random.split(key, 3)

    x = jax.random.normal(kx, (B, horizon, transition_dim), jnp.float32)
    time = jax.random.uniform(kt, (B,), jnp.float32, 0.0, 100.0)
    cond = None  # unused by TemporalValue.forward

    params, d = init_temporal_value_params(kp, horizon, transition_dim, dim=dim)
    fwd = build_temporal_value_forward(params, batch=B, horizon=horizon,
                                       transition_dim=transition_dim, dim=d)
    out = jax.block_until_ready(fwd(x, cond, time))
    assert out.shape == (B, 1) and out.dtype == jnp.float32
    assert bool(jnp.all(jnp.isfinite(out)))
    print("KERNEL_OK")
</pallas_src>

<mosaic_0001>
module attributes {stable_mosaic.version = 11 : i64} {
  func.func @kernel(%arg0: memref<2x16x4xf32, #tpu.memory_space<vmem>>, %arg1: memref<2x8xf32, #tpu.memory_space<vmem>>, %arg2: memref<16x32xf32, #tpu.memory_space<vmem>>, %arg3: memref<40x8xf32, #tpu.memory_space<vmem>>, %arg4: memref<344x8xf32, #tpu.memory_space<vmem>>, %arg5: memref<496x16xf32, #tpu.memory_space<vmem>>, %arg6: memref<848x32xf32, #tpu.memory_space<vmem>>, %arg7: memref<1552x64xf32, #tpu.memory_space<vmem>>, %arg8: memref<16x32xf32, #tpu.memory_space<vmem>>, %arg9: memref<8x16xf32, #tpu.memory_space<vmem>>, %arg10: memref<4x8xf32, #tpu.memory_space<vmem>>, %arg11: memref<2x4xf32, #tpu.memory_space<vmem>>, %arg12: memref<80x32xf32, #tpu.memory_space<vmem>>, %arg13: memref<40x1xf32, #tpu.memory_space<vmem>>, %arg14: memref<2x128xf32, #tpu.memory_space<vmem>>) attributes {dimension_semantics = [], scalar_prefetch = 0 : i64, scratch_operands = 0 : i64, tpu.core_type = #tpu.core_type<tc>} {
    %c0 = arith.constant 0 : index
    %c0_0 = arith.constant 0 : index
    %0 = vector.load %arg1[%c0, %c0_0] : memref<2x8xf32, #tpu.memory_space<vmem>>, vector<2x8xf32>
    %c0_1 = arith.constant 0 : index
    %c0_2 = arith.constant 0 : index
    %1 = vector.load %arg2[%c0_1, %c0_2] : memref<16x32xf32, #tpu.memory_space<vmem>>, vector<8x32xf32>
    %cst = arith.constant dense<0.000000e+00> : vector<2x32xf32>
    %2 = tpu.matmul %0, %1, %cst {dimension_numbers = #tpu.dot_dimension_numbers<[1], [0], [0], [1], [0, 0, 1, 1], [], []>} : vector<2x8xf32>, vector<8x32xf32>, vector<2x32xf32> -> vector<2x32xf32>
    %c8 = arith.constant 8 : index
    %c0_3 = arith.constant 0 : index
    %3 = vector.load %arg2[%c8, %c0_3] : memref<16x32xf32, #tpu.memory_space<vmem>>, vector<1x32xf32>
    %4 = vector.broadcast %3 : vector<1x32xf32> to vector<2x32xf32>
    %5 = arith.addf %2, %4 : vector<2x32xf32>
    %cst_4 = arith.constant 2.000000e+01 : f32
    %6 = vector.broadcast %cst_4 : f32 to vector<2x32xf32>
    %7 = arith.minimumf %5, %6 : vector<2x32xf32>
    %8 = math.exp %7 : vector<2x32xf32>
    %cst_5 = arith.constant 1.000000e+00 : f32
    %9 = vector.broadcast %cst_5 : f32 to vector<2x32xf32>
    %10 = arith.addf %9, %8 : vector<2x32xf32>
    %cst_6 = arith.constant 1.000000e+00 : f32
    %11 = vector.broadcast %cst_6 : f32 to vector<2x32xf32>
    %12 = arith.addf %11, %8 : vector<2x32xf32>
    %13 = arith.mulf %10, %12 : vector<2x32xf32>
    %cst_7 = arith.constant 1.000000e+00 : f32
    %14 = vector.broadcast %cst_7 : f32 to vector<2x32xf32>
    %15 = arith.subf %13, %14 : vector<2x32xf32>
    %cst_8 = arith.constant 1.000000e+00 : f32
    %16 = vector.broadcast %cst_8 : f32 to vector<2x32xf32>
    %17 = arith.addf %13, %16 : vector<2x32xf32>
    %18 = tpu.reciprocal %17 {approx = true} : vector<2x32xf32> -> vector<2x32xf32>
    %19 = arith.mulf %15, %18 : vector<2x32xf32>
    %cst_9 = arith.constant 2.000000e+01 : f32
    %20 = vector.broadcast %cst_9 : f32 to vector<2x32xf32>
    %21 = arith.cmpf ogt, %5, %20 : vector<2x32xf32>
    %cst_10 = arith.constant 1.000000e+00 : f32
    %22 = vector.broadcast %cst_10 : f32 to vector<2x32xf32>
    %23 = arith.select %21, %22, %19 : vector<2x32xi1>, vector<2x32xf32>
    %24 = arith.mulf %5, %23 : vector<2x32xf32>
    %c0_11 = arith.constant 0 : index
    %c0_12 = arith.constant 0 : index
    %25 = vector.load %arg3[%c0_11, %c0_12] : memref<40x8xf32, #tpu.memory_space<vmem>>, vector<32x8xf32>
    %cst_13 = arith.constant dense<0.000000e+00> : vector<2x8xf32>
    %26 = tpu.matmul %24, %25, %cst_13 {dimension_numbers = #tpu.dot_dimension_numbers<[1], [0], [0], [1], [0, 0, 1, 1], [], []>} : vector<2x32xf32>, vector<32x8xf32>, vector<2x8xf32> -> vector<2x8xf32>
    %c32 = arith.constant 32 : index
    %c0_14 = arith.constant 0 : index
    %27 = vector.load %arg3[%c32, %c0_14] : memref<40x8xf32, #tpu.memory_space<vmem>>, vector<1x8xf32>
    %28 = vector.broadcast %27 : vector<1x8xf32> to vector<2x8xf32>
    %29 = arith.addf %26, %28 : vector<2x8xf32>
    %cst_15 = arith.constant 2.000000e+01 : f32
    %30 = vector.broadcast %cst_15 : f32 to vector<2x8xf32>
    %31 = arith.minimumf %29, %30 : vector<2x8xf32>
    %32 = math.exp %31 : vector<2x8xf32>
    %cst_16 = arith.constant 1.000000e+00 : f32
    %33 = vector.broadcast %cst_16 : f32 to vector<2x8xf32>
    %34 = arith.addf %33, %32 : vector<2x8xf32>
    %cst_17 = arith.constant 1.000000e+00 : f32
    %35 = vector.broadcast %cst_17 : f32 to vector<2x8xf32>
    %36 = arith.addf %35, %32 : vector<2x8xf32>
    %37 = arith.mulf %34, %36 : vector<2x8xf32>
    %cst_18 = arith.constant 1.000000e+00 : f32
    %38 = vector.broadcast %cst_18 : f32 to vector<2x8xf32>
    %39 = arith.subf %37, %38 : vector<2x8xf32>
    %cst_19 = arith.constant 1.000000e+00 : f32
    %40 = vector.broadcast %cst_19 : f32 to vector<2x8xf32>
    %41 = arith.addf %37, %40 : vector<2x8xf32>
    %42 = tpu.reciprocal %41 {approx = true} : vector<2x8xf32> -> vector<2x8xf32>
    %43 = arith.mulf %39, %42 : vector<2x8xf32>
    %cst_20 = arith.constant 2.000000e+01 : f32
    %44 = vector.broadcast %cst_20 : f32 to vector<2x8xf32>
    %45 = arith.cmpf ogt, %29, %44 : vector<2x8xf32>
    %cst_21 = arith.constant 1.000000e+00 : f32
    %46 = vector.broadcast %cst_21 : f32 to vector<2x8xf32>
    %47 = arith.select %45, %46, %43 : vector<2x8xi1>, vector<2x8xf32>
    %48 = arith.mulf %29, %47 : vector<2x8xf32>
    %c0_22 = arith.constant 0 : index
    %c0_23 = arith.constant 0 : index
    %c0_24 = arith.constant 0 : index
    %49 = vector.load %arg0[%c0_22, %c0_23, %c0_24] : memref<2x16x4xf32, #tpu.memory_space<vmem>>, vector<2x16x4xf32>
    %cst_25 = arith.constant 0.000000e+00 : f32
    %50 = vector.broadcast %cst_25 : f32 to vector<2x2x4xf32>
    %51 = vector.extract_strided_slice %49 {offsets = [0, 0, 0], sizes = [2, 14, 4], strides = [1, 1, 1]} : vector<2x16x4xf32> to vector<2x14x4xf32>
    %52 = tpu.concatenate %50, %51 in 1 : vector<2x2x4xf32>, vector<2x14x4xf32> -> vector<2x16x4xf32>
    %53 = vector.shape_cast %52 : vector<2x16x4xf32> to vector<32x4xf32>
    %c0_26 = arith.constant 0 : index
    %c0_27 = arith.constant 0 : index
    %54 = vector.load %arg4[%c0_26, %c0_27] : memref<344x8xf32, #tpu.memory_space<vmem>>, vector<4x8xf32>
    %cst_28 = arith.constant dense<0.000000e+00> : vector<32x8xf32>
    %55 = tpu.matmul %53, %54, %cst_28 {dimension_numbers = #tpu.dot_dimension_numbers<[1], [0], [0], [1], [0, 0, 1, 1], [], []>} : vector<32x4xf32>, vector<4x8xf32>, vector<32x8xf32> -> vector<32x8xf32>
    %cst_29 = arith.constant 0.000000e+00 : f32
    %56 = vector.broadcast %cst_29 : f32 to vector<2x1x4xf32>
    %57 = vector.extract_strided_slice %49 {offsets = [0, 0, 0], sizes = [2, 15, 4], strides = [1, 1, 1]} : vector<2x16x4xf32> to vector<2x15x4xf32>
    %58 = tpu.concatenate %56, %57 in 1 : vector<2x1x4xf32>, vector<2x15x4xf32> -> vector<2x16x4xf32>
    %59 = vector.shape_cast %58 : vector<2x16x4xf32> to vector<32x4xf32>
    %c8_30 = arith.constant 8 : index
    %c0_31 = arith.constant 0 : index
    %60 = vector.load %arg4[%c8_30, %c0_31] : memref<344x8xf32, #tpu.memory_space<vmem>>, vector<4x8xf32>
    %cst_32 = arith.constant dense<0.000000e+00> : vector<32x8xf32>
    %61 = tpu.matmul %59, %60, %cst_32 {dimension_numbers = #tpu.dot_dimension_numbers<[1], [0], [0], [1], [0, 0, 1, 1], [], []>} : vector<32x4xf32>, vector<4x8xf32>, vector<32x8xf32> -> vector<32x8xf32>
    %62 = arith.addf %55, %61 : vector<32x8xf32>
    %63 = vector.shape_cast %49 : vector<2x16x4xf32> to vector<32x4xf32>
    %c16 = arith.constant 16 : index
    %c0_33 = arith.constant 0 : index
    %64 = vector.load %arg4[%c16, %c0_33] : memref<344x8xf32, #tpu.memory_space<vmem>>, vector<4x8xf32>
    %cst_34 = arith.constant dense<0.000000e+00> : vector<32x8xf32>
    %65 = tpu.matmul %63, %64, %cst_34 {dimension_numbers = #tpu.dot_dimension_numbers<[1], [0], [0], [1], [0, 0, 1, 1], [], []>} : vector<32x4xf32>, vector<4x8xf32>, vector<32x8xf32> -> vector<32x8xf32>
    %66 = arith.addf %62, %65 : vector<32x8xf32>
    %67 = vector.extract_strided_slice %49 {offsets = [0, 1, 0], sizes = [2, 15, 4], strides = [1, 1, 1]} : vector<2x16x4xf32> to vector<2x15x4xf32>
    %cst_35 = arith.constant 0.000000e+00 : f32
    %68 = vector.broadcast %cst_35 : f32 to vector<2x1x4xf32>
    %69 = tpu.concatenate %67, %68 in 1 : vector<2x15x4xf32>, vector<2x1x4xf32> -> vector<2x16x4xf32>
    %70 = vector.shape_cast %69 : vector<2x16x4xf32> to vector<32x4xf32>
    %c24 = arith.constant 24 : index
    %c0_36 = arith.constant 0 : index
    %71 = vector.load %arg4[%c24, %c0_36] : memref<344x8xf32, #tpu.memory_space<vmem>>, vector<4x8xf32>
    %cst_37 = arith.constant dense<0.000000e+00> : vector<32x8xf32>
    %72 = tpu.matmul %70, %71, %cst_37 {dimension_numbers = #tpu.dot_dimension_numbers<[1], [0], [0], [1], [0, 0, 1, 1], [], []>} : vector<32x4xf32>, vector<4x8xf32>, vector<32x8xf32> -> vector<32x8xf32>
    %73 = arith.addf %66, %72 : vector<32x8xf32>
    %74 = vector.extract_strided_slice %49 {offsets = [0, 2, 0], sizes = [2, 14, 4], strides = [1, 1, 1]} : vector<2x16x4xf32> to vector<2x14x4xf32>
    %cst_38 = arith.constant 0.000000e+00 : f32
    %75 = vector.broadcast %cst_38 : f32 to vector<2x2x4xf32>
    %76 = tpu.concatenate %74, %75 in 1 : vector<2x14x4xf32>, vector<2x2x4xf32> -> vector<2x16x4xf32>
    %77 = vector.shape_cast %76 : vector<2x16x4xf32> to vector<32x4xf32>
    %c32_39 = arith.constant 32 : index
    %c0_40 = arith.constant 0 : index
    %78 = vector.load %arg4[%c32_39, %c0_40] : memref<344x8xf32, #tpu.memory_space<vmem>>, vector<4x8xf32>
    %cst_41 = arith.constant dense<0.000000e+00> : vector<32x8xf32>
    %79 = tpu.matmul %77, %78, %cst_41 {dimension_numbers = #tpu.dot_dimension_numbers<[1], [0], [0], [1], [0, 0, 1, 1], [], []>} : vector<32x4xf32>, vector<4x8xf32>, vector<32x8xf32> -> vector<32x8xf32>
    %80 = arith.addf %73, %79 : vector<32x8xf32>
    %81 = vector.shape_cast %80 : vector<32x8xf32> to vector<2x16x8xf32>
    %c40 = arith.constant 40 : index
    %c0_42 = arith.constant 0 : index
    %82 = vector.load %arg4[%c40, %c0_42] : memref<344x8xf32, #tpu.memory_space<vmem>>, vector<1x8xf32>
    %83 = vector.shape_cast %82 : vector<1x8xf32> to vector<1x1x8xf32>
    %84 = vector.broadcast %83 : vector<1x1x8xf32> to vector<2x16x8xf32>
    %85 = arith.addf %81, %84 : vector<2x16x8xf32>
    %c336 = arith.constant 336 : index
    %c0_43 = arith.constant 0 : index
    %86 = vector.load %arg4[%c336, %c0_43] : memref<344x8xf32, #tpu.memory_space<vmem>>, vector<8x8xf32>
    %cst_44 = arith.constant dense<0.000000e+00> : vector<2x8xf32>
    %87 = vector.multi_reduction <add>, %85, %cst_44 [1] : vector<2x16x8xf32> to vector<2x8xf32>
    %cst_45 = arith.constant 1.600000e+01 : f32
    %88 = vector.broadcast %cst_45 : f32 to vector<2x8xf32>
    %89 = arith.divf %87, %88 : vector<2x8xf32>
    %cst_46 = arith.constant dense<0.000000e+00> : vector<2x8xf32>
    %90 = tpu.matmul %89, %86, %cst_46 {dimension_numbers = #tpu.dot_dimension_numbers<[1], [0], [0], [1], [0, 0, 1, 1], [], []>} : vector<2x8xf32>, vector<8x8xf32>, vector<2x8xf32> -> vector<2x8xf32>
    %91 = vector.shape_cast %90 : vector<2x8xf32> to vector<2x1x8xf32>
    %92 = vector.broadcast %91 : vector<2x1x8xf32> to vector<2x16x8xf32>
    %93 = arith.subf %85, %92 : vector<2x16x8xf32>
    %94 = arith.mulf %93, %93 : vector<2x16x8xf32>
    %cst_47 = arith.constant dense<0.000000e+00> : vector<2x8xf32>
    %95 = vector.multi_reduction <add>, %94, %cst_47 [1] : vector<2x16x8xf32> to vector<2x8xf32>
    %cst_48 = arith.constant 1.600000e+01 : f32
    %96 = vector.broadcast %cst_48 : f32 to vector<2x8xf32>
    %97 = arith.divf %95, %96 : vector<2x8xf32>
    %cst_49 = arith.constant dense<0.000000e+00> : vector<2x8xf32>
    %98 = tpu.matmul %97, %86, %cst_49 {dimension_numbers = #tpu.dot_dimension_numbers<[1], [0], [0], [1], [0, 0, 1, 1], [], []>} : vector<2x8xf32>, vector<8x8xf32>, vector<2x8xf32> -> vector<2x8xf32>
    %cst_50 = arith.constant 9.99999974E-6 : f32
    %99 = vector.broadcast %cst_50 : f32 to vector<2x8xf32>
    %100 = arith.addf %98, %99 : vector<2x8xf32>
    %101 = math.rsqrt %100 : vector<2x8xf32>
    %102 = vector.shape_cast %101 : vector<2x8xf32> to vector<2x1x8xf32>
    %103 = vector.broadcast %102 : vector<2x1x8xf32> to vector<2x16x8xf32>
    %104 = arith.mulf %93, %103 : vector<2x16x8xf32>
    %c48 = arith.constant 48 : index
    %c0_51 = arith.constant 0 : index
    %105 = vector.load %arg4[%c48, %c0_51] : memref<344x8xf32, #tpu.memory_space<vmem>>, vector<1x8xf32>
    %106 = vector.shape_cast %105 : vector<1x8xf32> to vector<1x1x8xf32>
    %107 = vector.broadcast %106 : vector<1x1x8xf32> to vector<2x16x8xf32>
    %108 = arith.mulf %104, %107 : vector<2x16x8xf32>
    %c56 = arith.constant 56 : index
    %c0_52 = arith.constant 0 : index
    %109 = vector.load %arg4[%c56, %c0_52] : memref<344x8xf32, #tpu.memory_space<vmem>>, vector<1x8xf32>
    %110 = vector.shape_cast %109 : vector<1x8xf32> to vector<1x1x8xf32>
    %111 = vector.broadcast %110 : vector<1x1x8xf32> to vector<2x16x8xf32>
    %112 = arith.addf %108, %111 : vector<2x16x8xf32>
    %cst_53 = arith.constant 2.000000e+01 : f32
    %113 = vector.broadcast %cst_53 : f32 to vector<2x16x8xf32>
    %114 = arith.minimumf %112, %113 : vector<2x16x8xf32>
    %115 = math.exp %114 : vector<2x16x8xf32>
    %cst_54 = arith.constant 1.000000e+00 : f32
    %116 = vector.broadcast %cst_54 : f32 to vector<2x16x8xf32>
    %117 = arith.addf %116, %115 : vector<2x16x8xf32>
    %cst_55 = arith.constant 1.000000e+00 : f32
    %118 = vector.broadcast %cst_55 : f32 to vector<2x16x8xf32>
    %119 = arith.addf %118, %115 : vector<2x16x8xf32>
    %120 = arith.mulf %117, %119 : vector<2x16x8xf32>
    %cst_56 = arith.constant 1.000000e+00 : f32
    %121 = vector.broadcast %cst_56 : f32 to vector<2x16x8xf32>
    %122 = arith.subf %120, %121 : vector<2x16x8xf32>
    %cst_57 = arith.constant 1.000000e+00 : f32
    %123 = vector.broadcast %cst_57 : f32 to vector<2x16x8xf32>
    %124 = arith.addf %120, %123 : vector<2x16x8xf32>
    %125 = tpu.reciprocal %124 {approx = true} : vector<2x16x8xf32> -> vector<2x16x8xf32>
    %126 = arith.mulf %122, %125 : vector<2x16x8xf32>
    %cst_58 = arith.constant 2.000000e+01 : f32
    %127 = vector.broadcast %cst_58 : f32 to vector<2x16x8xf32>
    %128 = arith.cmpf ogt, %112, %127 : vector<2x16x8xf32>
    %cst_59 = arith.constant 1.000000e+00 : f32
    %129 = vector.broadcast %cst_59 : f32 to vector<2x16x8xf32>
    %130 = arith.select %128, %129, %126 : vector<2x16x8xi1>, vector<2x16x8xf32>
    %131 = arith.mulf %112, %130 : vector<2x16x8xf32>
    %c128 = arith.constant 128 : index
    %c0_60 = arith.constant 0 : index
    %132 = vector.load %arg4[%c128, %c0_60] : memref<344x8xf32, #tpu.memory_space<vmem>>, vector<8x8xf32>
    %cst_61 = arith.constant dense<0.000000e+00> : vector<2x8xf32>
    %133 = tpu.matmul %48, %132, %cst_61 {dimension_numbers = #tpu.dot_dimension_numbers<[1], [0], [0], [1], [0, 0, 1, 1], [], []>} : vector<2x8xf32>, vector<8x8xf32>, vector<2x8xf32> -> vector<2x8xf32>
    %c136 = arith.constant 136 : index
    %c0_62 = arith.constant 0 : index
    %134 = vector.load %arg4[%c136, %c0_62] : memref<344x8xf32, #tpu.memory_space<vmem>>, vector<1x8xf32>
    %135 = vector.broadcast %134 : vector<1x8xf32> to vector<2x8xf32>
    %136 = arith.addf %133, %135 : vector<2x8xf32>
    %137 = vector.shape_cast %136 : vector<2x8xf32> to vector<2x1x8xf32>
    %138 = vector.broadcast %137 : vector<2x1x8xf32> to vector<2x16x8xf32>
    %139 = arith.addf %131, %138 : vector<2x16x8xf32>
    %cst_63 = arith.constant 0.000000e+00 : f32
    %140 = vector.broadcast %cst_63 : f32 to vector<2x2x8xf32>
    %141 = vector.extract_strided_slice %139 {offsets = [0, 0, 0], sizes = [2, 14, 8], strides = [1, 1, 1]} : vector<2x16x8xf32> to vector<2x14x8xf32>
    %142 = tpu.concatenate %140, %141 in 1 : vector<2x2x8xf32>, vector<2x14x8xf32> -> vector<2x16x8xf32>
    %143 = vector.shape_cast %142 : vector<2x16x8xf32> to vector<32x8xf32>
    %c64 = arith.constant 64 : index
    %c0_64 = arith.constant 0 : index
    %144 = vector.load %arg4[%c64, %c0_64] : memref<344x8xf32, #tpu.memory_space<vmem>>, vector<8x8xf32>
    %cst_65 = arith.constant dense<0.000000e+00> : vector<32x8xf32>
    %145 = tpu.matmul %143, %144, %cst_65 {dimension_numbers = #tpu.dot_dimension_numbers<[1], [0], [0], [1], [0, 0, 1, 1], [], []>} : vector<32x8xf32>, vector<8x8xf32>, vector<32x8xf32> -> vector<32x8xf32>
    %cst_66 = arith.constant 0.000000e+00 : f32
    %146 = vector.broadcast %cst_66 : f32 to vector<2x1x8xf32>
    %147 = vector.extract_strided_slice %139 {offsets = [0, 0, 0], sizes = [2, 15, 8], strides = [1, 1, 1]} : vector<2x16x8xf32> to vector<2x15x8xf32>
    %148 = tpu.concatenate %146, %147 in 1 : vector<2x1x8xf32>, vector<2x15x8xf32> -> vector<2x16x8xf32>
    %149 = vector.shape_cast %148 : vector<2x16x8xf32> to vector<32x8xf32>
    %c72 = arith.constant 72 : index
    %c0_67 = arith.constant 0 : index
    %150 = vector.load %arg4[%c72, %c0_67] : memref<344x8xf32, #tpu.memory_space<vmem>>, vector<8x8xf32>
    %cst_68 = arith.constant dense<0.000000e+00> : vector<32x8xf32>
    %151 = tpu.matmul %149, %150, %cst_68 {dimension_numbers = #tpu.dot_dimension_numbers<[1], [0], [0], [1], [0, 0, 1, 1], [], []>} : vector<32x8xf32>, vector<8x8xf32>, vector<32x8xf32> -> vector<32x8xf32>
    %152 = arith.addf %145, %151 : vector<32x8xf32>
    %153 = vector.shape_cast %139 : vector<2x16x8xf32> to vector<32x8xf32>
    %c80 = arith.constant 80 : index
    %c0_69 = arith.constant 0 : index
    %154 = vector.load %arg4[%c80, %c0_69] : memref<344x8xf32, #tpu.memory_space<vmem>>, vector<8x8xf32>
    %cst_70 = arith.constant dense<0.000000e+00> : vector<32x8xf32>
    %155 = tpu.matmul %153, %154, %cst_70 {dimension_numbers = #tpu.dot_dimension_numbers<[1], [0], [0], [1], [0, 0, 1, 1], [], []>} : vector<32x8xf32>, vector<8x8xf32>, vector<32x8xf32> -> vector<32x8xf32>
    %156 = arith.addf %152, %155 : vector<32x8xf32>
    %157 = vector.extract_strided_slice %139 {offsets = [0, 1, 0], sizes = [2, 15, 8], strides = [1, 1, 1]} : vector<2x16x8xf32> to vector<2x15x8xf32>
    %cst_71 = arith.constant 0.000000e+00 : f32
    %158 = vector.broadcast %cst_71 : f32 to vector<2x1x8xf32>
    %159 = tpu.concatenate %157, %158 in 1 : vector<2x15x8xf32>, vector<2x1x8xf32> -> vector<2x16x8xf32>
    %160 = vector.shape_cast %159 : vector<2x16x8xf32> to vector<32x8xf32>
    %c88 = arith.constant 88 : index
    %c0_72 = arith.constant 0 : index
    %161 = vector.load %arg4[%c88, %c0_72] : memref<344x8xf32, #tpu.memory_space<vmem>>, vector<8x8xf32>
    %cst_73 = arith.constant dense<0.000000e+00> : vector<32x8xf32>
    %162 = tpu.matmul %160, %161, %cst_73 {dimension_numbers = #tpu.dot_dimension_numbers<[1], [0], [0], [1], [0, 0, 1, 1], [], []>} : vector<32x8xf32>, vector<8x8xf32>, vector<32x8xf32> -> vector<32x8xf32>
    %163 = arith.addf %156, %162 : vector<32x8xf32>
    %164 = vector.extract_strided_slice %139 {offsets = [0, 2, 0], sizes = [2, 14, 8], strides = [1, 1, 1]} : vector<2x16x8xf32> to vector<2x14x8xf32>
    %cst_74 = arith.constant 0.000000e+00 : f32
    %165 = vector.broadcast %cst_74 : f32 to vector<2x2x8xf32>
    %166 = tpu.concatenate %164, %165 in 1 : vector<2x14x8xf32>, vector<2x2x8xf32> -> vector<2x16x8xf32>
    %167 = vector.shape_cast %166 : vector<2x16x8xf32> to vector<32x8xf32>
    %c96 = arith.constant 96 : index
    %c0_75 = arith.constant 0 : index
    %168 = vector.load %arg4[%c96, %c0_75] : memref<344x8xf32, #tpu.memory_space<vmem>>, vector<8x8xf32>
    %cst_76 = arith.constant dense<0.000000e+00> : vector<32x8xf32>
    %169 = tpu.matmul %167, %168, %cst_76 {dimension_numbers = #tpu.dot_dimension_numbers<[1], [0], [0], [1], [0, 0, 1, 1], [], []>} : vector<32x8xf32>, vector<8x8xf32>, vector<32x8xf32> -> vector<32x8xf32>
    %170 = arith.addf %163, %169 : vector<32x8xf32>
    %171 = vector.shape_cast %170 : vector<32x8xf32> to vector<2x16x8xf32>
    %c104 = arith.constant 104 : index
    %c0_77 = arith.constant 0 : index
    %172 = vector.load %arg4[%c104, %c0_77] : memref<344x8xf32, #tpu.memory_space<vmem>>, vector<1x8xf32>
    %173 = vector.shape_cast %172 : vector<1x8xf32> to vector<1x1x8xf32>
    %174 = vector.broadcast %173 : vector<1x1x8xf32> to vector<2x16x8xf32>
    %175 = arith.addf %171, %174 : vector<2x16x8xf32>
    %c336_78 = arith.constant 336 : index
    %c0_79 = arith.constant 0 : index
    %176 = vector.load %arg4[%c336_78, %c0_79] : memref<344x8xf32, #tpu.memory_space<vmem>>, vector<8x8xf32>
    %cst_80 = arith.constant dense<0.000000e+00> : vector<2x8xf32>
    %177 = vector.multi_reduction <add>, %175, %cst_80 [1] : vector<2x16x8xf32> to vector<2x8xf32>
    %cst_81 = arith.constant 1.600000e+01 : f32
    %178 = vector.broadcast %cst_81 : f32 to vector<2x8xf32>
    %179 = arith.divf %177, %178 : vector<2x8xf32>
    %cst_82 = arith.constant dense<0.000000e+00> : vector<2x8xf32>
    %180 = tpu.matmul %179, %176, %cst_82 {dimension_numbers = #tpu.dot_dimension_numbers<[1], [0], [0], [1], [0, 0, 1, 1], [], []>} : vector<2x8xf32>, vector<8x8xf32>, vector<2x8xf32> -> vector<2x8xf32>
    %181 = vector.shape_cast %180 : vector<2x8xf32> to vector<2x1x8xf32>
    %182 = vector.broadcast %181 : vector<2x1x8xf32> to vector<2x16x8xf32>
    %183 = arith.subf %175, %182 : vector<2x16x8xf32>
    %184 = arith.mulf %183, %183 : vector<2x16x8xf32>
    %cst_83 = arith.constant dense<0.000000e+00> : vector<2x8xf32>
    %185 = vector.multi_reduction <add>, %184, %cst_83 [1] : vector<2x16x8xf32> to vector<2x8xf32>
    %cst_84 = arith.constant 1.600000e+01 : f32
    %186 = vector.broadcast %cst_84 : f32 to vector<2x8xf32>
    %187 = arith.divf %185, %186 : vector<2x8xf32>
    %cst_85 = arith.constant dense<0.000000e+00> : vector<2x8xf32>
    %188 = tpu.matmul %187, %176, %cst_85 {dimension_numbers = #tpu.dot_dimension_numbers<[1], [0], [0], [1], [0, 0, 1, 1], [], []>} : vector<2x8xf32>, vector<8x8xf32>, vector<2x8xf32> -> vector<2x8xf32>
    %cst_86 = arith.constant 9.99999974E-6 : f32
    %189 = vector.broadcast %cst_86 : f32 to vector<2x8xf32>
    %190 = arith.addf %188, %189 : vector<2x8xf32>
    %191 = math.rsqrt %190 : vector<2x8xf32>
    %192 = vector.shape_cast %191 : vector<2x8xf32> to vector<2x1x8xf32>
    %193 = vector.broadcast %192 : vector<2x1x8xf32> to vector<2x16x8xf32>
    %194 = arith.mulf %183, %193 : vector<2x16x8xf32>
    %c112 = arith.constant 112 : index
    %c0_87 = arith.constant 0 : index
    %195 = vector.load %arg4[%c112, %c0_87] : memref<344x8xf32, #tpu.memory_space<vmem>>, vector<1x8xf32>
    %196 = vector.shape_cast %195 : vector<1x8xf32> to vector<1x1x8xf32>
    %197 = vector.broadcast %196 : vector<1x1x8xf32> to vector<2x16x8xf32>
    %198 = arith.mulf %194, %197 : vector<2x16x8xf32>
    %c120 = arith.constant 120 : index
    %c0_88 = arith.constant 0 : index
    %199 = vector.load %arg4[%c120, %c0_88] : memref<344x8xf32, #tpu.memory_space<vmem>>, vector<1x8xf32>
    %200 = vector.shape_cast %199 : vector<1x8xf32> to vector<1x1x8xf32>
    %201 = vector.broadcast %200 : vector<1x1x8xf32> to vector<2x16x8xf32>
    %202 = arith.addf %198, %201 : vector<2x16x8xf32>
    %cst_89 = arith.constant 2.000000e+01 : f32
    %203 = vector.broadcast %cst_89 : f32 to vector<2x16x8xf32>
    %204 = arith.minimumf %202, %203 : vector<2x16x8xf32>
    %205 = math.exp %204 : vector<2x16x8xf32>
    %cst_90 = arith.constant 1.000000e+00 : f32
    %206 = vector.broadcast %cst_90 : f32 to vector<2x16x8xf32>
    %207 = arith.addf %206, %205 : vector<2x16x8xf32>
    %cst_91 = arith.constant 1.000000e+00 : f32
    %208 = vector.broadcast %cst_91 : f32 to vector<2x16x8xf32>
    %209 = arith.addf %208, %205 : vector<2x16x8xf32>
    %210 = arith.mulf %207, %209 : vector<2x16x8xf32>
    %cst_92 = arith.constant 1.000000e+00 : f32
    %211 = vector.broadcast %cst_92 : f32 to vector<2x16x8xf32>
    %212 = arith.subf %210, %211 : vector<2x16x8xf32>
    %cst_93 = arith.constant 1.000000e+00 : f32
    %213 = vector.broadcast %cst_93 : f32 to vector<2x16x8xf32>
    %214 = arith.addf %210, %213 : vector<2x16x8xf32>
    %215 = tpu.reciprocal %214 {approx = true} : vector<2x16x8xf32> -> vector<2x16x8xf32>
    %216 = arith.mulf %212, %215 : vector<2x16x8xf32>
    %cst_94 = arith.constant 2.000000e+01 : f32
    %217 = vector.broadcast %cst_94 : f32 to vector<2x16x8xf32>
    %218 = arith.cmpf ogt, %202, %217 : vector<2x16x8xf32>
    %cst_95 = arith.constant 1.000000e+00 : f32
    %219 = vector.broadcast %cst_95 : f32 to vector<2x16x8xf32>
    %220 = arith.select %218, %219, %216 : vector<2x16x8xi1>, vector<2x16x8xf32>
    %221 = arith.mulf %202, %220 : vector<2x16x8xf32>
    %222 = vector.shape_cast %49 : vector<2x16x4xf32> to vector<32x4xf32>
    %c144 = arith.constant 144 : index
    %c0_96 = arith.constant 0 : index
    %223 = vector.load %arg4[%c144, %c0_96] : memref<344x8xf32, #tpu.memory_space<vmem>>, vector<4x8xf32>
    %cst_97 = arith.constant dense<0.000000e+00> : vector<32x8xf32>
    %224 = tpu.matmul %222, %223, %cst_97 {dimension_numbers = #tpu.dot_dimension_numbers<[1], [0], [0], [1], [0, 0, 1, 1], [], []>} : vector<32x4xf32>, vector<4x8xf32>, vector<32x8xf32> -> vector<32x8xf32>
    %c152 = arith.constant 152 : index
    %c0_98 = arith.constant 0 : index
    %225 = vector.load %arg4[%c152, %c0_98] : memref<344x8xf32, #tpu.memory_space<vmem>>, vector<1x8xf32>
    %226 = vector.broadcast %225 : vector<1x8xf32> to vector<32x8xf32>
    %227 = arith.addf %224, %226 : vector<32x8xf32>
    %228 = vector.shape_cast %227 : vector<32x8xf32> to vector<2x16x8xf32>
    %229 = arith.addf %221, %228 : vector<2x16x8xf32>
    %cst_99 = arith.constant 0.000000e+00 : f32
    %230 = vector.broadcast %cst_99 : f32 to vector<2x2x8xf32>
    %231 = vector.extract_strided_slice %229 {offsets = [0, 0, 0], sizes = [2, 14, 8], strides = [1, 1, 1]} : vector<2x16x8xf32> to vector<2x14x8xf32>
    %232 = tpu.concatenate %230, %231 in 1 : vector<2x2x8xf32>, vector<2x14x8xf32> -> vector<2x16x8xf32>
    %233 = vector.shape_cast %232 : vector<2x16x8xf32> to vector<32x8xf32>
    %c160 = arith.constant 160 : index
    %c0_100 = arith.constant 0 : index
    %234 = vector.load %arg4[%c160, %c0_100] : memref<344x8xf32, #tpu.memory_space<vmem>>, vector<8x8xf32>
    %cst_101 = arith.constant dense<0.000000e+00> : vector<32x8xf32>
    %235 = tpu.matmul %233, %234, %cst_101 {dimension_numbers = #tpu.dot_dimension_numbers<[1], [0], [0], [1], [0, 0, 1, 1], [], []>} : vector<32x8xf32>, vector<8x8xf32>, vector<32x8xf32> -> vector<32x8xf32>
    %cst_102 = arith.constant 0.000000e+00 : f32
    %236 = vector.broadcast %cst_102 : f32 to vector<2x1x8xf32>
    %237 = vector.extract_strided_slice %229 {offsets = [0, 0, 0], sizes = [2, 15, 8], strides = [1, 1, 1]} : vector<2x16x8xf32> to vector<2x15x8xf32>
    %238 = tpu.concatenate %236, %237 in 1 : vector<2x1x8xf32>, vector<2x15x8xf32> -> vector<2x16x8xf32>
    %239 = vector.shape_cast %238 : vector<2x16x8xf32> to vector<32x8xf32>
    %c168 = arith.constant 168 : index
    %c0_103 = arith.constant 0 : index
    %240 = vector.load %arg4[%c168, %c0_103] : memref<344x8xf32, #tpu.memory_space<vmem>>, vector<8x8xf32>
    %cst_104 = arith.constant dense<0.000000e+00> : vector<32x8xf32>
    %241 = tpu.matmul %239, %240, %cst_104 {dimension_numbers = #tpu.dot_dimension_numbers<[1], [0], [0], [1], [0, 0, 1, 1], [], []>} : vector<32x8xf32>, vector<8x8xf32>, vector<32x8xf32> -> vector<32x8xf32>
    %242 = arith.addf %235, %241 : vector<32x8xf32>
    %243 = vector.shape_cast %229 : vector<2x16x8xf32> to vector<32x8xf32>
    %c176 = arith.constant 176 : index
    %c0_105 = arith.constant 0 : index
    %244 = vector.load %arg4[%c176, %c0_105] : memref<344x8xf32, #tpu.memory_space<vmem>>, vector<8x8xf32>
    %cst_106 = arith.constant dense<0.000000e+00> : vector<32x8xf32>
    %245 = tpu.matmul %243, %244, %cst_106 {dimension_numbers = #tpu.dot_dimension_numbers<[1], [0], [0], [1], [0, 0, 1, 1], [], []>} : vector<32x8xf32>, vector<8x8xf32>, vector<32x8xf32> -> vector<32x8xf32>
    %246 = arith.addf %242, %245 : vector<32x8xf32>
    %247 = vector.extract_strided_slice %229 {offsets = [0, 1, 0], sizes = [2, 15, 8], strides = [1, 1, 1]} : vector<2x16x8xf32> to vector<2x15x8xf32>
    %cst_107 = arith.constant 0.000000e+00 : f32
    %248 = vector.broadcast %cst_107 : f32 to vector<2x1x8xf32>
    %249 = tpu.concatenate %247, %248 in 1 : vector<2x15x8xf32>, vector<2x1x8xf32> -> vector<2x16x8xf32>
    %250 = vector.shape_cast %249 : vector<2x16x8xf32> to vector<32x8xf32>
    %c184 = arith.constant 184 : index
    %c0_108 = arith.constant 0 : index
    %251 = vector.load %arg4[%c184, %c0_108] : memref<344x8xf32, #tpu.memory_space<vmem>>, vector<8x8xf32>
    %cst_109 = arith.constant dense<0.000000e+00> : vector<32x8xf32>
    %252 = tpu.matmul %250, %251, %cst_109 {dimension_numbers = #tpu.dot_dimension_numbers<[1], [0], [0], [1], [0, 0, 1, 1], [], []>} : vector<32x8xf32>, vector<8x8xf32>, vector<32x8xf32> -> vector<32x8xf32>
    %253 = arith.addf %246, %252 : vector<32x8xf32>
    %254 = vector.extract_strided_slice %229 {offsets = [0, 2, 0], sizes = [2, 14, 8], strides = [1, 1, 1]} : vector<2x16x8xf32> to vector<2x14x8xf32>
    %cst_110 = arith.constant 0.000000e+00 : f32
    %255 = vector.broadcast %cst_110 : f32 to vector<2x2x8xf32>
    %256 = tpu.concatenate %254, %255 in 1 : vector<2x14x8xf32>, vector<2x2x8xf32> -> vector<2x16x8xf32>
    %257 = vector.shape_cast %256 : vector<2x16x8xf32> to vector<32x8xf32>
    %c192 = arith.constant 192 : index
    %c0_111 = arith.constant 0 : index
    %258 = vector.load %arg4[%c192, %c0_111] : memref<344x8xf32, #tpu.memory_space<vmem>>, vector<8x8xf32>
    %cst_112 = arith.constant dense<0.000000e+00> : vector<32x8xf32>
    %259 = tpu.matmul %257, %258, %cst_112 {dimension_numbers = #tpu.dot_dimension_numbers<[1], [0], [0], [1], [0, 0, 1, 1], [], []>} : vector<32x8xf32>, vector<8x8xf32>, vector<32x8xf32> -> vector<32x8xf32>
    %260 = arith.addf %253, %259 : vector<32x8xf32>
    %261 = vector.shape_cast %260 : vector<32x8xf32> to vector<2x16x8xf32>
    %c200 = arith.constant 200 : index
    %c0_113 = arith.constant 0 : index
    %262 = vector.load %arg4[%c200, %c0_113] : memref<344x8xf32, #tpu.memory_space<vmem>>, vector<1x8xf32>
    %263 = vector.shape_cast %262 : vector<1x8xf32> to vector<1x1x8xf32>
    %264 = vector.broadcast %263 : vector<1x1x8xf32> to vector<2x16x8xf32>
    %265 = arith.addf %261, %264 : vector<2x16x8xf32>
    %c336_114 = arith.constant 336 : index
    %c0_115 = arith.constant 0 : index
    %266 = vector.load %arg4[%c336_114, %c0_115] : memref<344x8xf32, #tpu.memory_space<vmem>>, vector<8x8xf32>
    %cst_116 = arith.constant dense<0.000000e+00> : vector<2x8xf32>
    %267 = vector.multi_reduction <add>, %265, %cst_116 [1] : vector<2x16x8xf32> to vector<2x8xf32>
    %cst_117 = arith.constant 1.600000e+01 : f32
    %268 = vector.broadcast %cst_117 : f32 to vector<2x8xf32>
    %269 = arith.divf %267, %268 : vector<2x8xf32>
    %cst_118 = arith.constant dense<0.000000e+00> : vector<2x8xf32>
    %270 = tpu.matmul %269, %266, %cst_118 {dimension_numbers = #tpu.dot_dimension_numbers<[1], [0], [0], [1], [0, 0, 1, 1], [], []>} : vector<2x8xf32>, vector<8x8xf32>, vector<2x8xf32> -> vector<2x8xf32>
    %271 = vector.shape_cast %270 : vector<2x8xf32> to vector<2x1x8xf32>
    %272 = vector.broadcast %271 : vector<2x1x8xf32> to vector<2x16x8xf32>
    %273 = arith.subf %265, %272 : vector<2x16x8xf32>
    %274 = arith.mulf %273, %273 : vector<2x16x8xf32>
    %cst_119 = arith.constant dense<0.000000e+00> : vector<2x8xf32>
    %275 = vector.multi_reduction <add>, %274, %cst_119 [1] : vector<2x16x8xf32> to vector<2x8xf32>
    %cst_120 = arith.constant 1.600000e+01 : f32
    %276 = vector.broadcast %cst_120 : f32 to vector<2x8xf32>
    %277 = arith.divf %275, %276 : vector<2x8xf32>
    %cst_121 = arith.constant dense<0.000000e+00> : vector<2x8xf32>
    %278 = tpu.matmul %277, %266, %cst_121 {dimension_numbers = #tpu.dot_dimension_numbers<[1], [0], [0], [1], [0, 0, 1, 1], [], []>} : vector<2x8xf32>, vector<8x8xf32>, vector<2x8xf32> -> vector<2x8xf32>
    %cst_122 = arith.constant 9.99999974E-6 : f32
    %279 = vector.broadcast %cst_122 : f32 to vector<2x8xf32>
    %280 = arith.addf %278, %279 : vector<2x8xf32>
    %281 = math.rsqrt %280 : vector<2x8xf32>
    %282 = vector.shape_cast %281 : vector<2x8xf32> to vector<2x1x8xf32>
    %283 = vector.broadcast %282 : vector<2x1x8xf32> to vector<2x16x8xf32>
    %284 = arith.mulf %273, %283 : vector<2x16x8xf32>
    %c208 = arith.constant 208 : index
    %c0_123 = arith.constant 0 : index
    %285 = vector.load %arg4[%c208, %c0_123] : memref<344x8xf32, #tpu.memory_space<vmem>>, vector<1x8xf32>
    %286 = vector.shape_cast %285 : vector<1x8xf32> to vector<1x1x8xf32>
    %287 = vector.broadcast %286 : vector<1x1x8xf32> to vector<2x16x8xf32>
    %288 = arith.mulf %284, %287 : vector<2x16x8xf32>
    %c216 = arith.constant 216 : index
    %c0_124 = arith.constant 0 : index
    %289 = vector.load %arg4[%c216, %c0_124] : memref<344x8xf32, #tpu.memory_space<vmem>>, vector<1x8xf32>
    %290 = vector.shape_cast %289 : vector<1x8xf32> to vector<1x1x8xf32>
    %291 = vector.broadcast %290 : vector<1x1x8xf32> to vector<2x16x8xf32>
    %292 = arith.addf %288, %291 : vector<2x16x8xf32>
    %cst_125 = arith.constant 2.000000e+01 : f32
    %293 = vector.broadcast %cst_125 : f32 to vector<2x16x8xf32>
    %294 = arith.minimumf %292, %293 : vector<2x16x8xf32>
    %295 = math.exp %294 : vector<2x16x8xf32>
    %cst_126 = arith.constant 1.000000e+00 : f32
    %296 = vector.broadcast %cst_126 : f32 to vector<2x16x8xf32>
    %297 = arith.addf %296, %295 : vector<2x16x8xf32>
    %cst_127 = arith.constant 1.000000e+00 : f32
    %298 = vector.broadcast %cst_127 : f32 to vector<2x16x8xf32>
    %299 = arith.addf %298, %295 : vector<2x16x8xf32>
    %300 = arith.mulf %297, %299 : vector<2x16x8xf32>
    %cst_128 = arith.constant 1.000000e+00 : f32
    %301 = vector.broadcast %cst_128 : f32 to vector<2x16x8xf32>
    %302 = arith.subf %300, %301 : vector<2x16x8xf32>
    %cst_129 = arith.constant 1.000000e+00 : f32
    %303 = vector.broadcast %cst_129 : f32 to vector<2x16x8xf32>
    %304 = arith.addf %300, %303 : vector<2x16x8xf32>
    %305 = tpu.reciprocal %304 {approx = true} : vector<2x16x8xf32> -> vector<2x16x8xf32>
    %306 = arith.mulf %302, %305 : vector<2x16x8xf32>
    %cst_130 = arith.constant 2.000000e+01 : f32
    %307 = vector.broadcast %cst_130 : f32 to vector<2x16x8xf32>
    %308 = arith.cmpf ogt, %292, %307 : vector<2x16x8xf32>
    %cst_131 = arith.constant 1.000000e+00 : f32
    %309 = vector.broadcast %cst_131 : f32 to vector<2x16x8xf32>
    %310 = arith.select %308, %309, %306 : vector<2x16x8xi1>, vector<2x16x8xf32>
    %311 = arith.mulf %292, %310 : vector<2x16x8xf32>
    %c288 = arith.constant 288 : index
    %c0_132 = arith.constant 0 : index
    %312 = vector.load %arg4[%c288, %c0_132] : memref<344x8xf32, #tpu.memory_space<vmem>>, vector<8x8xf32>
    %cst_133 = arith.constant dense<0.000000e+00> : vector<2x8xf32>
    %313 = tpu.matmul %48, %312, %cst_133 {dimension_numbers = #tpu.dot_dimension_numbers<[1], [0], [0], [1], [0, 0, 1, 1], [], []>} : vector<2x8xf32>, vector<8x8xf32>, vector<2x8xf32> -> vector<2x8xf32>
    %c296 = arith.constant 296 : index
    %c0_134 = arith.constant 0 : index
    %314 = vector.load %arg4[%c296, %c0_134] : memref<344x8xf32, #tpu.memory_space<vmem>>, vector<1x8xf32>
    %315 = vector.broadcast %314 : vector<1x8xf32> to vector<2x8xf32>
    %316 = arith.addf %313, %315 : vector<2x8xf32>
    %317 = vector.shape_cast %316 : vector<2x8xf32> to vector<2x1x8xf32>
    %318 = vector.broadcast %317 : vector<2x1x8xf32> to vector<2x16x8xf32>
    %319 = arith.addf %311, %318 : vector<2x16x8xf32>
    %cst_135 = arith.constant 0.000000e+00 : f32
    %320 = vector.broadcast %cst_135 : f32 to vector<2x2x8xf32>
    %321 = vector.extract_strided_slice %319 {offsets = [0, 0, 0], sizes = [2, 14, 8], strides = [1, 1, 1]} : vector<2x16x8xf32> to vector<2x14x8xf32>
    %322 = tpu.concatenate %320, %321 in 1 : vector<2x2x8xf32>, vector<2x14x8xf32> -> vector<2x16x8xf32>
    %323 = vector.shape_cast %322 : vector<2x16x8xf32> to vector<32x8xf32>
    %c224 = arith.constant 224 : index
    %c0_136 = arith.constant 0 : index
    %324 = vector.load %arg4[%c224, %c0_136] : memref<344x8xf32, #tpu.memory_space<vmem>>, vector<8x8xf32>
    %cst_137 = arith.constant dense<0.000000e+00> : vector<32x8xf32>
    %325 = tpu.matmul %323, %324, %cst_137 {dimension_numbers = #tpu.dot_dimension_numbers<[1], [0], [0], [1], [0, 0, 1, 1], [], []>} : vector<32x8xf32>, vector<8x8xf32>, vector<32x8xf32> -> vector<32x8xf32>
    %cst_138 = arith.constant 0.000000e+00 : f32
    %326 = vector.broadcast %cst_138 : f32 to vector<2x1x8xf32>
    %327 = vector.extract_strided_slice %319 {offsets = [0, 0, 0], sizes = [2, 15, 8], strides = [1, 1, 1]} : vector<2x16x8xf32> to vector<2x15x8xf32>
    %328 = tpu.concatenate %326, %327 in 1 : vector<2x1x8xf32>, vector<2x15x8xf32> -> vector<2x16x8xf32>
    %329 = vector.shape_cast %328 : vector<2x16x8xf32> to vector<32x8xf32>
    %c232 = arith.constant 232 : index
    %c0_139 = arith.constant 0 : index
    %330 = vector.load %arg4[%c232, %c0_139] : memref<344x8xf32, #tpu.memory_space<vmem>>, vector<8x8xf32>
    %cst_140 = arith.constant dense<0.000000e+00> : vector<32x8xf32>
    %331 = tpu.matmul %329, %330, %cst_140 {dimension_numbers = #tpu.dot_dimension_numbers<[1], [0], [0], [1], [0, 0, 1, 1], [], []>} : vector<32x8xf32>, vector<8x8xf32>, vector<32x8xf32> -> vector<32x8xf32>
    %332 = arith.addf %325, %331 : vector<32x8xf32>
    %333 = vector.shape_cast %319 : vector<2x16x8xf32> to vector<32x8xf32>
    %c240 = arith.constant 240 : index
    %c0_141 = arith.constant 0 : index
    %334 = vector.load %arg4[%c240, %c0_141] : memref<344x8xf32, #tpu.memory_space<vmem>>, vector<8x8xf32>
    %cst_142 = arith.constant dense<0.000000e+00> : vector<32x8xf32>
    %335 = tpu.matmul %333, %334, %cst_142 {dimension_numbers = #tpu.dot_dimension_numbers<[1], [0], [0], [1], [0, 0, 1, 1], [], []>} : vector<32x8xf32>, vector<8x8xf32>, vector<32x8xf32> -> vector<32x8xf32>
    %336 = arith.addf %332, %335 : vector<32x8xf32>
    %337 = vector.extract_strided_slice %319 {offsets = [0, 1, 0], sizes = [2, 15, 8], strides = [1, 1, 1]} : vector<2x16x8xf32> to vector<2x15x8xf32>
    %cst_143 = arith.constant 0.000000e+00 : f32
    %338 = vector.broadcast %cst_143 : f32 to vector<2x1x8xf32>
    %339 = tpu.concatenate %337, %338 in 1 : vector<2x15x8xf32>, vector<2x1x8xf32> -> vector<2x16x8xf32>
    %340 = vector.shape_cast %339 : vector<2x16x8xf32> to vector<32x8xf32>
    %c248 = arith.constant 248 : index
    %c0_144 = arith.constant 0 : index
    %341 = vector.load %arg4[%c248, %c0_144] : memref<344x8xf32, #tpu.memory_space<vmem>>, vector<8x8xf32>
    %cst_145 = arith.constant dense<0.000000e+00> : vector<32x8xf32>
    %342 = tpu.matmul %340, %341, %cst_145 {dimension_numbers = #tpu.dot_dimension_numbers<[1], [0], [0], [1], [0, 0, 1, 1], [], []>} : vector<32x8xf32>, vector<8x8xf32>, vector<32x8xf32> -> vector<32x8xf32>
    %343 = arith.addf %336, %342 : vector<32x8xf32>
    %344 = vector.extract_strided_slice %319 {offsets = [0, 2, 0], sizes = [2, 14, 8], strides = [1, 1, 1]} : vector<2x16x8xf32> to vector<2x14x8xf32>
    %cst_146 = arith.constant 0.000000e+00 : f32
    %345 = vector.broadcast %cst_146 : f32 to vector<2x2x8xf32>
    %346 = tpu.concatenate %344, %345 in 1 : vector<2x14x8xf32>, vector<2x2x8xf32> -> vector<2x16x8xf32>
    %347 = vector.shape_cast %346 : vector<2x16x8xf32> to vector<32x8xf32>
    %c256 = arith.constant 256 : index
    %c0_147 = arith.constant 0 : index
    %348 = vector.load %arg4[%c256, %c0_147] : memref<344x8xf32, #tpu.memory_space<vmem>>, vector<8x8xf32>
    %cst_148 = arith.constant dense<0.000000e+00> : vector<32x8xf32>
    %349 = tpu.matmul %347, %348, %cst_148 {dimension_numbers = #tpu.dot_dimension_numbers<[1], [0], [0], [1], [0, 0, 1, 1], [], []>} : vector<32x8xf32>, vector<8x8xf32>, vector<32x8xf32> -> vector<32x8xf32>
    %350 = arith.addf %343, %349 : vector<32x8xf32>
    %351 = vector.shape_cast %350 : vector<32x8xf32> to vector<2x16x8xf32>
    %c264 = arith.constant 264 : index
    %c0_149 = arith.constant 0 : index
    %352 = vector.load %arg4[%c264, %c0_149] : memref<344x8xf32, #tpu.memory_space<vmem>>, vector<1x8xf32>
    %353 = vector.shape_cast %352 : vector<1x8xf32> to vector<1x1x8xf32>
    %354 = vector.broadcast %353 : vector<1x1x8xf32> to vector<2x16x8xf32>
    %355 = arith.addf %351, %354 : vector<2x16x8xf32>
    %c336_150 = arith.constant 336 : index
    %c0_151 = arith.constant 0 : index
    %356 = vector.load %arg4[%c336_150, %c0_151] : memref<344x8xf32, #tpu.memory_space<vmem>>, vector<8x8xf32>
    %cst_152 = arith.constant dense<0.000000e+00> : vector<2x8xf32>
    %357 = vector.multi_reduction <add>, %355, %cst_152 [1] : vector<2x16x8xf32> to vector<2x8xf32>
    %cst_153 = arith.constant 1.600000e+01 : f32
    %358 = vector.broadcast %cst_153 : f32 to vector<2x8xf32>
    %359 = arith.divf %357, %358 : vector<2x8xf32>
    %cst_154 = arith.constant dense<0.000000e+00> : vector<2x8xf32>
    %360 = tpu.matmul %359, %356, %cst_154 {dimension_numbers = #tpu.dot_dimension_numbers<[1], [0], [0], [1], [0, 0, 1, 1], [], []>} : vector<2x8xf32>, vector<8x8xf32>, vector<2x8xf32> -> vector<2x8xf32>
    %361 = vector.shape_cast %360 : vector<2x8xf32> to vector<2x1x8xf32>
    %362 = vector.broadcast %361 : vector<2x1x8xf32> to vector<2x16x8xf32>
    %363 = arith.subf %355, %362 : vector<2x16x8xf32>
    %364 = arith.mulf %363, %363 : vector<2x16x8xf32>
    %cst_155 = arith.constant dense<0.000000e+00> : vector<2x8xf32>
    %365 = vector.multi_reduction <add>, %364, %cst_155 [1] : vector<2x16x8xf32> to vector<2x8xf32>
    %cst_156 = arith.constant 1.600000e+01 : f32
    %366 = vector.broadcast %cst_156 : f32 to vector<2x8xf32>
    %367 = arith.divf %365, %366 : vector<2x8xf32>
    %cst_157 = arith.constant dense<0.000000e+00> : vector<2x8xf32>
    %368 = tpu.matmul %367, %356, %cst_157 {dimension_numbers = #tpu.dot_dimension_numbers<[1], [0], [0], [1], [0, 0, 1, 1], [], []>} : vector<2x8xf32>, vector<8x8xf32>, vector<2x8xf32> -> vector<2x8xf32>
    %cst_158 = arith.constant 9.99999974E-6 : f32
    %369 = vector.broadcast %cst_158 : f32 to vector<2x8xf32>
    %370 = arith.addf %368, %369 : vector<2x8xf32>
    %371 = math.rsqrt %370 : vector<2x8xf32>
    %372 = vector.shape_cast %371 : vector<2x8xf32> to vector<2x1x8xf32>
    %373 = vector.broadcast %372 : vector<2x1x8xf32> to vector<2x16x8xf32>
    %374 = arith.mulf %363, %373 : vector<2x16x8xf32>
    %c272 = arith.constant 272 : index
    %c0_159 = arith.constant 0 : index
    %375 = vector.load %arg4[%c272, %c0_159] : memref<344x8xf32, #tpu.memory_space<vmem>>, vector<1x8xf32>
    %376 = vector.shape_cast %375 : vector<1x8xf32> to vector<1x1x8xf32>
    %377 = vector.broadcast %376 : vector<1x1x8xf32> to vector<2x16x8xf32>
    %378 = arith.mulf %374, %377 : vector<2x16x8xf32>
    %c280 = arith.constant 280 : index
    %c0_160 = arith.constant 0 : index
    %379 = vector.load %arg4[%c280, %c0_160] : memref<344x8xf32, #tpu.memory_space<vmem>>, vector<1x8xf32>
    %380 = vector.shape_cast %379 : vector<1x8xf32> to vector<1x1x8xf32>
    %381 = vector.broadcast %380 : vector<1x1x8xf32> to vector<2x16x8xf32>
    %382 = arith.addf %378, %381 : vector<2x16x8xf32>
    %cst_161 = arith.constant 2.000000e+01 : f32
    %383 = vector.broadcast %cst_161 : f32 to vector<2x16x8xf32>
    %384 = arith.minimumf %382, %383 : vector<2x16x8xf32>
    %385 = math.exp %384 : vector<2x16x8xf32>
    %cst_162 = arith.constant 1.000000e+00 : f32
    %386 = vector.broadcast %cst_162 : f32 to vector<2x16x8xf32>
    %387 = arith.addf %386, %385 : vector<2x16x8xf32>
    %cst_163 = arith.constant 1.000000e+00 : f32
    %388 = vector.broadcast %cst_163 : f32 to vector<2x16x8xf32>
    %389 = arith.addf %388, %385 : vector<2x16x8xf32>
    %390 = arith.mulf %387, %389 : vector<2x16x8xf32>
    %cst_164 = arith.constant 1.000000e+00 : f32
    %391 = vector.broadcast %cst_164 : f32 to vector<2x16x8xf32>
    %392 = arith.subf %390, %391 : vector<2x16x8xf32>
    %cst_165 = arith.constant 1.000000e+00 : f32
    %393 = vector.broadcast %cst_165 : f32 to vector<2x16x8xf32>
    %394 = arith.addf %390, %393 : vector<2x16x8xf32>
    %395 = tpu.reciprocal %394 {approx = true} : vector<2x16x8xf32> -> vector<2x16x8xf32>
    %396 = arith.mulf %392, %395 : vector<2x16x8xf32>
    %cst_166 = arith.constant 2.000000e+01 : f32
    %397 = vector.broadcast %cst_166 : f32 to vector<2x16x8xf32>
    %398 = arith.cmpf ogt, %382, %397 : vector<2x16x8xf32>
    %cst_167 = arith.constant 1.000000e+00 : f32
    %399 = vector.broadcast %cst_167 : f32 to vector<2x16x8xf32>
    %400 = arith.select %398, %399, %396 : vector<2x16x8xi1>, vector<2x16x8xf32>
    %401 = arith.mulf %382, %400 : vector<2x16x8xf32>
    %402 = arith.addf %401, %229 : vector<2x16x8xf32>
    %cst_168 = arith.constant 0.000000e+00 : f32
    %403 = vector.broadcast %cst_168 : f32 to vector<2x1x8xf32>
    %404 = vector.extract_strided_slice %402 {offsets = [0, 0, 0], sizes = [2, 15, 8], strides = [1, 1, 1]} : vector<2x16x8xf32> to vector<2x15x8xf32>
    %405 = tpu.concatenate %403, %404 in 1 : vector<2x1x8xf32>, vector<2x15x8xf32> -> vector<2x16x8xf32>
    %406 = vector.shape_cast %405 : vector<2x16x8xf32> to vector<32x8xf32>
    %c304 = arith.constant 304 : index
    %c0_169 = arith.constant 0 : index
    %407 = vector.load %arg4[%c304, %c0_169] : memref<344x8xf32, #tpu.memory_space<vmem>>, vector<8x8xf32>
    %cst_170 = arith.constant dense<0.000000e+00> : vector<32x8xf32>
    %408 = tpu.matmul %406, %407, %cst_170 {dimension_numbers = #tpu.dot_dimension_numbers<[1], [0], [0], [1], [0, 0, 1, 1], [], []>} : vector<32x8xf32>, vector<8x8xf32>, vector<32x8xf32> -> vector<32x8xf32>
    %409 = vector.shape_cast %402 : vector<2x16x8xf32> to vector<32x8xf32>
    %c312 = arith.constant 312 : index
    %c0_171 = arith.constant 0 : index
    %410 = vector.load %arg4[%c312, %c0_171] : memref<344x8xf32, #tpu.memory_space<vmem>>, vector<8x8xf32>
    %cst_172 = arith.constant dense<0.000000e+00> : vector<32x8xf32>
    %411 = tpu.matmul %409, %410, %cst_172 {dimension_numbers = #tpu.dot_dimension_numbers<[1], [0], [0], [1], [0, 0, 1, 1], [], []>} : vector<32x8xf32>, vector<8x8xf32>, vector<32x8xf32> -> vector<32x8xf32>
    %412 = arith.addf %408, %411 : vector<32x8xf32>
    %413 = vector.extract_strided_slice %402 {offsets = [0, 1, 0], sizes = [2, 15, 8], strides = [1, 1, 1]} : vector<2x16x8xf32> to vector<2x15x8xf32>
    %cst_173 = arith.constant 0.000000e+00 : f32
    %414 = vector.broadcast %cst_173 : f32 to vector<2x1x8xf32>
    %415 = tpu.concatenate %413, %414 in 1 : vector<2x15x8xf32>, vector<2x1x8xf32> -> vector<2x16x8xf32>
    %416 = vector.shape_cast %415 : vector<2x16x8xf32> to vector<32x8xf32>
    %c320 = arith.constant 320 : index
    %c0_174 = arith.constant 0 : index
    %417 = vector.load %arg4[%c320, %c0_174] : memref<344x8xf32, #tpu.memory_space<vmem>>, vector<8x8xf32>
    %cst_175 = arith.constant dense<0.000000e+00> : vector<32x8xf32>
    %418 = tpu.matmul %416, %417, %cst_175 {dimension_numbers = #tpu.dot_dimension_numbers<[1], [0], [0], [1], [0, 0, 1, 1], [], []>} : vector<32x8xf32>, vector<8x8xf32>, vector<32x8xf32> -> vector<32x8xf32>
    %419 = arith.addf %412, %418 : vector<32x8xf32>
    %420 = vector.shape_cast %419 : vector<32x8xf32> to vector<2x16x8xf32>
    %c328 = arith.constant 328 : index
    %c0_176 = arith.constant 0 : index
    %421 = vector.load %arg4[%c328, %c0_176] : memref<344x8xf32, #tpu.memory_space<vmem>>, vector<1x8xf32>
    %422 = vector.shape_cast %421 : vector<1x8xf32> to vector<1x1x8xf32>
    %423 = vector.broadcast %422 : vector<1x1x8xf32> to vector<2x16x8xf32>
    %424 = arith.addf %420, %423 : vector<2x16x8xf32>
    %c0_177 = arith.constant 0 : index
    %c0_178 = arith.constant 0 : index
    %425 = vector.load %arg8[%c0_177, %c0_178] : memref<16x32xf32, #tpu.memory_space<vmem>>, vector<16x32xf32>
    %426 = vector.shape_cast %424 : vector<2x16x8xf32> to vector<32x8xf32>
    %cst_179 = arith.constant dense<0.000000e+00> : vector<16x8xf32>
    %427 = tpu.matmul %425, %426, %cst_179 {dimension_numbers = #tpu.dot_dimension_numbers<[1], [0], [0], [1], [0, 0, 1, 1], [], []>} : vector<16x32xf32>, vector<32x8xf32>, vector<16x8xf32> -> vector<16x8xf32>
    %428 = vector.shape_cast %427 : vector<16x8xf32> to vector<2x8x8xf32>
    %cst_180 = arith.constant 0.000000e+00 : f32
    %429 = vector.broadcast %cst_180 : f32 to vector<2x2x8xf32>
    %430 = vector.extract_strided_slice %428 {offsets = [0, 0, 0], sizes = [2, 6, 8], strides = [1, 1, 1]} : vector<2x8x8xf32> to vector<2x6x8xf32>
    %431 = tpu.concatenate %429, %430 in 1 : vector<2x2x8xf32>, vector<2x6x8xf32> -> vector<2x8x8xf32>
    %432 = vector.shape_cast %431 : vector<2x8x8xf32> to vector<16x8xf32>
    %c0_181 = arith.constant 0 : index
    %c0_182 = arith.constant 0 : index
    %433 = vector.load %arg5[%c0_181, %c0_182] : memref<496x16xf32, #tpu.memory_space<vmem>>, vector<8x16xf32>
    %cst_183 = arith.constant dense<0.000000e+00> : vector<16x16xf32>
    %434 = tpu.matmul %432, %433, %cst_183 {dimension_numbers = #tpu.dot_dimension_numbers<[1], [0], [0], [1], [0, 0, 1, 1], [], []>} : vector<16x8xf32>, vector<8x16xf32>, vector<16x16xf32> -> vector<16x16xf32>
    %cst_184 = arith.constant 0.000000e+00 : f32
    %435 = vector.broadcast %cst_184 : f32 to vector<2x1x8xf32>
    %436 = vector.extract_strided_slice %428 {offsets = [0, 0, 0], sizes = [2, 7, 8], strides = [1, 1, 1]} : vector<2x8x8xf32> to vector<2x7x8xf32>
    %437 = tpu.concatenate %435, %436 in 1 : vector<2x1x8xf32>, vector<2x7x8xf32> -> vector<2x8x8xf32>
    %438 = vector.shape_cast %437 : vector<2x8x8xf32> to vector<16x8xf32>
    %c8_185 = arith.constant 8 : index
    %c0_186 = arith.constant 0 : index
    %439 = vector.load %arg5[%c8_185, %c0_186] : memref<496x16xf32, #tpu.memory_space<vmem>>, vector<8x16xf32>
    %cst_187 = arith.constant dense<0.000000e+00> : vector<16x16xf32>
    %440 = tpu.matmul %438, %439, %cst_187 {dimension_numbers = #tpu.dot_dimension_numbers<[1], [0], [0], [1], [0, 0, 1, 1], [], []>} : vector<16x8xf32>, vector<8x16xf32>, vector<16x16xf32> -> vector<16x16xf32>
    %441 = arith.addf %434, %440 : vector<16x16xf32>
    %442 = vector.shape_cast %428 : vector<2x8x8xf32> to vector<16x8xf32>
    %c16_188 = arith.constant 16 : index
    %c0_189 = arith.constant 0 : index
    %443 = vector.load %arg5[%c16_188, %c0_189] : memref<496x16xf32, #tpu.memory_space<vmem>>, vector<8x16xf32>
    %cst_190 = arith.constant dense<0.000000e+00> : vector<16x16xf32>
    %444 = tpu.matmul %442, %443, %cst_190 {dimension_numbers = #tpu.dot_dimension_numbers<[1], [0], [0], [1], [0, 0, 1, 1], [], []>} : vector<16x8xf32>, vector<8x16xf32>, vector<16x16xf32> -> vector<16x16xf32>
    %445 = arith.addf %441, %444 : vector<16x16xf32>
    %446 = vector.extract_strided_slice %428 {offsets = [0, 1, 0], sizes = [2, 7, 8], strides = [1, 1, 1]} : vector<2x8x8xf32> to vector<2x7x8xf32>
    %cst_191 = arith.constant 0.000000e+00 : f32
    %447 = vector.broadcast %cst_191 : f32 to vector<2x1x8xf32>
    %448 = tpu.concatenate %446, %447 in 1 : vector<2x7x8xf32>, vector<2x1x8xf32> -> vector<2x8x8xf32>
    %449 = vector.shape_cast %448 : vector<2x8x8xf32> to vector<16x8xf32>
    %c24_192 = arith.constant 24 : index
    %c0_193 = arith.constant 0 : index
    %450 = vector.load %arg5[%c24_192, %c0_193] : memref<496x16xf32, #tpu.memory_space<vmem>>, vector<8x16xf32>
    %cst_194 = arith.constant dense<0.000000e+00> : vector<16x16xf32>
    %451 = tpu.matmul %449, %450, %cst_194 {dimension_numbers = #tpu.dot_dimension_numbers<[1], [0], [0], [1], [0, 0, 1, 1], [], []>} : vector<16x8xf32>, vector<8x16xf32>, vector<16x16xf32> -> vector<16x16xf32>
    %452 = arith.addf %445, %451 : vector<16x16xf32>
    %453 = vector.extract_strided_slice %428 {offsets = [0, 2, 0], sizes = [2, 6, 8], strides = [1, 1, 1]} : vector<2x8x8xf32> to vector<2x6x8xf32>
    %cst_195 = arith.constant 0.000000e+00 : f32
    %454 = vector.broadcast %cst_195 : f32 to vector<2x2x8xf32>
    %455 = tpu.concatenate %453, %454 in 1 : vector<2x6x8xf32>, vector<2x2x8xf32> -> vector<2x8x8xf32>
    %456 = vector.shape_cast %455 : vector<2x8x8xf32> to vector<16x8xf32>
    %c32_196 = arith.constant 32 : index
    %c0_197 = arith.constant 0 : index
    %457 = vector.load %arg5[%c32_196, %c0_197] : memref<496x16xf32, #tpu.memory_space<vmem>>, vector<8x16xf32>
    %cst_198 = arith.constant dense<0.000000e+00> : vector<16x16xf32>
    %458 = tpu.matmul %456, %457, %cst_198 {dimension_numbers = #tpu.dot_dimension_numbers<[1], [0], [0], [1], [0, 0, 1, 1], [], []>} : vector<16x8xf32>, vector<8x16xf32>, vector<16x16xf32> -> vector<16x16xf32>
    %459 = arith.addf %452, %458 : vector<16x16xf32>
    %460 = vector.shape_cast %459 : vector<16x16xf32> to vector<2x8x16xf32>
    %c40_199 = arith.constant 40 : index
    %c0_200 = arith.constant 0 : index
    %461 = vector.load %arg5[%c40_199, %c0_200] : memref<496x16xf32, #tpu.memory_space<vmem>>, vector<1x16xf32>
    %462 = vector.shape_cast %461 : vector<1x16xf32> to vector<1x1x16xf32>
    %463 = vector.broadcast %462 : vector<1x1x16xf32> to vector<2x8x16xf32>
    %464 = arith.addf %460, %463 : vector<2x8x16xf32>
    %c480 = arith.constant 480 : index
    %c0_201 = arith.constant 0 : index
    %465 = vector.load %arg5[%c480, %c0_201] : memref<496x16xf32, #tpu.memory_space<vmem>>, vector<16x16xf32>
    %cst_202 = arith.constant dense<0.000000e+00> : vector<2x16xf32>
    %466 = vector.multi_reduction <add>, %464, %cst_202 [1] : vector<2x8x16xf32> to vector<2x16xf32>
    %cst_203 = arith.constant 8.000000e+00 : f32
    %467 = vector.broadcast %cst_203 : f32 to vector<2x16xf32>
    %468 = arith.divf %466, %467 : vector<2x16xf32>
    %cst_204 = arith.constant dense<0.000000e+00> : vector<2x16xf32>
    %469 = tpu.matmul %468, %465, %cst_204 {dimension_numbers = #tpu.dot_dimension_numbers<[1], [0], [0], [1], [0, 0, 1, 1], [], []>} : vector<2x16xf32>, vector<16x16xf32>, vector<2x16xf32> -> vector<2x16xf32>
    %470 = vector.shape_cast %469 : vector<2x16xf32> to vector<2x1x16xf32>
    %471 = vector.broadcast %470 : vector<2x1x16xf32> to vector<2x8x16xf32>
    %472 = arith.subf %464, %471 : vector<2x8x16xf32>
    %473 = arith.mulf %472, %472 : vector<2x8x16xf32>
    %cst_205 = arith.constant dense<0.000000e+00> : vector<2x16xf32>
    %474 = vector.multi_reduction <add>, %473, %cst_205 [1] : vector<2x8x16xf32> to vector<2x16xf32>
    %cst_206 = arith.constant 8.000000e+00 : f32
    %475 = vector.broadcast %cst_206 : f32 to vector<2x16xf32>
    %476 = arith.divf %474, %475 : vector<2x16xf32>
    %cst_207 = arith.constant dense<0.000000e+00> : vector<2x16xf32>
    %477 = tpu.matmul %476, %465, %cst_207 {dimension_numbers = #tpu.dot_dimension_numbers<[1], [0], [0], [1], [0, 0, 1, 1], [], []>} : vector<2x16xf32>, vector<16x16xf32>, vector<2x16xf32> -> vector<2x16xf32>
    %cst_208 = arith.constant 9.99999974E-6 : f32
    %478 = vector.broadcast %cst_208 : f32 to vector<2x16xf32>
    %479 = arith.addf %477, %478 : vector<2x16xf32>
    %480 = math.rsqrt %479 : vector<2x16xf32>
    %481 = vector.shape_cast %480 : vector<2x16xf32> to vector<2x1x16xf32>
    %482 = vector.broadcast %481 : vector<2x1x16xf32> to vector<2x8x16xf32>
    %483 = arith.mulf %472, %482 : vector<2x8x16xf32>
    %c48_209 = arith.constant 48 : index
    %c0_210 = arith.constant 0 : index
    %484 = vector.load %arg5[%c48_209, %c0_210] : memref<496x16xf32, #tpu.memory_space<vmem>>, vector<1x16xf32>
    %485 = vector.shape_cast %484 : vector<1x16xf32> to vector<1x1x16xf32>
    %486 = vector.broadcast %485 : vector<1x1x16xf32> to vector<2x8x16xf32>
    %487 = arith.mulf %483, %486 : vector<2x8x16xf32>
    %c56_211 = arith.constant 56 : index
    %c0_212 = arith.constant 0 : index
    %488 = vector.load %arg5[%c56_211, %c0_212] : memref<496x16xf32, #tpu.memory_space<vmem>>, vector<1x16xf32>
    %489 = vector.shape_cast %488 : vector<1x16xf32> to vector<1x1x16xf32>
    %490 = vector.broadcast %489 : vector<1x1x16xf32> to vector<2x8x16xf32>
    %491 = arith.addf %487, %490 : vector<2x8x16xf32>
    %cst_213 = arith.constant 2.000000e+01 : f32
    %492 = vector.broadcast %cst_213 : f32 to vector<2x8x16xf32>
    %493 = arith.minimumf %491, %492 : vector<2x8x16xf32>
    %494 = math.exp %493 : vector<2x8x16xf32>
    %cst_214 = arith.constant 1.000000e+00 : f32
    %495 = vector.broadcast %cst_214 : f32 to vector<2x8x16xf32>
    %496 = arith.addf %495, %494 : vector<2x8x16xf32>
    %cst_215 = arith.constant 1.000000e+00 : f32
    %497 = vector.broadcast %cst_215 : f32 to vector<2x8x16xf32>
    %498 = arith.addf %497, %494 : vector<2x8x16xf32>
    %499 = arith.mulf %496, %498 : vector<2x8x16xf32>
    %cst_216 = arith.constant 1.000000e+00 : f32
    %500 = vector.broadcast %cst_216 : f32 to vector<2x8x16xf32>
    %501 = arith.subf %499, %500 : vector<2x8x16xf32>
    %cst_217 = arith.constant 1.000000e+00 : f32
    %502 = vector.broadcast %cst_217 : f32 to vector<2x8x16xf32>
    %503 = arith.addf %499, %502 : vector<2x8x16xf32>
    %504 = tpu.reciprocal %503 {approx = true} : vector<2x8x16xf32> -> vector<2x8x16xf32>
    %505 = arith.mulf %501, %504 : vector<2x8x16xf32>
    %cst_218 = arith.constant 2.000000e+01 : f32
    %506 = vector.broadcast %cst_218 : f32 to vector<2x8x16xf32>
    %507 = arith.cmpf ogt, %491, %506 : vector<2x8x16xf32>
    %cst_219 = arith.constant 1.000000e+00 : f32
    %508 = vector.broadcast %cst_219 : f32 to vector<2x8x16xf32>
    %509 = arith.select %507, %508, %505 : vector<2x8x16xi1>, vector<2x8x16xf32>
    %510 = arith.mulf %491, %509 : vector<2x8x16xf32>
    %c168_220 = arith.constant 168 : index
    %c0_221 = arith.constant 0 : index
    %511 = vector.load %arg5[%c168_220, %c0_221] : memref<496x16xf32, #tpu.memory_space<vmem>>, vector<8x16xf32>
    %cst_222 = arith.constant dense<0.000000e+00> : vector<2x16xf32>
    %512 = tpu.matmul %48, %511, %cst_222 {dimension_numbers = #tpu.dot_dimension_numbers<[1], [0], [0], [1], [0, 0, 1, 1], [], []>} : vector<2x8xf32>, vector<8x16xf32>, vector<2x16xf32> -> vector<2x16xf32>
    %c176_223 = arith.constant 176 : index
    %c0_224 = arith.constant 0 : index
    %513 = vector.load %arg5[%c176_223, %c0_224] : memref<496x16xf32, #tpu.memory_space<vmem>>, vector<1x16xf32>
    %514 = vector.broadcast %513 : vector<1x16xf32> to vector<2x16xf32>
    %515 = arith.addf %512, %514 : vector<2x16xf32>
    %516 = vector.shape_cast %515 : vector<2x16xf32> to vector<2x1x16xf32>
    %517 = vector.broadcast %516 : vector<2x1x16xf32> to vector<2x8x16xf32>
    %518 = arith.addf %510, %517 : vector<2x8x16xf32>
    %cst_225 = arith.constant 0.000000e+00 : f32
    %519 = vector.broadcast %cst_225 : f32 to vector<2x2x16xf32>
    %520 = vector.extract_strided_slice %518 {offsets = [0, 0, 0], sizes = [2, 6, 16], strides = [1, 1, 1]} : vector<2x8x16xf32> to vector<2x6x16xf32>
    %521 = tpu.concatenate %519, %520 in 1 : vector<2x2x16xf32>, vector<2x6x16xf32> -> vector<2x8x16xf32>
    %522 = vector.shape_cast %521 : vector<2x8x16xf32> to vector<16x16xf32>
    %c64_226 = arith.constant 64 : index
    %c0_227 = arith.constant 0 : index
    %523 = vector.load %arg5[%c64_226, %c0_227] : memref<496x16xf32, #tpu.memory_space<vmem>>, vector<16x16xf32>
    %cst_228 = arith.constant dense<0.000000e+00> : vector<16x16xf32>
    %524 = tpu.matmul %522, %523, %cst_228 {dimension_numbers = #tpu.dot_dimension_numbers<[1], [0], [0], [1], [0, 0, 1, 1], [], []>} : vector<16x16xf32>, vector<16x16xf32>, vector<16x16xf32> -> vector<16x16xf32>
    %cst_229 = arith.constant 0.000000e+00 : f32
    %525 = vector.broadcast %cst_229 : f32 to vector<2x1x16xf32>
    %526 = vector.extract_strided_slice %518 {offsets = [0, 0, 0], sizes = [2, 7, 16], strides = [1, 1, 1]} : vector<2x8x16xf32> to vector<2x7x16xf32>
    %527 = tpu.concatenate %525, %526 in 1 : vector<2x1x16xf32>, vector<2x7x16xf32> -> vector<2x8x16xf32>
    %528 = vector.shape_cast %527 : vector<2x8x16xf32> to vector<16x16xf32>
    %c80_230 = arith.constant 80 : index
    %c0_231 = arith.constant 0 : index
    %529 = vector.load %arg5[%c80_230, %c0_231] : memref<496x16xf32, #tpu.memory_space<vmem>>, vector<16x16xf32>
    %cst_232 = arith.constant dense<0.000000e+00> : vector<16x16xf32>
    %530 = tpu.matmul %528, %529, %cst_232 {dimension_numbers = #tpu.dot_dimension_numbers<[1], [0], [0], [1], [0, 0, 1, 1], [], []>} : vector<16x16xf32>, vector<16x16xf32>, vector<16x16xf32> -> vector<16x16xf32>
    %531 = arith.addf %524, %530 : vector<16x16xf32>
    %532 = vector.shape_cast %518 : vector<2x8x16xf32> to vector<16x16xf32>
    %c96_233 = arith.constant 96 : index
    %c0_234 = arith.constant 0 : index
    %533 = vector.load %arg5[%c96_233, %c0_234] : memref<496x16xf32, #tpu.memory_space<vmem>>, vector<16x16xf32>
    %cst_235 = arith.constant dense<0.000000e+00> : vector<16x16xf32>
    %534 = tpu.matmul %532, %533, %cst_235 {dimension_numbers = #tpu.dot_dimension_numbers<[1], [0], [0], [1], [0, 0, 1, 1], [], []>} : vector<16x16xf32>, vector<16x16xf32>, vector<16x16xf32> -> vector<16x16xf32>
    %535 = arith.addf %531, %534 : vector<16x16xf32>
    %536 = vector.extract_strided_slice %518 {offsets = [0, 1, 0], sizes = [2, 7, 16], strides = [1, 1, 1]} : vector<2x8x16xf32> to vector<2x7x16xf32>
    %cst_236 = arith.constant 0.000000e+00 : f32
    %537 = vector.broadcast %cst_236 : f32 to vector<2x1x16xf32>
    %538 = tpu.concatenate %536, %537 in 1 : vector<2x7x16xf32>, vector<2x1x16xf32> -> vector<2x8x16xf32>
    %539 = vector.shape_cast %538 : vector<2x8x16xf32> to vector<16x16xf32>
    %c112_237 = arith.constant 112 : index
    %c0_238 = arith.constant 0 : index
    %540 = vector.load %arg5[%c112_237, %c0_238] : memref<496x16xf32, #tpu.memory_space<vmem>>, vector<16x16xf32>
    %cst_239 = arith.constant dense<0.000000e+00> : vector<16x16xf32>
    %541 = tpu.matmul %539, %540, %cst_239 {dimension_numbers = #tpu.dot_dimension_numbers<[1], [0], [0], [1], [0, 0, 1, 1], [], []>} : vector<16x16xf32>, vector<16x16xf32>, vector<16x16xf32> -> vector<16x16xf32>
    %542 = arith.addf %535, %541 : vector<16x16xf32>
    %543 = vector.extract_strided_slice %518 {offsets = [0, 2, 0], sizes = [2, 6, 16], strides = [1, 1, 1]} : vector<2x8x16xf32> to vector<2x6x16xf32>
    %cst_240 = arith.constant 0.000000e+00 : f32
    %544 = vector.broadcast %cst_240 : f32 to vector<2x2x16xf32>
    %545 = tpu.concatenate %543, %544 in 1 : vector<2x6x16xf32>, vector<2x2x16xf32> -> vector<2x8x16xf32>
    %546 = vector.shape_cast %545 : vector<2x8x16xf32> to vector<16x16xf32>
    %c128_241 = arith.constant 128 : index
    %c0_242 = arith.constant 0 : index
    %547 = vector.load %arg5[%c128_241, %c0_242] : memref<496x16xf32, #tpu.memory_space<vmem>>, vector<16x16xf32>
    %cst_243 = arith.constant dense<0.000000e+00> : vector<16x16xf32>
    %548 = tpu.matmul %546, %547, %cst_243 {dimension_numbers = #tpu.dot_dimension_numbers<[1], [0], [0], [1], [0, 0, 1, 1], [], []>} : vector<16x16xf32>, vector<16x16xf32>, vector<16x16xf32> -> vector<16x16xf32>
    %549 = arith.addf %542, %548 : vector<16x16xf32>
    %550 = vector.shape_cast %549 : vector<16x16xf32> to vector<2x8x16xf32>
    %c144_244 = arith.constant 144 : index
    %c0_245 = arith.constant 0 : index
    %551 = vector.load %arg5[%c144_244, %c0_245] : memref<496x16xf32, #tpu.memory_space<vmem>>, vector<1x16xf32>
    %552 = vector.shape_cast %551 : vector<1x16xf32> to vector<1x1x16xf32>
    %553 = vector.broadcast %552 : vector<1x1x16xf32> to vector<2x8x16xf32>
    %554 = arith.addf %550, %553 : vector<2x8x16xf32>
    %c480_246 = arith.constant 480 : index
    %c0_247 = arith.constant 0 : index
    %555 = vector.load %arg5[%c480_246, %c0_247] : memref<496x16xf32, #tpu.memory_space<vmem>>, vector<16x16xf32>
    %cst_248 = arith.constant dense<0.000000e+00> : vector<2x16xf32>
    %556 = vector.multi_reduction <add>, %554, %cst_248 [1] : vector<2x8x16xf32> to vector<2x16xf32>
    %cst_249 = arith.constant 8.000000e+00 : f32
    %557 = vector.broadcast %cst_249 : f32 to vector<2x16xf32>
    %558 = arith.divf %556, %557 : vector<2x16xf32>
    %cst_250 = arith.constant dense<0.000000e+00> : vector<2x16xf32>
    %559 = tpu.matmul %558, %555, %cst_250 {dimension_numbers = #tpu.dot_dimension_numbers<[1], [0], [0], [1], [0, 0, 1, 1], [], []>} : vector<2x16xf32>, vector<16x16xf32>, vector<2x16xf32> -> vector<2x16xf32>
    %560 = vector.shape_cast %559 : vector<2x16xf32> to vector<2x1x16xf32>
    %561 = vector.broadcast %560 : vector<2x1x16xf32> to vector<2x8x16xf32>
    %562 = arith.subf %554, %561 : vector<2x8x16xf32>
    %563 = arith.mulf %562, %562 : vector<2x8x16xf32>
    %cst_251 = arith.constant dense<0.000000e+00> : vector<2x16xf32>
    %564 = vector.multi_reduction <add>, %563, %cst_251 [1] : vector<2x8x16xf32> to vector<2x16xf32>
    %cst_252 = arith.constant 8.000000e+00 : f32
    %565 = vector.broadcast %cst_252 : f32 to vector<2x16xf32>
    %566 = arith.divf %564, %565 : vector<2x16xf32>
    %cst_253 = arith.constant dense<0.000000e+00> : vector<2x16xf32>
    %567 = tpu.matmul %566, %555, %cst_253 {dimension_numbers = #tpu.dot_dimension_numbers<[1], [0], [0], [1], [0, 0, 1, 1], [], []>} : vector<2x16xf32>, vector<16x16xf32>, vector<2x16xf32> -> vector<2x16xf32>
    %cst_254 = arith.constant 9.99999974E-6 : f32
    %568 = vector.broadcast %cst_254 : f32 to vector<2x16xf32>
    %569 = arith.addf %567, %568 : vector<2x16xf32>
    %570 = math.rsqrt %569 : vector<2x16xf32>
    %571 = vector.shape_cast %570 : vector<2x16xf32> to vector<2x1x16xf32>
    %572 = vector.broadcast %571 : vector<2x1x16xf32> to vector<2x8x16xf32>
    %573 = arith.mulf %562, %572 : vector<2x8x16xf32>
    %c152_255 = arith.constant 152 : index
    %c0_256 = arith.constant 0 : index
    %574 = vector.load %arg5[%c152_255, %c0_256] : memref<496x16xf32, #tpu.memory_space<vmem>>, vector<1x16xf32>
    %575 = vector.shape_cast %574 : vector<1x16xf32> to vector<1x1x16xf32>
    %576 = vector.broadcast %575 : vector<1x1x16xf32> to vector<2x8x16xf32>
    %577 = arith.mulf %573, %576 : vector<2x8x16xf32>
    %c160_257 = arith.constant 160 : index
    %c0_258 = arith.constant 0 : index
    %578 = vector.load %arg5[%c160_257, %c0_258] : memref<496x16xf32, #tpu.memory_space<vmem>>, vector<1x16xf32>
    %579 = vector.shape_cast %578 : vector<1x16xf32> to vector<1x1x16xf32>
    %580 = vector.broadcast %579 : vector<1x1x16xf32> to vector<2x8x16xf32>
    %581 = arith.addf %577, %580 : vector<2x8x16xf32>
    %cst_259 = arith.constant 2.000000e+01 : f32
    %582 = vector.broadcast %cst_259 : f32 to vector<2x8x16xf32>
    %583 = arith.minimumf %581, %582 : vector<2x8x16xf32>
    %584 = math.exp %583 : vector<2x8x16xf32>
    %cst_260 = arith.constant 1.000000e+00 : f32
    %585 = vector.broadcast %cst_260 : f32 to vector<2x8x16xf32>
    %586 = arith.addf %585, %584 : vector<2x8x16xf32>
    %cst_261 = arith.constant 1.000000e+00 : f32
    %587 = vector.broadcast %cst_261 : f32 to vector<2x8x16xf32>
    %588 = arith.addf %587, %584 : vector<2x8x16xf32>
    %589 = arith.mulf %586, %588 : vector<2x8x16xf32>
    %cst_262 = arith.constant 1.000000e+00 : f32
    %590 = vector.broadcast %cst_262 : f32 to vector<2x8x16xf32>
    %591 = arith.subf %589, %590 : vector<2x8x16xf32>
    %cst_263 = arith.constant 1.000000e+00 : f32
    %592 = vector.broadcast %cst_263 : f32 to vector<2x8x16xf32>
    %593 = arith.addf %589, %592 : vector<2x8x16xf32>
    %594 = tpu.reciprocal %593 {approx = true} : vector<2x8x16xf32> -> vector<2x8x16xf32>
    %595 = arith.mulf %591, %594 : vector<2x8x16xf32>
    %cst_264 = arith.constant 2.000000e+01 : f32
    %596 = vector.broadcast %cst_264 : f32 to vector<2x8x16xf32>
    %597 = arith.cmpf ogt, %581, %596 : vector<2x8x16xf32>
    %cst_265 = arith.constant 1.000000e+00 : f32
    %598 = vector.broadcast %cst_265 : f32 to vector<2x8x16xf32>
    %599 = arith.select %597, %598, %595 : vector<2x8x16xi1>, vector<2x8x16xf32>
    %600 = arith.mulf %581, %599 : vector<2x8x16xf32>
    %601 = vector.shape_cast %428 : vector<2x8x8xf32> to vector<16x8xf32>
    %c184_266 = arith.constant 184 : index
    %c0_267 = arith.constant 0 : index
    %602 = vector.load %arg5[%c184_266, %c0_267] : memref<496x16xf32, #tpu.memory_space<vmem>>, vector<8x16xf32>
    %cst_268 = arith.constant dense<0.000000e+00> : vector<16x16xf32>
    %603 = tpu.matmul %601, %602, %cst_268 {dimension_numbers = #tpu.dot_dimension_numbers<[1], [0], [0], [1], [0, 0, 1, 1], [], []>} : vector<16x8xf32>, vector<8x16xf32>, vector<16x16xf32> -> vector<16x16xf32>
    %c192_269 = arith.constant 192 : index
    %c0_270 = arith.constant 0 : index
    %604 = vector.load %arg5[%c192_269, %c0_270] : memref<496x16xf32, #tpu.memory_space<vmem>>, vector<1x16xf32>
    %605 = vector.broadcast %604 : vector<1x16xf32> to vector<16x16xf32>
    %606 = arith.addf %603, %605 : vector<16x16xf32>
    %607 = vector.shape_cast %606 : vector<16x16xf32> to vector<2x8x16xf32>
    %608 = arith.addf %600, %607 : vector<2x8x16xf32>
    %cst_271 = arith.constant 0.000000e+00 : f32
    %609 = vector.broadcast %cst_271 : f32 to vector<2x2x16xf32>
    %610 = vector.extract_strided_slice %608 {offsets = [0, 0, 0], sizes = [2, 6, 16], strides = [1, 1, 1]} : vector<2x8x16xf32> to vector<2x6x16xf32>
    %611 = tpu.concatenate %609, %610 in 1 : vector<2x2x16xf32>, vector<2x6x16xf32> -> vector<2x8x16xf32>
    %612 = vector.shape_cast %611 : vector<2x8x16xf32> to vector<16x16xf32>
    %c200_272 = arith.constant 200 : index
    %c0_273 = arith.constant 0 : index
    %613 = vector.load %arg5[%c200_272, %c0_273] : memref<496x16xf32, #tpu.memory_space<vmem>>, vector<16x16xf32>
    %cst_274 = arith.constant dense<0.000000e+00> : vector<16x16xf32>
    %614 = tpu.matmul %612, %613, %cst_274 {dimension_numbers = #tpu.dot_dimension_numbers<[1], [0], [0], [1], [0, 0, 1, 1], [], []>} : vector<16x16xf32>, vector<16x16xf32>, vector<16x16xf32> -> vector<16x16xf32>
    %cst_275 = arith.constant 0.000000e+00 : f32
    %615 = vector.broadcast %cst_275 : f32 to vector<2x1x16xf32>
    %616 = vector.extract_strided_slice %608 {offsets = [0, 0, 0], sizes = [2, 7, 16], strides = [1, 1, 1]} : vector<2x8x16xf32> to vector<2x7x16xf32>
    %617 = tpu.concatenate %615, %616 in 1 : vector<2x1x16xf32>, vector<2x7x16xf32> -> vector<2x8x16xf32>
    %618 = vector.shape_cast %617 : vector<2x8x16xf32> to vector<16x16xf32>
    %c216_276 = arith.constant 216 : index
    %c0_277 = arith.constant 0 : index
    %619 = vector.load %arg5[%c216_276, %c0_277] : memref<496x16xf32, #tpu.memory_space<vmem>>, vector<16x16xf32>
    %cst_278 = arith.constant dense<0.000000e+00> : vector<16x16xf32>
    %620 = tpu.matmul %618, %619, %cst_278 {dimension_numbers = #tpu.dot_dimension_numbers<[1], [0], [0], [1], [0, 0, 1, 1], [], []>} : vector<16x16xf32>, vector<16x16xf32>, vector<16x16xf32> -> vector<16x16xf32>
    %621 = arith.addf %614, %620 : vector<16x16xf32>
    %622 = vector.shape_cast %608 : vector<2x8x16xf32> to vector<16x16xf32>
    %c232_279 = arith.constant 232 : index
    %c0_280 = arith.constant 0 : index
    %623 = vector.load %arg5[%c232_279, %c0_280] : memref<496x16xf32, #tpu.memory_space<vmem>>, vector<16x16xf32>
    %cst_281 = arith.constant dense<0.000000e+00> : vector<16x16xf32>
    %624 = tpu.matmul %622, %623, %cst_281 {dimension_numbers = #tpu.dot_dimension_numbers<[1], [0], [0], [1], [0, 0, 1, 1], [], []>} : vector<16x16xf32>, vector<16x16xf32>, vector<16x16xf32> -> vector<16x16xf32>
    %625 = arith.addf %621, %624 : vector<16x16xf32>
    %626 = vector.extract_strided_slice %608 {offsets = [0, 1, 0], sizes = [2, 7, 16], strides = [1, 1, 1]} : vector<2x8x16xf32> to vector<2x7x16xf32>
    %cst_282 = arith.constant 0.000000e+00 : f32
    %627 = vector.broadcast %cst_282 : f32 to vector<2x1x16xf32>
    %628 = tpu.concatenate %626, %627 in 1 : vector<2x7x16xf32>, vector<2x1x16xf32> -> vector<2x8x16xf32>
    %629 = vector.shape_cast %628 : vector<2x8x16xf32> to vector<16x16xf32>
    %c248_283 = arith.constant 248 : index
    %c0_284 = arith.constant 0 : index
    %630 = vector.load %arg5[%c248_283, %c0_284] : memref<496x16xf32, #tpu.memory_space<vmem>>, vector<16x16xf32>
    %cst_285 = arith.constant dense<0.000000e+00> : vector<16x16xf32>
    %631 = tpu.matmul %629, %630, %cst_285 {dimension_numbers = #tpu.dot_dimension_numbers<[1], [0], [0], [1], [0, 0, 1, 1], [], []>} : vector<16x16xf32>, vector<16x16xf32>, vector<16x16xf32> -> vector<16x16xf32>
    %632 = arith.addf %625, %631 : vector<16x16xf32>
    %633 = vector.extract_strided_slice %608 {offsets = [0, 2, 0], sizes = [2, 6, 16], strides = [1, 1, 1]} : vector<2x8x16xf32> to vector<2x6x16xf32>
    %cst_286 = arith.constant 0.000000e+00 : f32
    %634 = vector.broadcast %cst_286 : f32 to vector<2x2x16xf32>
    %635 = tpu.concatenate %633, %634 in 1 : vector<2x6x16xf32>, vector<2x2x16xf32> -> vector<2x8x16xf32>
    %636 = vector.shape_cast %635 : vector<2x8x16xf32> to vector<16x16xf32>
    %c264_287 = arith.constant 264 : index
    %c0_288 = arith.constant 0 : index
    %637 = vector.load %arg5[%c264_287, %c0_288] : memref<496x16xf32, #tpu.memory_space<vmem>>, vector<16x16xf32>
    %cst_289 = arith.constant dense<0.000000e+00> : vector<16x16xf32>
    %638 = tpu.matmul %636, %637, %cst_289 {dimension_numbers = #tpu.dot_dimension_numbers<[1], [0], [0], [1], [0, 0, 1, 1], [], []>} : vector<16x16xf32>, vector<16x16xf32>, vector<16x16xf32> -> vector<16x16xf32>
    %639 = arith.addf %632, %638 : vector<16x16xf32>
    %640 = vector.shape_cast %639 : vector<16x16xf32> to vector<2x8x16xf32>
    %c280_290 = arith.constant 280 : index
    %c0_291 = arith.constant 0 : index
    %641 = vector.load %arg5[%c280_290, %c0_291] : memref<496x16xf32, #tpu.memory_space<vmem>>, vector<1x16xf32>
    %642 = vector.shape_cast %641 : vector<1x16xf32> to vector<1x1x16xf32>
    %643 = vector.broadcast %642 : vector<1x1x16xf32> to vector<2x8x16xf32>
    %644 = arith.addf %640, %643 : vector<2x8x16xf32>
    %c480_292 = arith.constant 480 : index
    %c0_293 = arith.constant 0 : index
    %645 = vector.load %arg5[%c480_292, %c0_293] : memref<496x16xf32, #tpu.memory_space<vmem>>, vector<16x16xf32>
    %cst_294 = arith.constant dense<0.000000e+00> : vector<2x16xf32>
    %646 = vector.multi_reduction <add>, %644, %cst_294 [1] : vector<2x8x16xf32> to vector<2x16xf32>
    %cst_295 = arith.constant 8.000000e+00 : f32
    %647 = vector.broadcast %cst_295 : f32 to vector<2x16xf32>
    %648 = arith.divf %646, %647 : vector<2x16xf32>
    %cst_296 = arith.constant dense<0.000000e+00> : vector<2x16xf32>
    %649 = tpu.matmul %648, %645, %cst_296 {dimension_numbers = #tpu.dot_dimension_numbers<[1], [0], [0], [1], [0, 0, 1, 1], [], []>} : vector<2x16xf32>, vector<16x16xf32>, vector<2x16xf32> -> vector<2x16xf32>
    %650 = vector.shape_cast %649 : vector<2x16xf32> to vector<2x1x16xf32>
    %651 = vector.broadcast %650 : vector<2x1x16xf32> to vector<2x8x16xf32>
    %652 = arith.subf %644, %651 : vector<2x8x16xf32>
    %653 = arith.mulf %652, %652 : vector<2x8x16xf32>
    %cst_297 = arith.constant dense<0.000000e+00> : vector<2x16xf32>
    %654 = vector.multi_reduction <add>, %653, %cst_297 [1] : vector<2x8x16xf32> to vector<2x16xf32>
    %cst_298 = arith.constant 8.000000e+00 : f32
    %655 = vector.broadcast %cst_298 : f32 to vector<2x16xf32>
    %656 = arith.divf %654, %655 : vector<2x16xf32>
    %cst_299 = arith.constant dense<0.000000e+00> : vector<2x16xf32>
    %657 = tpu.matmul %656, %645, %cst_299 {dimension_numbers = #tpu.dot_dimension_numbers<[1], [0], [0], [1], [0, 0, 1, 1], [], []>} : vector<2x16xf32>, vector<16x16xf32>, vector<2x16xf32> -> vector<2x16xf32>
    %cst_300 = arith.constant 9.99999974E-6 : f32
    %658 = vector.broadcast %cst_300 : f32 to vector<2x16xf32>
    %659 = arith.addf %657, %658 : vector<2x16xf32>
    %660 = math.rsqrt %659 : vector<2x16xf32>
    %661 = vector.shape_cast %660 : vector<2x16xf32> to vector<2x1x16xf32>
    %662 = vector.broadcast %661 : vector<2x1x16xf32> to vector<2x8x16xf32>
    %663 = arith.mulf %652, %662 : vector<2x8x16xf32>
    %c288_301 = arith.constant 288 : index
    %c0_302 = arith.constant 0 : index
    %664 = vector.load %arg5[%c288_301, %c0_302] : memref<496x16xf32, #tpu.memory_space<vmem>>, vector<1x16xf32>
    %665 = vector.shape_cast %664 : vector<1x16xf32> to vector<1x1x16xf32>
    %666 = vector.broadcast %665 : vector<1x1x16xf32> to vector<2x8x16xf32>
    %667 = arith.mulf %663, %666 : vector<2x8x16xf32>
    %c296_303 = arith.constant 296 : index
    %c0_304 = arith.constant 0 : index
    %668 = vector.load %arg5[%c296_303, %c0_304] : memref<496x16xf32, #tpu.memory_space<vmem>>, vector<1x16xf32>
    %669 = vector.shape_cast %668 : vector<1x16xf32> to vector<1x1x16xf32>
    %670 = vector.broadcast %669 : vector<1x1x16xf32> to vector<2x8x16xf32>
    %671 = arith.addf %667, %670 : vector<2x8x16xf32>
    %cst_305 = arith.constant 2.000000e+01 : f32
    %672 = vector.broadcast %cst_305 : f32 to vector<2x8x16xf32>
    %673 = arith.minimumf %671, %672 : vector<2x8x16xf32>
    %674 = math.exp %673 : vector<2x8x16xf32>
    %cst_306 = arith.constant 1.000000e+00 : f32
    %675 = vector.broadcast %cst_306 : f32 to vector<2x8x16xf32>
    %676 = arith.addf %675, %674 : vector<2x8x16xf32>
    %cst_307 = arith.constant 1.000000e+00 : f32
    %677 = vector.broadcast %cst_307 : f32 to vector<2x8x16xf32>
    %678 = arith.addf %677, %674 : vector<2x8x16xf32>
    %679 = arith.mulf %676, %678 : vector<2x8x16xf32>
    %cst_308 = arith.constant 1.000000e+00 : f32
    %680 = vector.broadcast %cst_308 : f32 to vector<2x8x16xf32>
    %681 = arith.subf %679, %680 : vector<2x8x16xf32>
    %cst_309 = arith.constant 1.000000e+00 : f32
    %682 = vector.broadcast %cst_309 : f32 to vector<2x8x16xf32>
    %683 = arith.addf %679, %682 : vector<2x8x16xf32>
    %684 = tpu.reciprocal %683 {approx = true} : vector<2x8x16xf32> -> vector<2x8x16xf32>
    %685 = arith.mulf %681, %684 : vector<2x8x16xf32>
    %cst_310 = arith.constant 2.000000e+01 : f32
    %686 = vector.broadcast %cst_310 : f32 to vector<2x8x16xf32>
    %687 = arith.cmpf ogt, %671, %686 : vector<2x8x16xf32>
    %cst_311 = arith.constant 1.000000e+00 : f32
    %688 = vector.broadcast %cst_311 : f32 to vector<2x8x16xf32>
    %689 = arith.select %687, %688, %685 : vector<2x8x16xi1>, vector<2x8x16xf32>
    %690 = arith.mulf %671, %689 : vector<2x8x16xf32>
    %c408 = arith.constant 408 : index
    %c0_312 = arith.constant 0 : index
    %691 = vector.load %arg5[%c408, %c0_312] : memref<496x16xf32, #tpu.memory_space<vmem>>, vector<8x16xf32>
    %cst_313 = arith.constant dense<0.000000e+00> : vector<2x16xf32>
    %692 = tpu.matmul %48, %691, %cst_313 {dimension_numbers = #tpu.dot_dimension_numbers<[1], [0], [0], [1], [0, 0, 1, 1], [], []>} : vector<2x8xf32>, vector<8x16xf32>, vector<2x16xf32> -> vector<2x16xf32>
    %c416 = arith.constant 416 : index
    %c0_314 = arith.constant 0 : index
    %693 = vector.load %arg5[%c416, %c0_314] : memref<496x16xf32, #tpu.memory_space<vmem>>, vector<1x16xf32>
    %694 = vector.broadcast %693 : vector<1x16xf32> to vector<2x16xf32>
    %695 = arith.addf %692, %694 : vector<2x16xf32>
    %696 = vector.shape_cast %695 : vector<2x16xf32> to vector<2x1x16xf32>
    %697 = vector.broadcast %696 : vector<2x1x16xf32> to vector<2x8x16xf32>
    %698 = arith.addf %690, %697 : vector<2x8x16xf32>
    %cst_315 = arith.constant 0.000000e+00 : f32
    %699 = vector.broadcast %cst_315 : f32 to vector<2x2x16xf32>
    %700 = vector.extract_strided_slice %698 {offsets = [0, 0, 0], sizes = [2, 6, 16], strides = [1, 1, 1]} : vector<2x8x16xf32> to vector<2x6x16xf32>
    %701 = tpu.concatenate %699, %700 in 1 : vector<2x2x16xf32>, vector<2x6x16xf32> -> vector<2x8x16xf32>
    %702 = vector.shape_cast %701 : vector<2x8x16xf32> to vector<16x16xf32>
    %c304_316 = arith.constant 304 : index
    %c0_317 = arith.constant 0 : index
    %703 = vector.load %arg5[%c304_316, %c0_317] : memref<496x16xf32, #tpu.memory_space<vmem>>, vector<16x16xf32>
    %cst_318 = arith.constant dense<0.000000e+00> : vector<16x16xf32>
    %704 = tpu.matmul %702, %703, %cst_318 {dimension_numbers = #tpu.dot_dimension_numbers<[1], [0], [0], [1], [0, 0, 1, 1], [], []>} : vector<16x16xf32>, vector<16x16xf32>, vector<16x16xf32> -> vector<16x16xf32>
    %cst_319 = arith.constant 0.000000e+00 : f32
    %705 = vector.broadcast %cst_319 : f32 to vector<2x1x16xf32>
    %706 = vector.extract_strided_slice %698 {offsets = [0, 0, 0], sizes = [2, 7, 16], strides = [1, 1, 1]} : vector<2x8x16xf32> to vector<2x7x16xf32>
    %707 = tpu.concatenate %705, %706 in 1 : vector<2x1x16xf32>, vector<2x7x16xf32> -> vector<2x8x16xf32>
    %708 = vector.shape_cast %707 : vector<2x8x16xf32> to vector<16x16xf32>
    %c320_320 = arith.constant 320 : index
    %c0_321 = arith.constant 0 : index
    %709 = vector.load %arg5[%c320_320, %c0_321] : memref<496x16xf32, #tpu.memory_space<vmem>>, vector<16x16xf32>
    %cst_322 = arith.constant dense<0.000000e+00> : vector<16x16xf32>
    %710 = tpu.matmul %708, %709, %cst_322 {dimension_numbers = #tpu.dot_dimension_numbers<[1], [0], [0], [1], [0, 0, 1, 1], [], []>} : vector<16x16xf32>, vector<16x16xf32>, vector<16x16xf32> -> vector<16x16xf32>
    %711 = arith.addf %704, %710 : vector<16x16xf32>
    %712 = vector.shape_cast %698 : vector<2x8x16xf32> to vector<16x16xf32>
    %c336_323 = arith.constant 336 : index
    %c0_324 = arith.constant 0 : index
    %713 = vector.load %arg5[%c336_323, %c0_324] : memref<496x16xf32, #tpu.memory_space<vmem>>, vector<16x16xf32>
    %cst_325 = arith.constant dense<0.000000e+00> : vector<16x16xf32>
    %714 = tpu.matmul %712, %713, %cst_325 {dimension_numbers = #tpu.dot_dimension_numbers<[1], [0], [0], [1], [0, 0, 1, 1], [], []>} : vector<16x16xf32>, vector<16x16xf32>, vector<16x16xf32> -> vector<16x16xf32>
    %715 = arith.addf %711, %714 : vector<16x16xf32>
    %716 = vector.extract_strided_slice %698 {offsets = [0, 1, 0], sizes = [2, 7, 16], strides = [1, 1, 1]} : vector<2x8x16xf32> to vector<2x7x16xf32>
    %cst_326 = arith.constant 0.000000e+00 : f32
    %717 = vector.broadcast %cst_326 : f32 to vector<2x1x16xf32>
    %718 = tpu.concatenate %716, %717 in 1 : vector<2x7x16xf32>, vector<2x1x16xf32> -> vector<2x8x16xf32>
    %719 = vector.shape_cast %718 : vector<2x8x16xf32> to vector<16x16xf32>
    %c352 = arith.constant 352 : index
    %c0_327 = arith.constant 0 : index
    %720 = vector.load %arg5[%c352, %c0_327] : memref<496x16xf32, #tpu.memory_space<vmem>>, vector<16x16xf32>
    %cst_328 = arith.constant dense<0.000000e+00> : vector<16x16xf32>
    %721 = tpu.matmul %719, %720, %cst_328 {dimension_numbers = #tpu.dot_dimension_numbers<[1], [0], [0], [1], [0, 0, 1, 1], [], []>} : vector<16x16xf32>, vector<16x16xf32>, vector<16x16xf32> -> vector<16x16xf32>
    %722 = arith.addf %715, %721 : vector<16x16xf32>
    %723 = vector.extract_strided_slice %698 {offsets = [0, 2, 0], sizes = [2, 6, 16], strides = [1, 1, 1]} : vector<2x8x16xf32> to vector<2x6x16xf32>
    %cst_329 = arith.constant 0.000000e+00 : f32
    %724 = vector.broadcast %cst_329 : f32 to vector<2x2x16xf32>
    %725 = tpu.concatenate %723, %724 in 1 : vector<2x6x16xf32>, vector<2x2x16xf32> -> vector<2x8x16xf32>
    %726 = vector.shape_cast %725 : vector<2x8x16xf32> to vector<16x16xf32>
    %c368 = arith.constant 368 : index
    %c0_330 = arith.constant 0 : index
    %727 = vector.load %arg5[%c368, %c0_330] : memref<496x16xf32, #tpu.memory_space<vmem>>, vector<16x16xf32>
    %cst_331 = arith.constant dense<0.000000e+00> : vector<16x16xf32>
    %728 = tpu.matmul %726, %727, %cst_331 {dimension_numbers = #tpu.dot_dimension_numbers<[1], [0], [0], [1], [0, 0, 1, 1], [], []>} : vector<16x16xf32>, vector<16x16xf32>, vector<16x16xf32> -> vector<16x16xf32>
    %729 = arith.addf %722, %728 : vector<16x16xf32>
    %730 = vector.shape_cast %729 : vector<16x16xf32> to vector<2x8x16xf32>
    %c384 = arith.constant 384 : index
    %c0_332 = arith.constant 0 : index
    %731 = vector.load %arg5[%c384, %c0_332] : memref<496x16xf32, #tpu.memory_space<vmem>>, vector<1x16xf32>
    %732 = vector.shape_cast %731 : vector<1x16xf32> to vector<1x1x16xf32>
    %733 = vector.broadcast %732 : vector<1x1x16xf32> to vector<2x8x16xf32>
    %734 = arith.addf %730, %733 : vector<2x8x16xf32>
    %c480_333 = arith.constant 480 : index
    %c0_334 = arith.constant 0 : index
    %735 = vector.load %arg5[%c480_333, %c0_334] : memref<496x16xf32, #tpu.memory_space<vmem>>, vector<16x16xf32>
    %cst_335 = arith.constant dense<0.000000e+00> : vector<2x16xf32>
    %736 = vector.multi_reduction <add>, %734, %cst_335 [1] : vector<2x8x16xf32> to vector<2x16xf32>
    %cst_336 = arith.constant 8.000000e+00 : f32
    %737 = vector.broadcast %cst_336 : f32 to vector<2x16xf32>
    %738 = arith.divf %736, %737 : vector<2x16xf32>
    %cst_337 = arith.constant dense<0.000000e+00> : vector<2x16xf32>
    %739 = tpu.matmul %738, %735, %cst_337 {dimension_numbers = #tpu.dot_dimension_numbers<[1], [0], [0], [1], [0, 0, 1, 1], [], []>} : vector<2x16xf32>, vector<16x16xf32>, vector<2x16xf32> -> vector<2x16xf32>
    %740 = vector.shape_cast %739 : vector<2x16xf32> to vector<2x1x16xf32>
    %741 = vector.broadcast %740 : vector<2x1x16xf32> to vector<2x8x16xf32>
    %742 = arith.subf %734, %741 : vector<2x8x16xf32>
    %743 = arith.mulf %742, %742 : vector<2x8x16xf32>
    %cst_338 = arith.constant dense<0.000000e+00> : vector<2x16xf32>
    %744 = vector.multi_reduction <add>, %743, %cst_338 [1] : vector<2x8x16xf32> to vector<2x16xf32>
    %cst_339 = arith.constant 8.000000e+00 : f32
    %745 = vector.broadcast %cst_339 : f32 to vector<2x16xf32>
    %746 = arith.divf %744, %745 : vector<2x16xf32>
    %cst_340 = arith.constant dense<0.000000e+00> : vector<2x16xf32>
    %747 = tpu.matmul %746, %735, %cst_340 {dimension_numbers = #tpu.dot_dimension_numbers<[1], [0], [0], [1], [0, 0, 1, 1], [], []>} : vector<2x16xf32>, vector<16x16xf32>, vector<2x16xf32> -> vector<2x16xf32>
    %cst_341 = arith.constant 9.99999974E-6 : f32
    %748 = vector.broadcast %cst_341 : f32 to vector<2x16xf32>
    %749 = arith.addf %747, %748 : vector<2x16xf32>
    %750 = math.rsqrt %749 : vector<2x16xf32>
    %751 = vector.shape_cast %750 : vector<2x16xf32> to vector<2x1x16xf32>
    %752 = vector.broadcast %751 : vector<2x1x16xf32> to vector<2x8x16xf32>
    %753 = arith.mulf %742, %752 : vector<2x8x16xf32>
    %c392 = arith.constant 392 : index
    %c0_342 = arith.constant 0 : index
    %754 = vector.load %arg5[%c392, %c0_342] : memref<496x16xf32, #tpu.memory_space<vmem>>, vector<1x16xf32>
    %755 = vector.shape_cast %754 : vector<1x16xf32> to vector<1x1x16xf32>
    %756 = vector.broadcast %755 : vector<1x1x16xf32> to vector<2x8x16xf32>
    %757 = arith.mulf %753, %756 : vector<2x8x16xf32>
    %c400 = arith.constant 400 : index
    %c0_343 = arith.constant 0 : index
    %758 = vector.load %arg5[%c400, %c0_343] : memref<496x16xf32, #tpu.memory_space<vmem>>, vector<1x16xf32>
    %759 = vector.shape_cast %758 : vector<1x16xf32> to vector<1x1x16xf32>
    %760 = vector.broadcast %759 : vector<1x1x16xf32> to vector<2x8x16xf32>
    %761 = arith.addf %757, %760 : vector<2x8x16xf32>
    %cst_344 = arith.constant 2.000000e+01 : f32
    %762 = vector.broadcast %cst_344 : f32 to vector<2x8x16xf32>
    %763 = arith.minimumf %761, %762 : vector<2x8x16xf32>
    %764 = math.exp %763 : vector<2x8x16xf32>
    %cst_345 = arith.constant 1.000000e+00 : f32
    %765 = vector.broadcast %cst_345 : f32 to vector<2x8x16xf32>
    %766 = arith.addf %765, %764 : vector<2x8x16xf32>
    %cst_346 = arith.constant 1.000000e+00 : f32
    %767 = vector.broadcast %cst_346 : f32 to vector<2x8x16xf32>
    %768 = arith.addf %767, %764 : vector<2x8x16xf32>
    %769 = arith.mulf %766, %768 : vector<2x8x16xf32>
    %cst_347 = arith.constant 1.000000e+00 : f32
    %770 = vector.broadcast %cst_347 : f32 to vector<2x8x16xf32>
    %771 = arith.subf %769, %770 : vector<2x8x16xf32>
    %cst_348 = arith.constant 1.000000e+00 : f32
    %772 = vector.broadcast %cst_348 : f32 to vector<2x8x16xf32>
    %773 = arith.addf %769, %772 : vector<2x8x16xf32>
    %774 = tpu.reciprocal %773 {approx = true} : vector<2x8x16xf32> -> vector<2x8x16xf32>
    %775 = arith.mulf %771, %774 : vector<2x8x16xf32>
    %cst_349 = arith.constant 2.000000e+01 : f32
    %776 = vector.broadcast %cst_349 : f32 to vector<2x8x16xf32>
    %777 = arith.cmpf ogt, %761, %776 : vector<2x8x16xf32>
    %cst_350 = arith.constant 1.000000e+00 : f32
    %778 = vector.broadcast %cst_350 : f32 to vector<2x8x16xf32>
    %779 = arith.select %777, %778, %775 : vector<2x8x16xi1>, vector<2x8x16xf32>
    %780 = arith.mulf %761, %779 : vector<2x8x16xf32>
    %781 = arith.addf %780, %608 : vector<2x8x16xf32>
    %cst_351 = arith.constant 0.000000e+00 : f32
    %782 = vector.broadcast %cst_351 : f32 to vector<2x1x16xf32>
    %783 = vector.extract_strided_slice %781 {offsets = [0, 0, 0], sizes = [2, 7, 16], strides = [1, 1, 1]} : vector<2x8x16xf32> to vector<2x7x16xf32>
    %784 = tpu.concatenate %782, %783 in 1 : vector<2x1x16xf32>, vector<2x7x16xf32> -> vector<2x8x16xf32>
    %785 = vector.shape_cast %784 : vector<2x8x16xf32> to vector<16x16xf32>
    %c424 = arith.constant 424 : index
    %c0_352 = arith.constant 0 : index
    %786 = vector.load %arg5[%c424, %c0_352] : memref<496x16xf32, #tpu.memory_space<vmem>>, vector<16x16xf32>
    %cst_353 = arith.constant dense<0.000000e+00> : vector<16x16xf32>
    %787 = tpu.matmul %785, %786, %cst_353 {dimension_numbers = #tpu.dot_dimension_numbers<[1], [0], [0], [1], [0, 0, 1, 1], [], []>} : vector<16x16xf32>, vector<16x16xf32>, vector<16x16xf32> -> vector<16x16xf32>
    %788 = vector.shape_cast %781 : vector<2x8x16xf32> to vector<16x16xf32>
    %c440 = arith.constant 440 : index
    %c0_354 = arith.constant 0 : index
    %789 = vector.load %arg5[%c440, %c0_354] : memref<496x16xf32, #tpu.memory_space<vmem>>, vector<16x16xf32>
    %cst_355 = arith.constant dense<0.000000e+00> : vector<16x16xf32>
    %790 = tpu.matmul %788, %789, %cst_355 {dimension_numbers = #tpu.dot_dimension_numbers<[1], [0], [0], [1], [0, 0, 1, 1], [], []>} : vector<16x16xf32>, vector<16x16xf32>, vector<16x16xf32> -> vector<16x16xf32>
    %791 = arith.addf %787, %790 : vector<16x16xf32>
    %792 = vector.extract_strided_slice %781 {offsets = [0, 1, 0], sizes = [2, 7, 16], strides = [1, 1, 1]} : vector<2x8x16xf32> to vector<2x7x16xf32>
    %cst_356 = arith.constant 0.000000e+00 : f32
    %793 = vector.broadcast %cst_356 : f32 to vector<2x1x16xf32>
    %794 = tpu.concatenate %792, %793 in 1 : vector<2x7x16xf32>, vector<2x1x16xf32> -> vector<2x8x16xf32>
    %795 = vector.shape_cast %794 : vector<2x8x16xf32> to vector<16x16xf32>
    %c456 = arith.constant 456 : index
    %c0_357 = arith.constant 0 : index
    %796 = vector.load %arg5[%c456, %c0_357] : memref<496x16xf32, #tpu.memory_space<vmem>>, vector<16x16xf32>
    %cst_358 = arith.constant dense<0.000000e+00> : vector<16x16xf32>
    %797 = tpu.matmul %795, %796, %cst_358 {dimension_numbers = #tpu.dot_dimension_numbers<[1], [0], [0], [1], [0, 0, 1, 1], [], []>} : vector<16x16xf32>, vector<16x16xf32>, vector<16x16xf32> -> vector<16x16xf32>
    %798 = arith.addf %791, %797 : vector<16x16xf32>
    %799 = vector.shape_cast %798 : vector<16x16xf32> to vector<2x8x16xf32>
    %c472 = arith.constant 472 : index
    %c0_359 = arith.constant 0 : index
    %800 = vector.load %arg5[%c472, %c0_359] : memref<496x16xf32, #tpu.memory_space<vmem>>, vector<1x16xf32>
    %801 = vector.shape_cast %800 : vector<1x16xf32> to vector<1x1x16xf32>
    %802 = vector.broadcast %801 : vector<1x1x16xf32> to vector<2x8x16xf32>
    %803 = arith.addf %799, %802 : vector<2x8x16xf32>
    %c0_360 = arith.constant 0 : index
    %c0_361 = arith.constant 0 : index
    %804 = vector.load %arg9[%c0_360, %c0_361] : memref<8x16xf32, #tpu.memory_space<vmem>>, vector<8x16xf32>
    %805 = vector.shape_cast %803 : vector<2x8x16xf32> to vector<16x16xf32>
    %cst_362 = arith.constant dense<0.000000e+00> : vector<8x16xf32>
    %806 = tpu.matmul %804, %805, %cst_362 {dimension_numbers = #tpu.dot_dimension_numbers<[1], [0], [0], [1], [0, 0, 1, 1], [], []>} : vector<8x16xf32>, vector<16x16xf32>, vector<8x16xf32> -> vector<8x16xf32>
    %807 = vector.shape_cast %806 : vector<8x16xf32> to vector<2x4x16xf32>
    %cst_363 = arith.constant 0.000000e+00 : f32
    %808 = vector.broadcast %cst_363 : f32 to vector<2x2x16xf32>
    %809 = vector.extract_strided_slice %807 {offsets = [0, 0, 0], sizes = [2, 2, 16], strides = [1, 1, 1]} : vector<2x4x16xf32> to vector<2x2x16xf32>
    %810 = tpu.concatenate %808, %809 in 1 : vector<2x2x16xf32>, vector<2x2x16xf32> -> vector<2x4x16xf32>
    %811 = vector.shape_cast %810 : vector<2x4x16xf32> to vector<8x16xf32>
    %c0_364 = arith.constant 0 : index
    %c0_365 = arith.constant 0 : index
    %812 = vector.load %arg6[%c0_364, %c0_365] : memref<848x32xf32, #tpu.memory_space<vmem>>, vector<16x32xf32>
    %cst_366 = arith.constant dense<0.000000e+00> : vector<8x32xf32>
    %813 = tpu.matmul %811, %812, %cst_366 {dimension_numbers = #tpu.dot_dimension_numbers<[1], [0], [0], [1], [0, 0, 1, 1], [], []>} : vector<8x16xf32>, vector<16x32xf32>, vector<8x32xf32> -> vector<8x32xf32>
    %cst_367 = arith.constant 0.000000e+00 : f32
    %814 = vector.broadcast %cst_367 : f32 to vector<2x1x16xf32>
    %815 = vector.extract_strided_slice %807 {offsets = [0, 0, 0], sizes = [2, 3, 16], strides = [1, 1, 1]} : vector<2x4x16xf32> to vector<2x3x16xf32>
    %816 = tpu.concatenate %814, %815 in 1 : vector<2x1x16xf32>, vector<2x3x16xf32> -> vector<2x4x16xf32>
    %817 = vector.shape_cast %816 : vector<2x4x16xf32> to vector<8x16xf32>
    %c16_368 = arith.constant 16 : index
    %c0_369 = arith.constant 0 : index
    %818 = vector.load %arg6[%c16_368, %c0_369] : memref<848x32xf32, #tpu.memory_space<vmem>>, vector<16x32xf32>
    %cst_370 = arith.constant dense<0.000000e+00> : vector<8x32xf32>
    %819 = tpu.matmul %817, %818, %cst_370 {dimension_numbers = #tpu.dot_dimension_numbers<[1], [0], [0], [1], [0, 0, 1, 1], [], []>} : vector<8x16xf32>, vector<16x32xf32>, vector<8x32xf32> -> vector<8x32xf32>
    %820 = arith.addf %813, %819 : vector<8x32xf32>
    %821 = vector.shape_cast %807 : vector<2x4x16xf32> to vector<8x16xf32>
    %c32_371 = arith.constant 32 : index
    %c0_372 = arith.constant 0 : index
    %822 = vector.load %arg6[%c32_371, %c0_372] : memref<848x32xf32, #tpu.memory_space<vmem>>, vector<16x32xf32>
    %cst_373 = arith.constant dense<0.000000e+00> : vector<8x32xf32>
    %823 = tpu.matmul %821, %822, %cst_373 {dimension_numbers = #tpu.dot_dimension_numbers<[1], [0], [0], [1], [0, 0, 1, 1], [], []>} : vector<8x16xf32>, vector<16x32xf32>, vector<8x32xf32> -> vector<8x32xf32>
    %824 = arith.addf %820, %823 : vector<8x32xf32>
    %825 = vector.extract_strided_slice %807 {offsets = [0, 1, 0], sizes = [2, 3, 16], strides = [1, 1, 1]} : vector<2x4x16xf32> to vector<2x3x16xf32>
    %cst_374 = arith.constant 0.000000e+00 : f32
    %826 = vector.broadcast %cst_374 : f32 to vector<2x1x16xf32>
    %827 = tpu.concatenate %825, %826 in 1 : vector<2x3x16xf32>, vector<2x1x16xf32> -> vector<2x4x16xf32>
    %828 = vector.shape_cast %827 : vector<2x4x16xf32> to vector<8x16xf32>
    %c48_375 = arith.constant 48 : index
    %c0_376 = arith.constant 0 : index
    %829 = vector.load %arg6[%c48_375, %c0_376] : memref<848x32xf32, #tpu.memory_space<vmem>>, vector<16x32xf32>
    %cst_377 = arith.constant dense<0.000000e+00> : vector<8x32xf32>
    %830 = tpu.matmul %828, %829, %cst_377 {dimension_numbers = #tpu.dot_dimension_numbers<[1], [0], [0], [1], [0, 0, 1, 1], [], []>} : vector<8x16xf32>, vector<16x32xf32>, vector<8x32xf32> -> vector<8x32xf32>
    %831 = arith.addf %824, %830 : vector<8x32xf32>
    %832 = vector.extract_strided_slice %807 {offsets = [0, 2, 0], sizes = [2, 2, 16], strides = [1, 1, 1]} : vector<2x4x16xf32> to vector<2x2x16xf32>
    %cst_378 = arith.constant 0.000000e+00 : f32
    %833 = vector.broadcast %cst_378 : f32 to vector<2x2x16xf32>
    %834 = tpu.concatenate %832, %833 in 1 : vector<2x2x16xf32>, vector<2x2x16xf32> -> vector<2x4x16xf32>
    %835 = vector.shape_cast %834 : vector<2x4x16xf32> to vector<8x16xf32>
    %c64_379 = arith.constant 64 : index
    %c0_380 = arith.constant 0 : index
    %836 = vector.load %arg6[%c64_379, %c0_380] : memref<848x32xf32, #tpu.memory_space<vmem>>, vector<16x32xf32>
    %cst_381 = arith.constant dense<0.000000e+00> : vector<8x32xf32>
    %837 = tpu.matmul %835, %836, %cst_381 {dimension_numbers = #tpu.dot_dimension_numbers<[1], [0], [0], [1], [0, 0, 1, 1], [], []>} : vector<8x16xf32>, vector<16x32xf32>, vector<8x32xf32> -> vector<8x32xf32>
    %838 = arith.addf %831, %837 : vector<8x32xf32>
    %839 = vector.shape_cast %838 : vector<8x32xf32> to vector<2x4x32xf32>
    %c80_382 = arith.constant 80 : index
    %c0_383 = arith.constant 0 : index
    %840 = vector.load %arg6[%c80_382, %c0_383] : memref<848x32xf32, #tpu.memory_space<vmem>>, vector<1x32xf32>
    %841 = vector.shape_cast %840 : vector<1x32xf32> to vector<1x1x32xf32>
    %842 = vector.broadcast %841 : vector<1x1x32xf32> to vector<2x4x32xf32>
    %843 = arith.addf %839, %842 : vector<2x4x32xf32>
    %c816 = arith.constant 816 : index
    %c0_384 = arith.constant 0 : index
    %844 = vector.load %arg6[%c816, %c0_384] : memref<848x32xf32, #tpu.memory_space<vmem>>, vector<32x32xf32>
    %cst_385 = arith.constant dense<0.000000e+00> : vector<2x32xf32>
    %845 = vector.multi_reduction <add>, %843, %cst_385 [1] : vector<2x4x32xf32> to vector<2x32xf32>
    %cst_386 = arith.constant 4.000000e+00 : f32
    %846 = vector.broadcast %cst_386 : f32 to vector<2x32xf32>
    %847 = arith.divf %845, %846 : vector<2x32xf32>
    %cst_387 = arith.constant dense<0.000000e+00> : vector<2x32xf32>
    %848 = tpu.matmul %847, %844, %cst_387 {dimension_numbers = #tpu.dot_dimension_numbers<[1], [0], [0], [1], [0, 0, 1, 1], [], []>} : vector<2x32xf32>, vector<32x32xf32>, vector<2x32xf32> -> vector<2x32xf32>
    %849 = vector.shape_cast %848 : vector<2x32xf32> to vector<2x1x32xf32>
    %850 = vector.broadcast %849 : vector<2x1x32xf32> to vector<2x4x32xf32>
    %851 = arith.subf %843, %850 : vector<2x4x32xf32>
    %852 = arith.mulf %851, %851 : vector<2x4x32xf32>
    %cst_388 = arith.constant dense<0.000000e+00> : vector<2x32xf32>
    %853 = vector.multi_reduction <add>, %852, %cst_388 [1] : vector<2x4x32xf32> to vector<2x32xf32>
    %cst_389 = arith.constant 4.000000e+00 : f32
    %854 = vector.broadcast %cst_389 : f32 to vector<2x32xf32>
    %855 = arith.divf %853, %854 : vector<2x32xf32>
    %cst_390 = arith.constant dense<0.000000e+00> : vector<2x32xf32>
    %856 = tpu.matmul %855, %844, %cst_390 {dimension_numbers = #tpu.dot_dimension_numbers<[1], [0], [0], [1], [0, 0, 1, 1], [], []>} : vector<2x32xf32>, vector<32x32xf32>, vector<2x32xf32> -> vector<2x32xf32>
    %cst_391 = arith.constant 9.99999974E-6 : f32
    %857 = vector.broadcast %cst_391 : f32 to vector<2x32xf32>
    %858 = arith.addf %856, %857 : vector<2x32xf32>
    %859 = math.rsqrt %858 : vector<2x32xf32>
    %860 = vector.shape_cast %859 : vector<2x32xf32> to vector<2x1x32xf32>
    %861 = vector.broadcast %860 : vector<2x1x32xf32> to vector<2x4x32xf32>
    %862 = arith.mulf %851, %861 : vector<2x4x32xf32>
    %c88_392 = arith.constant 88 : index
    %c0_393 = arith.constant 0 : index
    %863 = vector.load %arg6[%c88_392, %c0_393] : memref<848x32xf32, #tpu.memory_space<vmem>>, vector<1x32xf32>
    %864 = vector.shape_cast %863 : vector<1x32xf32> to vector<1x1x32xf32>
    %865 = vector.broadcast %864 : vector<1x1x32xf32> to vector<2x4x32xf32>
    %866 = arith.mulf %862, %865 : vector<2x4x32xf32>
    %c96_394 = arith.constant 96 : index
    %c0_395 = arith.constant 0 : index
    %867 = vector.load %arg6[%c96_394, %c0_395] : memref<848x32xf32, #tpu.memory_space<vmem>>, vector<1x32xf32>
    %868 = vector.shape_cast %867 : vector<1x32xf32> to vector<1x1x32xf32>
    %869 = vector.broadcast %868 : vector<1x1x32xf32> to vector<2x4x32xf32>
    %870 = arith.addf %866, %869 : vector<2x4x32xf32>
    %cst_396 = arith.constant 2.000000e+01 : f32
    %871 = vector.broadcast %cst_396 : f32 to vector<2x4x32xf32>
    %872 = arith.minimumf %870, %871 : vector<2x4x32xf32>
    %873 = math.exp %872 : vector<2x4x32xf32>
    %cst_397 = arith.constant 1.000000e+00 : f32
    %874 = vector.broadcast %cst_397 : f32 to vector<2x4x32xf32>
    %875 = arith.addf %874, %873 : vector<2x4x32xf32>
    %cst_398 = arith.constant 1.000000e+00 : f32
    %876 = vector.broadcast %cst_398 : f32 to vector<2x4x32xf32>
    %877 = arith.addf %876, %873 : vector<2x4x32xf32>
    %878 = arith.mulf %875, %877 : vector<2x4x32xf32>
    %cst_399 = arith.constant 1.000000e+00 : f32
    %879 = vector.broadcast %cst_399 : f32 to vector<2x4x32xf32>
    %880 = arith.subf %878, %879 : vector<2x4x32xf32>
    %cst_400 = arith.constant 1.000000e+00 : f32
    %881 = vector.broadcast %cst_400 : f32 to vector<2x4x32xf32>
    %882 = arith.addf %878, %881 : vector<2x4x32xf32>
    %883 = tpu.reciprocal %882 {approx = true} : vector<2x4x32xf32> -> vector<2x4x32xf32>
    %884 = arith.mulf %880, %883 : vector<2x4x32xf32>
    %cst_401 = arith.constant 2.000000e+01 : f32
    %885 = vector.broadcast %cst_401 : f32 to vector<2x4x32xf32>
    %886 = arith.cmpf ogt, %870, %885 : vector<2x4x32xf32>
    %cst_402 = arith.constant 1.000000e+00 : f32
    %887 = vector.broadcast %cst_402 : f32 to vector<2x4x32xf32>
    %888 = arith.select %886, %887, %884 : vector<2x4x32xi1>, vector<2x4x32xf32>
    %889 = arith.mulf %870, %888 : vector<2x4x32xf32>
    %c288_403 = arith.constant 288 : index
    %c0_404 = arith.constant 0 : index
    %890 = vector.load %arg6[%c288_403, %c0_404] : memref<848x32xf32, #tpu.memory_space<vmem>>, vector<8x32xf32>
    %cst_405 = arith.constant dense<0.000000e+00> : vector<2x32xf32>
    %891 = tpu.matmul %48, %890, %cst_405 {dimension_numbers = #tpu.dot_dimension_numbers<[1], [0], [0], [1], [0, 0, 1, 1], [], []>} : vector<2x8xf32>, vector<8x32xf32>, vector<2x32xf32> -> vector<2x32xf32>
    %c296_406 = arith.constant 296 : index
    %c0_407 = arith.constant 0 : index
    %892 = vector.load %arg6[%c296_406, %c0_407] : memref<848x32xf32, #tpu.memory_space<vmem>>, vector<1x32xf32>
    %893 = vector.broadcast %892 : vector<1x32xf32> to vector<2x32xf32>
    %894 = arith.addf %891, %893 : vector<2x32xf32>
    %895 = vector.shape_cast %894 : vector<2x32xf32> to vector<2x1x32xf32>
    %896 = vector.broadcast %895 : vector<2x1x32xf32> to vector<2x4x32xf32>
    %897 = arith.addf %889, %896 : vector<2x4x32xf32>
    %cst_408 = arith.constant 0.000000e+00 : f32
    %898 = vector.broadcast %cst_408 : f32 to vector<2x2x32xf32>
    %899 = vector.extract_strided_slice %897 {offsets = [0, 0, 0], sizes = [2, 2, 32], strides = [1, 1, 1]} : vector<2x4x32xf32> to vector<2x2x32xf32>
    %900 = tpu.concatenate %898, %899 in 1 : vector<2x2x32xf32>, vector<2x2x32xf32> -> vector<2x4x32xf32>
    %901 = vector.shape_cast %900 : vector<2x4x32xf32> to vector<8x32xf32>
    %c104_409 = arith.constant 104 : index
    %c0_410 = arith.constant 0 : index
    %902 = vector.load %arg6[%c104_409, %c0_410] : memref<848x32xf32, #tpu.memory_space<vmem>>, vector<32x32xf32>
    %cst_411 = arith.constant dense<0.000000e+00> : vector<8x32xf32>
    %903 = tpu.matmul %901, %902, %cst_411 {dimension_numbers = #tpu.dot_dimension_numbers<[1], [0], [0], [1], [0, 0, 1, 1], [], []>} : vector<8x32xf32>, vector<32x32xf32>, vector<8x32xf32> -> vector<8x32xf32>
    %cst_412 = arith.constant 0.000000e+00 : f32
    %904 = vector.broadcast %cst_412 : f32 to vector<2x1x32xf32>
    %905 = vector.extract_strided_slice %897 {offsets = [0, 0, 0], sizes = [2, 3, 32], strides = [1, 1, 1]} : vector<2x4x32xf32> to vector<2x3x32xf32>
    %906 = tpu.concatenate %904, %905 in 1 : vector<2x1x32xf32>, vector<2x3x32xf32> -> vector<2x4x32xf32>
    %907 = vector.shape_cast %906 : vector<2x4x32xf32> to vector<8x32xf32>
    %c136_413 = arith.constant 136 : index
    %c0_414 = arith.constant 0 : index
    %908 = vector.load %arg6[%c136_413, %c0_414] : memref<848x32xf32, #tpu.memory_space<vmem>>, vector<32x32xf32>
    %cst_415 = arith.constant dense<0.000000e+00> : vector<8x32xf32>
    %909 = tpu.matmul %907, %908, %cst_415 {dimension_numbers = #tpu.dot_dimension_numbers<[1], [0], [0], [1], [0, 0, 1, 1], [], []>} : vector<8x32xf32>, vector<32x32xf32>, vector<8x32xf32> -> vector<8x32xf32>
    %910 = arith.addf %903, %909 : vector<8x32xf32>
    %911 = vector.shape_cast %897 : vector<2x4x32xf32> to vector<8x32xf32>
    %c168_416 = arith.constant 168 : index
    %c0_417 = arith.constant 0 : index
    %912 = vector.load %arg6[%c168_416, %c0_417] : memref<848x32xf32, #tpu.memory_space<vmem>>, vector<32x32xf32>
    %cst_418 = arith.constant dense<0.000000e+00> : vector<8x32xf32>
    %913 = tpu.matmul %911, %912, %cst_418 {dimension_numbers = #tpu.dot_dimension_numbers<[1], [0], [0], [1], [0, 0, 1, 1], [], []>} : vector<8x32xf32>, vector<32x32xf32>, vector<8x32xf32> -> vector<8x32xf32>
    %914 = arith.addf %910, %913 : vector<8x32xf32>
    %915 = vector.extract_strided_slice %897 {offsets = [0, 1, 0], sizes = [2, 3, 32], strides = [1, 1, 1]} : vector<2x4x32xf32> to vector<2x3x32xf32>
    %cst_419 = arith.constant 0.000000e+00 : f32
    %916 = vector.broadcast %cst_419 : f32 to vector<2x1x32xf32>
    %917 = tpu.concatenate %915, %916 in 1 : vector<2x3x32xf32>, vector<2x1x32xf32> -> vector<2x4x32xf32>
    %918 = vector.shape_cast %917 : vector<2x4x32xf32> to vector<8x32xf32>
    %c200_420 = arith.constant 200 : index
    %c0_421 = arith.constant 0 : index
    %919 = vector.load %arg6[%c200_420, %c0_421] : memref<848x32xf32, #tpu.memory_space<vmem>>, vector<32x32xf32>
    %cst_422 = arith.constant dense<0.000000e+00> : vector<8x32xf32>
    %920 = tpu.matmul %918, %919, %cst_422 {dimension_numbers = #tpu.dot_dimension_numbers<[1], [0], [0], [1], [0, 0, 1, 1], [], []>} : vector<8x32xf32>, vector<32x32xf32>, vector<8x32xf32> -> vector<8x32xf32>
    %921 = arith.addf %914, %920 : vector<8x32xf32>
    %922 = vector.extract_strided_slice %897 {offsets = [0, 2, 0], sizes = [2, 2, 32], strides = [1, 1, 1]} : vector<2x4x32xf32> to vector<2x2x32xf32>
    %cst_423 = arith.constant 0.000000e+00 : f32
    %923 = vector.broadcast %cst_423 : f32 to vector<2x2x32xf32>
    %924 = tpu.concatenate %922, %923 in 1 : vector<2x2x32xf32>, vector<2x2x32xf32> -> vector<2x4x32xf32>
    %925 = vector.shape_cast %924 : vector<2x4x32xf32> to vector<8x32xf32>
    %c232_424 = arith.constant 232 : index
    %c0_425 = arith.constant 0 : index
    %926 = vector.load %arg6[%c232_424, %c0_425] : memref<848x32xf32, #tpu.memory_space<vmem>>, vector<32x32xf32>
    %cst_426 = arith.constant dense<0.000000e+00> : vector<8x32xf32>
    %927 = tpu.matmul %925, %926, %cst_426 {dimension_numbers = #tpu.dot_dimension_numbers<[1], [0], [0], [1], [0, 0, 1, 1], [], []>} : vector<8x32xf32>, vector<32x32xf32>, vector<8x32xf32> -> vector<8x32xf32>
    %928 = arith.addf %921, %927 : vector<8x32xf32>
    %929 = vector.shape_cast %928 : vector<8x32xf32> to vector<2x4x32xf32>
    %c264_427 = arith.constant 264 : index
    %c0_428 = arith.constant 0 : index
    %930 = vector.load %arg6[%c264_427, %c0_428] : memref<848x32xf32, #tpu.memory_space<vmem>>, vector<1x32xf32>
    %931 = vector.shape_cast %930 : vector<1x32xf32> to vector<1x1x32xf32>
    %932 = vector.broadcast %931 : vector<1x1x32xf32> to vector<2x4x32xf32>
    %933 = arith.addf %929, %932 : vector<2x4x32xf32>
    %c816_429 = arith.constant 816 : index
    %c0_430 = arith.constant 0 : index
    %934 = vector.load %arg6[%c816_429, %c0_430] : memref<848x32xf32, #tpu.memory_space<vmem>>, vector<32x32xf32>
    %cst_431 = arith.constant dense<0.000000e+00> : vector<2x32xf32>
    %935 = vector.multi_reduction <add>, %933, %cst_431 [1] : vector<2x4x32xf32> to vector<2x32xf32>
    %cst_432 = arith.constant 4.000000e+00 : f32
    %936 = vector.broadcast %cst_432 : f32 to vector<2x32xf32>
    %937 = arith.divf %935, %936 : vector<2x32xf32>
    %cst_433 = arith.constant dense<0.000000e+00> : vector<2x32xf32>
    %938 = tpu.matmul %937, %934, %cst_433 {dimension_numbers = #tpu.dot_dimension_numbers<[1], [0], [0], [1], [0, 0, 1, 1], [], []>} : vector<2x32xf32>, vector<32x32xf32>, vector<2x32xf32> -> vector<2x32xf32>
    %939 = vector.shape_cast %938 : vector<2x32xf32> to vector<2x1x32xf32>
    %940 = vector.broadcast %939 : vector<2x1x32xf32> to vector<2x4x32xf32>
    %941 = arith.subf %933, %940 : vector<2x4x32xf32>
    %942 = arith.mulf %941, %941 : vector<2x4x32xf32>
    %cst_434 = arith.constant dense<0.000000e+00> : vector<2x32xf32>
    %943 = vector.multi_reduction <add>, %942, %cst_434 [1] : vector<2x4x32xf32> to vector<2x32xf32>
    %cst_435 = arith.constant 4.000000e+00 : f32
    %944 = vector.broadcast %cst_435 : f32 to vector<2x32xf32>
    %945 = arith.divf %943, %944 : vector<2x32xf32>
    %cst_436 = arith.constant dense<0.000000e+00> : vector<2x32xf32>
    %946 = tpu.matmul %945, %934, %cst_436 {dimension_numbers = #tpu.dot_dimension_numbers<[1], [0], [0], [1], [0, 0, 1, 1], [], []>} : vector<2x32xf32>, vector<32x32xf32>, vector<2x32xf32> -> vector<2x32xf32>
    %cst_437 = arith.constant 9.99999974E-6 : f32
    %947 = vector.broadcast %cst_437 : f32 to vector<2x32xf32>
    %948 = arith.addf %946, %947 : vector<2x32xf32>
    %949 = math.rsqrt %948 : vector<2x32xf32>
    %950 = vector.shape_cast %949 : vector<2x32xf32> to vector<2x1x32xf32>
    %951 = vector.broadcast %950 : vector<2x1x32xf32> to vector<2x4x32xf32>
    %952 = arith.mulf %941, %951 : vector<2x4x32xf32>
    %c272_438 = arith.constant 272 : index
    %c0_439 = arith.constant 0 : index
    %953 = vector.load %arg6[%c272_438, %c0_439] : memref<848x32xf32, #tpu.memory_space<vmem>>, vector<1x32xf32>
    %954 = vector.shape_cast %953 : vector<1x32xf32> to vector<1x1x32xf32>
    %955 = vector.broadcast %954 : vector<1x1x32xf32> to vector<2x4x32xf32>
    %956 = arith.mulf %952, %955 : vector<2x4x32xf32>
    %c280_440 = arith.constant 280 : index
    %c0_441 = arith.constant 0 : index
    %957 = vector.load %arg6[%c280_440, %c0_441] : memref<848x32xf32, #tpu.memory_space<vmem>>, vector<1x32xf32>
    %958 = vector.shape_cast %957 : vector<1x32xf32> to vector<1x1x32xf32>
    %959 = vector.broadcast %958 : vector<1x1x32xf32> to vector<2x4x32xf32>
    %960 = arith.addf %956, %959 : vector<2x4x32xf32>
    %cst_442 = arith.constant 2.000000e+01 : f32
    %961 = vector.broadcast %cst_442 : f32 to vector<2x4x32xf32>
    %962 = arith.minimumf %960, %961 : vector<2x4x32xf32>
    %963 = math.exp %962 : vector<2x4x32xf32>
    %cst_443 = arith.constant 1.000000e+00 : f32
    %964 = vector.broadcast %cst_443 : f32 to vector<2x4x32xf32>
    %965 = arith.addf %964, %963 : vector<2x4x32xf32>
    %cst_444 = arith.constant 1.000000e+00 : f32
    %966 = vector.broadcast %cst_444 : f32 to vector<2x4x32xf32>
    %967 = arith.addf %966, %963 : vector<2x4x32xf32>
    %968 = arith.mulf %965, %967 : vector<2x4x32xf32>
    %cst_445 = arith.constant 1.000000e+00 : f32
    %969 = vector.broadcast %cst_445 : f32 to vector<2x4x32xf32>
    %970 = arith.subf %968, %969 : vector<2x4x32xf32>
    %cst_446 = arith.constant 1.000000e+00 : f32
    %971 = vector.broadcast %cst_446 : f32 to vector<2x4x32xf32>
    %972 = arith.addf %968, %971 : vector<2x4x32xf32>
    %973 = tpu.reciprocal %972 {approx = true} : vector<2x4x32xf32> -> vector<2x4x32xf32>
    %974 = arith.mulf %970, %973 : vector<2x4x32xf32>
    %cst_447 = arith.constant 2.000000e+01 : f32
    %975 = vector.broadcast %cst_447 : f32 to vector<2x4x32xf32>
    %976 = arith.cmpf ogt, %960, %975 : vector<2x4x32xf32>
    %cst_448 = arith.constant 1.000000e+00 : f32
    %977 = vector.broadcast %cst_448 : f32 to vector<2x4x32xf32>
    %978 = arith.select %976, %977, %974 : vector<2x4x32xi1>, vector<2x4x32xf32>
    %979 = arith.mulf %960, %978 : vector<2x4x32xf32>
    %980 = vector.shape_cast %807 : vector<2x4x16xf32> to vector<8x16xf32>
    %c304_449 = arith.constant 304 : index
    %c0_450 = arith.constant 0 : index
    %981 = vector.load %arg6[%c304_449, %c0_450] : memref<848x32xf32, #tpu.memory_space<vmem>>, vector<16x32xf32>
    %cst_451 = arith.constant dense<0.000000e+00> : vector<8x32xf32>
    %982 = tpu.matmul %980, %981, %cst_451 {dimension_numbers = #tpu.dot_dimension_numbers<[1], [0], [0], [1], [0, 0, 1, 1], [], []>} : vector<8x16xf32>, vector<16x32xf32>, vector<8x32xf32> -> vector<8x32xf32>
    %c320_452 = arith.constant 320 : index
    %c0_453 = arith.constant 0 : index
    %983 = vector.load %arg6[%c320_452, %c0_453] : memref<848x32xf32, #tpu.memory_space<vmem>>, vector<1x32xf32>
    %984 = vector.broadcast %983 : vector<1x32xf32> to vector<8x32xf32>
    %985 = arith.addf %982, %984 : vector<8x32xf32>
    %986 = vector.shape_cast %985 : vector<8x32xf32> to vector<2x4x32xf32>
    %987 = arith.addf %979, %986 : vector<2x4x32xf32>
    %cst_454 = arith.constant 0.000000e+00 : f32
    %988 = vector.broadcast %cst_454 : f32 to vector<2x2x32xf32>
    %989 = vector.extract_strided_slice %987 {offsets = [0, 0, 0], sizes = [2, 2, 32], strides = [1, 1, 1]} : vector<2x4x32xf32> to vector<2x2x32xf32>
    %990 = tpu.concatenate %988, %989 in 1 : vector<2x2x32xf32>, vector<2x2x32xf32> -> vector<2x4x32xf32>
    %991 = vector.shape_cast %990 : vector<2x4x32xf32> to vector<8x32xf32>
    %c328_455 = arith.constant 328 : index
    %c0_456 = arith.constant 0 : index
    %992 = vector.load %arg6[%c328_455, %c0_456] : memref<848x32xf32, #tpu.memory_space<vmem>>, vector<32x32xf32>
    %cst_457 = arith.constant dense<0.000000e+00> : vector<8x32xf32>
    %993 = tpu.matmul %991, %992, %cst_457 {dimension_numbers = #tpu.dot_dimension_numbers<[1], [0], [0], [1], [0, 0, 1, 1], [], []>} : vector<8x32xf32>, vector<32x32xf32>, vector<8x32xf32> -> vector<8x32xf32>
    %cst_458 = arith.constant 0.000000e+00 : f32
    %994 = vector.broadcast %cst_458 : f32 to vector<2x1x32xf32>
    %995 = vector.extract_strided_slice %987 {offsets = [0, 0, 0], sizes = [2, 3, 32], strides = [1, 1, 1]} : vector<2x4x32xf32> to vector<2x3x32xf32>
    %996 = tpu.concatenate %994, %995 in 1 : vector<2x1x32xf32>, vector<2x3x32xf32> -> vector<2x4x32xf32>
    %997 = vector.shape_cast %996 : vector<2x4x32xf32> to vector<8x32xf32>
    %c360 = arith.constant 360 : index
    %c0_459 = arith.constant 0 : index
    %998 = vector.load %arg6[%c360, %c0_459] : memref<848x32xf32, #tpu.memory_space<vmem>>, vector<32x32xf32>
    %cst_460 = arith.constant dense<0.000000e+00> : vector<8x32xf32>
    %999 = tpu.matmul %997, %998, %cst_460 {dimension_numbers = #tpu.dot_dimension_numbers<[1], [0], [0], [1], [0, 0, 1, 1], [], []>} : vector<8x32xf32>, vector<32x32xf32>, vector<8x32xf32> -> vector<8x32xf32>
    %1000 = arith.addf %993, %999 : vector<8x32xf32>
    %1001 = vector.shape_cast %987 : vector<2x4x32xf32> to vector<8x32xf32>
    %c392_461 = arith.constant 392 : index
    %c0_462 = arith.constant 0 : index
    %1002 = vector.load %arg6[%c392_461, %c0_462] : memref<848x32xf32, #tpu.memory_space<vmem>>, vector<32x32xf32>
    %cst_463 = arith.constant dense<0.000000e+00> : vector<8x32xf32>
    %1003 = tpu.matmul %1001, %1002, %cst_463 {dimension_numbers = #tpu.dot_dimension_numbers<[1], [0], [0], [1], [0, 0, 1, 1], [], []>} : vector<8x32xf32>, vector<32x32xf32>, vector<8x32xf32> -> vector<8x32xf32>
    %1004 = arith.addf %1000, %1003 : vector<8x32xf32>
    %1005 = vector.extract_strided_slice %987 {offsets = [0, 1, 0], sizes = [2, 3, 32], strides = [1, 1, 1]} : vector<2x4x32xf32> to vector<2x3x32xf32>
    %cst_464 = arith.constant 0.000000e+00 : f32
    %1006 = vector.broadcast %cst_464 : f32 to vector<2x1x32xf32>
    %1007 = tpu.concatenate %1005, %1006 in 1 : vector<2x3x32xf32>, vector<2x1x32xf32> -> vector<2x4x32xf32>
    %1008 = vector.shape_cast %1007 : vector<2x4x32xf32> to vector<8x32xf32>
    %c424_465 = arith.constant 424 : index
    %c0_466 = arith.constant 0 : index
    %1009 = vector.load %arg6[%c424_465, %c0_466] : memref<848x32xf32, #tpu.memory_space<vmem>>, vector<32x32xf32>
    %cst_467 = arith.constant dense<0.000000e+00> : vector<8x32xf32>
    %1010 = tpu.matmul %1008, %1009, %cst_467 {dimension_numbers = #tpu.dot_dimension_numbers<[1], [0], [0], [1], [0, 0, 1, 1], [], []>} : vector<8x32xf32>, vector<32x32xf32>, vector<8x32xf32> -> vector<8x32xf32>
    %1011 = arith.addf %1004, %1010 : vector<8x32xf32>
    %1012 = vector.extract_strided_slice %987 {offsets = [0, 2, 0], sizes = [2, 2, 32], strides = [1, 1, 1]} : vector<2x4x32xf32> to vector<2x2x32xf32>
    %cst_468 = arith.constant 0.000000e+00 : f32
    %1013 = vector.broadcast %cst_468 : f32 to vector<2x2x32xf32>
    %1014 = tpu.concatenate %1012, %1013 in 1 : vector<2x2x32xf32>, vector<2x2x32xf32> -> vector<2x4x32xf32>
    %1015 = vector.shape_cast %1014 : vector<2x4x32xf32> to vector<8x32xf32>
    %c456_469 = arith.constant 456 : index
    %c0_470 = arith.constant 0 : index
    %1016 = vector.load %arg6[%c456_469, %c0_470] : memref<848x32xf32, #tpu.memory_space<vmem>>, vector<32x32xf32>
    %cst_471 = arith.constant dense<0.000000e+00> : vector<8x32xf32>
    %1017 = tpu.matmul %1015, %1016, %cst_471 {dimension_numbers = #tpu.dot_dimension_numbers<[1], [0], [0], [1], [0, 0, 1, 1], [], []>} : vector<8x32xf32>, vector<32x32xf32>, vector<8x32xf32> -> vector<8x32xf32>
    %1018 = arith.addf %1011, %1017 : vector<8x32xf32>
    %1019 = vector.shape_cast %1018 : vector<8x32xf32> to vector<2x4x32xf32>
    %c488 = arith.constant 488 : index
    %c0_472 = arith.constant 0 : index
    %1020 = vector.load %arg6[%c488, %c0_472] : memref<848x32xf32, #tpu.memory_space<vmem>>, vector<1x32xf32>
    %1021 = vector.shape_cast %1020 : vector<1x32xf32> to vector<1x1x32xf32>
    %1022 = vector.broadcast %1021 : vector<1x1x32xf32> to vector<2x4x32xf32>
    %1023 = arith.addf %1019, %1022 : vector<2x4x32xf32>
    %c816_473 = arith.constant 816 : index
    %c0_474 = arith.constant 0 : index
    %1024 = vector.load %arg6[%c816_473, %c0_474] : memref<848x32xf32, #tpu.memory_space<vmem>>, vector<32x32xf32>
    %cst_475 = arith.constant dense<0.000000e+00> : vector<2x32xf32>
    %1025 = vector.multi_reduction <add>, %1023, %cst_475 [1] : vector<2x4x32xf32> to vector<2x32xf32>
    %cst_476 = arith.constant 4.000000e+00 : f32
    %1026 = vector.broadcast %cst_476 : f32 to vector<2x32xf32>
    %1027 = arith.divf %1025, %1026 : vector<2x32xf32>
    %cst_477 = arith.constant dense<0.000000e+00> : vector<2x32xf32>
    %1028 = tpu.matmul %1027, %1024, %cst_477 {dimension_numbers = #tpu.dot_dimension_numbers<[1], [0], [0], [1], [0, 0, 1, 1], [], []>} : vector<2x32xf32>, vector<32x32xf32>, vector<2x32xf32> -> vector<2x32xf32>
    %1029 = vector.shape_cast %1028 : vector<2x32xf32> to vector<2x1x32xf32>
    %1030 = vector.broadcast %1029 : vector<2x1x32xf32> to vector<2x4x32xf32>
    %1031 = arith.subf %1023, %1030 : vector<2x4x32xf32>
    %1032 = arith.mulf %1031, %1031 : vector<2x4x32xf32>
    %cst_478 = arith.constant dense<0.000000e+00> : vector<2x32xf32>
    %1033 = vector.multi_reduction <add>, %1032, %cst_478 [1] : vector<2x4x32xf32> to vector<2x32xf32>
    %cst_479 = arith.constant 4.000000e+00 : f32
    %1034 = vector.broadcast %cst_479 : f32 to vector<2x32xf32>
    %1035 = arith.divf %1033, %1034 : vector<2x32xf32>
    %cst_480 = arith.constant dense<0.000000e+00> : vector<2x32xf32>
    %1036 = tpu.matmul %1035, %1024, %cst_480 {dimension_numbers = #tpu.dot_dimension_numbers<[1], [0], [0], [1], [0, 0, 1, 1], [], []>} : vector<2x32xf32>, vector<32x32xf32>, vector<2x32xf32> -> vector<2x32xf32>
    %cst_481 = arith.constant 9.99999974E-6 : f32
    %1037 = vector.broadcast %cst_481 : f32 to vector<2x32xf32>
    %1038 = arith.addf %1036, %1037 : vector<2x32xf32>
    %1039 = math.rsqrt %1038 : vector<2x32xf32>
    %1040 = vector.shape_cast %1039 : vector<2x32xf32> to vector<2x1x32xf32>
    %1041 = vector.broadcast %1040 : vector<2x1x32xf32> to vector<2x4x32xf32>
    %1042 = arith.mulf %1031, %1041 : vector<2x4x32xf32>
    %c496 = arith.constant 496 : index
    %c0_482 = arith.constant 0 : index
    %1043 = vector.load %arg6[%c496, %c0_482] : memref<848x32xf32, #tpu.memory_space<vmem>>, vector<1x32xf32>
    %1044 = vector.shape_cast %1043 : vector<1x32xf32> to vector<1x1x32xf32>
    %1045 = vector.broadcast %1044 : vector<1x1x32xf32> to vector<2x4x32xf32>
    %1046 = arith.mulf %1042, %1045 : vector<2x4x32xf32>
    %c504 = arith.constant 504 : index
    %c0_483 = arith.constant 0 : index
    %1047 = vector.load %arg6[%c504, %c0_483] : memref<848x32xf32, #tpu.memory_space<vmem>>, vector<1x32xf32>
    %1048 = vector.shape_cast %1047 : vector<1x32xf32> to vector<1x1x32xf32>
    %1049 = vector.broadcast %1048 : vector<1x1x32xf32> to vector<2x4x32xf32>
    %1050 = arith.addf %1046, %1049 : vector<2x4x32xf32>
    %cst_484 = arith.constant 2.000000e+01 : f32
    %1051 = vector.broadcast %cst_484 : f32 to vector<2x4x32xf32>
    %1052 = arith.minimumf %1050, %1051 : vector<2x4x32xf32>
    %1053 = math.exp %1052 : vector<2x4x32xf32>
    %cst_485 = arith.constant 1.000000e+00 : f32
    %1054 = vector.broadcast %cst_485 : f32 to vector<2x4x32xf32>
    %1055 = arith.addf %1054, %1053 : vector<2x4x32xf32>
    %cst_486 = arith.constant 1.000000e+00 : f32
    %1056 = vector.broadcast %cst_486 : f32 to vector<2x4x32xf32>
    %1057 = arith.addf %1056, %1053 : vector<2x4x32xf32>
    %1058 = arith.mulf %1055, %1057 : vector<2x4x32xf32>
    %cst_487 = arith.constant 1.000000e+00 : f32
    %1059 = vector.broadcast %cst_487 : f32 to vector<2x4x32xf32>
    %1060 = arith.subf %1058, %1059 : vector<2x4x32xf32>
    %cst_488 = arith.constant 1.000000e+00 : f32
    %1061 = vector.broadcast %cst_488 : f32 to vector<2x4x32xf32>
    %1062 = arith.addf %1058, %1061 : vector<2x4x32xf32>
    %1063 = tpu.reciprocal %1062 {approx = true} : vector<2x4x32xf32> -> vector<2x4x32xf32>
    %1064 = arith.mulf %1060, %1063 : vector<2x4x32xf32>
    %cst_489 = arith.constant 2.000000e+01 : f32
    %1065 = vector.broadcast %cst_489 : f32 to vector<2x4x32xf32>
    %1066 = arith.cmpf ogt, %1050, %1065 : vector<2x4x32xf32>
    %cst_490 = arith.constant 1.000000e+00 : f32
    %1067 = vector.broadcast %cst_490 : f32 to vector<2x4x32xf32>
    %1068 = arith.select %1066, %1067, %1064 : vector<2x4x32xi1>, vector<2x4x32xf32>
    %1069 = arith.mulf %1050, %1068 : vector<2x4x32xf32>
    %c696 = arith.constant 696 : index
    %c0_491 = arith.constant 0 : index
    %1070 = vector.load %arg6[%c696, %c0_491] : memref<848x32xf32, #tpu.memory_space<vmem>>, vector<8x32xf32>
    %cst_492 = arith.constant dense<0.000000e+00> : vector<2x32xf32>
    %1071 = tpu.matmul %48, %1070, %cst_492 {dimension_numbers = #tpu.dot_dimension_numbers<[1], [0], [0], [1], [0, 0, 1, 1], [], []>} : vector<2x8xf32>, vector<8x32xf32>, vector<2x32xf32> -> vector<2x32xf32>
    %c704 = arith.constant 704 : index
    %c0_493 = arith.constant 0 : index
    %1072 = vector.load %arg6[%c704, %c0_493] : memref<848x32xf32, #tpu.memory_space<vmem>>, vector<1x32xf32>
    %1073 = vector.broadcast %1072 : vector<1x32xf32> to vector<2x32xf32>
    %1074 = arith.addf %1071, %1073 : vector<2x32xf32>
    %1075 = vector.shape_cast %1074 : vector<2x32xf32> to vector<2x1x32xf32>
    %1076 = vector.broadcast %1075 : vector<2x1x32xf32> to vector<2x4x32xf32>
    %1077 = arith.addf %1069, %1076 : vector<2x4x32xf32>
    %cst_494 = arith.constant 0.000000e+00 : f32
    %1078 = vector.broadcast %cst_494 : f32 to vector<2x2x32xf32>
    %1079 = vector.extract_strided_slice %1077 {offsets = [0, 0, 0], sizes = [2, 2, 32], strides = [1, 1, 1]} : vector<2x4x32xf32> to vector<2x2x32xf32>
    %1080 = tpu.concatenate %1078, %1079 in 1 : vector<2x2x32xf32>, vector<2x2x32xf32> -> vector<2x4x32xf32>
    %1081 = vector.shape_cast %1080 : vector<2x4x32xf32> to vector<8x32xf32>
    %c512 = arith.constant 512 : index
    %c0_495 = arith.constant 0 : index
    %1082 = vector.load %arg6[%c512, %c0_495] : memref<848x32xf32, #tpu.memory_space<vmem>>, vector<32x32xf32>
    %cst_496 = arith.constant dense<0.000000e+00> : vector<8x32xf32>
    %1083 = tpu.matmul %1081, %1082, %cst_496 {dimension_numbers = #tpu.dot_dimension_numbers<[1], [0], [0], [1], [0, 0, 1, 1], [], []>} : vector<8x32xf32>, vector<32x32xf32>, vector<8x32xf32> -> vector<8x32xf32>
    %cst_497 = arith.constant 0.000000e+00 : f32
    %1084 = vector.broadcast %cst_497 : f32 to vector<2x1x32xf32>
    %1085 = vector.extract_strided_slice %1077 {offsets = [0, 0, 0], sizes = [2, 3, 32], strides = [1, 1, 1]} : vector<2x4x32xf32> to vector<2x3x32xf32>
    %1086 = tpu.concatenate %1084, %1085 in 1 : vector<2x1x32xf32>, vector<2x3x32xf32> -> vector<2x4x32xf32>
    %1087 = vector.shape_cast %1086 : vector<2x4x32xf32> to vector<8x32xf32>
    %c544 = arith.constant 544 : index
    %c0_498 = arith.constant 0 : index
    %1088 = vector.load %arg6[%c544, %c0_498] : memref<848x32xf32, #tpu.memory_space<vmem>>, vector<32x32xf32>
    %cst_499 = arith.constant dense<0.000000e+00> : vector<8x32xf32>
    %1089 = tpu.matmul %1087, %1088, %cst_499 {dimension_numbers = #tpu.dot_dimension_numbers<[1], [0], [0], [1], [0, 0, 1, 1], [], []>} : vector<8x32xf32>, vector<32x32xf32>, vector<8x32xf32> -> vector<8x32xf32>
    %1090 = arith.addf %1083, %1089 : vector<8x32xf32>
    %1091 = vector.shape_cast %1077 : vector<2x4x32xf32> to vector<8x32xf32>
    %c576 = arith.constant 576 : index
    %c0_500 = arith.constant 0 : index
    %1092 = vector.load %arg6[%c576, %c0_500] : memref<848x32xf32, #tpu.memory_space<vmem>>, vector<32x32xf32>
    %cst_501 = arith.constant dense<0.000000e+00> : vector<8x32xf32>
    %1093 = tpu.matmul %1091, %1092, %cst_501 {dimension_numbers = #tpu.dot_dimension_numbers<[1], [0], [0], [1], [0, 0, 1, 1], [], []>} : vector<8x32xf32>, vector<32x32xf32>, vector<8x32xf32> -> vector<8x32xf32>
    %1094 = arith.addf %1090, %1093 : vector<8x32xf32>
    %1095 = vector.extract_strided_slice %1077 {offsets = [0, 1, 0], sizes = [2, 3, 32], strides = [1, 1, 1]} : vector<2x4x32xf32> to vector<2x3x32xf32>
    %cst_502 = arith.constant 0.000000e+00 : f32
    %1096 = vector.broadcast %cst_502 : f32 to vector<2x1x32xf32>
    %1097 = tpu.concatenate %1095, %1096 in 1 : vector<2x3x32xf32>, vector<2x1x32xf32> -> vector<2x4x32xf32>
    %1098 = vector.shape_cast %1097 : vector<2x4x32xf32> to vector<8x32xf32>
    %c608 = arith.constant 608 : index
    %c0_503 = arith.constant 0 : index
    %1099 = vector.load %arg6[%c608, %c0_503] : memref<848x32xf32, #tpu.memory_space<vmem>>, vector<32x32xf32>
    %cst_504 = arith.constant dense<0.000000e+00> : vector<8x32xf32>
    %1100 = tpu.matmul %1098, %1099, %cst_504 {dimension_numbers = #tpu.dot_dimension_numbers<[1], [0], [0], [1], [0, 0, 1, 1], [], []>} : vector<8x32xf32>, vector<32x32xf32>, vector<8x32xf32> -> vector<8x32xf32>
    %1101 = arith.addf %1094, %1100 : vector<8x32xf32>
    %1102 = vector.extract_strided_slice %1077 {offsets = [0, 2, 0], sizes = [2, 2, 32], strides = [1, 1, 1]} : vector<2x4x32xf32> to vector<2x2x32xf32>
    %cst_505 = arith.constant 0.000000e+00 : f32
    %1103 = vector.broadcast %cst_505 : f32 to vector<2x2x32xf32>
    %1104 = tpu.concatenate %1102, %1103 in 1 : vector<2x2x32xf32>, vector<2x2x32xf32> -> vector<2x4x32xf32>
    %1105 = vector.shape_cast %1104 : vector<2x4x32xf32> to vector<8x32xf32>
    %c640 = arith.constant 640 : index
    %c0_506 = arith.constant 0 : index
    %1106 = vector.load %arg6[%c640, %c0_506] : memref<848x32xf32, #tpu.memory_space<vmem>>, vector<32x32xf32>
    %cst_507 = arith.constant dense<0.000000e+00> : vector<8x32xf32>
    %1107 = tpu.matmul %1105, %1106, %cst_507 {dimension_numbers = #tpu.dot_dimension_numbers<[1], [0], [0], [1], [0, 0, 1, 1], [], []>} : vector<8x32xf32>, vector<32x32xf32>, vector<8x32xf32> -> vector<8x32xf32>
    %1108 = arith.addf %1101, %1107 : vector<8x32xf32>
    %1109 = vector.shape_cast %1108 : vector<8x32xf32> to vector<2x4x32xf32>
    %c672 = arith.constant 672 : index
    %c0_508 = arith.constant 0 : index
    %1110 = vector.load %arg6[%c672, %c0_508] : memref<848x32xf32, #tpu.memory_space<vmem>>, vector<1x32xf32>
    %1111 = vector.shape_cast %1110 : vector<1x32xf32> to vector<1x1x32xf32>
    %1112 = vector.broadcast %1111 : vector<1x1x32xf32> to vector<2x4x32xf32>
    %1113 = arith.addf %1109, %1112 : vector<2x4x32xf32>
    %c816_509 = arith.constant 816 : index
    %c0_510 = arith.constant 0 : index
    %1114 = vector.load %arg6[%c816_509, %c0_510] : memref<848x32xf32, #tpu.memory_space<vmem>>, vector<32x32xf32>
    %cst_511 = arith.constant dense<0.000000e+00> : vector<2x32xf32>
    %1115 = vector.multi_reduction <add>, %1113, %cst_511 [1] : vector<2x4x32xf32> to vector<2x32xf32>
    %cst_512 = arith.constant 4.000000e+00 : f32
    %1116 = vector.broadcast %cst_512 : f32 to vector<2x32xf32>
    %1117 = arith.divf %1115, %1116 : vector<2x32xf32>
    %cst_513 = arith.constant dense<0.000000e+00> : vector<2x32xf32>
    %1118 = tpu.matmul %1117, %1114, %cst_513 {dimension_numbers = #tpu.dot_dimension_numbers<[1], [0], [0], [1], [0, 0, 1, 1], [], []>} : vector<2x32xf32>, vector<32x32xf32>, vector<2x32xf32> -> vector<2x32xf32>
    %1119 = vector.shape_cast %1118 : vector<2x32xf32> to vector<2x1x32xf32>
    %1120 = vector.broadcast %1119 : vector<2x1x32xf32> to vector<2x4x32xf32>
    %1121 = arith.subf %1113, %1120 : vector<2x4x32xf32>
    %1122 = arith.mulf %1121, %1121 : vector<2x4x32xf32>
    %cst_514 = arith.constant dense<0.000000e+00> : vector<2x32xf32>
    %1123 = vector.multi_reduction <add>, %1122, %cst_514 [1] : vector<2x4x32xf32> to vector<2x32xf32>
    %cst_515 = arith.constant 4.000000e+00 : f32
    %1124 = vector.broadcast %cst_515 : f32 to vector<2x32xf32>
    %1125 = arith.divf %1123, %1124 : vector<2x32xf32>
    %cst_516 = arith.constant dense<0.000000e+00> : vector<2x32xf32>
    %1126 = tpu.matmul %1125, %1114, %cst_516 {dimension_numbers = #tpu.dot_dimension_numbers<[1], [0], [0], [1], [0, 0, 1, 1], [], []>} : vector<2x32xf32>, vector<32x32xf32>, vector<2x32xf32> -> vector<2x32xf32>
    %cst_517 = arith.constant 9.99999974E-6 : f32
    %1127 = vector.broadcast %cst_517 : f32 to vector<2x32xf32>
    %1128 = arith.addf %1126, %1127 : vector<2x32xf32>
    %1129 = math.rsqrt %1128 : vector<2x32xf32>
    %1130 = vector.shape_cast %1129 : vector<2x32xf32> to vector<2x1x32xf32>
    %1131 = vector.broadcast %1130 : vector<2x1x32xf32> to vector<2x4x32xf32>
    %1132 = arith.mulf %1121, %1131 : vector<2x4x32xf32>
    %c680 = arith.constant 680 : index
    %c0_518 = arith.constant 0 : index
    %1133 = vector.load %arg6[%c680, %c0_518] : memref<848x32xf32, #tpu.memory_space<vmem>>, vector<1x32xf32>
    %1134 = vector.shape_cast %1133 : vector<1x32xf32> to vector<1x1x32xf32>
    %1135 = vector.broadcast %1134 : vector<1x1x32xf32> to vector<2x4x32xf32>
    %1136 = arith.mulf %1132, %1135 : vector<2x4x32xf32>
    %c688 = arith.constant 688 : index
    %c0_519 = arith.constant 0 : index
    %1137 = vector.load %arg6[%c688, %c0_519] : memref<848x32xf32, #tpu.memory_space<vmem>>, vector<1x32xf32>
    %1138 = vector.shape_cast %1137 : vector<1x32xf32> to vector<1x1x32xf32>
    %1139 = vector.broadcast %1138 : vector<1x1x32xf32> to vector<2x4x32xf32>
    %1140 = arith.addf %1136, %1139 : vector<2x4x32xf32>
    %cst_520 = arith.constant 2.000000e+01 : f32
    %1141 = vector.broadcast %cst_520 : f32 to vector<2x4x32xf32>
    %1142 = arith.minimumf %1140, %1141 : vector<2x4x32xf32>
    %1143 = math.exp %1142 : vector<2x4x32xf32>
    %cst_521 = arith.constant 1.000000e+00 : f32
    %1144 = vector.broadcast %cst_521 : f32 to vector<2x4x32xf32>
    %1145 = arith.addf %1144, %1143 : vector<2x4x32xf32>
    %cst_522 = arith.constant 1.000000e+00 : f32
    %1146 = vector.broadcast %cst_522 : f32 to vector<2x4x32xf32>
    %1147 = arith.addf %1146, %1143 : vector<2x4x32xf32>
    %1148 = arith.mulf %1145, %1147 : vector<2x4x32xf32>
    %cst_523 = arith.constant 1.000000e+00 : f32
    %1149 = vector.broadcast %cst_523 : f32 to vector<2x4x32xf32>
    %1150 = arith.subf %1148, %1149 : vector<2x4x32xf32>
    %cst_524 = arith.constant 1.000000e+00 : f32
    %1151 = vector.broadcast %cst_524 : f32 to vector<2x4x32xf32>
    %1152 = arith.addf %1148, %1151 : vector<2x4x32xf32>
    %1153 = tpu.reciprocal %1152 {approx = true} : vector<2x4x32xf32> -> vector<2x4x32xf32>
    %1154 = arith.mulf %1150, %1153 : vector<2x4x32xf32>
    %cst_525 = arith.constant 2.000000e+01 : f32
    %1155 = vector.broadcast %cst_525 : f32 to vector<2x4x32xf32>
    %1156 = arith.cmpf ogt, %1140, %1155 : vector<2x4x32xf32>
    %cst_526 = arith.constant 1.000000e+00 : f32
    %1157 = vector.broadcast %cst_526 : f32 to vector<2x4x32xf32>
    %1158 = arith.select %1156, %1157, %1154 : vector<2x4x32xi1>, vector<2x4x32xf32>
    %1159 = arith.mulf %1140, %1158 : vector<2x4x32xf32>
    %1160 = arith.addf %1159, %987 : vector<2x4x32xf32>
    %cst_527 = arith.constant 0.000000e+00 : f32
    %1161 = vector.broadcast %cst_527 : f32 to vector<2x1x32xf32>
    %1162 = vector.extract_strided_slice %1160 {offsets = [0, 0, 0], sizes = [2, 3, 32], strides = [1, 1, 1]} : vector<2x4x32xf32> to vector<2x3x32xf32>
    %1163 = tpu.concatenate %1161, %1162 in 1 : vector<2x1x32xf32>, vector<2x3x32xf32> -> vector<2x4x32xf32>
    %1164 = vector.shape_cast %1163 : vector<2x4x32xf32> to vector<8x32xf32>
    %c712 = arith.constant 712 : index
    %c0_528 = arith.constant 0 : index
    %1165 = vector.load %arg6[%c712, %c0_528] : memref<848x32xf32, #tpu.memory_space<vmem>>, vector<32x32xf32>
    %cst_529 = arith.constant dense<0.000000e+00> : vector<8x32xf32>
    %1166 = tpu.matmul %1164, %1165, %cst_529 {dimension_numbers = #tpu.dot_dimension_numbers<[1], [0], [0], [1], [0, 0, 1, 1], [], []>} : vector<8x32xf32>, vector<32x32xf32>, vector<8x32xf32> -> vector<8x32xf32>
    %1167 = vector.shape_cast %1160 : vector<2x4x32xf32> to vector<8x32xf32>
    %c744 = arith.constant 744 : index
    %c0_530 = arith.constant 0 : index
    %1168 = vector.load %arg6[%c744, %c0_530] : memref<848x32xf32, #tpu.memory_space<vmem>>, vector<32x32xf32>
    %cst_531 = arith.constant dense<0.000000e+00> : vector<8x32xf32>
    %1169 = tpu.matmul %1167, %1168, %cst_531 {dimension_numbers = #tpu.dot_dimension_numbers<[1], [0], [0], [1], [0, 0, 1, 1], [], []>} : vector<8x32xf32>, vector<32x32xf32>, vector<8x32xf32> -> vector<8x32xf32>
    %1170 = arith.addf %1166, %1169 : vector<8x32xf32>
    %1171 = vector.extract_strided_slice %1160 {offsets = [0, 1, 0], sizes = [2, 3, 32], strides = [1, 1, 1]} : vector<2x4x32xf32> to vector<2x3x32xf32>
    %cst_532 = arith.constant 0.000000e+00 : f32
    %1172 = vector.broadcast %cst_532 : f32 to vector<2x1x32xf32>
    %1173 = tpu.concatenate %1171, %1172 in 1 : vector<2x3x32xf32>, vector<2x1x32xf32> -> vector<2x4x32xf32>
    %1174 = vector.shape_cast %1173 : vector<2x4x32xf32> to vector<8x32xf32>
    %c776 = arith.constant 776 : index
    %c0_533 = arith.constant 0 : index
    %1175 = vector.load %arg6[%c776, %c0_533] : memref<848x32xf32, #tpu.memory_space<vmem>>, vector<32x32xf32>
    %cst_534 = arith.constant dense<0.000000e+00> : vector<8x32xf32>
    %1176 = tpu.matmul %1174, %1175, %cst_534 {dimension_numbers = #tpu.dot_dimension_numbers<[1], [0], [0], [1], [0, 0, 1, 1], [], []>} : vector<8x32xf32>, vector<32x32xf32>, vector<8x32xf32> -> vector<8x32xf32>
    %1177 = arith.addf %1170, %1176 : vector<8x32xf32>
    %1178 = vector.shape_cast %1177 : vector<8x32xf32> to vector<2x4x32xf32>
    %c808 = arith.constant 808 : index
    %c0_535 = arith.constant 0 : index
    %1179 = vector.load %arg6[%c808, %c0_535] : memref<848x32xf32, #tpu.memory_space<vmem>>, vector<1x32xf32>
    %1180 = vector.shape_cast %1179 : vector<1x32xf32> to vector<1x1x32xf32>
    %1181 = vector.broadcast %1180 : vector<1x1x32xf32> to vector<2x4x32xf32>
    %1182 = arith.addf %1178, %1181 : vector<2x4x32xf32>
    %c0_536 = arith.constant 0 : index
    %c0_537 = arith.constant 0 : index
    %1183 = vector.load %arg10[%c0_536, %c0_537] : memref<4x8xf32, #tpu.memory_space<vmem>>, vector<4x8xf32>
    %1184 = vector.shape_cast %1182 : vector<2x4x32xf32> to vector<8x32xf32>
    %cst_538 = arith.constant dense<0.000000e+00> : vector<4x32xf32>
    %1185 = tpu.matmul %1183, %1184, %cst_538 {dimension_numbers = #tpu.dot_dimension_numbers<[1], [0], [0], [1], [0, 0, 1, 1], [], []>} : vector<4x8xf32>, vector<8x32xf32>, vector<4x32xf32> -> vector<4x32xf32>
    %1186 = vector.shape_cast %1185 : vector<4x32xf32> to vector<2x2x32xf32>
    %cst_539 = arith.constant 0.000000e+00 : f32
    %1187 = vector.broadcast %cst_539 : f32 to vector<2x1x32xf32>
    %1188 = vector.extract_strided_slice %1186 {offsets = [0, 0, 0], sizes = [2, 1, 32], strides = [1, 1, 1]} : vector<2x2x32xf32> to vector<2x1x32xf32>
    %1189 = tpu.concatenate %1187, %1188 in 1 : vector<2x1x32xf32>, vector<2x1x32xf32> -> vector<2x2x32xf32>
    %1190 = vector.shape_cast %1189 : vector<2x2x32xf32> to vector<4x32xf32>
    %c32_540 = arith.constant 32 : index
    %c0_541 = arith.constant 0 : index
    %1191 = vector.load %arg7[%c32_540, %c0_541] : memref<1552x64xf32, #tpu.memory_space<vmem>>, vector<32x64xf32>
    %cst_542 = arith.constant dense<0.000000e+00> : vector<4x64xf32>
    %1192 = tpu.matmul %1190, %1191, %cst_542 {dimension_numbers = #tpu.dot_dimension_numbers<[1], [0], [0], [1], [0, 0, 1, 1], [], []>} : vector<4x32xf32>, vector<32x64xf32>, vector<4x64xf32> -> vector<4x64xf32>
    %1193 = vector.shape_cast %1186 : vector<2x2x32xf32> to vector<4x32xf32>
    %c64_543 = arith.constant 64 : index
    %c0_544 = arith.constant 0 : index
    %1194 = vector.load %arg7[%c64_543, %c0_544] : memref<1552x64xf32, #tpu.memory_space<vmem>>, vector<32x64xf32>
    %cst_545 = arith.constant dense<0.000000e+00> : vector<4x64xf32>
    %1195 = tpu.matmul %1193, %1194, %cst_545 {dimension_numbers = #tpu.dot_dimension_numbers<[1], [0], [0], [1], [0, 0, 1, 1], [], []>} : vector<4x32xf32>, vector<32x64xf32>, vector<4x64xf32> -> vector<4x64xf32>
    %1196 = arith.addf %1192, %1195 : vector<4x64xf32>
    %1197 = vector.extract_strided_slice %1186 {offsets = [0, 1, 0], sizes = [2, 1, 32], strides = [1, 1, 1]} : vector<2x2x32xf32> to vector<2x1x32xf32>
    %cst_546 = arith.constant 0.000000e+00 : f32
    %1198 = vector.broadcast %cst_546 : f32 to vector<2x1x32xf32>
    %1199 = tpu.concatenate %1197, %1198 in 1 : vector<2x1x32xf32>, vector<2x1x32xf32> -> vector<2x2x32xf32>
    %1200 = vector.shape_cast %1199 : vector<2x2x32xf32> to vector<4x32xf32>
    %c96_547 = arith.constant 96 : index
    %c0_548 = arith.constant 0 : index
    %1201 = vector.load %arg7[%c96_547, %c0_548] : memref<1552x64xf32, #tpu.memory_space<vmem>>, vector<32x64xf32>
    %cst_549 = arith.constant dense<0.000000e+00> : vector<4x64xf32>
    %1202 = tpu.matmul %1200, %1201, %cst_549 {dimension_numbers = #tpu.dot_dimension_numbers<[1], [0], [0], [1], [0, 0, 1, 1], [], []>} : vector<4x32xf32>, vector<32x64xf32>, vector<4x64xf32> -> vector<4x64xf32>
    %1203 = arith.addf %1196, %1202 : vector<4x64xf32>
    %1204 = vector.shape_cast %1203 : vector<4x64xf32> to vector<2x2x64xf32>
    %c160_550 = arith.constant 160 : index
    %c0_551 = arith.constant 0 : index
    %1205 = vector.load %arg7[%c160_550, %c0_551] : memref<1552x64xf32, #tpu.memory_space<vmem>>, vector<1x64xf32>
    %1206 = vector.shape_cast %1205 : vector<1x64xf32> to vector<1x1x64xf32>
    %1207 = vector.broadcast %1206 : vector<1x1x64xf32> to vector<2x2x64xf32>
    %1208 = arith.addf %1204, %1207 : vector<2x2x64xf32>
    %c1488 = arith.constant 1488 : index
    %c0_552 = arith.constant 0 : index
    %1209 = vector.load %arg7[%c1488, %c0_552] : memref<1552x64xf32, #tpu.memory_space<vmem>>, vector<64x64xf32>
    %cst_553 = arith.constant dense<0.000000e+00> : vector<2x64xf32>
    %1210 = vector.multi_reduction <add>, %1208, %cst_553 [1] : vector<2x2x64xf32> to vector<2x64xf32>
    %cst_554 = arith.constant 2.000000e+00 : f32
    %1211 = vector.broadcast %cst_554 : f32 to vector<2x64xf32>
    %1212 = arith.divf %1210, %1211 : vector<2x64xf32>
    %cst_555 = arith.constant dense<0.000000e+00> : vector<2x64xf32>
    %1213 = tpu.matmul %1212, %1209, %cst_555 {dimension_numbers = #tpu.dot_dimension_numbers<[1], [0], [0], [1], [0, 0, 1, 1], [], []>} : vector<2x64xf32>, vector<64x64xf32>, vector<2x64xf32> -> vector<2x64xf32>
    %1214 = vector.shape_cast %1213 : vector<2x64xf32> to vector<2x1x64xf32>
    %1215 = vector.broadcast %1214 : vector<2x1x64xf32> to vector<2x2x64xf32>
    %1216 = arith.subf %1208, %1215 : vector<2x2x64xf32>
    %1217 = arith.mulf %1216, %1216 : vector<2x2x64xf32>
    %cst_556 = arith.constant dense<0.000000e+00> : vector<2x64xf32>
    %1218 = vector.multi_reduction <add>, %1217, %cst_556 [1] : vector<2x2x64xf32> to vector<2x64xf32>
    %cst_557 = arith.constant 2.000000e+00 : f32
    %1219 = vector.broadcast %cst_557 : f32 to vector<2x64xf32>
    %1220 = arith.divf %1218, %1219 : vector<2x64xf32>
    %cst_558 = arith.constant dense<0.000000e+00> : vector<2x64xf32>
    %1221 = tpu.matmul %1220, %1209, %cst_558 {dimension_numbers = #tpu.dot_dimension_numbers<[1], [0], [0], [1], [0, 0, 1, 1], [], []>} : vector<2x64xf32>, vector<64x64xf32>, vector<2x64xf32> -> vector<2x64xf32>
    %cst_559 = arith.constant 9.99999974E-6 : f32
    %1222 = vector.broadcast %cst_559 : f32 to vector<2x64xf32>
    %1223 = arith.addf %1221, %1222 : vector<2x64xf32>
    %1224 = math.rsqrt %1223 : vector<2x64xf32>
    %1225 = vector.shape_cast %1224 : vector<2x64xf32> to vector<2x1x64xf32>
    %1226 = vector.broadcast %1225 : vector<2x1x64xf32> to vector<2x2x64xf32>
    %1227 = arith.mulf %1216, %1226 : vector<2x2x64xf32>
    %c168_560 = arith.constant 168 : index
    %c0_561 = arith.constant 0 : index
    %1228 = vector.load %arg7[%c168_560, %c0_561] : memref<1552x64xf32, #tpu.memory_space<vmem>>, vector<1x64xf32>
    %1229 = vector.shape_cast %1228 : vector<1x64xf32> to vector<1x1x64xf32>
    %1230 = vector.broadcast %1229 : vector<1x1x64xf32> to vector<2x2x64xf32>
    %1231 = arith.mulf %1227, %1230 : vector<2x2x64xf32>
    %c176_562 = arith.constant 176 : index
    %c0_563 = arith.constant 0 : index
    %1232 = vector.load %arg7[%c176_562, %c0_563] : memref<1552x64xf32, #tpu.memory_space<vmem>>, vector<1x64xf32>
    %1233 = vector.shape_cast %1232 : vector<1x64xf32> to vector<1x1x64xf32>
    %1234 = vector.broadcast %1233 : vector<1x1x64xf32> to vector<2x2x64xf32>
    %1235 = arith.addf %1231, %1234 : vector<2x2x64xf32>
    %cst_564 = arith.constant 2.000000e+01 : f32
    %1236 = vector.broadcast %cst_564 : f32 to vector<2x2x64xf32>
    %1237 = arith.minimumf %1235, %1236 : vector<2x2x64xf32>
    %1238 = math.exp %1237 : vector<2x2x64xf32>
    %cst_565 = arith.constant 1.000000e+00 : f32
    %1239 = vector.broadcast %cst_565 : f32 to vector<2x2x64xf32>
    %1240 = arith.addf %1239, %1238 : vector<2x2x64xf32>
    %cst_566 = arith.constant 1.000000e+00 : f32
    %1241 = vector.broadcast %cst_566 : f32 to vector<2x2x64xf32>
    %1242 = arith.addf %1241, %1238 : vector<2x2x64xf32>
    %1243 = arith.mulf %1240, %1242 : vector<2x2x64xf32>
    %cst_567 = arith.constant 1.000000e+00 : f32
    %1244 = vector.broadcast %cst_567 : f32 to vector<2x2x64xf32>
    %1245 = arith.subf %1243, %1244 : vector<2x2x64xf32>
    %cst_568 = arith.constant 1.000000e+00 : f32
    %1246 = vector.broadcast %cst_568 : f32 to vector<2x2x64xf32>
    %1247 = arith.addf %1243, %1246 : vector<2x2x64xf32>
    %1248 = tpu.reciprocal %1247 {approx = true} : vector<2x2x64xf32> -> vector<2x2x64xf32>
    %1249 = arith.mulf %1245, %1248 : vector<2x2x64xf32>
    %cst_569 = arith.constant 2.000000e+01 : f32
    %1250 = vector.broadcast %cst_569 : f32 to vector<2x2x64xf32>
    %1251 = arith.cmpf ogt, %1235, %1250 : vector<2x2x64xf32>
    %cst_570 = arith.constant 1.000000e+00 : f32
    %1252 = vector.broadcast %cst_570 : f32 to vector<2x2x64xf32>
    %1253 = arith.select %1251, %1252, %1249 : vector<2x2x64xi1>, vector<2x2x64xf32>
    %1254 = arith.mulf %1235, %1253 : vector<2x2x64xf32>
    %c528 = arith.constant 528 : index
    %c0_571 = arith.constant 0 : index
    %1255 = vector.load %arg7[%c528, %c0_571] : memref<1552x64xf32, #tpu.memory_space<vmem>>, vector<8x64xf32>
    %cst_572 = arith.constant dense<0.000000e+00> : vector<2x64xf32>
    %1256 = tpu.matmul %48, %1255, %cst_572 {dimension_numbers = #tpu.dot_dimension_numbers<[1], [0], [0], [1], [0, 0, 1, 1], [], []>} : vector<2x8xf32>, vector<8x64xf32>, vector<2x64xf32> -> vector<2x64xf32>
    %c536 = arith.constant 536 : index
    %c0_573 = arith.constant 0 : index
    %1257 = vector.load %arg7[%c536, %c0_573] : memref<1552x64xf32, #tpu.memory_space<vmem>>, vector<1x64xf32>
    %1258 = vector.broadcast %1257 : vector<1x64xf32> to vector<2x64xf32>
    %1259 = arith.addf %1256, %1258 : vector<2x64xf32>
    %1260 = vector.shape_cast %1259 : vector<2x64xf32> to vector<2x1x64xf32>
    %1261 = vector.broadcast %1260 : vector<2x1x64xf32> to vector<2x2x64xf32>
    %1262 = arith.addf %1254, %1261 : vector<2x2x64xf32>
    %cst_574 = arith.constant 0.000000e+00 : f32
    %1263 = vector.broadcast %cst_574 : f32 to vector<2x1x64xf32>
    %1264 = vector.extract_strided_slice %1262 {offsets = [0, 0, 0], sizes = [2, 1, 64], strides = [1, 1, 1]} : vector<2x2x64xf32> to vector<2x1x64xf32>
    %1265 = tpu.concatenate %1263, %1264 in 1 : vector<2x1x64xf32>, vector<2x1x64xf32> -> vector<2x2x64xf32>
    %1266 = vector.shape_cast %1265 : vector<2x2x64xf32> to vector<4x64xf32>
    %c248_575 = arith.constant 248 : index
    %c0_576 = arith.constant 0 : index
    %1267 = vector.load %arg7[%c248_575, %c0_576] : memref<1552x64xf32, #tpu.memory_space<vmem>>, vector<64x64xf32>
    %cst_577 = arith.constant dense<0.000000e+00> : vector<4x64xf32>
    %1268 = tpu.matmul %1266, %1267, %cst_577 {dimension_numbers = #tpu.dot_dimension_numbers<[1], [0], [0], [1], [0, 0, 1, 1], [], []>} : vector<4x64xf32>, vector<64x64xf32>, vector<4x64xf32> -> vector<4x64xf32>
    %1269 = vector.shape_cast %1262 : vector<2x2x64xf32> to vector<4x64xf32>
    %c312_578 = arith.constant 312 : index
    %c0_579 = arith.constant 0 : index
    %1270 = vector.load %arg7[%c312_578, %c0_579] : memref<1552x64xf32, #tpu.memory_space<vmem>>, vector<64x64xf32>
    %cst_580 = arith.constant dense<0.000000e+00> : vector<4x64xf32>
    %1271 = tpu.matmul %1269, %1270, %cst_580 {dimension_numbers = #tpu.dot_dimension_numbers<[1], [0], [0], [1], [0, 0, 1, 1], [], []>} : vector<4x64xf32>, vector<64x64xf32>, vector<4x64xf32> -> vector<4x64xf32>
    %1272 = arith.addf %1268, %1271 : vector<4x64xf32>
    %1273 = vector.extract_strided_slice %1262 {offsets = [0, 1, 0], sizes = [2, 1, 64], strides = [1, 1, 1]} : vector<2x2x64xf32> to vector<2x1x64xf32>
    %cst_581 = arith.constant 0.000000e+00 : f32
    %1274 = vector.broadcast %cst_581 : f32 to vector<2x1x64xf32>
    %1275 = tpu.concatenate %1273, %1274 in 1 : vector<2x1x64xf32>, vector<2x1x64xf32> -> vector<2x2x64xf32>
    %1276 = vector.shape_cast %1275 : vector<2x2x64xf32> to vector<4x64xf32>
    %c376 = arith.constant 376 : index
    %c0_582 = arith.constant 0 : index
    %1277 = vector.load %arg7[%c376, %c0_582] : memref<1552x64xf32, #tpu.memory_space<vmem>>, vector<64x64xf32>
    %cst_583 = arith.constant dense<0.000000e+00> : vector<4x64xf32>
    %1278 = tpu.matmul %1276, %1277, %cst_583 {dimension_numbers = #tpu.dot_dimension_numbers<[1], [0], [0], [1], [0, 0, 1, 1], [], []>} : vector<4x64xf32>, vector<64x64xf32>, vector<4x64xf32> -> vector<4x64xf32>
    %1279 = arith.addf %1272, %1278 : vector<4x64xf32>
    %1280 = vector.shape_cast %1279 : vector<4x64xf32> to vector<2x2x64xf32>
    %c504_584 = arith.constant 504 : index
    %c0_585 = arith.constant 0 : index
    %1281 = vector.load %arg7[%c504_584, %c0_585] : memref<1552x64xf32, #tpu.memory_space<vmem>>, vector<1x64xf32>
    %1282 = vector.shape_cast %1281 : vector<1x64xf32> to vector<1x1x64xf32>
    %1283 = vector.broadcast %1282 : vector<1x1x64xf32> to vector<2x2x64xf32>
    %1284 = arith.addf %1280, %1283 : vector<2x2x64xf32>
    %c1488_586 = arith.constant 1488 : index
    %c0_587 = arith.constant 0 : index
    %1285 = vector.load %arg7[%c1488_586, %c0_587] : memref<1552x64xf32, #tpu.memory_space<vmem>>, vector<64x64xf32>
    %cst_588 = arith.constant dense<0.000000e+00> : vector<2x64xf32>
    %1286 = vector.multi_reduction <add>, %1284, %cst_588 [1] : vector<2x2x64xf32> to vector<2x64xf32>
    %cst_589 = arith.constant 2.000000e+00 : f32
    %1287 = vector.broadcast %cst_589 : f32 to vector<2x64xf32>
    %1288 = arith.divf %1286, %1287 : vector<2x64xf32>
    %cst_590 = arith.constant dense<0.000000e+00> : vector<2x64xf32>
    %1289 = tpu.matmul %1288, %1285, %cst_590 {dimension_numbers = #tpu.dot_dimension_numbers<[1], [0], [0], [1], [0, 0, 1, 1], [], []>} : vector<2x64xf32>, vector<64x64xf32>, vector<2x64xf32> -> vector<2x64xf32>
    %1290 = vector.shape_cast %1289 : vector<2x64xf32> to vector<2x1x64xf32>
    %1291 = vector.broadcast %1290 : vector<2x1x64xf32> to vector<2x2x64xf32>
    %1292 = arith.subf %1284, %1291 : vector<2x2x64xf32>
    %1293 = arith.mulf %1292, %1292 : vector<2x2x64xf32>
    %cst_591 = arith.constant dense<0.000000e+00> : vector<2x64xf32>
    %1294 = vector.multi_reduction <add>, %1293, %cst_591 [1] : vector<2x2x64xf32> to vector<2x64xf32>
    %cst_592 = arith.constant 2.000000e+00 : f32
    %1295 = vector.broadcast %cst_592 : f32 to vector<2x64xf32>
    %1296 = arith.divf %1294, %1295 : vector<2x64xf32>
    %cst_593 = arith.constant dense<0.000000e+00> : vector<2x64xf32>
    %1297 = tpu.matmul %1296, %1285, %cst_593 {dimension_numbers = #tpu.dot_dimension_numbers<[1], [0], [0], [1], [0, 0, 1, 1], [], []>} : vector<2x64xf32>, vector<64x64xf32>, vector<2x64xf32> -> vector<2x64xf32>
    %cst_594 = arith.constant 9.99999974E-6 : f32
    %1298 = vector.broadcast %cst_594 : f32 to vector<2x64xf32>
    %1299 = arith.addf %1297, %1298 : vector<2x64xf32>
    %1300 = math.rsqrt %1299 : vector<2x64xf32>
    %1301 = vector.shape_cast %1300 : vector<2x64xf32> to vector<2x1x64xf32>
    %1302 = vector.broadcast %1301 : vector<2x1x64xf32> to vector<2x2x64xf32>
    %1303 = arith.mulf %1292, %1302 : vector<2x2x64xf32>
    %c512_595 = arith.constant 512 : index
    %c0_596 = arith.constant 0 : index
    %1304 = vector.load %arg7[%c512_595, %c0_596] : memref<1552x64xf32, #tpu.memory_space<vmem>>, vector<1x64xf32>
    %1305 = vector.shape_cast %1304 : vector<1x64xf32> to vector<1x1x64xf32>
    %1306 = vector.broadcast %1305 : vector<1x1x64xf32> to vector<2x2x64xf32>
    %1307 = arith.mulf %1303, %1306 : vector<2x2x64xf32>
    %c520 = arith.constant 520 : index
    %c0_597 = arith.constant 0 : index
    %1308 = vector.load %arg7[%c520, %c0_597] : memref<1552x64xf32, #tpu.memory_space<vmem>>, vector<1x64xf32>
    %1309 = vector.shape_cast %1308 : vector<1x64xf32> to vector<1x1x64xf32>
    %1310 = vector.broadcast %1309 : vector<1x1x64xf32> to vector<2x2x64xf32>
    %1311 = arith.addf %1307, %1310 : vector<2x2x64xf32>
    %cst_598 = arith.constant 2.000000e+01 : f32
    %1312 = vector.broadcast %cst_598 : f32 to vector<2x2x64xf32>
    %1313 = arith.minimumf %1311, %1312 : vector<2x2x64xf32>
    %1314 = math.exp %1313 : vector<2x2x64xf32>
    %cst_599 = arith.constant 1.000000e+00 : f32
    %1315 = vector.broadcast %cst_599 : f32 to vector<2x2x64xf32>
    %1316 = arith.addf %1315, %1314 : vector<2x2x64xf32>
    %cst_600 = arith.constant 1.000000e+00 : f32
    %1317 = vector.broadcast %cst_600 : f32 to vector<2x2x64xf32>
    %1318 = arith.addf %1317, %1314 : vector<2x2x64xf32>
    %1319 = arith.mulf %1316, %1318 : vector<2x2x64xf32>
    %cst_601 = arith.constant 1.000000e+00 : f32
    %1320 = vector.broadcast %cst_601 : f32 to vector<2x2x64xf32>
    %1321 = arith.subf %1319, %1320 : vector<2x2x64xf32>
    %cst_602 = arith.constant 1.000000e+00 : f32
    %1322 = vector.broadcast %cst_602 : f32 to vector<2x2x64xf32>
    %1323 = arith.addf %1319, %1322 : vector<2x2x64xf32>
    %1324 = tpu.reciprocal %1323 {approx = true} : vector<2x2x64xf32> -> vector<2x2x64xf32>
    %1325 = arith.mulf %1321, %1324 : vector<2x2x64xf32>
    %cst_603 = arith.constant 2.000000e+01 : f32
    %1326 = vector.broadcast %cst_603 : f32 to vector<2x2x64xf32>
    %1327 = arith.cmpf ogt, %1311, %1326 : vector<2x2x64xf32>
    %cst_604 = arith.constant 1.000000e+00 : f32
    %1328 = vector.broadcast %cst_604 : f32 to vector<2x2x64xf32>
    %1329 = arith.select %1327, %1328, %1325 : vector<2x2x64xi1>, vector<2x2x64xf32>
    %1330 = arith.mulf %1311, %1329 : vector<2x2x64xf32>
    %1331 = vector.shape_cast %1186 : vector<2x2x32xf32> to vector<4x32xf32>
    %c544_605 = arith.constant 544 : index
    %c0_606 = arith.constant 0 : index
    %1332 = vector.load %arg7[%c544_605, %c0_606] : memref<1552x64xf32, #tpu.memory_space<vmem>>, vector<32x64xf32>
    %cst_607 = arith.constant dense<0.000000e+00> : vector<4x64xf32>
    %1333 = tpu.matmul %1331, %1332, %cst_607 {dimension_numbers = #tpu.dot_dimension_numbers<[1], [0], [0], [1], [0, 0, 1, 1], [], []>} : vector<4x32xf32>, vector<32x64xf32>, vector<4x64xf32> -> vector<4x64xf32>
    %c576_608 = arith.constant 576 : index
    %c0_609 = arith.constant 0 : index
    %1334 = vector.load %arg7[%c576_608, %c0_609] : memref<1552x64xf32, #tpu.memory_space<vmem>>, vector<1x64xf32>
    %1335 = vector.broadcast %1334 : vector<1x64xf32> to vector<4x64xf32>
    %1336 = arith.addf %1333, %1335 : vector<4x64xf32>
    %1337 = vector.shape_cast %1336 : vector<4x64xf32> to vector<2x2x64xf32>
    %1338 = arith.addf %1330, %1337 : vector<2x2x64xf32>
    %cst_610 = arith.constant 0.000000e+00 : f32
    %1339 = vector.broadcast %cst_610 : f32 to vector<2x1x64xf32>
    %1340 = vector.extract_strided_slice %1338 {offsets = [0, 0, 0], sizes = [2, 1, 64], strides = [1, 1, 1]} : vector<2x2x64xf32> to vector<2x1x64xf32>
    %1341 = tpu.concatenate %1339, %1340 in 1 : vector<2x1x64xf32>, vector<2x1x64xf32> -> vector<2x2x64xf32>
    %1342 = vector.shape_cast %1341 : vector<2x2x64xf32> to vector<4x64xf32>
    %c648 = arith.constant 648 : index
    %c0_611 = arith.constant 0 : index
    %1343 = vector.load %arg7[%c648, %c0_611] : memref<1552x64xf32, #tpu.memory_space<vmem>>, vector<64x64xf32>
    %cst_612 = arith.constant dense<0.000000e+00> : vector<4x64xf32>
    %1344 = tpu.matmul %1342, %1343, %cst_612 {dimension_numbers = #tpu.dot_dimension_numbers<[1], [0], [0], [1], [0, 0, 1, 1], [], []>} : vector<4x64xf32>, vector<64x64xf32>, vector<4x64xf32> -> vector<4x64xf32>
    %1345 = vector.shape_cast %1338 : vector<2x2x64xf32> to vector<4x64xf32>
    %c712_613 = arith.constant 712 : index
    %c0_614 = arith.constant 0 : index
    %1346 = vector.load %arg7[%c712_613, %c0_614] : memref<1552x64xf32, #tpu.memory_space<vmem>>, vector<64x64xf32>
    %cst_615 = arith.constant dense<0.000000e+00> : vector<4x64xf32>
    %1347 = tpu.matmul %1345, %1346, %cst_615 {dimension_numbers = #tpu.dot_dimension_numbers<[1], [0], [0], [1], [0, 0, 1, 1], [], []>} : vector<4x64xf32>, vector<64x64xf32>, vector<4x64xf32> -> vector<4x64xf32>
    %1348 = arith.addf %1344, %1347 : vector<4x64xf32>
    %1349 = vector.extract_strided_slice %1338 {offsets = [0, 1, 0], sizes = [2, 1, 64], strides = [1, 1, 1]} : vector<2x2x64xf32> to vector<2x1x64xf32>
    %cst_616 = arith.constant 0.000000e+00 : f32
    %1350 = vector.broadcast %cst_616 : f32 to vector<2x1x64xf32>
    %1351 = tpu.concatenate %1349, %1350 in 1 : vector<2x1x64xf32>, vector<2x1x64xf32> -> vector<2x2x64xf32>
    %1352 = vector.shape_cast %1351 : vector<2x2x64xf32> to vector<4x64xf32>
    %c776_617 = arith.constant 776 : index
    %c0_618 = arith.constant 0 : index
    %1353 = vector.load %arg7[%c776_617, %c0_618] : memref<1552x64xf32, #tpu.memory_space<vmem>>, vector<64x64xf32>
    %cst_619 = arith.constant dense<0.000000e+00> : vector<4x64xf32>
    %1354 = tpu.matmul %1352, %1353, %cst_619 {dimension_numbers = #tpu.dot_dimension_numbers<[1], [0], [0], [1], [0, 0, 1, 1], [], []>} : vector<4x64xf32>, vector<64x64xf32>, vector<4x64xf32> -> vector<4x64xf32>
    %1355 = arith.addf %1348, %1354 : vector<4x64xf32>
    %1356 = vector.shape_cast %1355 : vector<4x64xf32> to vector<2x2x64xf32>
    %c904 = arith.constant 904 : index
    %c0_620 = arith.constant 0 : index
    %1357 = vector.load %arg7[%c904, %c0_620] : memref<1552x64xf32, #tpu.memory_space<vmem>>, vector<1x64xf32>
    %1358 = vector.shape_cast %1357 : vector<1x64xf32> to vector<1x1x64xf32>
    %1359 = vector.broadcast %1358 : vector<1x1x64xf32> to vector<2x2x64xf32>
    %1360 = arith.addf %1356, %1359 : vector<2x2x64xf32>
    %c1488_621 = arith.constant 1488 : index
    %c0_622 = arith.constant 0 : index
    %1361 = vector.load %arg7[%c1488_621, %c0_622] : memref<1552x64xf32, #tpu.memory_space<vmem>>, vector<64x64xf32>
    %cst_623 = arith.constant dense<0.000000e+00> : vector<2x64xf32>
    %1362 = vector.multi_reduction <add>, %1360, %cst_623 [1] : vector<2x2x64xf32> to vector<2x64xf32>
    %cst_624 = arith.constant 2.000000e+00 : f32
    %1363 = vector.broadcast %cst_624 : f32 to vector<2x64xf32>
    %1364 = arith.divf %1362, %1363 : vector<2x64xf32>
    %cst_625 = arith.constant dense<0.000000e+00> : vector<2x64xf32>
    %1365 = tpu.matmul %1364, %1361, %cst_625 {dimension_numbers = #tpu.dot_dimension_numbers<[1], [0], [0], [1], [0, 0, 1, 1], [], []>} : vector<2x64xf32>, vector<64x64xf32>, vector<2x64xf32> -> vector<2x64xf32>
    %1366 = vector.shape_cast %1365 : vector<2x64xf32> to vector<2x1x64xf32>
    %1367 = vector.broadcast %1366 : vector<2x1x64xf32> to vector<2x2x64xf32>
    %1368 = arith.subf %1360, %1367 : vector<2x2x64xf32>
    %1369 = arith.mulf %1368, %1368 : vector<2x2x64xf32>
    %cst_626 = arith.constant dense<0.000000e+00> : vector<2x64xf32>
    %1370 = vector.multi_reduction <add>, %1369, %cst_626 [1] : vector<2x2x64xf32> to vector<2x64xf32>
    %cst_627 = arith.constant 2.000000e+00 : f32
    %1371 = vector.broadcast %cst_627 : f32 to vector<2x64xf32>
    %1372 = arith.divf %1370, %1371 : vector<2x64xf32>
    %cst_628 = arith.constant dense<0.000000e+00> : vector<2x64xf32>
    %1373 = tpu.matmul %1372, %1361, %cst_628 {dimension_numbers = #tpu.dot_dimension_numbers<[1], [0], [0], [1], [0, 0, 1, 1], [], []>} : vector<2x64xf32>, vector<64x64xf32>, vector<2x64xf32> -> vector<2x64xf32>
    %cst_629 = arith.constant 9.99999974E-6 : f32
    %1374 = vector.broadcast %cst_629 : f32 to vector<2x64xf32>
    %1375 = arith.addf %1373, %1374 : vector<2x64xf32>
    %1376 = math.rsqrt %1375 : vector<2x64xf32>
    %1377 = vector.shape_cast %1376 : vector<2x64xf32> to vector<2x1x64xf32>
    %1378 = vector.broadcast %1377 : vector<2x1x64xf32> to vector<2x2x64xf32>
    %1379 = arith.mulf %1368, %1378 : vector<2x2x64xf32>
    %c912 = arith.constant 912 : index
    %c0_630 = arith.constant 0 : index
    %1380 = vector.load %arg7[%c912, %c0_630] : memref<1552x64xf32, #tpu.memory_space<vmem>>, vector<1x64xf32>
    %1381 = vector.shape_cast %1380 : vector<1x64xf32> to vector<1x1x64xf32>
    %1382 = vector.broadcast %1381 : vector<1x1x64xf32> to vector<2x2x64xf32>
    %1383 = arith.mulf %1379, %1382 : vector<2x2x64xf32>
    %c920 = arith.constant 920 : index
    %c0_631 = arith.constant 0 : index
    %1384 = vector.load %arg7[%c920, %c0_631] : memref<1552x64xf32, #tpu.memory_space<vmem>>, vector<1x64xf32>
    %1385 = vector.shape_cast %1384 : vector<1x64xf32> to vector<1x1x64xf32>
    %1386 = vector.broadcast %1385 : vector<1x1x64xf32> to vector<2x2x64xf32>
    %1387 = arith.addf %1383, %1386 : vector<2x2x64xf32>
    %cst_632 = arith.constant 2.000000e+01 : f32
    %1388 = vector.broadcast %cst_632 : f32 to vector<2x2x64xf32>
    %1389 = arith.minimumf %1387, %1388 : vector<2x2x64xf32>
    %1390 = math.exp %1389 : vector<2x2x64xf32>
    %cst_633 = arith.constant 1.000000e+00 : f32
    %1391 = vector.broadcast %cst_633 : f32 to vector<2x2x64xf32>
    %1392 = arith.addf %1391, %1390 : vector<2x2x64xf32>
    %cst_634 = arith.constant 1.000000e+00 : f32
    %1393 = vector.broadcast %cst_634 : f32 to vector<2x2x64xf32>
    %1394 = arith.addf %1393, %1390 : vector<2x2x64xf32>
    %1395 = arith.mulf %1392, %1394 : vector<2x2x64xf32>
    %cst_635 = arith.constant 1.000000e+00 : f32
    %1396 = vector.broadcast %cst_635 : f32 to vector<2x2x64xf32>
    %1397 = arith.subf %1395, %1396 : vector<2x2x64xf32>
    %cst_636 = arith.constant 1.000000e+00 : f32
    %1398 = vector.broadcast %cst_636 : f32 to vector<2x2x64xf32>
    %1399 = arith.addf %1395, %1398 : vector<2x2x64xf32>
    %1400 = tpu.reciprocal %1399 {approx = true} : vector<2x2x64xf32> -> vector<2x2x64xf32>
    %1401 = arith.mulf %1397, %1400 : vector<2x2x64xf32>
    %cst_637 = arith.constant 2.000000e+01 : f32
    %1402 = vector.broadcast %cst_637 : f32 to vector<2x2x64xf32>
    %1403 = arith.cmpf ogt, %1387, %1402 : vector<2x2x64xf32>
    %cst_638 = arith.constant 1.000000e+00 : f32
    %1404 = vector.broadcast %cst_638 : f32 to vector<2x2x64xf32>
    %1405 = arith.select %1403, %1404, %1401 : vector<2x2x64xi1>, vector<2x2x64xf32>
    %1406 = arith.mulf %1387, %1405 : vector<2x2x64xf32>
    %c1272 = arith.constant 1272 : index
    %c0_639 = arith.constant 0 : index
    %1407 = vector.load %arg7[%c1272, %c0_639] : memref<1552x64xf32, #tpu.memory_space<vmem>>, vector<8x64xf32>
    %cst_640 = arith.constant dense<0.000000e+00> : vector<2x64xf32>
    %1408 = tpu.matmul %48, %1407, %cst_640 {dimension_numbers = #tpu.dot_dimension_numbers<[1], [0], [0], [1], [0, 0, 1, 1], [], []>} : vector<2x8xf32>, vector<8x64xf32>, vector<2x64xf32> -> vector<2x64xf32>
    %c1280 = arith.constant 1280 : index
    %c0_641 = arith.constant 0 : index
    %1409 = vector.load %arg7[%c1280, %c0_641] : memref<1552x64xf32, #tpu.memory_space<vmem>>, vector<1x64xf32>
    %1410 = vector.broadcast %1409 : vector<1x64xf32> to vector<2x64xf32>
    %1411 = arith.addf %1408, %1410 : vector<2x64xf32>
    %1412 = vector.shape_cast %1411 : vector<2x64xf32> to vector<2x1x64xf32>
    %1413 = vector.broadcast %1412 : vector<2x1x64xf32> to vector<2x2x64xf32>
    %1414 = arith.addf %1406, %1413 : vector<2x2x64xf32>
    %cst_642 = arith.constant 0.000000e+00 : f32
    %1415 = vector.broadcast %cst_642 : f32 to vector<2x1x64xf32>
    %1416 = vector.extract_strided_slice %1414 {offsets = [0, 0, 0], sizes = [2, 1, 64], strides = [1, 1, 1]} : vector<2x2x64xf32> to vector<2x1x64xf32>
    %1417 = tpu.concatenate %1415, %1416 in 1 : vector<2x1x64xf32>, vector<2x1x64xf32> -> vector<2x2x64xf32>
    %1418 = vector.shape_cast %1417 : vector<2x2x64xf32> to vector<4x64xf32>
    %c992 = arith.constant 992 : index
    %c0_643 = arith.constant 0 : index
    %1419 = vector.load %arg7[%c992, %c0_643] : memref<1552x64xf32, #tpu.memory_space<vmem>>, vector<64x64xf32>
    %cst_644 = arith.constant dense<0.000000e+00> : vector<4x64xf32>
    %1420 = tpu.matmul %1418, %1419, %cst_644 {dimension_numbers = #tpu.dot_dimension_numbers<[1], [0], [0], [1], [0, 0, 1, 1], [], []>} : vector<4x64xf32>, vector<64x64xf32>, vector<4x64xf32> -> vector<4x64xf32>
    %1421 = vector.shape_cast %1414 : vector<2x2x64xf32> to vector<4x64xf32>
    %c1056 = arith.constant 1056 : index
    %c0_645 = arith.constant 0 : index
    %1422 = vector.load %arg7[%c1056, %c0_645] : memref<1552x64xf32, #tpu.memory_space<vmem>>, vector<64x64xf32>
    %cst_646 = arith.constant dense<0.000000e+00> : vector<4x64xf32>
    %1423 = tpu.matmul %1421, %1422, %cst_646 {dimension_numbers = #tpu.dot_dimension_numbers<[1], [0], [0], [1], [0, 0, 1, 1], [], []>} : vector<4x64xf32>, vector<64x64xf32>, vector<4x64xf32> -> vector<4x64xf32>
    %1424 = arith.addf %1420, %1423 : vector<4x64xf32>
    %1425 = vector.extract_strided_slice %1414 {offsets = [0, 1, 0], sizes = [2, 1, 64], strides = [1, 1, 1]} : vector<2x2x64xf32> to vector<2x1x64xf32>
    %cst_647 = arith.constant 0.000000e+00 : f32
    %1426 = vector.broadcast %cst_647 : f32 to vector<2x1x64xf32>
    %1427 = tpu.concatenate %1425, %1426 in 1 : vector<2x1x64xf32>, vector<2x1x64xf32> -> vector<2x2x64xf32>
    %1428 = vector.shape_cast %1427 : vector<2x2x64xf32> to vector<4x64xf32>
    %c1120 = arith.constant 1120 : index
    %c0_648 = arith.constant 0 : index
    %1429 = vector.load %arg7[%c1120, %c0_648] : memref<1552x64xf32, #tpu.memory_space<vmem>>, vector<64x64xf32>
    %cst_649 = arith.constant dense<0.000000e+00> : vector<4x64xf32>
    %1430 = tpu.matmul %1428, %1429, %cst_649 {dimension_numbers = #tpu.dot_dimension_numbers<[1], [0], [0], [1], [0, 0, 1, 1], [], []>} : vector<4x64xf32>, vector<64x64xf32>, vector<4x64xf32> -> vector<4x64xf32>
    %1431 = arith.addf %1424, %1430 : vector<4x64xf32>
    %1432 = vector.shape_cast %1431 : vector<4x64xf32> to vector<2x2x64xf32>
    %c1248 = arith.constant 1248 : index
    %c0_650 = arith.constant 0 : index
    %1433 = vector.load %arg7[%c1248, %c0_650] : memref<1552x64xf32, #tpu.memory_space<vmem>>, vector<1x64xf32>
    %1434 = vector.shape_cast %1433 : vector<1x64xf32> to vector<1x1x64xf32>
    %1435 = vector.broadcast %1434 : vector<1x1x64xf32> to vector<2x2x64xf32>
    %1436 = arith.addf %1432, %1435 : vector<2x2x64xf32>
    %c1488_651 = arith.constant 1488 : index
    %c0_652 = arith.constant 0 : index
    %1437 = vector.load %arg7[%c1488_651, %c0_652] : memref<1552x64xf32, #tpu.memory_space<vmem>>, vector<64x64xf32>
    %cst_653 = arith.constant dense<0.000000e+00> : vector<2x64xf32>
    %1438 = vector.multi_reduction <add>, %1436, %cst_653 [1] : vector<2x2x64xf32> to vector<2x64xf32>
    %cst_654 = arith.constant 2.000000e+00 : f32
    %1439 = vector.broadcast %cst_654 : f32 to vector<2x64xf32>
    %1440 = arith.divf %1438, %1439 : vector<2x64xf32>
    %cst_655 = arith.constant dense<0.000000e+00> : vector<2x64xf32>
    %1441 = tpu.matmul %1440, %1437, %cst_655 {dimension_numbers = #tpu.dot_dimension_numbers<[1], [0], [0], [1], [0, 0, 1, 1], [], []>} : vector<2x64xf32>, vector<64x64xf32>, vector<2x64xf32> -> vector<2x64xf32>
    %1442 = vector.shape_cast %1441 : vector<2x64xf32> to vector<2x1x64xf32>
    %1443 = vector.broadcast %1442 : vector<2x1x64xf32> to vector<2x2x64xf32>
    %1444 = arith.subf %1436, %1443 : vector<2x2x64xf32>
    %1445 = arith.mulf %1444, %1444 : vector<2x2x64xf32>
    %cst_656 = arith.constant dense<0.000000e+00> : vector<2x64xf32>
    %1446 = vector.multi_reduction <add>, %1445, %cst_656 [1] : vector<2x2x64xf32> to vector<2x64xf32>
    %cst_657 = arith.constant 2.000000e+00 : f32
    %1447 = vector.broadcast %cst_657 : f32 to vector<2x64xf32>
    %1448 = arith.divf %1446, %1447 : vector<2x64xf32>
    %cst_658 = arith.constant dense<0.000000e+00> : vector<2x64xf32>
    %1449 = tpu.matmul %1448, %1437, %cst_658 {dimension_numbers = #tpu.dot_dimension_numbers<[1], [0], [0], [1], [0, 0, 1, 1], [], []>} : vector<2x64xf32>, vector<64x64xf32>, vector<2x64xf32> -> vector<2x64xf32>
    %cst_659 = arith.constant 9.99999974E-6 : f32
    %1450 = vector.broadcast %cst_659 : f32 to vector<2x64xf32>
    %1451 = arith.addf %1449, %1450 : vector<2x64xf32>
    %1452 = math.rsqrt %1451 : vector<2x64xf32>
    %1453 = vector.shape_cast %1452 : vector<2x64xf32> to vector<2x1x64xf32>
    %1454 = vector.broadcast %1453 : vector<2x1x64xf32> to vector<2x2x64xf32>
    %1455 = arith.mulf %1444, %1454 : vector<2x2x64xf32>
    %c1256 = arith.constant 1256 : index
    %c0_660 = arith.constant 0 : index
    %1456 = vector.load %arg7[%c1256, %c0_660] : memref<1552x64xf32, #tpu.memory_space<vmem>>, vector<1x64xf32>
    %1457 = vector.shape_cast %1456 : vector<1x64xf32> to vector<1x1x64xf32>
    %1458 = vector.broadcast %1457 : vector<1x1x64xf32> to vector<2x2x64xf32>
    %1459 = arith.mulf %1455, %1458 : vector<2x2x64xf32>
    %c1264 = arith.constant 1264 : index
    %c0_661 = arith.constant 0 : index
    %1460 = vector.load %arg7[%c1264, %c0_661] : memref<1552x64xf32, #tpu.memory_space<vmem>>, vector<1x64xf32>
    %1461 = vector.shape_cast %1460 : vector<1x64xf32> to vector<1x1x64xf32>
    %1462 = vector.broadcast %1461 : vector<1x1x64xf32> to vector<2x2x64xf32>
    %1463 = arith.addf %1459, %1462 : vector<2x2x64xf32>
    %cst_662 = arith.constant 2.000000e+01 : f32
    %1464 = vector.broadcast %cst_662 : f32 to vector<2x2x64xf32>
    %1465 = arith.minimumf %1463, %1464 : vector<2x2x64xf32>
    %1466 = math.exp %1465 : vector<2x2x64xf32>
    %cst_663 = arith.constant 1.000000e+00 : f32
    %1467 = vector.broadcast %cst_663 : f32 to vector<2x2x64xf32>
    %1468 = arith.addf %1467, %1466 : vector<2x2x64xf32>
    %cst_664 = arith.constant 1.000000e+00 : f32
    %1469 = vector.broadcast %cst_664 : f32 to vector<2x2x64xf32>
    %1470 = arith.addf %1469, %1466 : vector<2x2x64xf32>
    %1471 = arith.mulf %1468, %1470 : vector<2x2x64xf32>
    %cst_665 = arith.constant 1.000000e+00 : f32
    %1472 = vector.broadcast %cst_665 : f32 to vector<2x2x64xf32>
    %1473 = arith.subf %1471, %1472 : vector<2x2x64xf32>
    %cst_666 = arith.constant 1.000000e+00 : f32
    %1474 = vector.broadcast %cst_666 : f32 to vector<2x2x64xf32>
    %1475 = arith.addf %1471, %1474 : vector<2x2x64xf32>
    %1476 = tpu.reciprocal %1475 {approx = true} : vector<2x2x64xf32> -> vector<2x2x64xf32>
    %1477 = arith.mulf %1473, %1476 : vector<2x2x64xf32>
    %cst_667 = arith.constant 2.000000e+01 : f32
    %1478 = vector.broadcast %cst_667 : f32 to vector<2x2x64xf32>
    %1479 = arith.cmpf ogt, %1463, %1478 : vector<2x2x64xf32>
    %cst_668 = arith.constant 1.000000e+00 : f32
    %1480 = vector.broadcast %cst_668 : f32 to vector<2x2x64xf32>
    %1481 = arith.select %1479, %1480, %1477 : vector<2x2x64xi1>, vector<2x2x64xf32>
    %1482 = arith.mulf %1463, %1481 : vector<2x2x64xf32>
    %1483 = arith.addf %1482, %1338 : vector<2x2x64xf32>
    %cst_669 = arith.constant 0.000000e+00 : f32
    %1484 = vector.broadcast %cst_669 : f32 to vector<2x1x64xf32>
    %1485 = vector.extract_strided_slice %1483 {offsets = [0, 0, 0], sizes = [2, 1, 64], strides = [1, 1, 1]} : vector<2x2x64xf32> to vector<2x1x64xf32>
    %1486 = tpu.concatenate %1484, %1485 in 1 : vector<2x1x64xf32>, vector<2x1x64xf32> -> vector<2x2x64xf32>
    %1487 = vector.shape_cast %1486 : vector<2x2x64xf32> to vector<4x64xf32>
    %c1288 = arith.constant 1288 : index
    %c0_670 = arith.constant 0 : index
    %1488 = vector.load %arg7[%c1288, %c0_670] : memref<1552x64xf32, #tpu.memory_space<vmem>>, vector<64x64xf32>
    %cst_671 = arith.constant dense<0.000000e+00> : vector<4x64xf32>
    %1489 = tpu.matmul %1487, %1488, %cst_671 {dimension_numbers = #tpu.dot_dimension_numbers<[1], [0], [0], [1], [0, 0, 1, 1], [], []>} : vector<4x64xf32>, vector<64x64xf32>, vector<4x64xf32> -> vector<4x64xf32>
    %1490 = vector.shape_cast %1483 : vector<2x2x64xf32> to vector<4x64xf32>
    %c1352 = arith.constant 1352 : index
    %c0_672 = arith.constant 0 : index
    %1491 = vector.load %arg7[%c1352, %c0_672] : memref<1552x64xf32, #tpu.memory_space<vmem>>, vector<64x64xf32>
    %cst_673 = arith.constant dense<0.000000e+00> : vector<4x64xf32>
    %1492 = tpu.matmul %1490, %1491, %cst_673 {dimension_numbers = #tpu.dot_dimension_numbers<[1], [0], [0], [1], [0, 0, 1, 1], [], []>} : vector<4x64xf32>, vector<64x64xf32>, vector<4x64xf32> -> vector<4x64xf32>
    %1493 = arith.addf %1489, %1492 : vector<4x64xf32>
    %1494 = vector.extract_strided_slice %1483 {offsets = [0, 1, 0], sizes = [2, 1, 64], strides = [1, 1, 1]} : vector<2x2x64xf32> to vector<2x1x64xf32>
    %cst_674 = arith.constant 0.000000e+00 : f32
    %1495 = vector.broadcast %cst_674 : f32 to vector<2x1x64xf32>
    %1496 = tpu.concatenate %1494, %1495 in 1 : vector<2x1x64xf32>, vector<2x1x64xf32> -> vector<2x2x64xf32>
    %1497 = vector.shape_cast %1496 : vector<2x2x64xf32> to vector<4x64xf32>
    %c1416 = arith.constant 1416 : index
    %c0_675 = arith.constant 0 : index
    %1498 = vector.load %arg7[%c1416, %c0_675] : memref<1552x64xf32, #tpu.memory_space<vmem>>, vector<64x64xf32>
    %cst_676 = arith.constant dense<0.000000e+00> : vector<4x64xf32>
    %1499 = tpu.matmul %1497, %1498, %cst_676 {dimension_numbers = #tpu.dot_dimension_numbers<[1], [0], [0], [1], [0, 0, 1, 1], [], []>} : vector<4x64xf32>, vector<64x64xf32>, vector<4x64xf32> -> vector<4x64xf32>
    %1500 = arith.addf %1493, %1499 : vector<4x64xf32>
    %1501 = vector.shape_cast %1500 : vector<4x64xf32> to vector<2x2x64xf32>
    %c1480 = arith.constant 1480 : index
    %c0_677 = arith.constant 0 : index
    %1502 = vector.load %arg7[%c1480, %c0_677] : memref<1552x64xf32, #tpu.memory_space<vmem>>, vector<1x64xf32>
    %1503 = vector.shape_cast %1502 : vector<1x64xf32> to vector<1x1x64xf32>
    %1504 = vector.broadcast %1503 : vector<1x1x64xf32> to vector<2x2x64xf32>
    %1505 = arith.addf %1501, %1504 : vector<2x2x64xf32>
    %c0_678 = arith.constant 0 : index
    %c0_679 = arith.constant 0 : index
    %1506 = vector.load %arg11[%c0_678, %c0_679] : memref<2x4xf32, #tpu.memory_space<vmem>>, vector<2x4xf32>
    %1507 = vector.shape_cast %1505 : vector<2x2x64xf32> to vector<4x64xf32>
    %cst_680 = arith.constant dense<0.000000e+00> : vector<2x64xf32>
    %1508 = tpu.matmul %1506, %1507, %cst_680 {dimension_numbers = #tpu.dot_dimension_numbers<[1], [0], [0], [1], [0, 0, 1, 1], [], []>} : vector<2x4xf32>, vector<4x64xf32>, vector<2x64xf32> -> vector<2x64xf32>
    %1509 = vector.shape_cast %1508 : vector<2x64xf32> to vector<2x1x64xf32>
    %1510 = vector.shape_cast %1509 : vector<2x1x64xf32> to vector<2x64xf32>
    %c0_681 = arith.constant 0 : index
    %c0_682 = arith.constant 0 : index
    %1511 = vector.load %arg12[%c0_681, %c0_682] : memref<80x32xf32, #tpu.memory_space<vmem>>, vector<64x32xf32>
    %cst_683 = arith.constant dense<0.000000e+00> : vector<2x32xf32>
    %1512 = tpu.matmul %1510, %1511, %cst_683 {dimension_numbers = #tpu.dot_dimension_numbers<[1], [0], [0], [1], [0, 0, 1, 1], [], []>} : vector<2x64xf32>, vector<64x32xf32>, vector<2x32xf32> -> vector<2x32xf32>
    %c64_684 = arith.constant 64 : index
    %c0_685 = arith.constant 0 : index
    %1513 = vector.load %arg12[%c64_684, %c0_685] : memref<80x32xf32, #tpu.memory_space<vmem>>, vector<8x32xf32>
    %cst_686 = arith.constant dense<0.000000e+00> : vector<2x32xf32>
    %1514 = tpu.matmul %29, %1513, %cst_686 {dimension_numbers = #tpu.dot_dimension_numbers<[1], [0], [0], [1], [0, 0, 1, 1], [], []>} : vector<2x8xf32>, vector<8x32xf32>, vector<2x32xf32> -> vector<2x32xf32>
    %1515 = arith.addf %1512, %1514 : vector<2x32xf32>
    %c72_687 = arith.constant 72 : index
    %c0_688 = arith.constant 0 : index
    %1516 = vector.load %arg12[%c72_687, %c0_688] : memref<80x32xf32, #tpu.memory_space<vmem>>, vector<1x32xf32>
    %1517 = vector.broadcast %1516 : vector<1x32xf32> to vector<2x32xf32>
    %1518 = arith.addf %1515, %1517 : vector<2x32xf32>
    %cst_689 = arith.constant 2.000000e+01 : f32
    %1519 = vector.broadcast %cst_689 : f32 to vector<2x32xf32>
    %1520 = arith.minimumf %1518, %1519 : vector<2x32xf32>
    %1521 = math.exp %1520 : vector<2x32xf32>
    %cst_690 = arith.constant 1.000000e+00 : f32
    %1522 = vector.broadcast %cst_690 : f32 to vector<2x32xf32>
    %1523 = arith.addf %1522, %1521 : vector<2x32xf32>
    %cst_691 = arith.constant 1.000000e+00 : f32
    %1524 = vector.broadcast %cst_691 : f32 to vector<2x32xf32>
    %1525 = arith.addf %1524, %1521 : vector<2x32xf32>
    %1526 = arith.mulf %1523, %1525 : vector<2x32xf32>
    %cst_692 = arith.constant 1.000000e+00 : f32
    %1527 = vector.broadcast %cst_692 : f32 to vector<2x32xf32>
    %1528 = arith.subf %1526, %1527 : vector<2x32xf32>
    %cst_693 = arith.constant 1.000000e+00 : f32
    %1529 = vector.broadcast %cst_693 : f32 to vector<2x32xf32>
    %1530 = arith.addf %1526, %1529 : vector<2x32xf32>
    %1531 = tpu.reciprocal %1530 {approx = true} : vector<2x32xf32> -> vector<2x32xf32>
    %1532 = arith.mulf %1528, %1531 : vector<2x32xf32>
    %cst_694 = arith.constant 2.000000e+01 : f32
    %1533 = vector.broadcast %cst_694 : f32 to vector<2x32xf32>
    %1534 = arith.cmpf ogt, %1518, %1533 : vector<2x32xf32>
    %cst_695 = arith.constant 1.000000e+00 : f32
    %1535 = vector.broadcast %cst_695 : f32 to vector<2x32xf32>
    %1536 = arith.select %1534, %1535, %1532 : vector<2x32xi1>, vector<2x32xf32>
    %1537 = arith.mulf %1518, %1536 : vector<2x32xf32>
    %c0_696 = arith.constant 0 : index
    %c0_697 = arith.constant 0 : index
    %1538 = vector.load %arg13[%c0_696, %c0_697] : memref<40x1xf32, #tpu.memory_space<vmem>>, vector<32x1xf32>
    %cst_698 = arith.constant dense<0.000000e+00> : vector<2x1xf32>
    %1539 = tpu.matmul %1537, %1538, %cst_698 {dimension_numbers = #tpu.dot_dimension_numbers<[1], [0], [0], [1], [0, 0, 1, 1], [], []>} : vector<2x32xf32>, vector<32x1xf32>, vector<2x1xf32> -> vector<2x1xf32>
    %c32_699 = arith.constant 32 : index
    %c0_700 = arith.constant 0 : index
    %1540 = vector.load %arg13[%c32_699, %c0_700] : memref<40x1xf32, #tpu.memory_space<vmem>>, vector<1x1xf32>
    %1541 = vector.broadcast %1540 : vector<1x1xf32> to vector<2x1xf32>
    %1542 = arith.addf %1539, %1541 : vector<2x1xf32>
    %cst_701 = arith.constant 0.000000e+00 : f32
    %1543 = vector.broadcast %cst_701 : f32 to vector<2x127xf32>
    %1544 = tpu.concatenate %1542, %1543 in 1 : vector<2x1xf32>, vector<2x127xf32> -> vector<2x128xf32>
    %c0_702 = arith.constant 0 : index
    %c0_703 = arith.constant 0 : index
    %1545 = vector.load %arg14[%c0_702, %c0_703] : memref<2x128xf32, #tpu.memory_space<vmem>>, vector<2x128xf32>
    tpu.vector_store %arg14[%c0_702, %c0_703], %1544 {strides = array<i32>} : memref<2x128xf32, #tpu.memory_space<vmem>>, vector<2x128xf32>,
    return
  }
}

</mosaic_0001>

<bundles_post_ra>
// kernel: forward.1
= control target key start
LH: loop header
LB: loop body
LE: loop exit
PB: predicated region body
PF: predicated region fallthrough
CT: control target
= control target key end

     0   :  { %19 = vsyncpa [#allocation3], 0  ;;  %s20444_s0 = inlined_call_operand.vmem [shape: f32[2,16,4], index: 0, kind: input, shape index: {}]   ;;  %s20445_s1 = inlined_call_operand.vmem [shape: f32[2,8], index: 1, kind: input, shape index: {}]   ;;  %s20446_s2 = inlined_call_operand.hbm [shape: f32[16,32], index: 2, kind: input, shape index: {}]   ;;  %s20447_s3 = inlined_call_operand.hbm [shape: f32[40,8], index: 3, kind: input, shape index: {}]   ;;  %s20448_s4 = inlined_call_operand.hbm [shape: f32[344,8], index: 4, kind: input, shape index: {}]   ;;  %s20449_s5 = inlined_call_operand.hbm [shape: f32[496,16], index: 5, kind: input, shape index: {}]   ;;  %s20450_s6 = inlined_call_operand.hbm [shape: f32[848,32], index: 6, kind: input, shape index: {}]   ;;  %s20451_s7 = inlined_call_operand.hbm [shape: f32[1552,64], index: 7, kind: input, shape index: {}]   ;;  %s20452_s8 = inlined_call_operand.vmem [shape: f32[16,32], index: 8, kind: input, shape index: {}]   ;;  %s20453_s9 = inlined_call_operand.vmem [shape: f32[8,16], index: 9, kind: input, shape index: {}]   ;;  %s20454_s10 = inlined_call_operand.hbm [shape: f32[4,8], index: 10, kind: input, shape index: {}]   ;;  %s20455_s11 = inlined_call_operand.hbm [shape: f32[2,4], index: 11, kind: input, shape index: {}]   ;;  %s20456_s12 = inlined_call_operand.vmem [shape: f32[80,32], index: 12, kind: input, shape index: {}]   ;;  %s20457_s13 = inlined_call_operand.hbm [shape: f32[40,1], index: 13, kind: input, shape index: {}]   ;;  %s20458_s14 = inlined_call_operand.vmem [shape: f32[2,128], index: 14, kind: output, shape index: {}]  }
   0x1   :  { %20 = vsyncpa [#allocation5], 0 }
   0x2   :  { %21 = vsyncpa [#allocation8], 0 }
   0x3   :  { %22 = vsyncpa [#allocation11], 0 }
   0x4   :  { %23 = vsyncpa [#allocation14], 0  ;;  %s18683_s29 = smov [#allocation4]   ;;  %s18684_s15 = smov [#allocation7]  }
   0x5   :  { %s45_s30 = sshll.u32 %s18683_s29, 4  ;;  %s69_s16 = sshll.u32 %s18684_s15, 4  ;;  %s46_s30 = int_to_ptr.vmem [resolvable:$true] %s45_s30  ;;  %s18774_s16 = int_to_ptr.vmem [resolvable:$true] %s69_s16 }
   0x6   :  { %s18475_s19 = scalar_lea.hbm %s20447_s3, 640 }
   0x7   :  { %p18476_p0 = scmp.ne.s32.totalorder %s20447_s3, %s18475_s19  ;;  %p18479_p1 = scmp.lt.u32.totalorder %s18475_s19, %s20447_s3 }
   0x9   :  { %p18481_p2 = pnand %p18479_p1, %p18476_p0 }
   0xb   :  { %18484 = shalt.err (!%p18481_p2)
}
   0xc   :  { %s18485_s24 = scalar_lea.vmem %s46_s30, 640  ;;  %p18490_p4 = scmp.lt.s32.totalorder %s46_s30, %s46_s30 }
   0xd   :  { %p18486_p3 = scmp.ne.s32.totalorder %s46_s30, %s18485_s24  ;;  %p18491_p5 = scmp.lt.s32.totalorder %s18485_s24, %s18485_s24 }
   0xf   :  { %p18492_p6 = por %p18491_p5, %p18490_p4 }
  0x11   :  { %p18493_p7 = pnand %p18492_p6, %p18486_p3 }
  0x13   :  { %18496 = shalt.err (!%p18493_p7)
}
  0x14   :  { %s18685_s25 = smov 128   ;;  %s18686_s26 = smov 8  }
  0x15   :  { %51 = dma.hbm_to_vmem [thread:$0]  %s20447_s3, 640, %s46_s30, [#allocation5], %s18685_s25, %s18685_s25, %s18686_s26  }
  0x16   :  { %s18497_s17 = scalar_lea.hbm %s20449_s5, 7936 }
  0x17   :  { %p18498_p8 = scmp.ne.s32.totalorder %s20449_s5, %s18497_s17  ;;  %p18501_p9 = scmp.lt.u32.totalorder %s18497_s17, %s20449_s5 }
  0x19   :  { %p18503_p10 = pnand %p18501_p9, %p18498_p8 }
  0x1b   :  { %18506 = shalt.err (!%p18503_p10)
}
  0x1c   :  { %s18507_s22 = scalar_lea.vmem %s18774_s16, 7936  ;;  %p18512_p12 = scmp.lt.s32.totalorder %s18774_s16, %s18774_s16 }
  0x1d   :  { %p18508_p11 = scmp.ne.s32.totalorder %s18774_s16, %s18507_s22  ;;  %p18513_p13 = scmp.lt.s32.totalorder %s18507_s22, %s18507_s22 }
  0x1f   :  { %p18514_p0 = por %p18513_p13, %p18512_p12 }
  0x21   :  { %p18515_p1 = pnand %p18514_p0, %p18508_p11 }
  0x23   :  { %18518 = shalt.err (!%p18515_p1)
}
  0x24   :  { %75 = dma.hbm_to_vmem [thread:$0]  %s20449_s5, 7936, %s18774_s16, [#allocation8], %s18685_s25, %s18685_s25, %s18686_s26  }
  0x25   :  { %s18687_s23 = smov [#allocation10]   ;;  %s18688_s27 = smov [#allocation13]  }
  0x26   :  { %s93_s24 = sshll.u32 %s18687_s23, 4  ;;  %s120_s28 = sshll.u32 %s18688_s27, 4  ;;  %s94_s24 = int_to_ptr.vmem [resolvable:$true] %s93_s24  ;;  %s121_s28 = int_to_ptr.vmem [resolvable:$true] %s120_s28 }
  0x27   :  { %s18519_s17 = scalar_lea.hbm %s20451_s7, 24832 }
  0x28   :  { %p18520_p2 = scmp.ne.s32.totalorder %s20451_s7, %s18519_s17  ;;  %p18523_p3 = scmp.lt.u32.totalorder %s18519_s17, %s20451_s7 }
  0x2a   :  { %p18525_p4 = pnand %p18523_p3, %p18520_p2 }
  0x2c   :  { %18528 = shalt.err (!%p18525_p4)
}
  0x2d   :  { %s18529_s5 = scalar_lea.vmem %s94_s24, 24832  ;;  %p18534_p6 = scmp.lt.s32.totalorder %s94_s24, %s94_s24 }
  0x2e   :  { %p18530_p5 = scmp.ne.s32.totalorder %s94_s24, %s18529_s5  ;;  %p18535_p7 = scmp.lt.s32.totalorder %s18529_s5, %s18529_s5 }
  0x30   :  { %p18536_p8 = por %p18535_p7, %p18534_p6 }
  0x32   :  { %p18537_p9 = pnand %p18536_p8, %p18530_p5 }
  0x34   :  { %18540 = shalt.err (!%p18537_p9)
}
  0x35   :  { %99 = dma.hbm_to_vmem [thread:$0]  %s20451_s7, 24832, %s94_s24, [#allocation11], %s18685_s25, %s18685_s25, %s18686_s26  }
  0x36   :  { %s18541_s23 = scalar_lea.hbm %s20455_s11, 32 }
  0x37   :  { %p18542_p10 = scmp.ne.s32.totalorder %s20455_s11, %s18541_s23  ;;  %p18545_p11 = scmp.lt.u32.totalorder %s18541_s23, %s20455_s11 }
  0x39   :  { %p18547_p12 = pnand %p18545_p11, %p18542_p10 }
  0x3b   :  { %18550 = shalt.err (!%p18547_p12)
}
  0x3c   :  { %s18551_s18 = scalar_lea.vmem %s121_s28, 32  ;;  %p18556_p0 = scmp.lt.s32.totalorder %s121_s28, %s121_s28 }
  0x3d   :  { %p18552_p13 = scmp.ne.s32.totalorder %s121_s28, %s18551_s18  ;;  %p18557_p1 = scmp.lt.s32.totalorder %s18551_s18, %s18551_s18 }
  0x3f   :  { %p18558_p2 = por %p18557_p1, %p18556_p0 }
  0x41   :  { %p18559_p3 = pnand %p18558_p2, %p18552_p13 }
  0x43   :  { %18562 = shalt.err (!%p18559_p3)
}
  0x44   :  { %123 = dma.hbm_to_vmem [thread:$0]  %s20455_s11, 32, %s121_s28, [#allocation14]  }
  0x45   :  { %s18689_s19 = smov [#allocation2]   ;;  %s18690_s21 = smov [#allocation6]  }
  0x46   :  { %s33_s20 = sshll.u32 %s18689_s19, 4  ;;  %s57_s5 = sshll.u32 %s18690_s21, 4  ;;  %s34_s20 = int_to_ptr.vmem [resolvable:$true] %s33_s20  ;;  %s18838_s5 = int_to_ptr.vmem [resolvable:$true] %s57_s5 }
  0x47   :  { %s18563_s3 = scalar_lea.hbm %s20446_s2, 256 }
  0x48   :  { %p18564_p4 = scmp.ne.s32.totalorder %s20446_s2, %s18563_s3  ;;  %p18567_p5 = scmp.lt.u32.totalorder %s18563_s3, %s20446_s2 }
  0x4a   :  { %p18569_p6 = pnand %p18567_p5, %p18564_p4 }
  0x4c   :  { %18572 = shalt.err (!%p18569_p6)
}
  0x4d   :  { %s18573_s11 = scalar_lea.vmem %s34_s20, 256  ;;  %p18578_p8 = scmp.lt.s32.totalorder %s34_s20, %s34_s20 }
  0x4e   :  { %p18574_p7 = scmp.ne.s32.totalorder %s34_s20, %s18573_s11  ;;  %p18579_p9 = scmp.lt.s32.totalorder %s18573_s11, %s18573_s11 }
  0x50   :  { %p18580_p10 = por %p18579_p9, %p18578_p8 }
  0x52   :  { %p18581_p11 = pnand %p18580_p10, %p18574_p7 }
  0x54   :  { %18584 = shalt.err (!%p18581_p11)
}
  0x55   :  { %39 = dma.hbm_to_vmem [thread:$0]  %s20446_s2, 256, %s34_s20, [#allocation3], %s18685_s25, %s18685_s25, %s18686_s26  }
  0x56   :  { %s18585_s7 = scalar_lea.hbm %s20448_s4, 5504 }
  0x57   :  { %p18586_p12 = scmp.ne.s32.totalorder %s20448_s4, %s18585_s7  ;;  %p18589_p13 = scmp.lt.u32.totalorder %s18585_s7, %s20448_s4 }
  0x59   :  { %p18591_p0 = pnand %p18589_p13, %p18586_p12 }
  0x5b   :  { %18594 = shalt.err (!%p18591_p0)
}
  0x5c   :  { %s18595_s22 = scalar_lea.vmem %s18838_s5, 5504  ;;  %p18600_p2 = scmp.lt.s32.totalorder %s18838_s5, %s18838_s5 }
  0x5d   :  { %p18596_p1 = scmp.ne.s32.totalorder %s18838_s5, %s18595_s22  ;;  %p18601_p3 = scmp.lt.s32.totalorder %s18595_s22, %s18595_s22 }
  0x5f   :  { %p18602_p4 = por %p18601_p3, %p18600_p2 }
  0x61   :  { %p18603_p5 = pnand %p18602_p4, %p18596_p1 }
  0x63   :  { %18606 = shalt.err (!%p18603_p5)
}
  0x64   :  { %63 = dma.hbm_to_vmem [thread:$0]  %s20448_s4, 5504, %s18838_s5, [#allocation5], %s18685_s25, %s18685_s25, %s18686_s26  }
  0x65   :  { %s18691_s3 = smov [#allocation9]   ;;  %s18692_s23 = smov [#allocation12]  }
  0x66   :  { %s81_s30 = sshll.u32 %s18691_s3, 4  ;;  %s110_s27 = sshll.u32 %s18692_s23, 4  ;;  %s82_s30 = int_to_ptr.vmem [resolvable:$true] %s81_s30  ;;  %s111_s27 = int_to_ptr.vmem [resolvable:$true] %s110_s27 }
  0x67   :  { %s18607_s28 = scalar_lea.hbm %s20450_s6, 13568 }
  0x68   :  { %p18608_p6 = scmp.ne.s32.totalorder %s20450_s6, %s18607_s28  ;;  %p18611_p7 = scmp.lt.u32.totalorder %s18607_s28, %s20450_s6 }
  0x6a   :  { %p18613_p8 = pnand %p18611_p7, %p18608_p6 }
  0x6c   :  { %18616 = shalt.err (!%p18613_p8)
}
  0x6d   :  { %s18617_s4 = scalar_lea.vmem %s82_s30, 13568  ;;  %p18622_p10 = scmp.lt.s32.totalorder %s82_s30, %s82_s30 }
  0x6e   :  { %p18618_p9 = scmp.ne.s32.totalorder %s82_s30, %s18617_s4  ;;  %p18623_p11 = scmp.lt.s32.totalorder %s18617_s4, %s18617_s4 }
  0x70   :  { %p18624_p12 = por %p18623_p11, %p18622_p10 }
  0x72   :  { %p18625_p13 = pnand %p18624_p12, %p18618_p9 }
  0x74   :  { %18628 = shalt.err (!%p18625_p13)
}
  0x75   :  { %87 = dma.hbm_to_vmem [thread:$0]  %s20450_s6, 13568, %s82_s30, [#allocation8], %s18685_s25, %s18685_s25, %s18686_s26  }
  0x76   :  { %s18629_s16 = scalar_lea.hbm %s20454_s10, 64 }
  0x77   :  { %p18630_p0 = scmp.ne.s32.totalorder %s20454_s10, %s18629_s16  ;;  %p18633_p1 = scmp.lt.u32.totalorder %s18629_s16, %s20454_s10 }
  0x79   :  { %p18635_p2 = pnand %p18633_p1, %p18630_p0 }
  0x7b   :  { %18638 = shalt.err (!%p18635_p2)
}
  0x7c   :  { %s18639_s23 = scalar_lea.vmem %s111_s27, 64  ;;  %p18644_p4 = scmp.lt.s32.totalorder %s111_s27, %s111_s27 }
  0x7d   :  { %p18640_p3 = scmp.ne.s32.totalorder %s111_s27, %s18639_s23  ;;  %p18645_p5 = scmp.lt.s32.totalorder %s18639_s23, %s18639_s23 }
  0x7f   :  { %p18646_p6 = por %p18645_p5, %p18644_p4 }
  0x81   :  { %p18647_p7 = pnand %p18646_p6, %p18640_p3 }
  0x83   :  { %18650 = shalt.err (!%p18647_p7)
}
  0x84   :  { %113 = dma.hbm_to_vmem [thread:$0]  %s20454_s10, 64, %s111_s27, [#allocation11]  }
  0x85   :  { %s18693_s29 = smov [#allocation15]   ;;  %s18651_s17 = scalar_lea.hbm %s20457_s13, 640 }
  0x86   :  { %s131_s11 = sshll.u32 %s18693_s29, 4  ;;  %p18652_p8 = scmp.ne.s32.totalorder %s20457_s13, %s18651_s17  ;;  %s132_s11 = int_to_ptr.vmem [resolvable:$true] %s131_s11 }
  0x87   :  { %p18655_p9 = scmp.lt.u32.totalorder %s18651_s17, %s20457_s13 }
  0x89   :  { %p18657_p10 = pnand %p18655_p9, %p18652_p8 }
  0x8b   :  { %18660 = shalt.err (!%p18657_p10)
}
  0x8c   :  { %s18661_s24 = scalar_lea.vmem %s132_s11, 640  ;;  %p18666_p12 = scmp.lt.s32.totalorder %s132_s11, %s132_s11 }
  0x8d   :  { %p18662_p11 = scmp.ne.s32.totalorder %s132_s11, %s18661_s24  ;;  %p18667_p13 = scmp.lt.s32.totalorder %s18661_s24, %s18661_s24 }
  0x8f   :  { %p18668_p0 = por %p18667_p13, %p18666_p12 }
  0x91   :  { %p18669_p1 = pnand %p18668_p0, %p18662_p11 }
  0x93   :  { %18672 = shalt.err (!%p18669_p1)
}
  0x94   :  { %137 = dma.hbm_to_vmem [thread:$0]  %s20457_s13, 640, %s132_s11, [#allocation14], %s18685_s25, %s18685_s25, %s18686_s26  }
  0x95   :  { %18673 = dma.done.wait [#allocation3], 256  }
  0x96   :  { %18674 = vsyncadd [#allocation3], 4294967040 }
  0x97   :  { %18675 = dma.done.wait [#allocation5], 6144  }
  0x98   :  { %18676 = vsyncadd [#allocation5], 4294961152 }
  0x99   :  { %18677 = dma.done.wait [#allocation8], 21504  }
  0x9a   :  { %18678 = vsyncadd [#allocation8], 4294945792 }
  0x9b   :  { %18679 = dma.done.wait [#allocation11], 24896  }
  0x9c   :  { %18680 = vsyncadd [#allocation11], 4294942400 }
  0x9d   :  { %18681 = dma.done.wait [#allocation14], 672  }
  0x9e   :  { %18682 = vsyncadd [#allocation14], 4294966624  ;;  %v18694_v0 = vmov 0.0   ;;  %vm18695_vm0 = vmmov 0   ;;  %vm172_vm1 = vcmask 64512   ;;  %vm396_vm2 = vcmask 1043456  }
  0x9f   :  { %16206 = vmatprep.subr.mxu0 %v18694_v0  ;;  %16208 = vmatprep.mubr.msk.f32.mxu0 %vm18695_vm0, %v18694_v0  ;;  %v166_v1 = vld [vmem:[#allocation2] sm:$0xff]  ;;  %vm373_vm3 = vcmask 1040384   ;;  %v18933_v5 = vld [vmem:[%s20444_s0 + $0x8] sm:$0xff]  ;;  %v372_v6 = vld [vmem:[#allocation6] sm:$0xf]  ;;  %vm385_vm4 = vcmask 31744  }
  0xa0   :  { %16219 = vmatprep.mubr.msk.f32.mxu1 %vm18695_vm0, %v18694_v0  ;;  %v165_v2 = vld [vmem:[%s20445_s1] sm:$0x3]  ;;  %16207 = vmatpush3.msra.mxu0 %v166_v1  ;;  %v375_v8 = vrot.slane %v18933_v5, 7  ;;  %v18942_v9 = vld [vmem:[%s20444_s0 + $0x10] sm:$0xff]  ;;  %v18947_v10 = vld [vmem:[%s20444_s0 + $0x18] sm:$0xff]  ;;  %vm361_vm5 = vcmask 1041408  }
  0xa1   :  { %v384_v3 = vld [vmem:[#allocation6 + $0x8] sm:$0xf]  ;;  %16209 = vmatmul.mubr.msk.f32.vlgmr.msra.gmra.mrb[0].mxu0 %vm172_vm1, %v165_v2  ;;  %v377_v11 = vrot.slane %v18942_v9, 7  ;;  %v378_v12 = vrot.slane %v18947_v10, 7  ;;  %v583_v17 = vld [vmem:[#allocation6 + $0x10] sm:$0xf] }
  0xa2   :  { %v18928_v4 = vld [vmem:[%s20444_s0] sm:$0xff]  ;;  %16222 = vmatprep.subr.msk.mxu0 %vm396_vm2, %v384_v3  ;;  %v363_v19 = vrot.slane %v18933_v5, 6  ;;  %v365_v21 = vrot.slane %v18942_v9, 6  ;;  %v366_v23 = vrot.slane %v18947_v10, 6  ;;  %v695_v25 = vld [vmem:[#allocation6 + $0x18] sm:$0xf] }
  0xa3   :  { %v374_v7 = vrot.slane %v18928_v4, 7  ;;  %16223 = vmatpush3.msk.msra.mxu0 %vm396_vm2, %v384_v3  ;;  %v362_v15 = vrot.slane %v18928_v4, 6  ;;  %v383_v16 = vsel %vm373_vm3, 0.0, %v377_v11  ;;  %v379_v18 = vsel %vm373_vm3, %v377_v11, %v378_v12  ;;  %v809_v29 = vld [vmem:[#allocation6 + $0x20] sm:$0xf]  ;;  %v258_v44 = vld [vmem:[#allocation4] sm:$0xff] }
  0xa4   :  { %16230 = vmatprep.subr.msk.mxu0 %vm396_vm2, %v372_v6  ;;  %v371_v24 = vsel %vm361_vm5, 0.0, %v365_v21  ;;  %v367_v26 = vsel %vm361_vm5, %v365_v21, %v366_v23  ;;  %v685_v27 = vrot.slane %v18928_v4, 1  ;;  %v686_v28 = vrot.slane %v18933_v5, 1  ;;  %v259_v45 = vld [vmem:[#allocation4 + $0x8] sm:$0xff]  ;;  %v260_v48 = vld [vmem:[#allocation4 + $0x10] sm:$0xff]  ;;  %v261_v49 = vld [vmem:[#allocation4 + $0x18] sm:$0xff] }
  0xa5   :  { %v382_v13 = vsel %vm373_vm3, 0.0, %v374_v7  ;;  %v376_v14 = vsel %vm373_vm3, %v374_v7, %v375_v8  ;;  %v370_v20 = vsel %vm361_vm5, 0.0, %v362_v15  ;;  %v364_v22 = vsel %vm361_vm5, %v362_v15, %v363_v19  ;;  %v19018_v51 = vld [vmem:[#allocation6 + $0x150] sm:$0xff]  ;;  %v15235_v1 = vld [vmem:[#allocation6 + $0x28] ss:$0 sm:$0xff] }
  0xa6   :  { %16224 = vmatprep.mubr.msk.f32.mxu0 %vm385_vm4, %v382_v13  ;;  %vm684_vm6 = vcmask 1046528   ;;  %v688_v31 = vrot.slane %v18942_v9, 1  ;;  %v689_v32 = vrot.slane %v18947_v10, 1  ;;  %v799_v35 = vrot.slane %v18928_v4, 2  ;;  %v15204_v52 = vld [vmem:[#allocation2 + $0x8] ss:$0 sm:$0xff] }
  0xa7   :  { %16225 = vmatmul.mubr.msk.f32.vlgmr.msra.gmra.mrb[2].mxu0 %vm385_vm4, %v376_v14  ;;  %v687_v30 = vsel %vm684_vm6, %v685_v27, %v686_v28  ;;  %v693_v33 = vsel %vm684_vm6, %v686_v28, 0.0  ;;  %v800_v36 = vrot.slane %v18933_v5, 2  ;;  %vm798_vm7 = vcmask 1045504  }
  0xa8   :  { %16227 = vmatprep.mubr.msk.f32.mxu0 %vm385_vm4, %v383_v16  ;;  %16231 = vmatpush3.msk.msra.mxu0 %vm396_vm2, %v372_v6  ;;  %v690_v34 = vsel %vm684_vm6, %v688_v31, %v689_v32  ;;  %v694_v37 = vsel %vm684_vm6, %v689_v32, 0.0  ;;  %v802_v39 = vrot.slane %v18942_v9, 2  ;;  %v803_v40 = vrot.slane %v18947_v10, 2 }
  0xa9   :  { %16238 = vmatprep.subr.msk.mxu0 %vm396_vm2, %v583_v17  ;;  %v801_v38 = vsel %vm798_vm7, %v799_v35, %v800_v36  ;;  %v807_v41 = vsel %vm798_vm7, %v800_v36, 0.0  ;;  %v17522_v46 = vpack.c.bf16 %v259_v45, %v258_v44  ;;  %v18696_v47 = vmov 0.0|0.0  }
  0xaa   :  { %v804_v42 = vsel %vm798_vm7, %v802_v39, %v803_v40  ;;  %v808_v43 = vsel %vm798_vm7, %v803_v40, 0.0  ;;  %17521 = vmatprep.subr.bf16.mxu1 %v18696_v47  ;;  %v17525_v50 = vpack.c.bf16 %v261_v49, %v260_v48  ;;  %vm267_vm9 = vcmask 261120  }
  0xab   :  { %16228 = vmatmul.mubr.msk.f32.gmra.mrb[4].mxu0 %vm385_vm4, %v379_v18  ;;  %17523 = vmatpush3.bf16.msra.mxu1 %v17522_v46  ;;  %vm945_vm10 = vcmask 1041409   ;;  %v18697_v44 = vmov 1966171168   ;;  %v1023_v46 = vlaneseq }
  0xac   :  { %16232 = vmatprep.mubr.msk.f32.mxu0 %vm385_vm4, %v370_v20  ;;  %17524 = vmatprep.subr.bf16.mxu1 %v18696_v47  ;;  %v1021_v45 = vunpack.c.l.s4 %v18697_v44 }
  0xad   :  { %v19043_v49 = vshrl.u32 %v1023_v46, 7 }
  0xae   :  { %v1022_v48 = vunpack.c.0.s8 %v1021_v45 }
  0xaf   :  { %16233 = vmatmul.mubr.msk.f32.vlgmr.msra.gmra.mrb[2].mxu0 %vm385_vm4, %v364_v22  ;;  %17526 = vmatpush3.bf16.msra.mxu1 %v17525_v50 }
  0xb0   :  { %16235 = vmatprep.mubr.msk.f32.mxu0 %vm385_vm4, %v371_v24  ;;  %16239 = vmatpush3.msk.msra.mxu0 %vm396_vm2, %v583_v17 }
  0xb1   :  { %16246 = vmatprep.subr.msk.mxu0 %vm396_vm2, %v695_v25  ;;  %16267 = vmatprep.subr.mxu1 %v18694_v0 }
  0xb3   :  { %16236 = vmatmul.mubr.msk.f32.gmra.mrb[4].mxu0 %vm385_vm4, %v367_v26 }
  0xb4   :  { %16240 = vmatprep.mubr.msk.f32.mxu0 %vm385_vm4, %v18928_v4 }
  0xb7   :  { %16241 = vmatmul.mubr.msk.f32.vlgmr.msra.gmra.mrb[2].mxu0 %vm385_vm4, %v18933_v5 }
  0xb8   :  { %16243 = vmatprep.mubr.msk.f32.mxu0 %vm385_vm4, %v18942_v9  ;;  %16247 = vmatpush3.msk.msra.mxu0 %vm396_vm2, %v695_v25 }
  0xb9   :  { %16254 = vmatprep.subr.msk.mxu0 %vm396_vm2, %v809_v29 }
  0xbb   :  { %16244 = vmatmul.mubr.msk.f32.gmra.mrb[4].mxu0 %vm385_vm4, %v18947_v10 }
  0xbc   :  { %16248 = vmatprep.mubr.msk.f32.mxu0 %vm385_vm4, %v687_v30 }
  0xbf   :  { %16249 = vmatmul.mubr.msk.f32.vlgmr.msra.gmra.mrb[2].mxu0 %vm385_vm4, %v693_v33 }
  0xc0   :  { %16251 = vmatprep.mubr.msk.f32.mxu0 %vm385_vm4, %v690_v34  ;;  %16255 = vmatpush3.msk.msra.mxu0 %vm396_vm2, %v809_v29 }
  0xc1   :  { %16262 = vmatprep.subr.mxu0 %v18694_v0 }
  0xc3   :  { %16252 = vmatmul.mubr.msk.f32.gmra.mrb[4].mxu0 %vm385_vm4, %v694_v37 }
  0xc4   :  { %16256 = vmatprep.mubr.msk.f32.mxu0 %vm385_vm4, %v801_v38  ;;  %v15207_v38 = vld [vmem:[#allocation4 + $0x20] ss:$0 sm:$0xff] }
  0xc7   :  { %16257 = vmatmul.mubr.msk.f32.vlgmr.msra.gmra.mrb[2].mxu0 %vm385_vm4, %v807_v41 }
  0xc8   :  { %16259 = vmatprep.mubr.msk.f32.mxu0 %vm385_vm4, %v804_v42  ;;  %16263 = vmatpush3.msra.mxu0 %v19018_v51 }
  0xc9   :  { %16317 = vmatprep.subr.mxu0 %v18694_v0 }
  0xcb   :  { %16260 = vmatmul.mubr.msk.f32.gmra.mrb[4].mxu0 %vm385_vm4, %v808_v43 }
  0xcc   :  { %16264 = vmatprep.mubr.msk.f32.mxu0 %vm18695_vm0, %v18694_v0 }
 0x174   :  { %v242_v53 = vpop.f32.mrb[0].mxu0 }
 0x175   :  { %v243_v54 = vadd.f32 %v15204_v52, %v242_v53  ;;  %v16210_v55 = vpop.f32.mrb[1].mxu0  ;;  %v19046_v52 = vsub.s32 %v1022_v48, %v19043_v49 }
 0x177   :  { %v246_v56 = vmin.f32 %v243_v54, 20.0  ;;  %vm255_vm8 = vcmp.gt.f32.partialorder %v243_v54, 20.0 }
 0x179   :  { %v247_v57 = vmul.f32 1.442695, %v246_v56  ;;  %v19050_v56 = vsub.s32 0, %v19043_v49 }
 0x17b   :  { %18270 = vpow2.f32 %v247_v57 }
 0x185   :  { %v18271_v58 = vpop.eup %18270 }
 0x186   :  { %v249_v59 = vadd.f32 1.0, %v18271_v58 }
 0x188   :  { %v250_v60 = vmul.f32 %v249_v59, %v249_v59 }
 0x18a   :  { %v252_v61 = vadd.f32 1.0, %v250_v60  ;;  %v15206_v62 = vadd.f32 -1.0, %v250_v60 }
 0x18c   :  { %18272 = vrcp.f32 %v252_v61 }
 0x196   :  { %v18273_v63 = vpop.eup %18272 }
 0x197   :  { %v254_v2 = vmul.f32 %v18273_v63, %v15206_v62 }
 0x199   :  { %v256_v6 = vsel %vm255_vm8, 1.0, %v254_v2 }
 0x19a   :  { %v16258_v3 = vpop.f32.mrb[2].mxu0  ;;  %v257_v11 = vmul.f32 %v256_v6, %v243_v54 }
 0x19b   :  { %v19022_v7 = vadd.f32 %v16258_v3, %v15235_v1  ;;  %v889_v8 = vpop.f32.mrb[3].mxu0 }
 0x19c   :  { %v917_v12 = vadd.f32 %v15235_v1, %v889_v8  ;;  %16220 = vmatmul.mubr.msk.f32.vlgmr.msra.gmra.mrb[0].mxu1 %vm267_vm9, %v257_v11 }
 0x19d   :  { %v923_v13 = vsel %vm172_vm1, %v19022_v7, 0.0  ;;  %16268 = vmatpush3.msra.mxu1 %v19018_v51  ;;  %16269 = vmatprep.mubr.msk.f32.mxu1 %vm18695_vm0, %v18694_v0 }
 0x19e   :  { %v922_v14 = vsel %vm172_vm1, %v917_v12, 0.0  ;;  %v16261_v15 = vpop.f32.mrb[4].mxu0  ;;  %16272 = vmatprep.subr.mxu1 %v18694_v0 }
 0x19f   :  { %v924_v16 = vadd.f32 %v923_v13, %v922_v14  ;;  %v920_v17 = vadd.f32 %v16261_v15, %v15235_v1  ;;  %v899_v18 = vpop.f32.mrb[5].mxu0 }
 0x1a0   :  { %v919_v19 = vadd.f32 %v15235_v1, %v899_v18 }
 0x1a1   :  { %v925_v20 = vrot.slane %v924_v16, 4  ;;  %v932_v21 = vsel %vm172_vm1, %v920_v17, 0.0 }
 0x1a2   :  { %v931_v22 = vsel %vm172_vm1, %v919_v19, 0.0 }
 0x1a3   :  { %v926_v23 = vadd.f32 %v925_v20, %v924_v16  ;;  %v933_v24 = vadd.f32 %v932_v21, %v931_v22 }
 0x1a5   :  { %v927_v25 = vrot.slane %v926_v23, 2  ;;  %v934_v26 = vrot.slane %v933_v24, 4 }
 0x1a7   :  { %v928_v27 = vadd.f32 %v927_v25, %v926_v23  ;;  %v935_v28 = vadd.f32 %v934_v26, %v933_v24 }
 0x1a9   :  { %v929_v29 = vrot.slane %v928_v27, 1  ;;  %v936_v30 = vrot.slane %v935_v28, 2 }
 0x1ab   :  { %v937_v31 = vadd.f32 %v936_v30, %v935_v28  ;;  %v930_v32 = vadd.f32 %v929_v29, %v928_v27 }
 0x1ad   :  { %v938_v33 = vrot.slane %v937_v31, 1  ;;  %v941_v35 = vmul.f32 0.0625, %v930_v32 }
 0x1af   :  { %v939_v34 = vadd.f32 %v938_v33, %v937_v31 }
 0x1b1   :  { %v942_v36 = vmul.f32 0.0625, %v939_v34 }
 0x1b3   :  { %v946_v37 = vsel %vm945_vm10, %v942_v36, %v941_v35 }
 0x1b4   :  { %16265 = vmatmul.mubr.msk.f32.vlgmr.msra.gmra.mrb[6].mxu0 %vm172_vm1, %v946_v37  ;;  %v1259_v37 = vld [vmem:[#allocation6 + $0x80] sm:$0xff] }
 0x1b5   :  { %16318 = vmatpush3.msra.mxu0 %v19018_v51  ;;  %16319 = vmatprep.mubr.msk.f32.mxu0 %vm18695_vm0, %v18694_v0 }
 0x1b6   :  { %16322 = vmatprep.subr.mxu0 %v18694_v0 }
 0x26f   :  { %v337_v39 = vpop.f32.mrb[0].mxu1 }
 0x270   :  { %v19040_v40 = vadd.f32 %v15207_v38, %v337_v39  ;;  %v16221_v41 = vpop.f32.mrb[1].mxu1 }
 0x272   :  { %v341_v42 = vmin.f32 %v19040_v40, 20.0  ;;  %vm350_vm11 = vcmp.gt.f32.partialorder %v19040_v40, 20.0 }
 0x274   :  { %v342_v43 = vmul.f32 1.442695, %v341_v42  ;;  %v1400_v42 = vld [vmem:[#allocation6 + $0x48] sm:$0xff] }
 0x276   :  { %18274 = vpow2.f32 %v342_v43  ;;  %v19071_v43 = vld [vmem:[#allocation6 + $0x40] sm:$0xff] }
 0x280   :  { %v18275_v50 = vpop.eup %18274 }
 0x281   :  { %v344_v53 = vadd.f32 1.0, %v18275_v50 }
 0x283   :  { %v345_v60 = vmul.f32 %v344_v53, %v344_v53 }
 0x285   :  { %v347_v3 = vadd.f32 1.0, %v345_v60  ;;  %v15209_v30 = vadd.f32 -1.0, %v345_v60  ;;  %v15238_v60 = vld [vmem:[#allocation6 + $0x30] ss:$0 sm:$0xff] }
 0x287   :  { %v1015_v54 = vpop.f32.mrb[6].mxu0  ;;  %18276 = vrcp.f32 %v347_v3  ;;  %v15239_v3 = vld [vmem:[#allocation6 + $0x38] ss:$0 sm:$0xff] }
 0x288   :  { %v1026_v55 = vrot.slane %v1015_v54, %v19046_v52  ;;  %v16266_v57 = vpop.f32.mrb[7].mxu0 }
 0x28a   :  { %v1027_v58 = vcombine.high %v1026_v55, %v1026_v55  ;;  %v1034_v59 = vrot.slane %v1026_v55, %v19046_v52 }
 0x28c   :  { %v1041_v61 = vrot.slane %v1027_v58, %v19046_v52  ;;  %v1045_v62 = vrot.slane %v1034_v59, %v19050_v56 }
 0x28e   :  { %v1049_v63 = vrot.slane %v1041_v61, %v19050_v56  ;;  %v1052_v1 = vsub.f32 %v917_v12, %v1045_v62  ;;  %v1053_v2 = vsub.f32 %v19022_v7, %v1045_v62 }
 0x290   :  { %v1054_v6 = vsub.f32 %v919_v19, %v1049_v63  ;;  %v1055_v8 = vsub.f32 %v920_v17, %v1049_v63  ;;  %v1056_v11 = vmul.f32 %v1052_v1, %v1052_v1  ;;  %v1057_v13 = vmul.f32 %v1053_v2, %v1053_v2 }
 0x291   :  { %v18277_v29 = vpop.eup %18276 }
 0x292   :  { %v1058_v14 = vmul.f32 %v1054_v6, %v1054_v6  ;;  %v1059_v15 = vmul.f32 %v1055_v8, %v1055_v8  ;;  %v1060_v16 = vsel %vm172_vm1, %v1056_v11, 0.0  ;;  %v1061_v18 = vsel %vm172_vm1, %v1057_v13, 0.0 }
 0x293   :  { %v1062_v20 = vadd.f32 %v1061_v18, %v1060_v16  ;;  %v349_v33 = vmul.f32 %v18277_v29, %v15209_v30 }
 0x294   :  { %v1069_v21 = vsel %vm172_vm1, %v1058_v14, 0.0  ;;  %v1070_v22 = vsel %vm172_vm1, %v1059_v15, 0.0 }
 0x295   :  { %v1063_v12 = vrot.slane %v1062_v20, 4  ;;  %v1071_v23 = vadd.f32 %v1070_v22, %v1069_v21  ;;  %v351_v38 = vsel %vm350_vm11, 1.0, %v349_v33 }
 0x296   :  { %v19067_v41 = vmul.f32 %v351_v38, %v19040_v40 }
 0x297   :  { %v1064_v7 = vadd.f32 %v1063_v12, %v1062_v20  ;;  %v1072_v24 = vrot.slane %v1071_v23, 4 }
 0x299   :  { %v1065_v19 = vrot.slane %v1064_v7, 2  ;;  %v1073_v17 = vadd.f32 %v1072_v24, %v1071_v23 }
 0x29b   :  { %v1066_v25 = vadd.f32 %v1065_v19, %v1064_v7  ;;  %v1074_v26 = vrot.slane %v1073_v17, 2 }
 0x29d   :  { %v1067_v27 = vrot.slane %v1066_v25, 1  ;;  %v1075_v28 = vadd.f32 %v1074_v26, %v1073_v17 }
 0x29f   :  { %v1068_v31 = vadd.f32 %v1067_v27, %v1066_v25  ;;  %v1076_v32 = vrot.slane %v1075_v28, 1 }
 0x2a1   :  { %v1077_v34 = vadd.f32 %v1076_v32, %v1075_v28  ;;  %v1078_v35 = vmul.f32 0.0625, %v1068_v31 }
 0x2a3   :  { %v1079_v36 = vmul.f32 0.0625, %v1077_v34  ;;  %v15244_v34 = vld [vmem:[#allocation6 + $0x88] ss:$0 sm:$0xff] }
 0x2a5   :  { %v1082_v39 = vsel %vm945_vm10, %v1079_v36, %v1078_v35 }
 0x2a6   :  { %16270 = vmatmul.mubr.msk.f32.vlgmr.msra.gmra.mrb[2].mxu1 %vm172_vm1, %v1082_v39 }
 0x2a7   :  { %16273 = vmatpush3.msra.mxu1 %v1259_v37  ;;  %16274 = vmatprep.mubr.msk.f32.mxu1 %vm18695_vm0, %v18694_v0 }
 0x2a8   :  { %16277 = vmatprep.subr.mxu1 %v1400_v42 }
 0x2aa   :  { %16275 = vmatmul.mubr.msk.f32.vlgmr.msra.gmra.mrb[4].mxu1 %vm172_vm1, %v19067_v41 }
 0x2ab   :  { %16278 = vmatpush3.msra.mxu1 %v1400_v42 }
 0x2ac   :  { %16285 = vmatprep.subr.mxu1 %v19071_v43 }
 0x379   :  { %v1151_v44 = vpop.f32.mrb[2].mxu1 }
 0x37a   :  { %v1152_v45 = vadd.f32 1e-05, %v1151_v44  ;;  %v16271_v46 = vpop.f32.mrb[3].mxu1 }
 0x37c   :  { %18278 = vrsqrt.f32 %v1152_v45 }
 0x37d   :  { %v1334_v48 = vpop.f32.mrb[4].mxu1 }
 0x37e   :  { %v16276_v50 = vpop.f32.mrb[5].mxu1  ;;  %v1335_v42 = vadd.f32 %v15244_v34, %v1334_v48 }
 0x380   :  { %v1345_v45 = vrot.slane %v1335_v42, %v19046_v52 }
 0x382   :  { %v1346_v46 = vcombine.high %v1345_v45, %v1345_v45 }
 0x384   :  { %v1360_v48 = vrot.slane %v1346_v46, %v19046_v52 }
 0x386   :  { %v18279_v53 = vpop.eup %18278 }
 0x387   :  { %v1163_v54 = vrot.slane %v18279_v53, %v19046_v52  ;;  %v1353_v53 = vrot.slane %v1345_v45, %v19046_v52 }
 0x389   :  { %v1164_v55 = vcombine.high %v1163_v54, %v1163_v54  ;;  %v1171_v57 = vrot.slane %v1163_v54, %v19046_v52 }
 0x38b   :  { %v1178_v58 = vrot.slane %v1164_v55, %v19046_v52  ;;  %v1182_v59 = vrot.slane %v1171_v57, %v19050_v56 }
 0x38d   :  { %v1186_v61 = vrot.slane %v1178_v58, %v19050_v56  ;;  %v1189_v62 = vmul.f32 %v1182_v59, %v1052_v1  ;;  %v1190_v63 = vmul.f32 %v1182_v59, %v1053_v2 }
 0x38f   :  { %v1191_v11 = vmul.f32 %v1186_v61, %v1054_v6  ;;  %v1192_v13 = vmul.f32 %v1186_v61, %v1055_v8  ;;  %v1198_v14 = vmul.f32 %v15238_v60, %v1189_v62  ;;  %v1199_v15 = vmul.f32 %v15238_v60, %v1190_v63 }
 0x391   :  { %v1200_v16 = vmul.f32 %v15238_v60, %v1191_v11  ;;  %v1201_v18 = vmul.f32 %v15238_v60, %v1192_v13  ;;  %v1207_v20 = vadd.f32 %v15239_v3, %v1198_v14  ;;  %v1208_v21 = vadd.f32 %v15239_v3, %v1199_v15 }
 0x392   :  { %v1364_v13 = vrot.slane %v1353_v53, %v19050_v56 }
 0x393   :  { %v19079_v22 = vadd.f32 %v15239_v3, %v1200_v16  ;;  %v19081_v12 = vadd.f32 %v15239_v3, %v1201_v18  ;;  %v1211_v23 = vmin.f32 %v1207_v20, 20.0  ;;  %v1212_v7 = vmin.f32 %v1208_v21, 20.0 }
 0x394   :  { %vm1247_vm12 = vcmp.gt.f32.partialorder %v1207_v20, 20.0  ;;  %vm1248_vm13 = vcmp.gt.f32.partialorder %v1208_v21, 20.0 }
 0x395   :  { %v1213_v24 = vmin.f32 %v19079_v22, 20.0  ;;  %v1214_v1 = vmin.f32 %v19081_v12, 20.0  ;;  %v1215_v2 = vmul.f32 1.442695, %v1211_v23  ;;  %v1217_v19 = vmul.f32 1.442695, %v1212_v7 }
 0x396   :  { %vm1249_vm14 = vcmp.gt.f32.partialorder %v19079_v22, 20.0  ;;  %vm1250_vm15 = vcmp.gt.f32.partialorder %v19081_v12, 20.0 }
 0x397   :  { %18280 = vpow2.f32 %v1215_v2  ;;  %v1219_v6 = vmul.f32 1.442695, %v1213_v24  ;;  %v1221_v8 = vmul.f32 1.442695, %v1214_v1  ;;  %v1368_v1 = vrot.slane %v1360_v48, %v19050_v56 }
 0x398   :  { %18282 = vpow2.f32 %v1217_v19 }
 0x399   :  { %18284 = vpow2.f32 %v1219_v6 }
 0x39a   :  { %18286 = vpow2.f32 %v1221_v8 }
 0x3a1   :  { %v18281_v17 = vpop.eup %18280 }
 0x3a2   :  { %v18283_v25 = vpop.eup %18282  ;;  %v1223_v26 = vadd.f32 1.0, %v18281_v17 }
 0x3a3   :  { %v18285_v27 = vpop.eup %18284  ;;  %v1224_v28 = vadd.f32 1.0, %v18283_v25 }
 0x3a4   :  { %v18287_v29 = vpop.eup %18286  ;;  %v1225_v30 = vadd.f32 1.0, %v18285_v27  ;;  %v1227_v31 = vmul.f32 %v1223_v26, %v1223_v26 }
 0x3a5   :  { %v1226_v32 = vadd.f32 1.0, %v18287_v29  ;;  %v1228_v33 = vmul.f32 %v1224_v28, %v1224_v28 }
 0x3a6   :  { %v1229_v35 = vmul.f32 %v1225_v30, %v1225_v30  ;;  %v1235_v36 = vadd.f32 1.0, %v1227_v31  ;;  %v15240_v50 = vadd.f32 -1.0, %v1227_v31 }
 0x3a7   :  { %v1230_v37 = vmul.f32 %v1226_v32, %v1226_v32  ;;  %v1236_v38 = vadd.f32 1.0, %v1228_v33  ;;  %v15241_v55 = vadd.f32 -1.0, %v1228_v33  ;;  %v1591_v33 = vld [vmem:[#allocation6 + $0x50] sm:$0xff] }
 0x3a8   :  { %v1237_v39 = vadd.f32 1.0, %v1229_v35  ;;  %18288 = vrcp.f32 %v1235_v36  ;;  %v15242_v58 = vadd.f32 -1.0, %v1229_v35 }
 0x3a9   :  { %v1238_v44 = vadd.f32 1.0, %v1230_v37  ;;  %18290 = vrcp.f32 %v1236_v38  ;;  %v15243_v61 = vadd.f32 -1.0, %v1230_v37 }
 0x3aa   :  { %18292 = vrcp.f32 %v1237_v39 }
 0x3ab   :  { %18294 = vrcp.f32 %v1238_v44 }
 0x3b2   :  { %v18289_v54 = vpop.eup %18288 }
 0x3b3   :  { %v18291_v57 = vpop.eup %18290  ;;  %v1243_v59 = vmul.f32 %v18289_v54, %v15240_v50 }
 0x3b4   :  { %v18293_v60 = vpop.eup %18292  ;;  %v1244_v62 = vmul.f32 %v18291_v57, %v15241_v55  ;;  %v1699_v57 = vld [vmem:[#allocation6 + $0x58] sm:$0xff] }
 0x3b5   :  { %v18295_v63 = vpop.eup %18294  ;;  %v1245_v3 = vmul.f32 %v18293_v60, %v15242_v58  ;;  %v1251_v11 = vsel %vm1247_vm12, 1.0, %v1243_v59  ;;  %v1809_v59 = vld [vmem:[#allocation6 + $0x60] sm:$0xff] }
 0x3b6   :  { %v1246_v14 = vmul.f32 %v18295_v63, %v15243_v61  ;;  %v1252_v15 = vsel %vm1248_vm13, 1.0, %v1244_v62  ;;  %v1255_v16 = vmul.f32 %v1251_v11, %v1207_v20  ;;  %v15266_v63 = vld [vmem:[#allocation6 + $0x68] ss:$0 sm:$0xff] }
 0x3b7   :  { %v1253_v18 = vsel %vm1249_vm14, 1.0, %v1245_v3  ;;  %v1256_v23 = vmul.f32 %v1252_v15, %v1208_v21 }
 0x3b8   :  { %v1254_v7 = vsel %vm1250_vm15, 1.0, %v1246_v14  ;;  %v1257_v24 = vmul.f32 %v1253_v18, %v19079_v22  ;;  %v1371_v2 = vadd.f32 %v1364_v13, %v1255_v16 }
 0x3b9   :  { %v1258_v19 = vmul.f32 %v1254_v7, %v19081_v12  ;;  %v1372_v6 = vadd.f32 %v1364_v13, %v1256_v23 }
 0x3ba   :  { %v1373_v8 = vadd.f32 %v1368_v1, %v1257_v24  ;;  %v1390_v17 = vrot.slane %v1371_v2, 7  ;;  %v1379_v25 = vrot.slane %v1371_v2, 6  ;;  %v1689_v26 = vrot.slane %v1371_v2, 1 }
 0x3bb   :  { %v1374_v27 = vadd.f32 %v1368_v1, %v1258_v19  ;;  %v1391_v28 = vrot.slane %v1372_v6, 7  ;;  %v1380_v20 = vrot.slane %v1372_v6, 6  ;;  %v1690_v29 = vrot.slane %v1372_v6, 1 }
 0x3bc   :  { %v1398_v30 = vsel %vm373_vm3, 0.0, %v1390_v17  ;;  %v1393_v21 = vrot.slane %v1373_v8, 7  ;;  %v1382_v31 = vrot.slane %v1373_v8, 6  ;;  %v1692_v39 = vrot.slane %v1373_v8, 1 }
 0x3bd   :  { %16279 = vmatprep.mubr.msk.f32.mxu1 %vm172_vm1, %v1398_v30  ;;  %v1392_v22 = vsel %vm373_vm3, %v1390_v17, %v1391_v28  ;;  %v1394_v32 = vrot.slane %v1374_v27, 7  ;;  %v1381_v12 = vsel %vm361_vm5, %v1379_v25, %v1380_v20  ;;  %v1383_v34 = vrot.slane %v1374_v27, 6 }
 0x3be   :  { %16280 = vmatmul.mubr.msk.f32.vlgmr.msra.gmra.mrb[6].mxu1 %vm172_vm1, %v1392_v22  ;;  %v1399_v35 = vsel %vm373_vm3, 0.0, %v1393_v21  ;;  %v1691_v36 = vsel %vm684_vm6, %v1689_v26, %v1690_v29  ;;  %v1693_v42 = vrot.slane %v1374_v27, 1  ;;  %v1799_v44 = vrot.slane %v1371_v2, 2 }
 0x3bf   :  { %16282 = vmatprep.mubr.msk.f32.mxu1 %vm172_vm1, %v1399_v35  ;;  %16286 = vmatpush3.msra.mxu1 %v19071_v43  ;;  %v1395_v37 = vsel %vm373_vm3, %v1393_v21, %v1394_v32  ;;  %v1384_v38 = vsel %vm361_vm5, %v1382_v31, %v1383_v34  ;;  %v1800_v45 = vrot.slane %v1372_v6, 2  ;;  %v1802_v46 = vrot.slane %v1373_v8, 2  ;;  %v2253_v34 = vld [vmem:[#allocation6 + $0x90] sm:$0xf] }
 0x3c0   :  { %16293 = vmatprep.subr.mxu1 %v1591_v33  ;;  %v1803_v50 = vrot.slane %v1374_v27, 2  ;;  %v1694_v53 = vsel %vm684_vm6, %v1692_v39, %v1693_v42  ;;  %v1387_v54 = vsel %vm361_vm5, 0.0, %v1379_v25  ;;  %v1388_v58 = vsel %vm361_vm5, 0.0, %v1382_v31 }
 0x3c1   :  { %v1801_v55 = vsel %vm798_vm7, %v1799_v44, %v1800_v45  ;;  %v1697_v60 = vsel %vm684_vm6, %v1690_v29, 0.0  ;;  %v1698_v61 = vsel %vm684_vm6, %v1693_v42, 0.0  ;;  %v1807_v62 = vsel %vm798_vm7, %v1800_v45, 0.0 }
 0x3c2   :  { %16283 = vmatmul.mubr.msk.f32.gmra.mrb[8].mxu1 %vm172_vm1, %v1395_v37  ;;  %v1804_v43 = vsel %vm798_vm7, %v1802_v46, %v1803_v50  ;;  %v1808_v48 = vsel %vm798_vm7, %v1803_v50, 0.0 }
 0x3c3   :  { %16287 = vmatprep.mubr.msk.f32.mxu1 %vm172_vm1, %v1387_v54 }
 0x3c6   :  { %16288 = vmatmul.mubr.msk.f32.vlgmr.msra.gmra.mrb[6].mxu1 %vm172_vm1, %v1381_v12 }
 0x3c7   :  { %16290 = vmatprep.mubr.msk.f32.mxu1 %vm172_vm1, %v1388_v58  ;;  %16294 = vmatpush3.msra.mxu1 %v1591_v33 }
 0x3c8   :  { %16301 = vmatprep.subr.mxu1 %v1699_v57 }
 0x3ca   :  { %16291 = vmatmul.mubr.msk.f32.gmra.mrb[8].mxu1 %vm172_vm1, %v1384_v38 }
 0x3cb   :  { %16295 = vmatprep.mubr.msk.f32.mxu1 %vm172_vm1, %v1371_v2 }
 0x3ce   :  { %16296 = vmatmul.mubr.msk.f32.vlgmr.msra.gmra.mrb[6].mxu1 %vm172_vm1, %v1372_v6 }
 0x3cf   :  { %16298 = vmatprep.mubr.msk.f32.mxu1 %vm172_vm1, %v1373_v8  ;;  %16302 = vmatpush3.msra.mxu1 %v1699_v57 }
 0x3d0   :  { %16309 = vmatprep.subr.mxu1 %v1809_v59 }
 0x3d2   :  { %16299 = vmatmul.mubr.msk.f32.gmra.mrb[8].mxu1 %vm172_vm1, %v1374_v27 }
 0x3d3   :  { %16303 = vmatprep.mubr.msk.f32.mxu1 %vm172_vm1, %v1691_v36 }
 0x3d6   :  { %16304 = vmatmul.mubr.msk.f32.vlgmr.msra.gmra.mrb[6].mxu1 %vm172_vm1, %v1697_v60 }
 0x3d7   :  { %16306 = vmatprep.mubr.msk.f32.mxu1 %vm172_vm1, %v1694_v53  ;;  %16310 = vmatpush3.msra.mxu1 %v1809_v59 }
 0x3d8   :  { %16375 = vmatprep.subr.mxu1 %v18694_v0 }
 0x3da   :  { %16307 = vmatmul.mubr.msk.f32.gmra.mrb[8].mxu1 %vm172_vm1, %v1698_v61 }
 0x3db   :  { %16311 = vmatprep.mubr.msk.f32.mxu1 %vm172_vm1, %v1801_v55 }
 0x3de   :  { %16312 = vmatmul.mubr.msk.f32.vlgmr.msra.gmra.mrb[6].mxu1 %vm172_vm1, %v1807_v62 }
 0x3df   :  { %16314 = vmatprep.mubr.msk.f32.mxu1 %vm172_vm1, %v1804_v43  ;;  %16376 = vmatpush3.msra.mxu1 %v19018_v51 }
 0x3e0   :  { %16380 = vmatprep.subr.mxu1 %v18694_v0 }
 0x3e2   :  { %16315 = vmatmul.mubr.msk.f32.gmra.mrb[8].mxu1 %vm172_vm1, %v1808_v48 }
 0x3e3   :  { %16377 = vmatprep.mubr.msk.f32.mxu1 %vm18695_vm0, %v18694_v0 }
 0x4b1   :  { %v16313_v3 = vpop.f32.mrb[6].mxu1 }
 0x4b2   :  { %v1915_v11 = vadd.f32 %v16313_v3, %v15266_v63  ;;  %v1886_v13 = vpop.f32.mrb[7].mxu1 }
 0x4b3   :  { %v1914_v14 = vadd.f32 %v15266_v63, %v1886_v13 }
 0x4b4   :  { %v1919_v15 = vsel %vm172_vm1, %v1915_v11, 0.0 }
 0x4b5   :  { %v1918_v16 = vsel %vm172_vm1, %v1914_v14, 0.0  ;;  %v16316_v18 = vpop.f32.mrb[8].mxu1 }
 0x4b6   :  { %v1920_v23 = vadd.f32 %v1919_v15, %v1918_v16  ;;  %v1917_v7 = vadd.f32 %v16316_v18, %v15266_v63  ;;  %v1896_v24 = vpop.f32.mrb[9].mxu1 }
 0x4b7   :  { %v1916_v1 = vadd.f32 %v15266_v63, %v1896_v24 }
 0x4b8   :  { %v1921_v2 = vrot.slane %v1920_v23, 4  ;;  %v1928_v19 = vsel %vm172_vm1, %v1917_v7, 0.0 }
 0x4b9   :  { %v1927_v6 = vsel %vm172_vm1, %v1916_v1, 0.0 }
 0x4ba   :  { %v1922_v8 = vadd.f32 %v1921_v2, %v1920_v23  ;;  %v1929_v17 = vadd.f32 %v1928_v19, %v1927_v6 }
 0x4bc   :  { %v1923_v25 = vrot.slane %v1922_v8, 2  ;;  %v1930_v26 = vrot.slane %v1929_v17, 4 }
 0x4be   :  { %v1924_v27 = vadd.f32 %v1923_v25, %v1922_v8  ;;  %v1931_v28 = vadd.f32 %v1930_v26, %v1929_v17  ;;  %v2376_v8 = vld [vmem:[#allocation6 + $0xa8] sm:$0xff]  ;;  %v19166_v17 = vld [vmem:[#allocation6 + $0xa0] sm:$0xff] }
 0x4c0   :  { %v1925_v20 = vrot.slane %v1924_v27, 1  ;;  %v1932_v29 = vrot.slane %v1931_v28, 2 }
 0x4c2   :  { %v1933_v30 = vadd.f32 %v1932_v29, %v1931_v28  ;;  %v1926_v21 = vadd.f32 %v1925_v20, %v1924_v27 }
 0x4c4   :  { %v1934_v31 = vrot.slane %v1933_v30, 1  ;;  %v1936_v32 = vmul.f32 0.0625, %v1926_v21 }
 0x4c6   :  { %v1935_v22 = vadd.f32 %v1934_v31, %v1933_v30 }
 0x4c8   :  { %v1937_v12 = vmul.f32 0.0625, %v1935_v22  ;;  %v15269_v22 = vld [vmem:[#allocation6 + $0x70] ss:$0 sm:$0xff] }
 0x4ca   :  { %v1940_v33 = vsel %vm945_vm10, %v1937_v12, %v1936_v32 }
 0x4cb   :  { %16320 = vmatmul.mubr.msk.f32.vlgmr.msra.gmra.mrb[8].mxu0 %vm172_vm1, %v1940_v33 }
 0x4cc   :  { %16323 = vmatpush3.msra.mxu0 %v19018_v51  ;;  %16324 = vmatprep.mubr.msk.f32.mxu0 %vm18695_vm0, %v18694_v0 }
 0x4cd   :  { %16327 = vmatprep.subr.msk.mxu0 %vm396_vm2, %v2253_v34 }
 0x59e   :  { %v2009_v35 = vpop.f32.mrb[8].mxu0 }
 0x59f   :  { %v2020_v36 = vrot.slane %v2009_v35, %v19046_v52  ;;  %v16321_v37 = vpop.f32.mrb[9].mxu0 }
 0x5a1   :  { %v2021_v38 = vcombine.high %v2020_v36, %v2020_v36  ;;  %v2028_v39 = vrot.slane %v2020_v36, %v19046_v52 }
 0x5a3   :  { %v2035_v42 = vrot.slane %v2021_v38, %v19046_v52  ;;  %v2039_v44 = vrot.slane %v2028_v39, %v19050_v56 }
 0x5a5   :  { %v2043_v45 = vrot.slane %v2035_v42, %v19050_v56  ;;  %v2046_v51 = vsub.f32 %v1914_v14, %v2039_v44  ;;  %v2047_v46 = vsub.f32 %v1915_v11, %v2039_v44 }
 0x5a7   :  { %v2048_v50 = vsub.f32 %v1916_v1, %v2043_v45  ;;  %v2049_v53 = vsub.f32 %v1917_v7, %v2043_v45  ;;  %v2050_v54 = vmul.f32 %v2046_v51, %v2046_v51  ;;  %v2051_v55 = vmul.f32 %v2047_v46, %v2047_v46 }
 0x5a9   :  { %v2052_v43 = vmul.f32 %v2048_v50, %v2048_v50  ;;  %v2053_v57 = vmul.f32 %v2049_v53, %v2049_v53  ;;  %v2054_v58 = vsel %vm172_vm1, %v2050_v54, 0.0  ;;  %v2055_v59 = vsel %vm172_vm1, %v2051_v55, 0.0 }
 0x5aa   :  { %v2056_v60 = vadd.f32 %v2055_v59, %v2054_v58 }
 0x5ab   :  { %v2063_v61 = vsel %vm172_vm1, %v2052_v43, 0.0  ;;  %v2064_v62 = vsel %vm172_vm1, %v2053_v57, 0.0 }
 0x5ac   :  { %v2057_v48 = vrot.slane %v2056_v60, 4  ;;  %v2065_v63 = vadd.f32 %v2064_v62, %v2063_v61 }
 0x5ae   :  { %v2058_v3 = vadd.f32 %v2057_v48, %v2056_v60  ;;  %v2066_v13 = vrot.slane %v2065_v63, 4 }
 0x5b0   :  { %v2059_v11 = vrot.slane %v2058_v3, 2  ;;  %v2067_v14 = vadd.f32 %v2066_v13, %v2065_v63 }
 0x5b2   :  { %v2060_v15 = vadd.f32 %v2059_v11, %v2058_v3  ;;  %v2068_v16 = vrot.slane %v2067_v14, 2 }
 0x5b4   :  { %v2061_v18 = vrot.slane %v2060_v15, 1  ;;  %v2069_v23 = vadd.f32 %v2068_v16, %v2067_v14 }
 0x5b6   :  { %v2062_v7 = vadd.f32 %v2061_v18, %v2060_v15  ;;  %v2070_v24 = vrot.slane %v2069_v23, 1 }
 0x5b8   :  { %v2071_v1 = vadd.f32 %v2070_v24, %v2069_v23  ;;  %v2072_v2 = vmul.f32 0.0625, %v2062_v7 }
 0x5ba   :  { %v2073_v19 = vmul.f32 0.0625, %v2071_v1 }
 0x5bc   :  { %v2076_v6 = vsel %vm945_vm10, %v2073_v19, %v2072_v2  ;;  %v15275_v19 = vld [vmem:[#allocation6 + $0x98] ss:$0 sm:$0xff] }
 0x5bd   :  { %16325 = vmatmul.mubr.msk.f32.vlgmr.msra.gmra.mrb[10].mxu0 %vm172_vm1, %v2076_v6 }
 0x5be   :  { %16328 = vmatpush3.msk.msra.mxu0 %vm396_vm2, %v2253_v34  ;;  %16329 = vmatprep.mubr.msk.f32.mxu0 %vm385_vm4, %v18928_v4  ;;  %v15270_v34 = vld [vmem:[#allocation6 + $0x78] ss:$0 sm:$0xff] }
 0x5bf   :  { %16335 = vmatprep.subr.mxu0 %v2376_v8 }
 0x5c1   :  { %16330 = vmatmul.mubr.msk.f32.vlgmr.msra.gmra.mrb[12].mxu0 %vm385_vm4, %v18933_v5 }
 0x5c2   :  { %16332 = vmatprep.mubr.msk.f32.mxu0 %vm385_vm4, %v18942_v9  ;;  %16336 = vmatpush3.msra.mxu0 %v2376_v8 }
 0x5c3   :  { %16343 = vmatprep.subr.mxu0 %v19166_v17 }
 0x5c5   :  { %16333 = vmatmul.mubr.msk.f32.gmra.mrb[14].mxu0 %vm385_vm4, %v18947_v10 }
 0x690   :  { %v2145_v25 = vpop.f32.mrb[10].mxu0 }
 0x691   :  { %v2146_v26 = vadd.f32 1e-05, %v2145_v25  ;;  %v16326_v27 = vpop.f32.mrb[11].mxu0 }
 0x693   :  { %18296 = vrsqrt.f32 %v2146_v26 }
 0x694   :  { %v19169_v4 = vpop.f32.mrb[12].mxu0 }
 0x695   :  { %v19171_v5 = vpop.f32.mrb[13].mxu0  ;;  %v2334_v27 = vadd.f32 %v19169_v4, %v15275_v19 }
 0x698   :  { %v19173_v28 = vpop.f32.mrb[14].mxu0 }
 0x699   :  { %v19175_v9 = vpop.f32.mrb[15].mxu0 }
 0x69d   :  { %v18297_v10 = vpop.eup %18296 }
 0x69e   :  { %v2157_v20 = vrot.slane %v18297_v10, %v19046_v52 }
 0x6a0   :  { %v2158_v29 = vcombine.high %v2157_v20, %v2157_v20  ;;  %v2165_v30 = vrot.slane %v2157_v20, %v19046_v52 }
 0x6a2   :  { %v2172_v21 = vrot.slane %v2158_v29, %v19046_v52  ;;  %v2176_v31 = vrot.slane %v2165_v30, %v19050_v56 }
 0x6a4   :  { %v2184_v32 = vmul.f32 %v2176_v31, %v2047_v46  ;;  %v2183_v12 = vmul.f32 %v2176_v31, %v2046_v51  ;;  %v2180_v33 = vrot.slane %v2172_v21, %v19050_v56  ;;  %v2329_v21 = vadd.f32 %v15275_v19, %v19171_v5 }
 0x6a6   :  { %v2193_v35 = vmul.f32 %v15269_v22, %v2184_v32  ;;  %v2192_v36 = vmul.f32 %v15269_v22, %v2183_v12  ;;  %v2186_v37 = vmul.f32 %v2180_v33, %v2049_v53  ;;  %v2185_v38 = vmul.f32 %v2180_v33, %v2048_v50 }
 0x6a8   :  { %v2202_v39 = vadd.f32 %v15270_v34, %v2193_v35  ;;  %v2201_v42 = vadd.f32 %v15270_v34, %v2192_v36  ;;  %v2195_v44 = vmul.f32 %v15269_v22, %v2186_v37  ;;  %v2194_v45 = vmul.f32 %v15269_v22, %v2185_v38 }
 0x6a9   :  { %v2344_v35 = vadd.f32 %v19173_v28, %v15275_v19  ;;  %v2339_v38 = vadd.f32 %v15275_v19, %v19175_v9 }
 0x6aa   :  { %v2206_v54 = vmin.f32 %v2202_v39, 20.0  ;;  %v2205_v55 = vmin.f32 %v2201_v42, 20.0  ;;  %v2204_v43 = vadd.f32 %v15270_v34, %v2195_v44  ;;  %v2203_v57 = vadd.f32 %v15270_v34, %v2194_v45 }
 0x6ab   :  { %vm2242_vm8 = vcmp.gt.f32.partialorder %v2202_v39, 20.0  ;;  %vm2241_vm11 = vcmp.gt.f32.partialorder %v2201_v42, 20.0 }
 0x6ac   :  { %v2211_v58 = vmul.f32 1.442695, %v2206_v54  ;;  %v2209_v59 = vmul.f32 1.442695, %v2205_v55  ;;  %v2208_v60 = vmin.f32 %v2204_v43, 20.0  ;;  %v2207_v46 = vmin.f32 %v2203_v57, 20.0 }
 0x6ad   :  { %vm2244_vm12 = vcmp.gt.f32.partialorder %v2204_v43, 20.0  ;;  %vm2243_vm13 = vcmp.gt.f32.partialorder %v2203_v57, 20.0 }
 0x6ae   :  { %18298 = vpow2.f32 %v2211_v58  ;;  %v2215_v51 = vmul.f32 1.442695, %v2208_v60  ;;  %v2213_v61 = vmul.f32 1.442695, %v2207_v46  ;;  %v2567_v60 = vld [vmem:[#allocation6 + $0xb0] sm:$0xff] }
 0x6af   :  { %18300 = vpow2.f32 %v2209_v59 }
 0x6b0   :  { %18302 = vpow2.f32 %v2215_v51 }
 0x6b1   :  { %18304 = vpow2.f32 %v2213_v61 }
 0x6b8   :  { %v18299_v53 = vpop.eup %18298 }
 0x6b9   :  { %v18301_v50 = vpop.eup %18300  ;;  %v2218_v62 = vadd.f32 1.0, %v18299_v53 }
 0x6ba   :  { %v2217_v48 = vadd.f32 1.0, %v18301_v50  ;;  %v18303_v63 = vpop.eup %18302 }
 0x6bb   :  { %v2222_v3 = vmul.f32 %v2218_v62, %v2218_v62  ;;  %v18305_v13 = vpop.eup %18304  ;;  %v2220_v14 = vadd.f32 1.0, %v18303_v63 }
 0x6bc   :  { %v2221_v11 = vmul.f32 %v2217_v48, %v2217_v48  ;;  %v2219_v16 = vadd.f32 1.0, %v18305_v13  ;;  %v2785_v13 = vld [vmem:[#allocation6 + $0xc0] sm:$0xff] }
 0x6bd   :  { %v2230_v15 = vadd.f32 1.0, %v2222_v3  ;;  %v2224_v23 = vmul.f32 %v2220_v14, %v2220_v14  ;;  %v15272_v2 = vadd.f32 -1.0, %v2222_v3 }
 0x6be   :  { %v2229_v18 = vadd.f32 1.0, %v2221_v11  ;;  %v2223_v7 = vmul.f32 %v2219_v16, %v2219_v16  ;;  %v15271_v8 = vadd.f32 -1.0, %v2221_v11 }
 0x6bf   :  { %18306 = vrcp.f32 %v2230_v15  ;;  %v2232_v24 = vadd.f32 1.0, %v2224_v23  ;;  %v15274_v20 = vadd.f32 -1.0, %v2224_v23 }
 0x6c0   :  { %18308 = vrcp.f32 %v2229_v18  ;;  %v2231_v1 = vadd.f32 1.0, %v2223_v7  ;;  %v15273_v31 = vadd.f32 -1.0, %v2223_v7 }
 0x6c1   :  { %18310 = vrcp.f32 %v2232_v24 }
 0x6c2   :  { %18312 = vrcp.f32 %v2231_v1 }
 0x6c9   :  { %v18307_v6 = vpop.eup %18306 }
 0x6ca   :  { %v18309_v25 = vpop.eup %18308  ;;  %v2238_v26 = vmul.f32 %v18307_v6, %v15272_v2 }
 0x6cb   :  { %v2237_v10 = vmul.f32 %v18309_v25, %v15271_v8  ;;  %v18311_v29 = vpop.eup %18310 }
 0x6cc   :  { %v2246_v30 = vsel %vm2242_vm8, 1.0, %v2238_v26  ;;  %v18313_v22 = vpop.eup %18312  ;;  %v2240_v33 = vmul.f32 %v18311_v29, %v15274_v20  ;;  %v15301_v20 = vld [vmem:[#allocation6 + $0xc8] ss:$0 sm:$0xff] }
 0x6cd   :  { %v2250_v32 = vmul.f32 %v2246_v30, %v2202_v39  ;;  %v2245_v12 = vsel %vm2241_vm11, 1.0, %v2237_v10  ;;  %v2239_v36 = vmul.f32 %v18313_v22, %v15273_v31 }
 0x6ce   :  { %v2249_v34 = vmul.f32 %v2245_v12, %v2201_v42  ;;  %v2248_v4 = vsel %vm2244_vm12, 1.0, %v2240_v33 }
 0x6cf   :  { %v19185_v37 = vadd.f32 %v2334_v27, %v2250_v32  ;;  %v2252_v45 = vmul.f32 %v2248_v4, %v2204_v43  ;;  %v2247_v5 = vsel %vm2243_vm13, 1.0, %v2239_v36  ;;  %v19250_v27 = vld [vmem:[#allocation6 + $0x150] sm:$0xff] }
 0x6d0   :  { %v19188_v44 = vadd.f32 %v2329_v21, %v2249_v34  ;;  %v2251_v54 = vmul.f32 %v2247_v5, %v2203_v57 }
 0x6d1   :  { %v2367_v39 = vrot.slane %v19185_v37, 7  ;;  %v19191_v55 = vadd.f32 %v2344_v35, %v2252_v45  ;;  %v2356_v61 = vrot.slane %v19185_v37, 6  ;;  %v2666_v14 = vrot.slane %v19185_v37, 1 }
 0x6d2   :  { %v2366_v42 = vrot.slane %v19188_v44, 7  ;;  %v19194_v58 = vadd.f32 %v2339_v38, %v2251_v54  ;;  %v2355_v57 = vrot.slane %v19188_v44, 6  ;;  %v2665_v11 = vrot.slane %v19188_v44, 1 }
 0x6d3   :  { %v2370_v43 = vrot.slane %v19191_v55, 7  ;;  %v2359_v48 = vrot.slane %v19191_v55, 6  ;;  %v2669_v18 = vrot.slane %v19191_v55, 1  ;;  %v2673_v23 = vsel %vm684_vm6, %v2666_v14, 0.0 }
 0x6d4   :  { %v2374_v28 = vsel %vm373_vm3, 0.0, %v2366_v42  ;;  %v2368_v59 = vsel %vm373_vm3, %v2366_v42, %v2367_v39  ;;  %v2369_v9 = vrot.slane %v19194_v58, 7  ;;  %v2363_v53 = vsel %vm361_vm5, 0.0, %v2355_v57 }
 0x6d5   :  { %16337 = vmatprep.mubr.msk.f32.mxu0 %vm172_vm1, %v2374_v28  ;;  %v2358_v50 = vrot.slane %v19194_v58, 6  ;;  %v2357_v62 = vsel %vm361_vm5, %v2355_v57, %v2356_v61  ;;  %v2667_v15 = vsel %vm684_vm6, %v2665_v11, %v2666_v14  ;;  %v2668_v16 = vrot.slane %v19194_v58, 1 }
 0x6d6   :  { %16338 = vmatmul.mubr.msk.f32.vlgmr.msra.gmra.mrb[16].mxu0 %vm172_vm1, %v2368_v59  ;;  %v2375_v46 = vsel %vm373_vm3, 0.0, %v2369_v9  ;;  %v2371_v51 = vsel %vm373_vm3, %v2369_v9, %v2370_v43  ;;  %v2775_v24 = vrot.slane %v19188_v44, 2  ;;  %v2776_v1 = vrot.slane %v19185_v37, 2 }
 0x6d7   :  { %16344 = vmatpush3.msra.mxu0 %v19166_v17  ;;  %16340 = vmatprep.mubr.msk.f32.mxu0 %vm172_vm1, %v2375_v46  ;;  %v2675_v17 = vld [vmem:[#allocation6 + $0xb8] sm:$0xff]  ;;  %v2364_v63 = vsel %vm361_vm5, 0.0, %v2358_v50  ;;  %v2360_v3 = vsel %vm361_vm5, %v2358_v50, %v2359_v48  ;;  %v2670_v7 = vsel %vm684_vm6, %v2668_v16, %v2669_v18  ;;  %v2674_v2 = vsel %vm684_vm6, %v2669_v18, 0.0 }
 0x6d8   :  { %16351 = vmatprep.subr.mxu0 %v2567_v60  ;;  %v2777_v19 = vsel %vm798_vm7, %v2775_v24, %v2776_v1  ;;  %v2778_v6 = vrot.slane %v19194_v58, 2  ;;  %v2779_v8 = vrot.slane %v19191_v55, 2  ;;  %v2783_v25 = vsel %vm798_vm7, %v2776_v1, 0.0 }
 0x6da   :  { %16341 = vmatmul.mubr.msk.f32.gmra.mrb[18].mxu0 %vm172_vm1, %v2371_v51  ;;  %v2780_v26 = vsel %vm798_vm7, %v2778_v6, %v2779_v8  ;;  %v2784_v10 = vsel %vm798_vm7, %v2779_v8, 0.0 }
 0x6db   :  { %16345 = vmatprep.mubr.msk.f32.mxu0 %vm172_vm1, %v2363_v53 }
 0x6de   :  { %16346 = vmatmul.mubr.msk.f32.vlgmr.msra.gmra.mrb[16].mxu0 %vm172_vm1, %v2357_v62 }
 0x6df   :  { %16348 = vmatprep.mubr.msk.f32.mxu0 %vm172_vm1, %v2364_v63  ;;  %16352 = vmatpush3.msra.mxu0 %v2567_v60 }
 0x6e0   :  { %16359 = vmatprep.subr.mxu0 %v2675_v17 }
 0x6e2   :  { %16349 = vmatmul.mubr.msk.f32.gmra.mrb[18].mxu0 %vm172_vm1, %v2360_v3 }
 0x6e3   :  { %16353 = vmatprep.mubr.msk.f32.mxu0 %vm172_vm1, %v19188_v44 }
 0x6e6   :  { %16354 = vmatmul.mubr.msk.f32.vlgmr.msra.gmra.mrb[16].mxu0 %vm172_vm1, %v19185_v37 }
 0x6e7   :  { %16356 = vmatprep.mubr.msk.f32.mxu0 %vm172_vm1, %v19194_v58  ;;  %16360 = vmatpush3.msra.mxu0 %v2675_v17 }
 0x6e8   :  { %16367 = vmatprep.subr.mxu0 %v2785_v13 }
 0x6ea   :  { %16357 = vmatmul.mubr.msk.f32.gmra.mrb[18].mxu0 %vm172_vm1, %v19191_v55 }
 0x6eb   :  { %16361 = vmatprep.mubr.msk.f32.mxu0 %vm172_vm1, %v2667_v15 }
 0x6ee   :  { %16362 = vmatmul.mubr.msk.f32.vlgmr.msra.gmra.mrb[16].mxu0 %vm172_vm1, %v2673_v23 }
 0x6ef   :  { %16364 = vmatprep.mubr.msk.f32.mxu0 %vm172_vm1, %v2670_v7  ;;  %16368 = vmatpush3.msra.mxu0 %v2785_v13 }
 0x6f0   :  { %16430 = vmatprep.subr.mxu0 %v18694_v0 }
 0x6f2   :  { %16365 = vmatmul.mubr.msk.f32.gmra.mrb[18].mxu0 %vm172_vm1, %v2674_v2 }
 0x6f3   :  { %16369 = vmatprep.mubr.msk.f32.mxu0 %vm172_vm1, %v2777_v19 }
 0x6f6   :  { %16370 = vmatmul.mubr.msk.f32.vlgmr.msra.gmra.mrb[16].mxu0 %vm172_vm1, %v2783_v25 }
 0x6f7   :  { %16372 = vmatprep.mubr.msk.f32.mxu0 %vm172_vm1, %v2780_v26  ;;  %16431 = vmatpush3.msra.mxu0 %v19250_v27 }
 0x6f8   :  { %16435 = vmatprep.subr.mxu0 %v18694_v0 }
 0x6fa   :  { %16373 = vmatmul.mubr.msk.f32.gmra.mrb[18].mxu0 %vm172_vm1, %v2784_v10 }
 0x6fb   :  { %16432 = vmatprep.mubr.msk.f32.mxu0 %vm18695_vm0, %v18694_v0 }
 0x7c9   :  { %v16371_v29 = vpop.f32.mrb[16].mxu0 }
 0x7ca   :  { %v2891_v30 = vadd.f32 %v16371_v29, %v15301_v20  ;;  %v2862_v21 = vpop.f32.mrb[17].mxu0 }
 0x7cb   :  { %v2890_v31 = vadd.f32 %v15301_v20, %v2862_v21 }
 0x7cc   :  { %v2895_v22 = vsel %vm172_vm1, %v2891_v30, 0.0 }
 0x7cd   :  { %v2894_v32 = vsel %vm172_vm1, %v2890_v31, 0.0  ;;  %v16374_v12 = vpop.f32.mrb[18].mxu0 }
 0x7ce   :  { %v2896_v33 = vadd.f32 %v2895_v22, %v2894_v32  ;;  %v2893_v34 = vadd.f32 %v16374_v12, %v15301_v20  ;;  %v2872_v35 = vpop.f32.mrb[19].mxu0 }
 0x7cf   :  { %v2892_v36 = vadd.f32 %v15301_v20, %v2872_v35 }
 0x7d0   :  { %v2897_v4 = vrot.slane %v2896_v33, 4  ;;  %v2904_v38 = vsel %vm172_vm1, %v2893_v34, 0.0 }
 0x7d1   :  { %v2903_v45 = vsel %vm172_vm1, %v2892_v36, 0.0 }
 0x7d2   :  { %v2898_v5 = vadd.f32 %v2897_v4, %v2896_v33  ;;  %v2905_v54 = vadd.f32 %v2904_v38, %v2903_v45  ;;  %v3229_v45 = vld [vmem:[#allocation6 + $0x120] sm:$0xff] }
 0x7d4   :  { %v2899_v39 = vrot.slane %v2898_v5, 2  ;;  %v2906_v42 = vrot.slane %v2905_v54, 4 }
 0x7d6   :  { %v2900_v28 = vadd.f32 %v2899_v39, %v2898_v5  ;;  %v2907_v59 = vadd.f32 %v2906_v42, %v2905_v54  ;;  %v3367_v54 = vld [vmem:[#allocation6 + $0xe8] sm:$0xff]  ;;  %v19283_v39 = vld [vmem:[#allocation6 + $0xe0] sm:$0xff] }
 0x7d8   :  { %v2901_v9 = vrot.slane %v2900_v28, 1  ;;  %v2908_v43 = vrot.slane %v2907_v59, 2 }
 0x7da   :  { %v2909_v60 = vadd.f32 %v2908_v43, %v2907_v59  ;;  %v2902_v57 = vadd.f32 %v2901_v9, %v2900_v28 }
 0x7dc   :  { %v2910_v46 = vrot.slane %v2909_v60, 1  ;;  %v2912_v61 = vmul.f32 0.0625, %v2902_v57 }
 0x7de   :  { %v2911_v51 = vadd.f32 %v2910_v46, %v2909_v60 }
 0x7e0   :  { %v2913_v53 = vmul.f32 0.0625, %v2911_v51 }
 0x7e2   :  { %v2916_v50 = vsel %vm945_vm10, %v2913_v53, %v2912_v61 }
 0x7e3   :  { %16378 = vmatmul.mubr.msk.f32.vlgmr.msra.gmra.mrb[10].mxu1 %vm172_vm1, %v2916_v50  ;;  %v15304_v50 = vld [vmem:[#allocation6 + $0xd0] ss:$0 sm:$0xff] }
 0x7e4   :  { %16381 = vmatpush3.msra.mxu1 %v19250_v27  ;;  %16382 = vmatprep.mubr.msk.f32.mxu1 %vm18695_vm0, %v18694_v0 }
 0x7e5   :  { %16385 = vmatprep.subr.mxu1 %v18694_v0 }
 0x8b6   :  { %v2985_v62 = vpop.f32.mrb[10].mxu1 }
 0x8b7   :  { %v2996_v48 = vrot.slane %v2985_v62, %v19046_v52  ;;  %v16379_v17 = vpop.f32.mrb[11].mxu1 }
 0x8b9   :  { %v2997_v63 = vcombine.high %v2996_v48, %v2996_v48  ;;  %v3004_v3 = vrot.slane %v2996_v48, %v19046_v52 }
 0x8bb   :  { %v3011_v13 = vrot.slane %v2997_v63, %v19046_v52  ;;  %v3015_v11 = vrot.slane %v3004_v3, %v19050_v56  ;;  %v15305_v63 = vld [vmem:[#allocation6 + $0xd8] ss:$0 sm:$0xff] }
 0x8bd   :  { %v3019_v14 = vrot.slane %v3011_v13, %v19050_v56  ;;  %v3022_v15 = vsub.f32 %v2890_v31, %v3015_v11  ;;  %v3023_v16 = vsub.f32 %v2891_v30, %v3015_v11 }
 0x8bf   :  { %v3024_v18 = vsub.f32 %v2892_v36, %v3019_v14  ;;  %v3025_v23 = vsub.f32 %v2893_v34, %v3019_v14  ;;  %v3026_v7 = vmul.f32 %v3022_v15, %v3022_v15  ;;  %v3027_v24 = vmul.f32 %v3023_v16, %v3023_v16 }
 0x8c1   :  { %v3028_v1 = vmul.f32 %v3024_v18, %v3024_v18  ;;  %v3029_v2 = vmul.f32 %v3025_v23, %v3025_v23  ;;  %v3030_v19 = vsel %vm172_vm1, %v3026_v7, 0.0  ;;  %v3031_v6 = vsel %vm172_vm1, %v3027_v24, 0.0 }
 0x8c2   :  { %v3032_v8 = vadd.f32 %v3031_v6, %v3030_v19 }
 0x8c3   :  { %v3039_v25 = vsel %vm172_vm1, %v3028_v1, 0.0  ;;  %v3040_v26 = vsel %vm172_vm1, %v3029_v2, 0.0 }
 0x8c4   :  { %v3033_v10 = vrot.slane %v3032_v8, 4  ;;  %v3041_v20 = vadd.f32 %v3040_v26, %v3039_v25 }
 0x8c6   :  { %v3034_v29 = vadd.f32 %v3033_v10, %v3032_v8  ;;  %v3042_v21 = vrot.slane %v3041_v20, 4 }
 0x8c8   :  { %v3035_v30 = vrot.slane %v3034_v29, 2  ;;  %v3043_v31 = vadd.f32 %v3042_v21, %v3041_v20 }
 0x8ca   :  { %v3036_v22 = vadd.f32 %v3035_v30, %v3034_v29  ;;  %v3044_v32 = vrot.slane %v3043_v31, 2 }
 0x8cc   :  { %v3037_v12 = vrot.slane %v3036_v22, 1  ;;  %v3045_v33 = vadd.f32 %v3044_v32, %v3043_v31 }
 0x8ce   :  { %v3038_v34 = vadd.f32 %v3037_v12, %v3036_v22  ;;  %v3046_v35 = vrot.slane %v3045_v33, 1 }
 0x8d0   :  { %v3047_v36 = vadd.f32 %v3046_v35, %v3045_v33  ;;  %v3048_v4 = vmul.f32 0.0625, %v3038_v34  ;;  %v15310_v35 = vld [vmem:[#allocation6 + $0x128] ss:$0 sm:$0xff] }
 0x8d2   :  { %v3049_v38 = vmul.f32 0.0625, %v3047_v36 }
 0x8d4   :  { %v3052_v5 = vsel %vm945_vm10, %v3049_v38, %v3048_v4 }
 0x8d5   :  { %16383 = vmatmul.mubr.msk.f32.vlgmr.msra.gmra.mrb[12].mxu1 %vm172_vm1, %v3052_v5 }
 0x8d6   :  { %16386 = vmatpush3.msra.mxu1 %v3229_v45  ;;  %16387 = vmatprep.mubr.msk.f32.mxu1 %vm18695_vm0, %v18694_v0 }
 0x8d7   :  { %16390 = vmatprep.subr.mxu1 %v3367_v54 }
 0x8d9   :  { %16388 = vmatmul.mubr.msk.f32.vlgmr.msra.gmra.mrb[14].mxu1 %vm172_vm1, %v19067_v41 }
 0x8da   :  { %16391 = vmatpush3.msra.mxu1 %v3367_v54 }
 0x8db   :  { %16398 = vmatprep.subr.mxu1 %v19283_v39 }
 0x9a8   :  { %v3121_v42 = vpop.f32.mrb[12].mxu1 }
 0x9a9   :  { %v3122_v28 = vadd.f32 1e-05, %v3121_v42  ;;  %v16384_v59 = vpop.f32.mrb[13].mxu1 }
 0x9ab   :  { %18314 = vrsqrt.f32 %v3122_v28 }
 0x9ac   :  { %v3301_v9 = vpop.f32.mrb[14].mxu1 }
 0x9ad   :  { %v16389_v43 = vpop.f32.mrb[15].mxu1  ;;  %v3302_v54 = vadd.f32 %v15310_v35, %v3301_v9 }
 0x9af   :  { %v3312_v28 = vrot.slane %v3302_v54, %v19046_v52 }
 0x9b1   :  { %v3313_v59 = vcombine.high %v3312_v28, %v3312_v28 }
 0x9b3   :  { %v3327_v9 = vrot.slane %v3313_v59, %v19046_v52 }
 0x9b5   :  { %v18315_v60 = vpop.eup %18314 }
 0x9b6   :  { %v3133_v57 = vrot.slane %v18315_v60, %v19046_v52  ;;  %v3320_v60 = vrot.slane %v3312_v28, %v19046_v52 }
 0x9b8   :  { %v3134_v46 = vcombine.high %v3133_v57, %v3133_v57  ;;  %v3141_v51 = vrot.slane %v3133_v57, %v19046_v52 }
 0x9ba   :  { %v3148_v61 = vrot.slane %v3134_v46, %v19046_v52  ;;  %v3152_v53 = vrot.slane %v3141_v51, %v19050_v56 }
 0x9bc   :  { %v3156_v62 = vrot.slane %v3148_v61, %v19050_v56  ;;  %v3159_v48 = vmul.f32 %v3152_v53, %v3022_v15  ;;  %v3160_v17 = vmul.f32 %v3152_v53, %v3023_v16 }
 0x9be   :  { %v3161_v3 = vmul.f32 %v3156_v62, %v3024_v18  ;;  %v3162_v13 = vmul.f32 %v3156_v62, %v3025_v23  ;;  %v3168_v11 = vmul.f32 %v15304_v50, %v3159_v48  ;;  %v3169_v14 = vmul.f32 %v15304_v50, %v3160_v17 }
 0x9c0   :  { %v3170_v7 = vmul.f32 %v15304_v50, %v3161_v3  ;;  %v3171_v24 = vmul.f32 %v15304_v50, %v3162_v13  ;;  %v3177_v1 = vadd.f32 %v15305_v63, %v3168_v11  ;;  %v3178_v2 = vadd.f32 %v15305_v63, %v3169_v14 }
 0x9c1   :  { %v3331_v13 = vrot.slane %v3320_v60, %v19050_v56 }
 0x9c2   :  { %v19291_v19 = vadd.f32 %v15305_v63, %v3170_v7  ;;  %v19293_v6 = vadd.f32 %v15305_v63, %v3171_v24  ;;  %v3181_v8 = vmin.f32 %v3177_v1, 20.0  ;;  %v3182_v25 = vmin.f32 %v3178_v2, 20.0 }
 0x9c3   :  { %vm3217_vm14 = vcmp.gt.f32.partialorder %v3177_v1, 20.0  ;;  %vm3218_vm15 = vcmp.gt.f32.partialorder %v3178_v2, 20.0 }
 0x9c4   :  { %v3183_v26 = vmin.f32 %v19291_v19, 20.0  ;;  %v3184_v15 = vmin.f32 %v19293_v6, 20.0  ;;  %v3185_v16 = vmul.f32 1.442695, %v3181_v8  ;;  %v3187_v10 = vmul.f32 1.442695, %v3182_v25 }
 0x9c5   :  { %vm3219_vm8 = vcmp.gt.f32.partialorder %v19291_v19, 20.0  ;;  %vm3220_vm11 = vcmp.gt.f32.partialorder %v19293_v6, 20.0 }
 0x9c6   :  { %18316 = vpow2.f32 %v3185_v16  ;;  %v3189_v18 = vmul.f32 1.442695, %v3183_v26  ;;  %v3191_v23 = vmul.f32 1.442695, %v3184_v15  ;;  %v3335_v15 = vrot.slane %v3327_v9, %v19050_v56 }
 0x9c7   :  { %18318 = vpow2.f32 %v3187_v10 }
 0x9c8   :  { %18320 = vpow2.f32 %v3189_v18 }
 0x9c9   :  { %18322 = vpow2.f32 %v3191_v23 }
 0x9d0   :  { %v18317_v20 = vpop.eup %18316 }
 0x9d1   :  { %v18319_v29 = vpop.eup %18318  ;;  %v3193_v21 = vadd.f32 1.0, %v18317_v20 }
 0x9d2   :  { %v18321_v30 = vpop.eup %18320  ;;  %v3194_v31 = vadd.f32 1.0, %v18319_v29 }
 0x9d3   :  { %v18323_v22 = vpop.eup %18322  ;;  %v3195_v32 = vadd.f32 1.0, %v18321_v30  ;;  %v3197_v12 = vmul.f32 %v3193_v21, %v3193_v21 }
 0x9d4   :  { %v3196_v33 = vadd.f32 1.0, %v18323_v22  ;;  %v3198_v34 = vmul.f32 %v3194_v31, %v3194_v31 }
 0x9d5   :  { %v3199_v36 = vmul.f32 %v3195_v32, %v3195_v32  ;;  %v3205_v4 = vadd.f32 1.0, %v3197_v12  ;;  %v15306_v43 = vadd.f32 -1.0, %v3197_v12 }
 0x9d6   :  { %v3200_v38 = vmul.f32 %v3196_v33, %v3196_v33  ;;  %v3206_v45 = vadd.f32 1.0, %v3198_v34  ;;  %v15307_v46 = vadd.f32 -1.0, %v3198_v34  ;;  %v3558_v34 = vld [vmem:[#allocation6 + $0xf0] sm:$0xff] }
 0x9d7   :  { %v3207_v5 = vadd.f32 1.0, %v3199_v36  ;;  %18324 = vrcp.f32 %v3205_v4  ;;  %v15308_v61 = vadd.f32 -1.0, %v3199_v36 }
 0x9d8   :  { %v3208_v42 = vadd.f32 1.0, %v3200_v38  ;;  %18326 = vrcp.f32 %v3206_v45  ;;  %v15309_v62 = vadd.f32 -1.0, %v3200_v38 }
 0x9d9   :  { %18328 = vrcp.f32 %v3207_v5 }
 0x9da   :  { %18330 = vrcp.f32 %v3208_v42 }
 0x9e1   :  { %v18325_v57 = vpop.eup %18324 }
 0x9e2   :  { %v18327_v51 = vpop.eup %18326  ;;  %v3213_v53 = vmul.f32 %v18325_v57, %v15306_v43 }
 0x9e3   :  { %v18329_v50 = vpop.eup %18328  ;;  %v3214_v48 = vmul.f32 %v18327_v51, %v15307_v46  ;;  %v3666_v51 = vld [vmem:[#allocation6 + $0xf8] sm:$0xff] }
 0x9e4   :  { %v18331_v17 = vpop.eup %18330  ;;  %v3215_v63 = vmul.f32 %v18329_v50, %v15308_v61  ;;  %v3221_v3 = vsel %vm3217_vm14, 1.0, %v3213_v53  ;;  %v3776_v53 = vld [vmem:[#allocation6 + $0x100] sm:$0xff] }
 0x9e5   :  { %v3216_v11 = vmul.f32 %v18331_v17, %v15309_v62  ;;  %v3222_v14 = vsel %vm3218_vm15, 1.0, %v3214_v48  ;;  %v3225_v7 = vmul.f32 %v3221_v3, %v3177_v1  ;;  %v15332_v17 = vld [vmem:[#allocation6 + $0x108] ss:$0 sm:$0xff] }
 0x9e6   :  { %v3223_v24 = vsel %vm3219_vm8, 1.0, %v3215_v63  ;;  %v3226_v8 = vmul.f32 %v3222_v14, %v3178_v2  ;;  %vm5079_vm8 = vcmask 130048  }
 0x9e7   :  { %v3224_v25 = vsel %vm3220_vm11, 1.0, %v3216_v11  ;;  %v3227_v26 = vmul.f32 %v3223_v24, %v19291_v19  ;;  %v3338_v16 = vadd.f32 %v3331_v13, %v3225_v7 }
 0x9e8   :  { %v3228_v10 = vmul.f32 %v3224_v25, %v19293_v6  ;;  %v3339_v18 = vadd.f32 %v3331_v13, %v3226_v8 }
 0x9e9   :  { %v3340_v23 = vadd.f32 %v3335_v15, %v3227_v26  ;;  %v3357_v20 = vrot.slane %v3338_v16, 7  ;;  %v3346_v29 = vrot.slane %v3338_v16, 6  ;;  %v3656_v21 = vrot.slane %v3338_v16, 1 }
 0x9ea   :  { %v3341_v30 = vadd.f32 %v3335_v15, %v3228_v10  ;;  %v3358_v31 = vrot.slane %v3339_v18, 7  ;;  %v3347_v1 = vrot.slane %v3339_v18, 6  ;;  %v3657_v22 = vrot.slane %v3339_v18, 1 }
 0x9eb   :  { %v3365_v32 = vsel %vm373_vm3, 0.0, %v3357_v20  ;;  %v3360_v2 = vrot.slane %v3340_v23, 7  ;;  %v3349_v12 = vrot.slane %v3340_v23, 6  ;;  %v3659_v5 = vrot.slane %v3340_v23, 1 }
 0x9ec   :  { %16392 = vmatprep.mubr.msk.f32.mxu1 %vm172_vm1, %v3365_v32  ;;  %v3359_v19 = vsel %vm373_vm3, %v3357_v20, %v3358_v31  ;;  %v3361_v33 = vrot.slane %v3341_v30, 7  ;;  %v3348_v6 = vsel %vm361_vm5, %v3346_v29, %v3347_v1  ;;  %v3350_v35 = vrot.slane %v3341_v30, 6 }
 0x9ed   :  { %16393 = vmatmul.mubr.msk.f32.vlgmr.msra.gmra.mrb[16].mxu1 %vm172_vm1, %v3359_v19  ;;  %v3366_v36 = vsel %vm373_vm3, 0.0, %v3360_v2  ;;  %v3658_v4 = vsel %vm684_vm6, %v3656_v21, %v3657_v22  ;;  %v3660_v54 = vrot.slane %v3341_v30, 1  ;;  %v3766_v42 = vrot.slane %v3338_v16, 2 }
 0x9ee   :  { %16395 = vmatprep.mubr.msk.f32.mxu1 %vm172_vm1, %v3366_v36  ;;  %16399 = vmatpush3.msra.mxu1 %v19283_v39  ;;  %v3362_v38 = vsel %vm373_vm3, %v3360_v2, %v3361_v33  ;;  %v3351_v45 = vsel %vm361_vm5, %v3349_v12, %v3350_v35  ;;  %v3767_v28 = vrot.slane %v3339_v18, 2  ;;  %v3769_v59 = vrot.slane %v3340_v23, 2 }
 0x9ef   :  { %16406 = vmatprep.subr.mxu1 %v3558_v34  ;;  %v3770_v43 = vrot.slane %v3341_v30, 2  ;;  %v3661_v60 = vsel %vm684_vm6, %v3659_v5, %v3660_v54  ;;  %v3354_v57 = vsel %vm361_vm5, 0.0, %v3346_v29  ;;  %v3355_v61 = vsel %vm361_vm5, 0.0, %v3349_v12 }
 0x9f0   :  { %v3768_v46 = vsel %vm798_vm7, %v3766_v42, %v3767_v28  ;;  %v3664_v50 = vsel %vm684_vm6, %v3657_v22, 0.0  ;;  %v3665_v62 = vsel %vm684_vm6, %v3660_v54, 0.0  ;;  %v3774_v48 = vsel %vm798_vm7, %v3767_v28, 0.0 }
 0x9f1   :  { %16396 = vmatmul.mubr.msk.f32.gmra.mrb[18].mxu1 %vm172_vm1, %v3362_v38  ;;  %v3771_v39 = vsel %vm798_vm7, %v3769_v59, %v3770_v43  ;;  %v3775_v9 = vsel %vm798_vm7, %v3770_v43, 0.0 }
 0x9f2   :  { %16400 = vmatprep.mubr.msk.f32.mxu1 %vm172_vm1, %v3354_v57 }
 0x9f5   :  { %16401 = vmatmul.mubr.msk.f32.vlgmr.msra.gmra.mrb[16].mxu1 %vm172_vm1, %v3348_v6 }
 0x9f6   :  { %16403 = vmatprep.mubr.msk.f32.mxu1 %vm172_vm1, %v3355_v61  ;;  %16407 = vmatpush3.msra.mxu1 %v3558_v34 }
 0x9f7   :  { %16414 = vmatprep.subr.mxu1 %v3666_v51 }
 0x9f9   :  { %16404 = vmatmul.mubr.msk.f32.gmra.mrb[18].mxu1 %vm172_vm1, %v3351_v45 }
 0x9fa   :  { %16408 = vmatprep.mubr.msk.f32.mxu1 %vm172_vm1, %v3338_v16 }
 0x9fd   :  { %16409 = vmatmul.mubr.msk.f32.vlgmr.msra.gmra.mrb[16].mxu1 %vm172_vm1, %v3339_v18 }
 0x9fe   :  { %16411 = vmatprep.mubr.msk.f32.mxu1 %vm172_vm1, %v3340_v23  ;;  %16415 = vmatpush3.msra.mxu1 %v3666_v51 }
 0x9ff   :  { %16422 = vmatprep.subr.mxu1 %v3776_v53 }
 0xa01   :  { %16412 = vmatmul.mubr.msk.f32.gmra.mrb[18].mxu1 %vm172_vm1, %v3341_v30 }
 0xa02   :  { %16416 = vmatprep.mubr.msk.f32.mxu1 %vm172_vm1, %v3658_v4 }
 0xa05   :  { %16417 = vmatmul.mubr.msk.f32.vlgmr.msra.gmra.mrb[16].mxu1 %vm172_vm1, %v3664_v50 }
 0xa06   :  { %16419 = vmatprep.mubr.msk.f32.mxu1 %vm172_vm1, %v3661_v60  ;;  %16423 = vmatpush3.msra.mxu1 %v3776_v53 }
 0xa09   :  { %16420 = vmatmul.mubr.msk.f32.gmra.mrb[18].mxu1 %vm172_vm1, %v3665_v62 }
 0xa0a   :  { %16424 = vmatprep.mubr.msk.f32.mxu1 %vm172_vm1, %v3768_v46 }
 0xa0d   :  { %16425 = vmatmul.mubr.msk.f32.vlgmr.msra.gmra.mrb[16].mxu1 %vm172_vm1, %v3774_v48 }
 0xa0e   :  { %16427 = vmatprep.mubr.msk.f32.mxu1 %vm172_vm1, %v3771_v39 }
 0xa11   :  { %16428 = vmatmul.mubr.msk.f32.gmra.mrb[18].mxu1 %vm172_vm1, %v3775_v9 }
 0xae0   :  { %v16426_v63 = vpop.f32.mrb[16].mxu1 }
 0xae1   :  { %v3882_v3 = vadd.f32 %v16426_v63, %v15332_v17  ;;  %v3853_v13 = vpop.f32.mrb[17].mxu1 }
 0xae2   :  { %v3881_v11 = vadd.f32 %v15332_v17, %v3853_v13 }
 0xae3   :  { %v3886_v14 = vsel %vm172_vm1, %v3882_v3, 0.0 }
 0xae4   :  { %v3885_v7 = vsel %vm172_vm1, %v3881_v11, 0.0  ;;  %v16429_v24 = vpop.f32.mrb[18].mxu1 }
 0xae5   :  { %v3887_v8 = vadd.f32 %v3886_v14, %v3885_v7  ;;  %v3884_v25 = vadd.f32 %v16429_v24, %v15332_v17  ;;  %v3863_v26 = vpop.f32.mrb[19].mxu1 }
 0xae6   :  { %v3883_v15 = vadd.f32 %v15332_v17, %v3863_v26 }
 0xae7   :  { %v3888_v16 = vrot.slane %v3887_v8, 4  ;;  %v3895_v10 = vsel %vm172_vm1, %v3884_v25, 0.0 }
 0xae8   :  { %v3894_v18 = vsel %vm172_vm1, %v3883_v15, 0.0 }
 0xae9   :  { %v3889_v23 = vadd.f32 %v3888_v16, %v3887_v8  ;;  %v3896_v20 = vadd.f32 %v3895_v10, %v3894_v18  ;;  %v4239_v18 = vld [vmem:[#allocation6 + $0x138] sm:$0xff] }
 0xaeb   :  { %v3890_v29 = vrot.slane %v3889_v23, 2  ;;  %v3897_v21 = vrot.slane %v3896_v20, 4 }
 0xaed   :  { %v3891_v30 = vadd.f32 %v3890_v29, %v3889_v23  ;;  %v3898_v31 = vadd.f32 %v3897_v21, %v3896_v20  ;;  %v19363_v23 = vld [vmem:[#allocation6 + $0x130] sm:$0xff] }
 0xaef   :  { %v3892_v1 = vrot.slane %v3891_v30, 1  ;;  %v3899_v22 = vrot.slane %v3898_v31, 2 }
 0xaf1   :  { %v3900_v32 = vadd.f32 %v3899_v22, %v3898_v31  ;;  %v3893_v2 = vadd.f32 %v3892_v1, %v3891_v30 }
 0xaf3   :  { %v3901_v12 = vrot.slane %v3900_v32, 1  ;;  %v3903_v33 = vmul.f32 0.0625, %v3893_v2 }
 0xaf5   :  { %v3902_v19 = vadd.f32 %v3901_v12, %v3900_v32  ;;  %v15335_v12 = vld [vmem:[#allocation6 + $0x110] ss:$0 sm:$0xff] }
 0xaf7   :  { %v3904_v6 = vmul.f32 0.0625, %v3902_v19 }
 0xaf9   :  { %v3907_v34 = vsel %vm945_vm10, %v3904_v6, %v3903_v33 }
 0xafa   :  { %16433 = vmatmul.mubr.msk.f32.vlgmr.msra.gmra.mrb[20].mxu0 %vm172_vm1, %v3907_v34  ;;  %v15336_v34 = vld [vmem:[#allocation6 + $0x118] ss:$0 sm:$0xff] }
 0xafb   :  { %16436 = vmatpush3.msra.mxu0 %v19250_v27  ;;  %16437 = vmatprep.mubr.msk.f32.mxu0 %vm18695_vm0, %v18694_v0 }
 0xafc   :  { %16440 = vmatprep.subr.mxu0 %v4239_v18 }
 0xbcd   :  { %v3976_v35 = vpop.f32.mrb[20].mxu0 }
 0xbce   :  { %v3987_v36 = vrot.slane %v3976_v35, %v19046_v52  ;;  %v16434_v4 = vpop.f32.mrb[21].mxu0 }
 0xbd0   :  { %v3988_v38 = vcombine.high %v3987_v36, %v3987_v36  ;;  %v3995_v45 = vrot.slane %v3987_v36, %v19046_v52 }
 0xbd2   :  { %v4002_v5 = vrot.slane %v3988_v38, %v19046_v52  ;;  %v4006_v54 = vrot.slane %v3995_v45, %v19050_v56 }
 0xbd4   :  { %v4010_v42 = vrot.slane %v4002_v5, %v19050_v56  ;;  %v4013_v28 = vsub.f32 %v3881_v11, %v4006_v54  ;;  %v4014_v59 = vsub.f32 %v3882_v3, %v4006_v54 }
 0xbd6   :  { %v4015_v43 = vsub.f32 %v3883_v15, %v4010_v42  ;;  %v4016_v27 = vsub.f32 %v3884_v25, %v4010_v42  ;;  %v4017_v60 = vmul.f32 %v4013_v28, %v4013_v28  ;;  %v4018_v57 = vmul.f32 %v4014_v59, %v4014_v59 }
 0xbd8   :  { %v4019_v46 = vmul.f32 %v4015_v43, %v4015_v43  ;;  %v4020_v39 = vmul.f32 %v4016_v27, %v4016_v27  ;;  %v4021_v51 = vsel %vm172_vm1, %v4017_v60, 0.0  ;;  %v4022_v61 = vsel %vm172_vm1, %v4018_v57, 0.0 }
 0xbd9   :  { %v4023_v53 = vadd.f32 %v4022_v61, %v4021_v51 }
 0xbda   :  { %v4030_v50 = vsel %vm172_vm1, %v4019_v46, 0.0  ;;  %v4031_v62 = vsel %vm172_vm1, %v4020_v39, 0.0 }
 0xbdb   :  { %v4024_v48 = vrot.slane %v4023_v53, 4  ;;  %v4032_v9 = vadd.f32 %v4031_v62, %v4030_v50 }
 0xbdd   :  { %v4025_v17 = vadd.f32 %v4024_v48, %v4023_v53  ;;  %v4033_v63 = vrot.slane %v4032_v9, 4 }
 0xbdf   :  { %v4026_v3 = vrot.slane %v4025_v17, 2  ;;  %v4034_v13 = vadd.f32 %v4033_v63, %v4032_v9 }
 0xbe1   :  { %v4027_v11 = vadd.f32 %v4026_v3, %v4025_v17  ;;  %v4035_v14 = vrot.slane %v4034_v13, 2 }
 0xbe3   :  { %v4028_v7 = vrot.slane %v4027_v11, 1  ;;  %v4036_v24 = vadd.f32 %v4035_v14, %v4034_v13 }
 0xbe5   :  { %v4029_v8 = vadd.f32 %v4028_v7, %v4027_v11  ;;  %v4037_v25 = vrot.slane %v4036_v24, 1 }
 0xbe7   :  { %v4038_v26 = vadd.f32 %v4037_v25, %v4036_v24  ;;  %v4039_v15 = vmul.f32 0.0625, %v4029_v8 }
 0xbe9   :  { %v4040_v16 = vmul.f32 0.0625, %v4038_v26 }
 0xbeb   :  { %v4043_v10 = vsel %vm945_vm10, %v4040_v16, %v4039_v15 }
 0xbec   :  { %16438 = vmatmul.mubr.msk.f32.vlgmr.msra.gmra.mrb[22].mxu0 %vm172_vm1, %v4043_v10 }
 0xbed   :  { %16441 = vmatpush3.msra.mxu0 %v4239_v18 }
 0xbee   :  { %16448 = vmatprep.subr.mxu0 %v19363_v23 }
 0xcbf   :  { %v4112_v20 = vpop.f32.mrb[22].mxu0 }
 0xcc0   :  { %v4113_v29 = vadd.f32 1e-05, %v4112_v20  ;;  %v16439_v21 = vpop.f32.mrb[23].mxu0 }
 0xcc2   :  { %18332 = vrsqrt.f32 %v4113_v29 }
 0xccc   :  { %v18333_v30 = vpop.eup %18332 }
 0xccd   :  { %v4124_v31 = vrot.slane %v18333_v30, %v19046_v52 }
 0xccf   :  { %v4125_v1 = vcombine.high %v4124_v31, %v4124_v31  ;;  %v4132_v22 = vrot.slane %v4124_v31, %v19046_v52 }
 0xcd1   :  { %v4139_v32 = vrot.slane %v4125_v1, %v19046_v52  ;;  %v4143_v2 = vrot.slane %v4132_v22, %v19050_v56 }
 0xcd3   :  { %v4147_v19 = vrot.slane %v4139_v32, %v19050_v56  ;;  %v4151_v33 = vmul.f32 %v4143_v2, %v4014_v59  ;;  %v4150_v6 = vmul.f32 %v4143_v2, %v4013_v28 }
 0xcd5   :  { %v4160_v35 = vmul.f32 %v15335_v12, %v4151_v33  ;;  %v4159_v36 = vmul.f32 %v15335_v12, %v4150_v6  ;;  %v4152_v4 = vmul.f32 %v4147_v19, %v4015_v43  ;;  %v4153_v38 = vmul.f32 %v4147_v19, %v4016_v27 }
 0xcd7   :  { %v4168_v45 = vadd.f32 %v15336_v34, %v4159_v36  ;;  %v4169_v5 = vadd.f32 %v15336_v34, %v4160_v35  ;;  %v4161_v54 = vmul.f32 %v15335_v12, %v4152_v4  ;;  %v4162_v42 = vmul.f32 %v15335_v12, %v4153_v38 }
 0xcd9   :  { %v4172_v60 = vmin.f32 %v4168_v45, 20.0  ;;  %v4173_v57 = vmin.f32 %v4169_v5, 20.0  ;;  %v4170_v46 = vadd.f32 %v15336_v34, %v4161_v54  ;;  %v4171_v39 = vadd.f32 %v15336_v34, %v4162_v42  ;;  %v4438_v54 = vld [vmem:[#allocation6 + $0x140] sm:$0xff] }
 0xcda   :  { %vm4208_vm12 = vcmp.gt.f32.partialorder %v4168_v45, 20.0  ;;  %vm4209_vm13 = vcmp.gt.f32.partialorder %v4169_v5, 20.0 }
 0xcdb   :  { %v4176_v51 = vmul.f32 1.442695, %v4172_v60  ;;  %v4178_v61 = vmul.f32 1.442695, %v4173_v57  ;;  %v4174_v53 = vmin.f32 %v4170_v46, 20.0  ;;  %v4175_v50 = vmin.f32 %v4171_v39, 20.0 }
 0xcdc   :  { %vm4210_vm14 = vcmp.gt.f32.partialorder %v4170_v46, 20.0  ;;  %vm4211_vm15 = vcmp.gt.f32.partialorder %v4171_v39, 20.0 }
 0xcdd   :  { %18334 = vpow2.f32 %v4176_v51  ;;  %v4180_v28 = vmul.f32 1.442695, %v4174_v53  ;;  %v4182_v59 = vmul.f32 1.442695, %v4175_v50 }
 0xcde   :  { %18336 = vpow2.f32 %v4178_v61 }
 0xcdf   :  { %18338 = vpow2.f32 %v4180_v28 }
 0xce0   :  { %18340 = vpow2.f32 %v4182_v59 }
 0xce7   :  { %v18335_v43 = vpop.eup %18334 }
 0xce8   :  { %v18337_v27 = vpop.eup %18336  ;;  %v4184_v62 = vadd.f32 1.0, %v18335_v43  ;;  %v4547_v43 = vld [vmem:[%s20452_s8] sm:$0xff] }
 0xce9   :  { %v4185_v48 = vadd.f32 1.0, %v18337_v27  ;;  %v18339_v9 = vpop.eup %18338  ;;  %16472 = vmatprep.mubr.msk.f32.mxu1 %vm267_vm9, %v4547_v43  ;;  %v15353_v27 = vld [vmem:[#allocation6 + $0x148] ss:$0 sm:$0xff] }
 0xcea   :  { %v4188_v17 = vmul.f32 %v4184_v62, %v4184_v62  ;;  %v18341_v63 = vpop.eup %18340  ;;  %v4186_v13 = vadd.f32 1.0, %v18339_v9 }
 0xceb   :  { %v4189_v3 = vmul.f32 %v4185_v48, %v4185_v48  ;;  %v4187_v14 = vadd.f32 1.0, %v18341_v63 }
 0xcec   :  { %v4196_v11 = vadd.f32 1.0, %v4188_v17  ;;  %v4190_v24 = vmul.f32 %v4186_v13, %v4186_v13  ;;  %v15337_v15 = vadd.f32 -1.0, %v4188_v17 }
 0xced   :  { %v4197_v7 = vadd.f32 1.0, %v4189_v3  ;;  %v4191_v8 = vmul.f32 %v4187_v14, %v4187_v14  ;;  %v15338_v10 = vadd.f32 -1.0, %v4189_v3 }
 0xcee   :  { %18342 = vrcp.f32 %v4196_v11  ;;  %v4198_v25 = vadd.f32 1.0, %v4190_v24  ;;  %v15339_v21 = vadd.f32 -1.0, %v4190_v24  ;;  %v4548_v24 = vld [vmem:[%s20452_s8 + $0x8] sm:$0xff] }
 0xcef   :  { %18344 = vrcp.f32 %v4197_v7  ;;  %v4199_v26 = vadd.f32 1.0, %v4191_v8  ;;  %v15340_v1 = vadd.f32 -1.0, %v4191_v8  ;;  %v4645_v8 = vld [vmem:[#allocation7 + $0x8] sm:$0xff] }
 0xcf0   :  { %18346 = vrcp.f32 %v4198_v25  ;;  %v4638_v25 = vld [vmem:[#allocation7] sm:$0xff] }
 0xcf1   :  { %18348 = vrcp.f32 %v4199_v26 }
 0xcf8   :  { %v18343_v16 = vpop.eup %18342 }
 0xcf9   :  { %v18345_v18 = vpop.eup %18344  ;;  %v4204_v20 = vmul.f32 %v18343_v16, %v15337_v15 }
 0xcfa   :  { %v4205_v29 = vmul.f32 %v18345_v18, %v15338_v10  ;;  %v18347_v30 = vpop.eup %18346 }
 0xcfb   :  { %v4212_v31 = vsel %vm4208_vm12, 1.0, %v4204_v20  ;;  %v18349_v22 = vpop.eup %18348  ;;  %v4206_v12 = vmul.f32 %v18347_v30, %v15339_v21  ;;  %v4808_v21 = vld [vmem:[#allocation7 + $0x10] sm:$0xff] }
 0xcfc   :  { %v4216_v32 = vmul.f32 %v4212_v31, %v4168_v45  ;;  %v4213_v2 = vsel %vm4209_vm13, 1.0, %v4205_v29  ;;  %v4207_v33 = vmul.f32 %v18349_v22, %v15340_v1  ;;  %v4896_v22 = vld [vmem:[#allocation7 + $0x18] sm:$0xff] }
 0xcfd   :  { %v4217_v19 = vmul.f32 %v4213_v2, %v4169_v5  ;;  %v4214_v34 = vsel %vm4210_vm14, 1.0, %v4206_v12  ;;  %v4986_v2 = vld [vmem:[#allocation7 + $0x20] sm:$0xff] }
 0xcfe   :  { %v4220_v6 = vadd.f32 %v4216_v32, %v19188_v44  ;;  %v4218_v36 = vmul.f32 %v4214_v34, %v4170_v46  ;;  %v4215_v4 = vsel %vm4211_vm15, 1.0, %v4207_v33 }
 0xcff   :  { %v4221_v35 = vadd.f32 %v4217_v19, %v19185_v37  ;;  %v4219_v38 = vmul.f32 %v4215_v4, %v4171_v39 }
 0xd00   :  { %16442 = vmatprep.mubr.msk.f32.mxu0 %vm172_vm1, %v4220_v6  ;;  %v4222_v45 = vadd.f32 %v4218_v36, %v19194_v58  ;;  %v4228_v42 = vrot.slane %v4220_v6, 7  ;;  %v5374_v36 = vld [vmem:[#allocation7 + $0xa8] sm:$0xff] }
 0xd01   :  { %16443 = vmatmul.mubr.msk.f32.vlgmr.msra.gmra.mrb[24].mxu0 %vm172_vm1, %v4221_v35  ;;  %v4223_v44 = vadd.f32 %v4219_v38, %v19191_v55  ;;  %v4229_v5 = vrot.slane %v4221_v35, 7  ;;  %v4429_v39 = vrot.slane %v4221_v35, 1  ;;  %v5077_v38 = vld [vmem:[#allocation7 + $0x1e0] sm:$0xff] }
 0xd02   :  { %16449 = vmatpush3.msra.mxu0 %v19363_v23  ;;  %16445 = vmatprep.mubr.msk.f32.mxu0 %vm172_vm1, %v4222_v45  ;;  %v4236_v37 = vsel %vm373_vm3, 0.0, %v4228_v42  ;;  %v4231_v60 = vrot.slane %v4222_v45, 7  ;;  %v4428_v23 = vrot.slane %v4220_v6, 1  ;;  %v4431_v61 = vrot.slane %v4222_v45, 1 }
 0xd03   :  { %16456 = vmatprep.subr.mxu0 %v4438_v54  ;;  %v4230_v57 = vsel %vm373_vm3, %v4228_v42, %v4229_v5  ;;  %v4232_v46 = vrot.slane %v4223_v44, 7  ;;  %v4432_v53 = vrot.slane %v4223_v44, 1  ;;  %v4436_v50 = vsel %vm684_vm6, %v4429_v39, 0.0  ;;  %v15366_v42 = vld [vmem:[#allocation7 + $0x28] ss:$0 sm:$0xff] }
 0xd04   :  { %v4237_v58 = vsel %vm373_vm3, 0.0, %v4231_v60  ;;  %v4430_v51 = vsel %vm684_vm6, %v4428_v23, %v4429_v39 }
 0xd05   :  { %16446 = vmatmul.mubr.msk.f32.gmra.mrb[26].mxu0 %vm172_vm1, %v4223_v44  ;;  %v4233_v55 = vsel %vm373_vm3, %v4231_v60, %v4232_v46  ;;  %v4433_v28 = vsel %vm684_vm6, %v4431_v61, %v4432_v53  ;;  %v4437_v59 = vsel %vm684_vm6, %v4432_v53, 0.0 }
 0xd06   :  { %16450 = vmatprep.mubr.msk.f32.mxu0 %vm172_vm1, %v4236_v37 }
 0xd09   :  { %16451 = vmatmul.mubr.msk.f32.vlgmr.msra.gmra.mrb[24].mxu0 %vm172_vm1, %v4230_v57 }
 0xd0a   :  { %16453 = vmatprep.mubr.msk.f32.mxu0 %vm172_vm1, %v4237_v58  ;;  %16457 = vmatpush3.msra.mxu0 %v4438_v54  ;;  %v5078_v54 = vld [vmem:[#allocation7 + $0x1e8] sm:$0xff] }
 0xd0b   :  { %17535 = vmatprep.subr.bf16.mxu0 %v18696_v47  ;;  %v19447_v45 = vpack.c.bf16 %v5078_v54, %v5077_v38  ;;  %v5501_v54 = vld [vmem:[#allocation7 + $0x50] sm:$0xff] }
 0xd0d   :  { %16454 = vmatmul.mubr.msk.f32.gmra.mrb[26].mxu0 %vm172_vm1, %v4233_v55 }
 0xd0e   :  { %16458 = vmatprep.mubr.msk.f32.mxu0 %vm172_vm1, %v4430_v51 }
 0xd11   :  { %16459 = vmatmul.mubr.msk.f32.vlgmr.msra.gmra.mrb[24].mxu0 %vm172_vm1, %v4436_v50 }
 0xd12   :  { %16461 = vmatprep.mubr.msk.f32.mxu0 %vm172_vm1, %v4433_v28  ;;  %17537 = vmatpush3.bf16.msra.mxu0 %v19447_v45 }
 0xd13   :  { %17538 = vmatprep.subr.bf16.mxu0 %v18696_v47 }
 0xd15   :  { %16462 = vmatmul.mubr.msk.f32.gmra.mrb[26].mxu0 %vm172_vm1, %v4437_v59 }
 0xd16   :  { %16504 = vmatprep.mubr.msk.f32.mxu0 %vm18695_vm0, %v18694_v0 }
 0xde4   :  { %v16460_v62 = vpop.f32.mrb[24].mxu0 }
 0xde5   :  { %v4544_v48 = vadd.f32 %v16460_v62, %v15353_v27  ;;  %v4515_v9 = vpop.f32.mrb[25].mxu0 }
 0xde6   :  { %v4543_v17 = vadd.f32 %v15353_v27, %v4515_v9 }
 0xde8   :  { %v17527_v63 = vpack.c.bf16 %v4544_v48, %v4543_v17  ;;  %v16463_v3 = vpop.f32.mrb[26].mxu0 }
 0xde9   :  { %v4546_v13 = vadd.f32 %v16463_v3, %v15353_v27  ;;  %v4525_v11 = vpop.f32.mrb[27].mxu0 }
 0xdea   :  { %v4545_v14 = vadd.f32 %v15353_v27, %v4525_v11  ;;  %17528 = vmatprep.subr.bf16.mxu1 %v17527_v63 }
 0xdeb   :  { %17530 = vmatpush3.bf16.msra.mxu1 %v17527_v63 }
 0xdec   :  { %v17531_v7 = vpack.c.bf16 %v4546_v13, %v4545_v14 }
 0xdee   :  { %17532 = vmatprep.subr.bf16.mxu1 %v17531_v7 }
 0xdef   :  { %17534 = vmatpush3.bf16.msra.mxu1 %v17531_v7 }
 0xdf0   :  { %16475 = vmatprep.subr.mxu1 %v4645_v8 }
 0xdf2   :  { %16473 = vmatmul.mubr.msk.f32.vlgmr.msra.gmra.mrb[20].mxu1 %vm267_vm9, %v4548_v24 }
 0xdf3   :  { %16476 = vmatpush3.msra.mxu1 %v4645_v8 }
 0xdf4   :  { %16480 = vmatprep.subr.mxu1 %v4638_v25 }
 0xec5   :  { %v19407_v26 = vpop.f32.mrb[20].mxu1 }
 0xec6   :  { %v19409_v15 = vpop.f32.mrb[21].mxu1  ;;  %v4640_v16 = vrot.slane %v19407_v26, 7  ;;  %v4633_v31 = vrot.slane %v19407_v26, 6  ;;  %v4891_v19 = vrot.slane %v19407_v26, 1  ;;  %v4981_v35 = vrot.slane %v19407_v26, 2 }
 0xec7   :  { %v4639_v10 = vrot.slane %v19409_v15, 7  ;;  %v4632_v18 = vrot.slane %v19409_v15, 6  ;;  %v4890_v32 = vrot.slane %v19409_v15, 1  ;;  %v4980_v33 = vrot.slane %v19409_v15, 2 }
 0xec8   :  { %v4644_v29 = vsel %vm373_vm3, 0.0, %v4640_v16  ;;  %v4637_v1 = vsel %vm361_vm5, 0.0, %v4633_v31  ;;  %v4895_v6 = vsel %vm684_vm6, %v4891_v19, 0.0  ;;  %v4985_v4 = vsel %vm798_vm7, %v4981_v35, 0.0 }
 0xec9   :  { %v4643_v20 = vsel %vm373_vm3, 0.0, %v4639_v10  ;;  %v4636_v30 = vsel %vm361_vm5, 0.0, %v4632_v18  ;;  %v4894_v12 = vsel %vm684_vm6, %v4890_v32, 0.0  ;;  %v4984_v34 = vsel %vm798_vm7, %v4980_v33, 0.0 }
 0xeca   :  { %16477 = vmatprep.mubr.msk.f32.mxu1 %vm172_vm1, %v4643_v20 }
 0xecb   :  { %16478 = vmatmul.mubr.msk.f32.vlgmr.msra.gmra.mrb[22].mxu1 %vm172_vm1, %v4644_v29 }
 0xecc   :  { %16482 = vmatprep.mubr.msk.f32.mxu1 %vm172_vm1, %v4636_v30  ;;  %16481 = vmatpush3.msra.mxu1 %v4638_v25 }
 0xecd   :  { %16485 = vmatprep.subr.mxu1 %v4808_v21 }
 0xed3   :  { %16483 = vmatmul.mubr.msk.f32.vlgmr.msra.gmra.mrb[22].mxu1 %vm172_vm1, %v4637_v1 }
 0xed4   :  { %16487 = vmatprep.mubr.msk.f32.mxu1 %vm172_vm1, %v19409_v15  ;;  %16486 = vmatpush3.msra.mxu1 %v4808_v21 }
 0xed5   :  { %16490 = vmatprep.subr.mxu1 %v4896_v22 }
 0xedb   :  { %16488 = vmatmul.mubr.msk.f32.vlgmr.msra.gmra.mrb[22].mxu1 %vm172_vm1, %v19407_v26 }
 0xedc   :  { %16492 = vmatprep.mubr.msk.f32.mxu1 %vm172_vm1, %v4894_v12  ;;  %16491 = vmatpush3.msra.mxu1 %v4896_v22 }
 0xedd   :  { %16495 = vmatprep.subr.mxu1 %v4986_v2 }
 0xee3   :  { %16493 = vmatmul.mubr.msk.f32.vlgmr.msra.gmra.mrb[22].mxu1 %vm172_vm1, %v4895_v6 }
 0xee4   :  { %16497 = vmatprep.mubr.msk.f32.mxu1 %vm172_vm1, %v4984_v34  ;;  %16496 = vmatpush3.msra.mxu1 %v4986_v2 }
 0xee5   :  { %16514 = vmatprep.subr.mxu1 %v18694_v0 }
 0xeeb   :  { %16498 = vmatmul.mubr.msk.f32.vlgmr.msra.gmra.mrb[22].mxu1 %vm172_vm1, %v4985_v4 }
 0xeec   :  { %16515 = vmatpush3.msra.mxu1 %v5374_v36  ;;  %16516 = vmatprep.mubr.msk.f32.mxu1 %vm18695_vm0, %v18694_v0 }
 0xeed   :  { %17561 = vmatprep.subr.bf16.mxu1 %v18696_v47 }
 0xeef   :  { %16517 = vmatmul.mubr.msk.f32.vlgmr.msra.gmra.mrb[24].mxu1 %vm172_vm1, %v19067_v41 }
 0xef0   :  { %16558 = vmatprep.mubr.msk.f32.mxu1 %vm18695_vm0, %v18694_v0  ;;  %17563 = vmatpush3.bf16.msra.mxu1 %v19447_v45 }
 0xef1   :  { %17564 = vmatprep.subr.bf16.mxu1 %v18696_v47 }
 0xfbe   :  { %v16499_v44 = vpop.f32.mrb[22].mxu1 }
 0xfbf   :  { %v5076_v5 = vadd.f32 %v16499_v44, %v15366_v42  ;;  %v5059_v37 = vpop.f32.mrb[23].mxu1 }
 0xfc0   :  { %v5075_v60 = vadd.f32 %v15366_v42, %v5059_v37  ;;  %v5502_v42 = vld [vmem:[#allocation7 + $0x58] sm:$0xff]  ;;  %v5494_v37 = vld [vmem:[#allocation7 + $0x48] sm:$0xff] }
 0xfc1   :  { %v5087_v57 = vsel %vm5079_vm8, %v5076_v5, 0.0  ;;  %v17541_v44 = vpack.c.bf16 %v5502_v42, %v5501_v54 }
 0xfc2   :  { %v5088_v46 = vrot.slane %v5087_v57, 4  ;;  %v5080_v58 = vsel %vm5079_vm8, %v5075_v60, 0.0  ;;  %v19455_v23 = vpop.f32.mrb[24].mxu1 }
 0xfc3   :  { %v5081_v39 = vrot.slane %v5080_v58, 4  ;;  %v16518_v55 = vpop.f32.mrb[25].mxu1 }
 0xfc4   :  { %v5089_v51 = vadd.f32 %v5088_v46, %v5087_v57 }
 0xfc5   :  { %v5082_v61 = vadd.f32 %v5081_v39, %v5080_v58 }
 0xfc6   :  { %v5090_v53 = vrot.slane %v5089_v51, 2 }
 0xfc7   :  { %v5083_v50 = vrot.slane %v5082_v61, 2 }
 0xfc8   :  { %v5091_v28 = vadd.f32 %v5090_v53, %v5089_v51 }
 0xfc9   :  { %v5084_v59 = vadd.f32 %v5083_v50, %v5082_v61 }
 0xfca   :  { %v5092_v43 = vrot.slane %v5091_v28, 1 }
 0xfcb   :  { %v5085_v27 = vrot.slane %v5084_v59, 1 }
 0xfcc   :  { %v5093_v62 = vadd.f32 %v5092_v43, %v5091_v28  ;;  %v15369_v28 = vld [vmem:[#allocation7 + $0x30] ss:$0 sm:$0xff] }
 0xfcd   :  { %v5086_v48 = vadd.f32 %v5085_v27, %v5084_v59  ;;  %v15370_v27 = vld [vmem:[#allocation7 + $0x38] ss:$0 sm:$0xff] }
 0xfce   :  { %v5096_v9 = vmul.f32 0.125, %v5093_v62 }
 0xfcf   :  { %v5095_v17 = vmul.f32 0.125, %v5086_v48 }
 0xfd1   :  { %v5099_v63 = vsel %vm945_vm10, %v5096_v9, %v5095_v17 }
 0xfd2   :  { %16505 = vmatmul.mubr.msk.f32.vlgmr.msra.gmra.mrb[28].mxu0 %vm5079_vm8, %v5099_v63 }
 0xfd3   :  { %17540 = vmatpush3.bf16.msra.mxu0 %v19447_v45  ;;  %16511 = vmatprep.mubr.msk.f32.mxu0 %vm18695_vm0, %v18694_v0 }
 0xfd4   :  { %17542 = vmatprep.subr.bf16.mxu0 %v17541_v44 }
0x10a5   :  { %v5168_v3 = vpop.f32.mrb[28].mxu0 }
0x10a6   :  { %v5179_v13 = vrot.slane %v5168_v3, %v19046_v52  ;;  %v16506_v11 = vpop.f32.mrb[29].mxu0 }
0x10a8   :  { %v5180_v14 = vcombine.high %v5179_v13, %v5179_v13  ;;  %v5187_v7 = vrot.slane %v5179_v13, %v19046_v52 }
0x10aa   :  { %v5194_v24 = vrot.slane %v5180_v14, %v19046_v52  ;;  %v5198_v8 = vrot.slane %v5187_v7, %v19050_v56 }
0x10ac   :  { %v5202_v25 = vrot.slane %v5194_v24, %v19050_v56  ;;  %v5205_v16 = vsub.f32 %v5075_v60, %v5198_v8 }
0x10ae   :  { %v5206_v10 = vsub.f32 %v5076_v5, %v5202_v25  ;;  %v5207_v18 = vmul.f32 %v5205_v16, %v5205_v16  ;;  %v5493_v5 = vld [vmem:[#allocation7 + $0x40] sm:$0xff] }
0x10af   :  { %v19471_v60 = vpack.c.bf16 %v5494_v37, %v5493_v5  ;;  %v5665_v5 = vld [vmem:[#allocation7 + $0x60] sm:$0xff]  ;;  %v5666_v37 = vld [vmem:[#allocation7 + $0x68] sm:$0xff] }
0x10b0   :  { %v5208_v20 = vmul.f32 %v5206_v10, %v5206_v10  ;;  %v5209_v29 = vsel %vm5079_vm8, %v5207_v18, 0.0 }
0x10b1   :  { %v5210_v21 = vrot.slane %v5209_v29, 4 }
0x10b2   :  { %v5216_v30 = vsel %vm5079_vm8, %v5208_v20, 0.0  ;;  %v15373_v20 = vld [vmem:[#allocation7 + $0xb0] ss:$0 sm:$0xff] }
0x10b3   :  { %v5211_v31 = vadd.f32 %v5210_v21, %v5209_v29  ;;  %v5217_v1 = vrot.slane %v5216_v30, 4 }
0x10b5   :  { %v5212_v22 = vrot.slane %v5211_v31, 2  ;;  %v5218_v32 = vadd.f32 %v5217_v1, %v5216_v30 }
0x10b7   :  { %v5213_v2 = vadd.f32 %v5212_v22, %v5211_v31  ;;  %v5219_v12 = vrot.slane %v5218_v32, 2 }
0x10b9   :  { %v5214_v19 = vrot.slane %v5213_v2, 1  ;;  %v5220_v33 = vadd.f32 %v5219_v12, %v5218_v32 }
0x10bb   :  { %v5215_v6 = vadd.f32 %v5214_v19, %v5213_v2  ;;  %v5221_v34 = vrot.slane %v5220_v33, 1 }
0x10bd   :  { %v5222_v35 = vadd.f32 %v5221_v34, %v5220_v33  ;;  %v5223_v36 = vmul.f32 0.125, %v5215_v6 }
0x10bf   :  { %v5224_v4 = vmul.f32 0.125, %v5222_v35 }
0x10c1   :  { %v5227_v38 = vsel %vm945_vm10, %v5224_v4, %v5223_v36 }
0x10c2   :  { %16512 = vmatmul.mubr.msk.f32.vlgmr.msra.gmra.mrb[30].mxu0 %vm5079_vm8, %v5227_v38 }
0x10c3   :  { %17544 = vmatpush3.bf16.msra.mxu0 %v17541_v44 }
0x10c4   :  { %17546 = vmatprep.subr.bf16.mxu0 %v19471_v60 }
0x1195   :  { %v5296_v57 = vpop.f32.mrb[30].mxu0 }
0x1196   :  { %v5297_v46 = vadd.f32 1e-05, %v5296_v57  ;;  %v16513_v58 = vpop.f32.mrb[31].mxu0 }
0x1198   :  { %18350 = vrsqrt.f32 %v5297_v46 }
0x11a2   :  { %v18351_v39 = vpop.eup %18350 }
0x11a3   :  { %v5308_v55 = vrot.slane %v18351_v39, %v19046_v52  ;;  %v17549_v39 = vpack.c.bf16 %v5666_v37, %v5665_v5 }
0x11a5   :  { %v5309_v51 = vcombine.high %v5308_v55, %v5308_v55  ;;  %v5316_v61 = vrot.slane %v5308_v55, %v19046_v52 }
0x11a7   :  { %v5323_v53 = vrot.slane %v5309_v51, %v19046_v52  ;;  %v5327_v50 = vrot.slane %v5316_v61, %v19050_v56 }
0x11a9   :  { %v5331_v59 = vrot.slane %v5323_v53, %v19050_v56  ;;  %v5334_v43 = vmul.f32 %v5327_v50, %v5205_v16  ;;  %v5754_v53 = vld [vmem:[#allocation7 + $0x70] sm:$0xff]  ;;  %v5755_v50 = vld [vmem:[#allocation7 + $0x78] sm:$0xff] }
0x11ab   :  { %v5335_v62 = vmul.f32 %v5331_v59, %v5206_v10  ;;  %v5341_v48 = vmul.f32 %v15369_v28, %v5334_v43  ;;  %v5447_v10 = vadd.f32 %v15373_v20, %v19455_v23  ;;  %v5845_v43 = vld [vmem:[#allocation7 + $0x80] sm:$0xff] }
0x11ad   :  { %v5342_v9 = vmul.f32 %v15369_v28, %v5335_v62  ;;  %v5348_v17 = vadd.f32 %v15370_v27, %v5341_v48  ;;  %v5457_v30 = vrot.slane %v5447_v10, %v19046_v52  ;;  %v17553_v28 = vpack.c.bf16 %v5755_v50, %v5754_v53 }
0x11af   :  { %v5349_v63 = vadd.f32 %v15370_v27, %v5342_v9  ;;  %v5350_v3 = vmin.f32 %v5348_v17, 20.0  ;;  %v5458_v31 = vcombine.high %v5457_v30, %v5457_v30  ;;  %v5465_v32 = vrot.slane %v5457_v30, %v19046_v52  ;;  %v5846_v27 = vld [vmem:[#allocation7 + $0x88] sm:$0xff] }
0x11b0   :  { %vm5368_vm11 = vcmp.gt.f32.partialorder %v5348_v17, 20.0  ;;  %v17557_v48 = vpack.c.bf16 %v5846_v27, %v5845_v43 }
0x11b1   :  { %v5351_v13 = vmin.f32 %v5349_v63, 20.0  ;;  %v5352_v11 = vmul.f32 1.442695, %v5350_v3  ;;  %v5472_v33 = vrot.slane %v5458_v31, %v19046_v52  ;;  %v5476_v23 = vrot.slane %v5465_v32, %v19050_v56 }
0x11b2   :  { %vm5369_vm12 = vcmp.gt.f32.partialorder %v5349_v63, 20.0 }
0x11b3   :  { %18352 = vpow2.f32 %v5352_v11  ;;  %v5354_v14 = vmul.f32 1.442695, %v5351_v13  ;;  %v5480_v4 = vrot.slane %v5472_v33, %v19050_v56 }
0x11b5   :  { %18354 = vpow2.f32 %v5354_v14  ;;  %v15385_v14 = vld [vmem:[#allocation7 + $0x90] ss:$0 sm:$0xff] }
0x11bd   :  { %v18353_v7 = vpop.eup %18352 }
0x11be   :  { %v5356_v24 = vadd.f32 1.0, %v18353_v7 }
0x11bf   :  { %v18355_v8 = vpop.eup %18354 }
0x11c0   :  { %v5358_v25 = vmul.f32 %v5356_v24, %v5356_v24  ;;  %v5357_v18 = vadd.f32 1.0, %v18355_v8 }
0x11c2   :  { %v5362_v29 = vadd.f32 1.0, %v5358_v25  ;;  %v5359_v16 = vmul.f32 %v5357_v18, %v5357_v18  ;;  %v15371_v1 = vadd.f32 -1.0, %v5358_v25 }
0x11c4   :  { %18356 = vrcp.f32 %v5362_v29  ;;  %v5363_v21 = vadd.f32 1.0, %v5359_v16  ;;  %v15372_v12 = vadd.f32 -1.0, %v5359_v16 }
0x11c6   :  { %18358 = vrcp.f32 %v5363_v21 }
0x11ce   :  { %v18357_v22 = vpop.eup %18356 }
0x11cf   :  { %v5366_v2 = vmul.f32 %v18357_v22, %v15371_v1 }
0x11d0   :  { %v18359_v19 = vpop.eup %18358 }
0x11d1   :  { %v5370_v6 = vsel %vm5368_vm11, 1.0, %v5366_v2  ;;  %v5367_v34 = vmul.f32 %v18359_v19, %v15372_v12 }
0x11d2   :  { %v5372_v35 = vmul.f32 %v5370_v6, %v5348_v17 }
0x11d3   :  { %v5371_v36 = vsel %vm5369_vm12, 1.0, %v5367_v34 }
0x11d4   :  { %v5483_v38 = vadd.f32 %v5476_v23, %v5372_v35  ;;  %v5373_v54 = vmul.f32 %v5371_v36, %v5349_v63  ;;  %v6230_v23 = vld [vmem:[#allocation7 + $0xb8] sm:$0xff] }
0x11d6   :  { %v5495_v42 = vrot.slane %v5483_v38, 7  ;;  %v5484_v44 = vadd.f32 %v5480_v4, %v5373_v54  ;;  %v5487_v57 = vrot.slane %v5483_v38, 6  ;;  %v5748_v62 = vrot.slane %v5483_v38, 1 }
0x11d7   :  { %v5839_v17 = vrot.slane %v5483_v38, 2 }
0x11d8   :  { %v5499_v46 = vsel %vm373_vm3, 0.0, %v5495_v42  ;;  %v5496_v58 = vrot.slane %v5484_v44, 7  ;;  %v5491_v51 = vsel %vm361_vm5, 0.0, %v5487_v57  ;;  %v5488_v61 = vrot.slane %v5484_v44, 6 }
0x11d9   :  { %16523 = vmatprep.mubr.msk.f32.mxu0 %vm5079_vm8, %v5499_v46  ;;  %v5749_v9 = vrot.slane %v5484_v44, 1  ;;  %v5843_v3 = vsel %vm798_vm7, %v5839_v17, 0.0  ;;  %v5840_v13 = vrot.slane %v5484_v44, 2 }
0x11da   :  { %v5500_v55 = vsel %vm373_vm3, 0.0, %v5496_v58  ;;  %v5492_v59 = vsel %vm361_vm5, 0.0, %v5488_v61 }
0x11db   :  { %16524 = vmatmul.mubr.msk.f32.vlgmr.msra.gmra.mrb[32].mxu0 %vm5079_vm8, %v5500_v55  ;;  %v5753_v63 = vsel %vm684_vm6, %v5749_v9, 0.0  ;;  %v5844_v11 = vsel %vm798_vm7, %v5840_v13, 0.0  ;;  %v6329_v13 = vld [vmem:[#allocation7 + $0xd8] sm:$0xff] }
0x11dc   :  { %16530 = vmatprep.mubr.msk.f32.mxu0 %vm5079_vm8, %v5491_v51  ;;  %17548 = vmatpush3.bf16.msra.mxu0 %v19471_v60  ;;  %v5752_v60 = vsel %vm684_vm6, %v5748_v62, 0.0 }
0x11dd   :  { %17550 = vmatprep.subr.bf16.mxu0 %v17549_v39 }
0x11e3   :  { %16531 = vmatmul.mubr.msk.f32.vlgmr.msra.gmra.mrb[32].mxu0 %vm5079_vm8, %v5492_v59 }
0x11e4   :  { %16537 = vmatprep.mubr.msk.f32.mxu0 %vm5079_vm8, %v5483_v38  ;;  %17552 = vmatpush3.bf16.msra.mxu0 %v17549_v39 }
0x11e5   :  { %17554 = vmatprep.subr.bf16.mxu0 %v17553_v28 }
0x11eb   :  { %16538 = vmatmul.mubr.msk.f32.vlgmr.msra.gmra.mrb[32].mxu0 %vm5079_vm8, %v5484_v44 }
0x11ec   :  { %16544 = vmatprep.mubr.msk.f32.mxu0 %vm5079_vm8, %v5752_v60  ;;  %17556 = vmatpush3.bf16.msra.mxu0 %v17553_v28 }
0x11ed   :  { %17558 = vmatprep.subr.bf16.mxu0 %v17557_v48 }
0x11f3   :  { %16545 = vmatmul.mubr.msk.f32.vlgmr.msra.gmra.mrb[32].mxu0 %vm5079_vm8, %v5753_v63 }
0x11f4   :  { %16551 = vmatprep.mubr.msk.f32.mxu0 %vm5079_vm8, %v5843_v3  ;;  %17560 = vmatpush3.bf16.msra.mxu0 %v17557_v48 }
0x11f5   :  { %17587 = vmatprep.subr.bf16.mxu0 %v18696_v47 }
0x11fb   :  { %16552 = vmatmul.mubr.msk.f32.vlgmr.msra.gmra.mrb[32].mxu0 %vm5079_vm8, %v5844_v11  ;;  %v6330_v11 = vld [vmem:[#allocation7 + $0xe0] sm:$0xff] }
0x11fc   :  { %17589 = vmatpush3.bf16.msra.mxu0 %v19447_v45  ;;  %16612 = vmatprep.mubr.msk.f32.mxu0 %vm18695_vm0, %v18694_v0 }
0x11fd   :  { %17590 = vmatprep.subr.bf16.mxu0 %v18696_v47 }
0x12ce   :  { %v16553_v7 = vpop.f32.mrb[32].mxu0 }
0x12cf   :  { %v5936_v24 = vadd.f32 %v16553_v7, %v15385_v14  ;;  %v5919_v8 = vpop.f32.mrb[33].mxu0  ;;  %v6321_v7 = vld [vmem:[#allocation7 + $0xc8] sm:$0xff] }
0x12d0   :  { %v5935_v25 = vadd.f32 %v15385_v14, %v5919_v8  ;;  %v17567_v14 = vpack.c.bf16 %v6330_v11, %v6329_v13 }
0x12d1   :  { %v5944_v18 = vsel %vm5079_vm8, %v5936_v24, 0.0 }
0x12d2   :  { %v5945_v20 = vrot.slane %v5944_v18, 4  ;;  %v5937_v29 = vsel %vm5079_vm8, %v5935_v25, 0.0 }
0x12d3   :  { %v5938_v16 = vrot.slane %v5937_v29, 4 }
0x12d4   :  { %v5946_v10 = vadd.f32 %v5945_v20, %v5944_v18 }
0x12d5   :  { %v5939_v21 = vadd.f32 %v5938_v16, %v5937_v29 }
0x12d6   :  { %v5947_v30 = vrot.slane %v5946_v10, 2 }
0x12d7   :  { %v5940_v31 = vrot.slane %v5939_v21, 2 }
0x12d8   :  { %v5948_v1 = vadd.f32 %v5947_v30, %v5946_v10 }
0x12d9   :  { %v5941_v22 = vadd.f32 %v5940_v31, %v5939_v21 }
0x12da   :  { %v5949_v32 = vrot.slane %v5948_v1, 1 }
0x12db   :  { %v5942_v2 = vrot.slane %v5941_v22, 1 }
0x12dc   :  { %v5950_v12 = vadd.f32 %v5949_v32, %v5948_v1  ;;  %v15388_v1 = vld [vmem:[#allocation7 + $0x98] ss:$0 sm:$0xff] }
0x12dd   :  { %v5943_v19 = vadd.f32 %v5942_v2, %v5941_v22  ;;  %v15389_v2 = vld [vmem:[#allocation7 + $0xa0] ss:$0 sm:$0xff] }
0x12de   :  { %v5952_v33 = vmul.f32 0.125, %v5950_v12 }
0x12df   :  { %v5951_v6 = vmul.f32 0.125, %v5943_v19 }
0x12e1   :  { %v5955_v34 = vsel %vm945_vm10, %v5952_v33, %v5951_v6 }
0x12e2   :  { %16559 = vmatmul.mubr.msk.f32.vlgmr.msra.gmra.mrb[26].mxu1 %vm5079_vm8, %v5955_v34 }
0x12e3   :  { %17566 = vmatpush3.bf16.msra.mxu1 %v19447_v45  ;;  %16565 = vmatprep.mubr.msk.f32.mxu1 %vm18695_vm0, %v18694_v0 }
0x12e4   :  { %16568 = vmatprep.subr.mxu1 %v6230_v23 }
0x13b5   :  { %v6024_v35 = vpop.f32.mrb[26].mxu1 }
0x13b6   :  { %v6035_v36 = vrot.slane %v6024_v35, %v19046_v52  ;;  %v16560_v4 = vpop.f32.mrb[27].mxu1 }
0x13b8   :  { %v6036_v38 = vcombine.high %v6035_v36, %v6035_v36  ;;  %v6043_v54 = vrot.slane %v6035_v36, %v19046_v52 }
0x13ba   :  { %v6050_v42 = vrot.slane %v6036_v38, %v19046_v52  ;;  %v6054_v44 = vrot.slane %v6043_v54, %v19050_v56 }
0x13bc   :  { %v6058_v5 = vrot.slane %v6050_v42, %v19050_v56  ;;  %v6061_v37 = vsub.f32 %v5935_v25, %v6054_v44 }
0x13be   :  { %v6062_v57 = vsub.f32 %v5936_v24, %v6058_v5  ;;  %v6063_v46 = vmul.f32 %v6061_v37, %v6061_v37  ;;  %v6322_v24 = vld [vmem:[#allocation7 + $0xd0] sm:$0xff] }
0x13bf   :  { %v19529_v8 = vpack.c.bf16 %v6322_v24, %v6321_v7 }
0x13c0   :  { %v6064_v58 = vmul.f32 %v6062_v57, %v6062_v57  ;;  %v6065_v39 = vsel %vm5079_vm8, %v6063_v46, 0.0 }
0x13c1   :  { %v6066_v55 = vrot.slane %v6065_v39, 4 }
0x13c2   :  { %v6072_v51 = vsel %vm5079_vm8, %v6064_v58, 0.0 }
0x13c3   :  { %v6067_v61 = vadd.f32 %v6066_v55, %v6065_v39  ;;  %v6073_v53 = vrot.slane %v6072_v51, 4 }
0x13c5   :  { %v6068_v50 = vrot.slane %v6067_v61, 2  ;;  %v6074_v28 = vadd.f32 %v6073_v53, %v6072_v51  ;;  %v15392_v51 = vld [vmem:[#allocation7 + $0xc0] ss:$0 sm:$0xff] }
0x13c7   :  { %v6069_v59 = vadd.f32 %v6068_v50, %v6067_v61  ;;  %v6075_v43 = vrot.slane %v6074_v28, 2 }
0x13c9   :  { %v6070_v27 = vrot.slane %v6069_v59, 1  ;;  %v6076_v62 = vadd.f32 %v6075_v43, %v6074_v28 }
0x13cb   :  { %v6071_v48 = vadd.f32 %v6070_v27, %v6069_v59  ;;  %v6077_v60 = vrot.slane %v6076_v62, 1 }
0x13cd   :  { %v6078_v9 = vadd.f32 %v6077_v60, %v6076_v62  ;;  %v6079_v17 = vmul.f32 0.125, %v6071_v48 }
0x13cf   :  { %v6080_v63 = vmul.f32 0.125, %v6078_v9 }
0x13d1   :  { %v6083_v3 = vsel %vm945_vm10, %v6080_v63, %v6079_v17  ;;  %v6493_v63 = vld [vmem:[#allocation7 + $0xe8] sm:$0xff] }
0x13d2   :  { %16566 = vmatmul.mubr.msk.f32.vlgmr.msra.gmra.mrb[28].mxu1 %vm5079_vm8, %v6083_v3  ;;  %v6494_v3 = vld [vmem:[#allocation7 + $0xf0] sm:$0xff] }
0x13d3   :  { %16570 = vmatprep.mubr.msk.f32.mxu1 %vm172_vm1, %v19409_v15  ;;  %16569 = vmatpush3.msra.mxu1 %v6230_v23  ;;  %v17575_v7 = vpack.c.bf16 %v6494_v3, %v6493_v63 }
0x13d4   :  { %17568 = vmatprep.subr.bf16.mxu1 %v17567_v14 }
0x13d6   :  { %16571 = vmatmul.mubr.msk.f32.vlgmr.msra.gmra.mrb[30].mxu1 %vm172_vm1, %v19407_v26 }
0x13d7   :  { %17570 = vmatpush3.bf16.msra.mxu1 %v17567_v14 }
0x13d8   :  { %17572 = vmatprep.subr.bf16.mxu1 %v19529_v8 }
0x14a5   :  { %v6152_v25 = vpop.f32.mrb[28].mxu1 }
0x14a6   :  { %v6153_v18 = vadd.f32 1e-05, %v6152_v25  ;;  %v16567_v20 = vpop.f32.mrb[29].mxu1 }
0x14a7   :  { %v6582_v20 = vld [vmem:[#allocation7 + $0xf8] sm:$0xff] }
0x14a8   :  { %18360 = vrsqrt.f32 %v6153_v18 }
0x14a9   :  { %v16572_v15 = vpop.f32.mrb[30].mxu1 }
0x14aa   :  { %v6302_v29 = vpop.f32.mrb[31].mxu1  ;;  %v6308_v48 = vadd.f32 %v16572_v15, %v15392_v51  ;;  %v6583_v15 = vld [vmem:[#allocation7 + $0x100] sm:$0xff] }
0x14ab   :  { %v6303_v43 = vadd.f32 %v15392_v51, %v6302_v29  ;;  %v17579_v29 = vpack.c.bf16 %v6583_v15, %v6582_v20 }
0x14b2   :  { %v18361_v16 = vpop.eup %18360 }
0x14b3   :  { %v6164_v26 = vrot.slane %v18361_v16, %v19046_v52 }
0x14b5   :  { %v6165_v10 = vcombine.high %v6164_v26, %v6164_v26  ;;  %v6172_v21 = vrot.slane %v6164_v26, %v19046_v52  ;;  %v6673_v26 = vld [vmem:[#allocation7 + $0x108] sm:$0xff] }
0x14b7   :  { %v6179_v30 = vrot.slane %v6165_v10, %v19046_v52  ;;  %v6183_v31 = vrot.slane %v6172_v21, %v19050_v56  ;;  %v6674_v10 = vld [vmem:[#allocation7 + $0x110] sm:$0xff] }
0x14b9   :  { %v6187_v22 = vrot.slane %v6179_v30, %v19050_v56  ;;  %v6190_v32 = vmul.f32 %v6183_v31, %v6061_v37 }
0x14bb   :  { %v6191_v12 = vmul.f32 %v6187_v22, %v6062_v57  ;;  %v6197_v19 = vmul.f32 %v15388_v1, %v6190_v32 }
0x14bd   :  { %v6198_v33 = vmul.f32 %v15388_v1, %v6191_v12  ;;  %v6204_v6 = vadd.f32 %v15389_v2, %v6197_v19  ;;  %v15405_v19 = vld [vmem:[#allocation7 + $0x118] ss:$0 sm:$0xff] }
0x14bf   :  { %v6205_v34 = vadd.f32 %v15389_v2, %v6198_v33  ;;  %v6206_v23 = vmin.f32 %v6204_v6, 20.0  ;;  %vm6224_vm13 = vcmp.gt.f32.partialorder %v6204_v6, 20.0 }
0x14c1   :  { %v6207_v35 = vmin.f32 %v6205_v34, 20.0  ;;  %v6208_v36 = vmul.f32 1.442695, %v6206_v23  ;;  %vm6225_vm14 = vcmp.gt.f32.partialorder %v6205_v34, 20.0 }
0x14c3   :  { %v6210_v4 = vmul.f32 1.442695, %v6207_v35  ;;  %18362 = vpow2.f32 %v6208_v36 }
0x14c5   :  { %18364 = vpow2.f32 %v6210_v4 }
0x14cd   :  { %v18363_v38 = vpop.eup %18362 }
0x14ce   :  { %v6212_v54 = vadd.f32 1.0, %v18363_v38 }
0x14cf   :  { %v18365_v42 = vpop.eup %18364 }
0x14d0   :  { %v6213_v44 = vadd.f32 1.0, %v18365_v42  ;;  %v6214_v5 = vmul.f32 %v6212_v54, %v6212_v54 }
0x14d2   :  { %v6215_v46 = vmul.f32 %v6213_v44, %v6213_v44  ;;  %v6218_v58 = vadd.f32 1.0, %v6214_v5  ;;  %v15390_v57 = vadd.f32 -1.0, %v6214_v5 }
0x14d4   :  { %v6219_v37 = vadd.f32 1.0, %v6215_v46  ;;  %18366 = vrcp.f32 %v6218_v58  ;;  %v15391_v55 = vadd.f32 -1.0, %v6215_v46 }
0x14d6   :  { %18368 = vrcp.f32 %v6219_v37 }
0x14de   :  { %v18367_v39 = vpop.eup %18366 }
0x14df   :  { %v6222_v61 = vmul.f32 %v18367_v39, %v15390_v57 }
0x14e0   :  { %v18369_v53 = vpop.eup %18368 }
0x14e1   :  { %v6223_v50 = vmul.f32 %v18369_v53, %v15391_v55  ;;  %v6226_v28 = vsel %vm6224_vm13, 1.0, %v6222_v61  ;;  %vm8686_vm13 = vcmask 257024  }
0x14e2   :  { %v6228_v59 = vmul.f32 %v6226_v28, %v6204_v6 }
0x14e3   :  { %v6227_v27 = vsel %vm6225_vm14, 1.0, %v6223_v50 }
0x14e4   :  { %v6229_v62 = vmul.f32 %v6227_v27, %v6205_v34  ;;  %v19537_v60 = vadd.f32 %v6303_v43, %v6228_v59 }
0x14e6   :  { %v19539_v9 = vadd.f32 %v6308_v48, %v6229_v62  ;;  %v6323_v17 = vrot.slane %v19537_v60, 7  ;;  %v6315_v13 = vrot.slane %v19537_v60, 6  ;;  %v6576_v21 = vrot.slane %v19537_v60, 1 }
0x14e7   :  { %v6667_v1 = vrot.slane %v19537_v60, 2 }
0x14e8   :  { %v6327_v11 = vsel %vm373_vm3, 0.0, %v6323_v17  ;;  %v6324_v14 = vrot.slane %v19539_v9, 7  ;;  %v6319_v25 = vsel %vm361_vm5, 0.0, %v6315_v13  ;;  %v6316_v18 = vrot.slane %v19539_v9, 6 }
0x14e9   :  { %16577 = vmatprep.mubr.msk.f32.mxu1 %vm5079_vm8, %v6327_v11  ;;  %v6580_v30 = vsel %vm684_vm6, %v6576_v21, 0.0  ;;  %v6577_v31 = vrot.slane %v19539_v9, 1  ;;  %v6671_v32 = vsel %vm798_vm7, %v6667_v1, 0.0  ;;  %v6668_v2 = vrot.slane %v19539_v9, 2 }
0x14ea   :  { %v6328_v24 = vsel %vm373_vm3, 0.0, %v6324_v14  ;;  %v6320_v16 = vsel %vm361_vm5, 0.0, %v6316_v18 }
0x14eb   :  { %16578 = vmatmul.mubr.msk.f32.vlgmr.msra.gmra.mrb[32].mxu1 %vm5079_vm8, %v6328_v24  ;;  %v6581_v22 = vsel %vm684_vm6, %v6577_v31, 0.0  ;;  %v6672_v12 = vsel %vm798_vm7, %v6668_v2, 0.0  ;;  %v7185_v2 = vld [vmem:[#allocation7 + $0x140] sm:$0xff] }
0x14ec   :  { %16584 = vmatprep.mubr.msk.f32.mxu1 %vm5079_vm8, %v6319_v25  ;;  %17574 = vmatpush3.bf16.msra.mxu1 %v19529_v8  ;;  %v17583_v8 = vpack.c.bf16 %v6674_v10, %v6673_v26 }
0x14ed   :  { %17576 = vmatprep.subr.bf16.mxu1 %v17575_v7 }
0x14f3   :  { %16585 = vmatmul.mubr.msk.f32.vlgmr.msra.gmra.mrb[32].mxu1 %vm5079_vm8, %v6320_v16 }
0x14f4   :  { %16591 = vmatprep.mubr.msk.f32.mxu1 %vm5079_vm8, %v19537_v60  ;;  %17578 = vmatpush3.bf16.msra.mxu1 %v17575_v7 }
0x14f5   :  { %17580 = vmatprep.subr.bf16.mxu1 %v17579_v29 }
0x14fb   :  { %16592 = vmatmul.mubr.msk.f32.vlgmr.msra.gmra.mrb[32].mxu1 %vm5079_vm8, %v19539_v9 }
0x14fc   :  { %16598 = vmatprep.mubr.msk.f32.mxu1 %vm5079_vm8, %v6580_v30  ;;  %17582 = vmatpush3.bf16.msra.mxu1 %v17579_v29 }
0x14fd   :  { %17584 = vmatprep.subr.bf16.mxu1 %v17583_v8 }
0x1503   :  { %16599 = vmatmul.mubr.msk.f32.vlgmr.msra.gmra.mrb[32].mxu1 %vm5079_vm8, %v6581_v22  ;;  %v7058_v22 = vld [vmem:[#allocation7 + $0x198] sm:$0xff] }
0x1504   :  { %16605 = vmatprep.mubr.msk.f32.mxu1 %vm5079_vm8, %v6671_v32  ;;  %17586 = vmatpush3.bf16.msra.mxu1 %v17583_v8 }
0x1505   :  { %17613 = vmatprep.subr.bf16.mxu1 %v18696_v47 }
0x150b   :  { %16606 = vmatmul.mubr.msk.f32.vlgmr.msra.gmra.mrb[32].mxu1 %vm5079_vm8, %v6672_v12  ;;  %v7186_v12 = vld [vmem:[#allocation7 + $0x148] sm:$0xff] }
0x150c   :  { %17615 = vmatpush3.bf16.msra.mxu1 %v19447_v45  ;;  %16666 = vmatprep.mubr.msk.f32.mxu1 %vm18695_vm0, %v18694_v0 }
0x150d   :  { %17616 = vmatprep.subr.bf16.mxu1 %v18696_v47 }
0x15de   :  { %v16607_v33 = vpop.f32.mrb[32].mxu1 }
0x15df   :  { %v6764_v6 = vadd.f32 %v16607_v33, %v15405_v19  ;;  %v6747_v34 = vpop.f32.mrb[33].mxu1  ;;  %v7177_v33 = vld [vmem:[#allocation7 + $0x130] sm:$0xff] }
0x15e0   :  { %v6763_v23 = vadd.f32 %v15405_v19, %v6747_v34  ;;  %v17593_v19 = vpack.c.bf16 %v7186_v12, %v7185_v2 }
0x15e1   :  { %v6772_v35 = vsel %vm5079_vm8, %v6764_v6, 0.0 }
0x15e2   :  { %v6773_v36 = vrot.slane %v6772_v35, 4  ;;  %v6765_v4 = vsel %vm5079_vm8, %v6763_v23, 0.0 }
0x15e3   :  { %v6766_v38 = vrot.slane %v6765_v4, 4 }
0x15e4   :  { %v6774_v54 = vadd.f32 %v6773_v36, %v6772_v35 }
0x15e5   :  { %v6767_v42 = vadd.f32 %v6766_v38, %v6765_v4 }
0x15e6   :  { %v6775_v44 = vrot.slane %v6774_v54, 2 }
0x15e7   :  { %v6768_v5 = vrot.slane %v6767_v42, 2 }
0x15e8   :  { %v6776_v46 = vadd.f32 %v6775_v44, %v6774_v54 }
0x15e9   :  { %v6769_v58 = vadd.f32 %v6768_v5, %v6767_v42 }
0x15ea   :  { %v6777_v37 = vrot.slane %v6776_v46, 1 }
0x15eb   :  { %v6770_v57 = vrot.slane %v6769_v58, 1 }
0x15ec   :  { %v6778_v39 = vadd.f32 %v6777_v37, %v6776_v46  ;;  %v15408_v37 = vld [vmem:[#allocation7 + $0x120] ss:$0 sm:$0xff] }
0x15ed   :  { %v6771_v55 = vadd.f32 %v6770_v57, %v6769_v58 }
0x15ee   :  { %v6780_v51 = vmul.f32 0.125, %v6778_v39 }
0x15ef   :  { %v6779_v61 = vmul.f32 0.125, %v6771_v55  ;;  %v15409_v55 = vld [vmem:[#allocation7 + $0x128] ss:$0 sm:$0xff] }
0x15f1   :  { %v6783_v53 = vsel %vm945_vm10, %v6780_v51, %v6779_v61 }
0x15f2   :  { %16613 = vmatmul.mubr.msk.f32.vlgmr.msra.gmra.mrb[34].mxu0 %vm5079_vm8, %v6783_v53 }
0x15f3   :  { %17592 = vmatpush3.bf16.msra.mxu0 %v19447_v45  ;;  %16619 = vmatprep.mubr.msk.f32.mxu0 %vm18695_vm0, %v18694_v0 }
0x15f4   :  { %16622 = vmatprep.subr.mxu0 %v18694_v0 }
0x16c5   :  { %v6852_v50 = vpop.f32.mrb[34].mxu0 }
0x16c6   :  { %v6863_v28 = vrot.slane %v6852_v50, %v19046_v52  ;;  %v16614_v59 = vpop.f32.mrb[35].mxu0 }
0x16c8   :  { %v6864_v43 = vcombine.high %v6863_v28, %v6863_v28  ;;  %v6871_v27 = vrot.slane %v6863_v28, %v19046_v52 }
0x16ca   :  { %v6878_v62 = vrot.slane %v6864_v43, %v19046_v52  ;;  %v6882_v48 = vrot.slane %v6871_v27, %v19050_v56 }
0x16cc   :  { %v6886_v17 = vrot.slane %v6878_v62, %v19050_v56  ;;  %v6889_v63 = vsub.f32 %v6763_v23, %v6882_v48 }
0x16ce   :  { %v6890_v3 = vsub.f32 %v6764_v6, %v6886_v17  ;;  %v6891_v13 = vmul.f32 %v6889_v63, %v6889_v63  ;;  %v7178_v6 = vld [vmem:[#allocation7 + $0x138] sm:$0xff] }
0x16cf   :  { %v19596_v34 = vpack.c.bf16 %v7178_v6, %v7177_v33 }
0x16d0   :  { %v6892_v11 = vmul.f32 %v6890_v3, %v6890_v3  ;;  %v6893_v14 = vsel %vm5079_vm8, %v6891_v13, 0.0 }
0x16d1   :  { %v6894_v7 = vrot.slane %v6893_v14, 4 }
0x16d2   :  { %v6900_v24 = vsel %vm5079_vm8, %v6892_v11, 0.0 }
0x16d3   :  { %v6895_v25 = vadd.f32 %v6894_v7, %v6893_v14  ;;  %v6901_v18 = vrot.slane %v6900_v24, 4  ;;  %v15412_v7 = vld [vmem:[#allocation7 + $0x1a0] ss:$0 sm:$0xff] }
0x16d5   :  { %v6896_v20 = vrot.slane %v6895_v25, 2  ;;  %v6902_v15 = vadd.f32 %v6901_v18, %v6900_v24 }
0x16d7   :  { %v6897_v29 = vadd.f32 %v6896_v20, %v6895_v25  ;;  %v6903_v16 = vrot.slane %v6902_v15, 2 }
0x16d9   :  { %v6898_v26 = vrot.slane %v6897_v29, 1  ;;  %v6904_v10 = vadd.f32 %v6903_v16, %v6902_v15 }
0x16db   :  { %v6899_v21 = vadd.f32 %v6898_v26, %v6897_v29  ;;  %v6905_v8 = vrot.slane %v6904_v10, 1 }
0x16dd   :  { %v6906_v30 = vadd.f32 %v6905_v8, %v6904_v10  ;;  %v6907_v31 = vmul.f32 0.125, %v6899_v21 }
0x16df   :  { %v6908_v1 = vmul.f32 0.125, %v6906_v30 }
0x16e1   :  { %v6911_v32 = vsel %vm945_vm10, %v6908_v1, %v6907_v31 }
0x16e2   :  { %16620 = vmatmul.mubr.msk.f32.vlgmr.msra.gmra.mrb[36].mxu0 %vm5079_vm8, %v6911_v32 }
0x16e3   :  { %16623 = vmatpush3.msra.mxu0 %v7058_v22  ;;  %16624 = vmatprep.mubr.msk.f32.mxu0 %vm18695_vm0, %v18694_v0 }
0x16e4   :  { %17594 = vmatprep.subr.bf16.mxu0 %v17593_v19 }
0x16e6   :  { %16625 = vmatmul.mubr.msk.f32.vlgmr.msra.gmra.mrb[38].mxu0 %vm172_vm1, %v19067_v41 }
0x16e7   :  { %17596 = vmatpush3.bf16.msra.mxu0 %v17593_v19 }
0x16e8   :  { %17598 = vmatprep.subr.bf16.mxu0 %v19596_v34 }
0x17b5   :  { %v6980_v23 = vpop.f32.mrb[36].mxu0 }
0x17b6   :  { %v6981_v35 = vadd.f32 1e-05, %v6980_v23  ;;  %v16621_v36 = vpop.f32.mrb[37].mxu0  ;;  %v7349_v23 = vld [vmem:[#allocation7 + $0x150] sm:$0xff] }
0x17b8   :  { %18370 = vrsqrt.f32 %v6981_v35  ;;  %v7350_v35 = vld [vmem:[#allocation7 + $0x158] sm:$0xff] }
0x17b9   :  { %v7130_v4 = vpop.f32.mrb[38].mxu0 }
0x17ba   :  { %v16626_v38 = vpop.f32.mrb[39].mxu0 }
0x17c2   :  { %v18371_v54 = vpop.eup %18370 }
0x17c3   :  { %v6992_v42 = vrot.slane %v18371_v54, %v19046_v52  ;;  %v17601_v54 = vpack.c.bf16 %v7350_v35, %v7349_v23 }
0x17c5   :  { %v6993_v44 = vcombine.high %v6992_v42, %v6992_v42  ;;  %v7000_v5 = vrot.slane %v6992_v42, %v19046_v52 }
0x17c7   :  { %v7007_v46 = vrot.slane %v6993_v44, %v19046_v52  ;;  %v7011_v58 = vrot.slane %v7000_v5, %v19050_v56 }
0x17c9   :  { %v7015_v57 = vrot.slane %v7007_v46, %v19050_v56  ;;  %v7018_v39 = vmul.f32 %v7011_v58, %v6889_v63  ;;  %v7438_v46 = vld [vmem:[#allocation7 + $0x160] sm:$0xff]  ;;  %v7439_v58 = vld [vmem:[#allocation7 + $0x168] sm:$0xff] }
0x17cb   :  { %v7019_v51 = vmul.f32 %v7015_v57, %v6890_v3  ;;  %v7025_v61 = vmul.f32 %v15408_v37, %v7018_v39  ;;  %v7131_v3 = vadd.f32 %v15412_v7, %v7130_v4  ;;  %v7529_v39 = vld [vmem:[#allocation7 + $0x170] sm:$0xff] }
0x17cd   :  { %v7026_v53 = vmul.f32 %v15408_v37, %v7019_v51  ;;  %v7032_v50 = vadd.f32 %v15409_v55, %v7025_v61  ;;  %v7141_v18 = vrot.slane %v7131_v3, %v19046_v52  ;;  %v17605_v37 = vpack.c.bf16 %v7439_v58, %v7438_v46 }
0x17cf   :  { %v7033_v28 = vadd.f32 %v15409_v55, %v7026_v53  ;;  %v7034_v59 = vmin.f32 %v7032_v50, 20.0  ;;  %v7142_v20 = vcombine.high %v7141_v18, %v7141_v18  ;;  %v7149_v16 = vrot.slane %v7141_v18, %v19046_v52  ;;  %v7530_v55 = vld [vmem:[#allocation7 + $0x178] sm:$0xff] }
0x17d0   :  { %vm7052_vm15 = vcmp.gt.f32.partialorder %v7032_v50, 20.0  ;;  %v17609_v61 = vpack.c.bf16 %v7530_v55, %v7529_v39 }
0x17d1   :  { %v7035_v43 = vmin.f32 %v7033_v28, 20.0  ;;  %v7036_v27 = vmul.f32 1.442695, %v7034_v59  ;;  %v7156_v8 = vrot.slane %v7142_v20, %v19046_v52  ;;  %vm7053_vm11 = vcmp.gt.f32.partialorder %v7033_v28, 20.0 }
0x17d2   :  { %v7160_v22 = vrot.slane %v7149_v16, %v19050_v56 }
0x17d3   :  { %18372 = vpow2.f32 %v7036_v27  ;;  %v7038_v62 = vmul.f32 1.442695, %v7035_v43  ;;  %v7164_v12 = vrot.slane %v7156_v8, %v19050_v56 }
0x17d5   :  { %18374 = vpow2.f32 %v7038_v62  ;;  %v15424_v62 = vld [vmem:[#allocation7 + $0x180] ss:$0 sm:$0xff] }
0x17dd   :  { %v18373_v48 = vpop.eup %18372 }
0x17de   :  { %v7040_v17 = vadd.f32 1.0, %v18373_v48 }
0x17df   :  { %v18375_v13 = vpop.eup %18374 }
0x17e0   :  { %v7041_v11 = vadd.f32 1.0, %v18375_v13  ;;  %v7042_v14 = vmul.f32 %v7040_v17, %v7040_v17 }
0x17e2   :  { %v7043_v24 = vmul.f32 %v7041_v11, %v7041_v11  ;;  %v7046_v63 = vadd.f32 1.0, %v7042_v14  ;;  %v15410_v15 = vadd.f32 -1.0, %v7042_v14 }
0x17e4   :  { %v7047_v25 = vadd.f32 1.0, %v7043_v24  ;;  %18376 = vrcp.f32 %v7046_v63  ;;  %v15411_v26 = vadd.f32 -1.0, %v7043_v24 }
0x17e6   :  { %18378 = vrcp.f32 %v7047_v25 }
0x17ee   :  { %v18377_v29 = vpop.eup %18376 }
0x17ef   :  { %v7050_v10 = vmul.f32 %v18377_v29, %v15410_v15 }
0x17f0   :  { %v18379_v21 = vpop.eup %18378 }
0x17f1   :  { %v7051_v30 = vmul.f32 %v18379_v21, %v15411_v26  ;;  %v7054_v31 = vsel %vm7052_vm15, 1.0, %v7050_v10 }
0x17f2   :  { %v7056_v1 = vmul.f32 %v7054_v31, %v7032_v50 }
0x17f3   :  { %v7055_v32 = vsel %vm7053_vm11, 1.0, %v7051_v30 }
0x17f4   :  { %v7057_v2 = vmul.f32 %v7055_v32, %v7033_v28  ;;  %v7167_v19 = vadd.f32 %v7160_v22, %v7056_v1 }
0x17f6   :  { %v7168_v33 = vadd.f32 %v7164_v12, %v7057_v2  ;;  %v7179_v6 = vrot.slane %v7167_v19, 7  ;;  %v7171_v36 = vrot.slane %v7167_v19, 6  ;;  %v7432_v51 = vrot.slane %v7167_v19, 1 }
0x17f7   :  { %v7523_v50 = vrot.slane %v7167_v19, 2 }
0x17f8   :  { %v7183_v4 = vsel %vm373_vm3, 0.0, %v7179_v6  ;;  %v7180_v38 = vrot.slane %v7168_v33, 7  ;;  %v7175_v44 = vsel %vm361_vm5, 0.0, %v7171_v36  ;;  %v7172_v5 = vrot.slane %v7168_v33, 6 }
0x17f9   :  { %16631 = vmatprep.mubr.msk.f32.mxu0 %vm5079_vm8, %v7183_v4  ;;  %v7433_v53 = vrot.slane %v7168_v33, 1  ;;  %v7527_v59 = vsel %vm798_vm7, %v7523_v50, 0.0  ;;  %v7524_v43 = vrot.slane %v7168_v33, 2 }
0x17fa   :  { %v7184_v42 = vsel %vm373_vm3, 0.0, %v7180_v38  ;;  %v7176_v57 = vsel %vm361_vm5, 0.0, %v7172_v5 }
0x17fb   :  { %16632 = vmatmul.mubr.msk.f32.vlgmr.msra.gmra.mrb[40].mxu0 %vm5079_vm8, %v7184_v42  ;;  %v7437_v28 = vsel %vm684_vm6, %v7433_v53, 0.0  ;;  %v7528_v27 = vsel %vm798_vm7, %v7524_v43, 0.0 }
0x17fc   :  { %16638 = vmatprep.mubr.msk.f32.mxu0 %vm5079_vm8, %v7175_v44  ;;  %17600 = vmatpush3.bf16.msra.mxu0 %v19596_v34  ;;  %v7436_v34 = vsel %vm684_vm6, %v7432_v51, 0.0 }
0x17fd   :  { %17602 = vmatprep.subr.bf16.mxu0 %v17601_v54 }
0x1803   :  { %16639 = vmatmul.mubr.msk.f32.vlgmr.msra.gmra.mrb[40].mxu0 %vm5079_vm8, %v7176_v57 }
0x1804   :  { %16645 = vmatprep.mubr.msk.f32.mxu0 %vm5079_vm8, %v7167_v19  ;;  %17604 = vmatpush3.bf16.msra.mxu0 %v17601_v54 }
0x1805   :  { %17606 = vmatprep.subr.bf16.mxu0 %v17605_v37 }
0x180b   :  { %16646 = vmatmul.mubr.msk.f32.vlgmr.msra.gmra.mrb[40].mxu0 %vm5079_vm8, %v7168_v33 }
0x180c   :  { %16652 = vmatprep.mubr.msk.f32.mxu0 %vm5079_vm8, %v7436_v34  ;;  %17608 = vmatpush3.bf16.msra.mxu0 %v17605_v37 }
0x180d   :  { %17610 = vmatprep.subr.bf16.mxu0 %v17609_v61 }
0x1813   :  { %16653 = vmatmul.mubr.msk.f32.vlgmr.msra.gmra.mrb[40].mxu0 %vm5079_vm8, %v7437_v28  ;;  %v7926_v28 = vld [vmem:[#allocation7 + $0x1b8] sm:$0xff] }
0x1814   :  { %16659 = vmatprep.mubr.msk.f32.mxu0 %vm5079_vm8, %v7527_v59  ;;  %17612 = vmatpush3.bf16.msra.mxu0 %v17609_v61  ;;  %v7927_v59 = vld [vmem:[#allocation7 + $0x1c0] sm:$0xff] }
0x1815   :  { %17631 = vmatprep.subr.bf16.mxu0 %v18696_v47  ;;  %v17619_v43 = vpack.c.bf16 %v7927_v59, %v7926_v28 }
0x181b   :  { %16660 = vmatmul.mubr.msk.f32.vlgmr.msra.gmra.mrb[40].mxu0 %vm5079_vm8, %v7528_v27  ;;  %v7924_v27 = vld [vmem:[#allocation7 + $0x1a8] sm:$0xff] }
0x181c   :  { %16701 = vmatprep.mubr.msk.f32.mxu0 %vm18695_vm0, %v18694_v0 }
0x18ee   :  { %v16661_v48 = vpop.f32.mrb[40].mxu0 }
0x18ef   :  { %v7620_v17 = vadd.f32 %v16661_v48, %v15424_v62  ;;  %v7603_v13 = vpop.f32.mrb[41].mxu0 }
0x18f0   :  { %v7619_v11 = vadd.f32 %v15424_v62, %v7603_v13  ;;  %v7925_v62 = vld [vmem:[#allocation7 + $0x1b0] sm:$0xff] }
0x18f1   :  { %v7628_v14 = vsel %vm5079_vm8, %v7620_v17, 0.0  ;;  %v17623_v48 = vpack.c.bf16 %v7925_v62, %v7924_v27 }
0x18f2   :  { %v7629_v7 = vrot.slane %v7628_v14, 4  ;;  %v7621_v24 = vsel %vm5079_vm8, %v7619_v11, 0.0 }
0x18f3   :  { %v7622_v63 = vrot.slane %v7621_v24, 4 }
0x18f4   :  { %v7630_v25 = vadd.f32 %v7629_v7, %v7628_v14 }
0x18f5   :  { %v7623_v3 = vadd.f32 %v7622_v63, %v7621_v24 }
0x18f6   :  { %v7631_v18 = vrot.slane %v7630_v25, 2 }
0x18f7   :  { %v7624_v20 = vrot.slane %v7623_v3, 2 }
0x18f8   :  { %v7632_v15 = vadd.f32 %v7631_v18, %v7630_v25  ;;  %v15427_v18 = vld [vmem:[#allocation7 + $0x188] ss:$0 sm:$0xff] }
0x18f9   :  { %v7625_v29 = vadd.f32 %v7624_v20, %v7623_v3 }
0x18fa   :  { %v7633_v16 = vrot.slane %v7632_v15, 1 }
0x18fb   :  { %v7626_v26 = vrot.slane %v7625_v29, 1 }
0x18fc   :  { %v7634_v10 = vadd.f32 %v7633_v16, %v7632_v15 }
0x18fd   :  { %v7627_v21 = vadd.f32 %v7626_v26, %v7625_v29  ;;  %v15428_v29 = vld [vmem:[#allocation7 + $0x190] ss:$0 sm:$0xff] }
0x18fe   :  { %v7636_v8 = vmul.f32 0.125, %v7634_v10 }
0x18ff   :  { %v7635_v30 = vmul.f32 0.125, %v7627_v21 }
0x1901   :  { %v7639_v31 = vsel %vm945_vm10, %v7636_v8, %v7635_v30 }
0x1902   :  { %16667 = vmatmul.mubr.msk.f32.vlgmr.msra.gmra.mrb[34].mxu1 %vm5079_vm8, %v7639_v31 }
0x1903   :  { %17618 = vmatpush3.bf16.msra.mxu1 %v19447_v45  ;;  %16673 = vmatprep.mubr.msk.f32.mxu1 %vm18695_vm0, %v18694_v0 }
0x1904   :  { %17620 = vmatprep.subr.bf16.mxu1 %v17619_v43 }
0x19d5   :  { %v7708_v1 = vpop.f32.mrb[34].mxu1 }
0x19d6   :  { %v7719_v22 = vrot.slane %v7708_v1, %v19046_v52  ;;  %v16668_v32 = vpop.f32.mrb[35].mxu1 }
0x19d8   :  { %v7720_v2 = vcombine.high %v7719_v22, %v7719_v22  ;;  %v7727_v12 = vrot.slane %v7719_v22, %v19046_v52 }
0x19da   :  { %v7734_v19 = vrot.slane %v7720_v2, %v19046_v52  ;;  %v7738_v33 = vrot.slane %v7727_v12, %v19050_v56 }
0x19dc   :  { %v7742_v6 = vrot.slane %v7734_v19, %v19050_v56  ;;  %v7745_v23 = vsub.f32 %v7619_v11, %v7738_v33 }
0x19de   :  { %v7746_v35 = vsub.f32 %v7620_v17, %v7742_v6  ;;  %v7747_v36 = vmul.f32 %v7745_v23, %v7745_v23 }
0x19e0   :  { %v7748_v45 = vmul.f32 %v7746_v35, %v7746_v35  ;;  %v7749_v4 = vsel %vm5079_vm8, %v7747_v36, 0.0 }
0x19e1   :  { %v7750_v38 = vrot.slane %v7749_v4, 4 }
0x19e2   :  { %v7756_v54 = vsel %vm5079_vm8, %v7748_v45, 0.0 }
0x19e3   :  { %v7751_v42 = vadd.f32 %v7750_v38, %v7749_v4  ;;  %v7757_v44 = vrot.slane %v7756_v54, 4 }
0x19e5   :  { %v7752_v5 = vrot.slane %v7751_v42, 2  ;;  %v7758_v46 = vadd.f32 %v7757_v44, %v7756_v54 }
0x19e7   :  { %v7753_v58 = vadd.f32 %v7752_v5, %v7751_v42  ;;  %v7759_v37 = vrot.slane %v7758_v46, 2 }
0x19e9   :  { %v7754_v57 = vrot.slane %v7753_v58, 1  ;;  %v7760_v39 = vadd.f32 %v7759_v37, %v7758_v46  ;;  %v8095_v37 = vld [vmem:[#allocation7 + $0x1d0] sm:$0xff] }
0x19eb   :  { %v7755_v55 = vadd.f32 %v7754_v57, %v7753_v58  ;;  %v7761_v51 = vrot.slane %v7760_v39, 1  ;;  %v8094_v58 = vld [vmem:[#allocation7 + $0x1c8] sm:$0xff] }
0x19ed   :  { %v7762_v61 = vadd.f32 %v7761_v51, %v7760_v39  ;;  %v7763_v34 = vmul.f32 0.125, %v7755_v55 }
0x19ef   :  { %v7764_v53 = vmul.f32 0.125, %v7762_v61  ;;  %v17627_v61 = vpack.c.bf16 %v8095_v37, %v8094_v58 }
0x19f1   :  { %v7767_v50 = vsel %vm945_vm10, %v7764_v53, %v7763_v34 }
0x19f2   :  { %16674 = vmatmul.mubr.msk.f32.vlgmr.msra.gmra.mrb[36].mxu1 %vm5079_vm8, %v7767_v50 }
0x19f3   :  { %17622 = vmatpush3.bf16.msra.mxu1 %v17619_v43  ;;  %v15437_v43 = vld [vmem:[#allocation7 + $0x1d8] ss:$0 sm:$0xff] }
0x19f4   :  { %17624 = vmatprep.subr.bf16.mxu1 %v17623_v48 }
0x1ac5   :  { %v7836_v17 = vpop.f32.mrb[36].mxu1 }
0x1ac6   :  { %v7837_v13 = vadd.f32 1e-05, %v7836_v17  ;;  %v16675_v11 = vpop.f32.mrb[37].mxu1 }
0x1ac7   :  { %v8186_v11 = vld [vmem:[%s20453_s9] sm:$0xff] }
0x1ac8   :  { %18380 = vrsqrt.f32 %v7837_v13 }
0x1ad2   :  { %v18381_v14 = vpop.eup %18380 }
0x1ad3   :  { %v7848_v7 = vrot.slane %v18381_v14, %v19046_v52  ;;  %v8276_v14 = vld [vmem:[#allocation9 + $0x10] sm:$0xff] }
0x1ad5   :  { %v7849_v24 = vcombine.high %v7848_v7, %v7848_v7  ;;  %v7856_v63 = vrot.slane %v7848_v7, %v19046_v52  ;;  %v8277_v7 = vld [vmem:[#allocation9 + $0x18] sm:$0xff] }
0x1ad7   :  { %v7863_v25 = vrot.slane %v7849_v24, %v19046_v52  ;;  %v7867_v3 = vrot.slane %v7856_v63, %v19050_v56  ;;  %v17635_v24 = vpack.c.bf16 %v8277_v7, %v8276_v14 }
0x1ad9   :  { %v7871_v20 = vrot.slane %v7863_v25, %v19050_v56  ;;  %v7874_v15 = vmul.f32 %v7867_v3, %v7745_v23 }
0x1adb   :  { %v7875_v16 = vmul.f32 %v7871_v20, %v7746_v35  ;;  %v7881_v26 = vmul.f32 %v15427_v18, %v7874_v15  ;;  %v8268_v20 = vld [vmem:[#allocation9] sm:$0xff]  ;;  %v8269_v15 = vld [vmem:[#allocation9 + $0x8] sm:$0xff] }
0x1add   :  { %v7882_v10 = vmul.f32 %v15427_v18, %v7875_v16  ;;  %v7888_v21 = vadd.f32 %v15428_v29, %v7881_v26 }
0x1adf   :  { %v7889_v8 = vadd.f32 %v15428_v29, %v7882_v10  ;;  %v7890_v30 = vmin.f32 %v7888_v21, 20.0  ;;  %vm7908_vm7 = vcmp.gt.f32.partialorder %v7888_v21, 20.0  ;;  %v17638_v10 = vpack.c.bf16 %v8269_v15, %v8268_v20 }
0x1ae1   :  { %v7891_v31 = vmin.f32 %v7889_v8, 20.0  ;;  %v7892_v1 = vmul.f32 1.442695, %v7890_v30  ;;  %vm7909_vm12 = vcmp.gt.f32.partialorder %v7889_v8, 20.0 }
0x1ae3   :  { %18382 = vpow2.f32 %v7892_v1  ;;  %v7894_v22 = vmul.f32 1.442695, %v7891_v31  ;;  %v8428_v31 = vld [vmem:[#allocation9 + $0x20] sm:$0xff]  ;;  %v8429_v1 = vld [vmem:[#allocation9 + $0x28] sm:$0xff] }
0x1ae5   :  { %18384 = vpow2.f32 %v7894_v22 }
0x1aed   :  { %v18383_v32 = vpop.eup %18382 }
0x1aee   :  { %v7896_v2 = vadd.f32 1.0, %v18383_v32 }
0x1aef   :  { %v18385_v12 = vpop.eup %18384 }
0x1af0   :  { %v7898_v19 = vmul.f32 %v7896_v2, %v7896_v2  ;;  %v7897_v33 = vadd.f32 1.0, %v18385_v12  ;;  %v17641_v2 = vpack.c.bf16 %v8429_v1, %v8428_v31 }
0x1af2   :  { %v7902_v6 = vadd.f32 1.0, %v7898_v19  ;;  %v7899_v36 = vmul.f32 %v7897_v33, %v7897_v33  ;;  %v15429_v35 = vadd.f32 -1.0, %v7898_v19  ;;  %v8510_v19 = vld [vmem:[#allocation9 + $0x30] sm:$0xff]  ;;  %v8511_v33 = vld [vmem:[#allocation9 + $0x38] sm:$0xff] }
0x1af4   :  { %18386 = vrcp.f32 %v7902_v6  ;;  %v7903_v23 = vadd.f32 1.0, %v7899_v36  ;;  %v15430_v38 = vadd.f32 -1.0, %v7899_v36  ;;  %v17644_v6 = vpack.c.bf16 %v8511_v33, %v8510_v19 }
0x1af6   :  { %18388 = vrcp.f32 %v7903_v23 }
0x1afe   :  { %v18387_v45 = vpop.eup %18386 }
0x1aff   :  { %v7906_v4 = vmul.f32 %v18387_v45, %v15429_v35  ;;  %v8594_v35 = vld [vmem:[#allocation9 + $0x40] sm:$0xff]  ;;  %v8595_v45 = vld [vmem:[#allocation9 + $0x48] sm:$0xff] }
0x1b00   :  { %v18389_v54 = vpop.eup %18388 }
0x1b01   :  { %v7910_v42 = vsel %vm7908_vm7, 1.0, %v7906_v4  ;;  %v7907_v44 = vmul.f32 %v18389_v54, %v15430_v38  ;;  %v17647_v54 = vpack.c.bf16 %v8595_v45, %v8594_v35 }
0x1b02   :  { %v7912_v5 = vmul.f32 %v7910_v42, %v7888_v21 }
0x1b03   :  { %v7911_v46 = vsel %vm7909_vm12, 1.0, %v7907_v44 }
0x1b04   :  { %v7914_v57 = vadd.f32 %v7912_v5, %v19537_v60  ;;  %v7913_v39 = vmul.f32 %v7911_v46, %v7889_v8 }
0x1b06   :  { %16680 = vmatprep.mubr.msk.f32.mxu1 %vm5079_vm8, %v7914_v57  ;;  %v7915_v55 = vadd.f32 %v7913_v39, %v19539_v9  ;;  %v7918_v51 = vrot.slane %v7914_v57, 7  ;;  %v8088_v50 = vrot.slane %v7914_v57, 1  ;;  %v8682_v57 = vld [vmem:[#allocation9 + $0x330] sm:$0xff]  ;;  %v8683_v39 = vld [vmem:[#allocation9 + $0x338] sm:$0xff] }
0x1b08   :  { %16681 = vmatmul.mubr.msk.f32.vlgmr.msra.gmra.mrb[38].mxu1 %vm5079_vm8, %v7915_v55  ;;  %v7922_v34 = vsel %vm373_vm3, 0.0, %v7918_v51  ;;  %v7919_v53 = vrot.slane %v7915_v55, 7  ;;  %v8092_v60 = vsel %vm684_vm6, %v8088_v50, 0.0  ;;  %v8089_v9 = vrot.slane %v7915_v55, 1  ;;  %v8684_v55 = vld [vmem:[#allocation9 + $0x340] sm:$0xff] }
0x1b09   :  { %16687 = vmatprep.mubr.msk.f32.mxu1 %vm5079_vm8, %v7922_v34  ;;  %17626 = vmatpush3.bf16.msra.mxu1 %v17623_v48  ;;  %v19711_v51 = vpack.c.bf16 %v8683_v39, %v8682_v57  ;;  %v8981_v39 = vld [vmem:[#allocation9 + $0x120] sm:$0xff] }
0x1b0a   :  { %17628 = vmatprep.subr.bf16.mxu1 %v17627_v61  ;;  %v7923_v28 = vsel %vm373_vm3, 0.0, %v7919_v53  ;;  %v8093_v59 = vsel %vm684_vm6, %v8089_v9, 0.0  ;;  %vm8507_vm6 = vcmask 1042432   ;;  %v15444_v53 = vld [vmem:[#allocation9 + $0x50] ss:$0 sm:$0xff] }
0x1b10   :  { %16688 = vmatmul.mubr.msk.f32.vlgmr.msra.gmra.mrb[38].mxu1 %vm5079_vm8, %v7923_v28 }
0x1b11   :  { %16694 = vmatprep.mubr.msk.f32.mxu1 %vm5079_vm8, %v8092_v60  ;;  %17630 = vmatpush3.bf16.msra.mxu1 %v17627_v61  ;;  %v8685_v61 = vld [vmem:[#allocation9 + $0x348] sm:$0xff] }
0x1b12   :  { %17634 = vmatprep.subr.bf16.mxu1 %v18696_v47  ;;  %v19714_v34 = vpack.c.bf16 %v8685_v61, %v8684_v55  ;;  %v9110_v61 = vld [vmem:[#allocation9 + $0x88] sm:$0xff] }
0x1b18   :  { %16695 = vmatmul.mubr.msk.f32.vlgmr.msra.gmra.mrb[38].mxu1 %vm5079_vm8, %v8093_v59 }
0x1b19   :  { %16708 = vmatprep.mubr.msk.f32.mxu1 %vm18695_vm0, %v18694_v0  ;;  %17636 = vmatpush3.bf16.msra.mxu1 %v17635_v24 }
0x1b1a   :  { %17637 = vmatprep.subr.bf16.mxu1 %v18696_v47 }
0x1beb   :  { %v16696_v27 = vpop.f32.mrb[38].mxu1 }
0x1bec   :  { %v8185_v62 = vadd.f32 %v16696_v27, %v15437_v43  ;;  %v8168_v48 = vpop.f32.mrb[39].mxu1 }
0x1bed   :  { %v8184_v17 = vadd.f32 %v15437_v43, %v8168_v48 }
0x1bef   :  { %v17632_v13 = vpack.c.bf16 %v8185_v62, %v8184_v17 }
0x1bf1   :  { %17633 = vmatpush3.bf16.msra.mxu0 %v17632_v13 }
0x1bf2   :  { %17649 = vmatprep.subr.bf16.mxu0 %v18696_v47 }
0x1bf4   :  { %16702 = vmatmul.mubr.msk.f32.vlgmr.msra.gmra.mrb[42].mxu0 %vm5079_vm8, %v8186_v11 }
0x1bf5   :  { %16747 = vmatprep.mubr.msk.f32.mxu0 %vm18695_vm0, %v18694_v0  ;;  %17651 = vmatpush3.bf16.msra.mxu0 %v19711_v51 }
0x1bf6   :  { %17652 = vmatprep.subr.bf16.mxu0 %v18696_v47 }
0x1bf9   :  { %17654 = vmatpush3.bf16.msra.mxu0 %v19714_v34 }
0x1bfa   :  { %17655 = vmatprep.subr.bf16.mxu0 %v18696_v47 }
0x1cc7   :  { %v19675_v63 = vpop.f32.mrb[42].mxu0 }
0x1cc8   :  { %v8261_v25 = vcombine.high %v19675_v63, %v19675_v63  ;;  %v16703_v3 = vpop.f32.mrb[43].mxu0  ;;  %v8270_v18 = vrot.slane %v19675_v63, 7  ;;  %v8262_v30 = vrot.slane %v19675_v63, 6  ;;  %v8503_v23 = vrot.slane %v19675_v63, 1 }
0x1cc9   :  { %v8588_v5 = vrot.slane %v19675_v63, 2 }
0x1cca   :  { %v8271_v29 = vrot.slane %v8261_v25, 7  ;;  %v8274_v16 = vsel %vm373_vm3, 0.0, %v8270_v18  ;;  %v8263_v8 = vrot.slane %v8261_v25, 6  ;;  %v8266_v32 = vsel %vm361_vm5, 0.0, %v8262_v30 }
0x1ccb   :  { %v8504_v36 = vrot.slane %v8261_v25, 1  ;;  %v8508_v38 = vsel %vm8507_vm6, %v8503_v23, 0.0  ;;  %v8589_v44 = vrot.slane %v8261_v25, 2  ;;  %v8592_v58 = vsel %vm361_vm5, %v8588_v5, 0.0 }
0x1ccc   :  { %v8275_v26 = vsel %vm373_vm3, 0.0, %v8271_v29  ;;  %v8267_v22 = vsel %vm361_vm5, 0.0, %v8263_v8 }
0x1ccd   :  { %v8280_v21 = vcombine.low %v8274_v16, %v8275_v26  ;;  %v8355_v12 = vcombine.low %v8266_v32, %v8267_v22  ;;  %v8509_v4 = vsel %vm8507_vm6, %v8504_v36, 0.0  ;;  %v8593_v46 = vsel %vm361_vm5, %v8589_v44, 0.0 }
0x1cce   :  { %v8514_v42 = vcombine.low %v8508_v38, %v8509_v4  ;;  %v8598_v37 = vcombine.low %v8592_v58, %v8593_v46 }
0x1ccf   :  { %16709 = vmatmul.mubr.msk.f32.vlgmr.msra.gmra.mrb[40].mxu1 %vm5079_vm8, %v8280_v21 }
0x1cd0   :  { %17639 = vmatpush3.bf16.msra.mxu1 %v17638_v10  ;;  %16715 = vmatprep.mubr.msk.f32.mxu1 %vm18695_vm0, %v18694_v0 }
0x1cd1   :  { %17640 = vmatprep.subr.bf16.mxu1 %v18696_v47 }
0x1cd7   :  { %16716 = vmatmul.mubr.msk.f32.vlgmr.msra.gmra.mrb[40].mxu1 %vm5079_vm8, %v8355_v12 }
0x1cd8   :  { %17642 = vmatpush3.bf16.msra.mxu1 %v17641_v2  ;;  %16722 = vmatprep.mubr.msk.f32.mxu1 %vm18695_vm0, %v18694_v0 }
0x1cd9   :  { %17643 = vmatprep.subr.bf16.mxu1 %v18696_v47 }
0x1cdf   :  { %16723 = vmatmul.mubr.msk.f32.vlgmr.msra.gmra.mrb[40].mxu1 %vm5079_vm8, %v19675_v63 }
0x1ce0   :  { %17645 = vmatpush3.bf16.msra.mxu1 %v17644_v6  ;;  %16729 = vmatprep.mubr.msk.f32.mxu1 %vm18695_vm0, %v18694_v0 }
0x1ce1   :  { %17646 = vmatprep.subr.bf16.mxu1 %v18696_v47 }
0x1ce7   :  { %16730 = vmatmul.mubr.msk.f32.vlgmr.msra.gmra.mrb[40].mxu1 %vm5079_vm8, %v8514_v42 }
0x1ce8   :  { %17648 = vmatpush3.bf16.msra.mxu1 %v17647_v54  ;;  %16736 = vmatprep.mubr.msk.f32.mxu1 %vm18695_vm0, %v18694_v0 }
0x1ce9   :  { %17661 = vmatprep.subr.bf16.mxu1 %v18696_v47 }
0x1cef   :  { %16737 = vmatmul.mubr.msk.f32.vlgmr.msra.gmra.mrb[40].mxu1 %vm5079_vm8, %v8598_v37 }
0x1cf0   :  { %16774 = vmatprep.mubr.msk.f32.mxu1 %vm18695_vm0, %v18694_v0 }
0x1dc2   :  { %v8667_v50 = vpop.f32.mrb[40].mxu1 }
0x1dc3   :  { %v8673_v28 = vcombine.high %v8667_v50, %v8667_v50  ;;  %v8680_v60 = vadd.f32 %v15444_v53, %v8667_v50  ;;  %v16738_v9 = vpop.f32.mrb[41].mxu1  ;;  %v9112_v50 = vld [vmem:[#allocation9 + $0x98] sm:$0xff] }
0x1dc5   :  { %v8681_v59 = vadd.f32 %v15444_v53, %v8673_v28  ;;  %v8687_v43 = vsel %vm8686_vm13, %v8680_v60, 0.0  ;;  %v9111_v53 = vld [vmem:[#allocation9 + $0x90] sm:$0xff] }
0x1dc6   :  { %v8688_v27 = vrot.slane %v8687_v43, 4  ;;  %v17662_v28 = vpack.c.bf16 %v9111_v53, %v9110_v61 }
0x1dc7   :  { %v8694_v62 = vsel %vm8686_vm13, %v8681_v59, 0.0 }
0x1dc8   :  { %v8689_v48 = vadd.f32 %v8688_v27, %v8687_v43  ;;  %v8695_v17 = vrot.slane %v8694_v62, 4  ;;  %17663 = vmatpush3.bf16.msra.mxu1 %v17662_v28  ;;  %v9100_v28 = vld [vmem:[#allocation9 + $0x68] sm:$0xff] }
0x1dc9   :  { %17664 = vmatprep.subr.bf16.mxu1 %v18696_v47 }
0x1dca   :  { %v8690_v13 = vrot.slane %v8689_v48, 2  ;;  %v8696_v11 = vadd.f32 %v8695_v17, %v8694_v62 }
0x1dcc   :  { %v8691_v14 = vadd.f32 %v8690_v13, %v8689_v48  ;;  %v8697_v7 = vrot.slane %v8696_v11, 2 }
0x1dce   :  { %v8692_v24 = vrot.slane %v8691_v14, 1  ;;  %v8698_v25 = vadd.f32 %v8697_v7, %v8696_v11 }
0x1dd0   :  { %v8693_v3 = vadd.f32 %v8692_v24, %v8691_v14  ;;  %v8699_v18 = vrot.slane %v8698_v25, 1 }
0x1dd2   :  { %v8700_v20 = vadd.f32 %v8699_v18, %v8698_v25  ;;  %v8702_v15 = vmul.f32 0.25, %v8693_v3  ;;  %v15447_v25 = vld [vmem:[#allocation9 + $0x58] ss:$0 sm:$0xff] }
0x1dd4   :  { %v8703_v29 = vmul.f32 0.25, %v8700_v20  ;;  %v15448_v20 = vld [vmem:[#allocation9 + $0x60] ss:$0 sm:$0xff] }
0x1dd6   :  { %v8706_v16 = vsel %vm945_vm10, %v8703_v29, %v8702_v15 }
0x1dd7   :  { %16748 = vmatmul.mubr.msk.f32.vlgmr.msra.gmra.mrb[44].mxu0 %vm267_vm9, %v8706_v16 }
0x1dd8   :  { %17657 = vmatpush3.bf16.msra.mxu0 %v19711_v51  ;;  %16758 = vmatprep.mubr.msk.f32.mxu0 %vm18695_vm0, %v18694_v0 }
0x1dd9   :  { %17658 = vmatprep.subr.bf16.mxu0 %v18696_v47 }
0x1ddc   :  { %17660 = vmatpush3.bf16.msra.mxu0 %v19714_v34 }
0x1ddd   :  { %16761 = vmatprep.subr.mxu0 %v18694_v0 }
0x1eaa   :  { %v8775_v26 = vpop.f32.mrb[44].mxu0 }
0x1eab   :  { %v8786_v10 = vrot.slane %v8775_v26, %v19046_v52  ;;  %v16749_v21 = vpop.f32.mrb[45].mxu0 }
0x1ead   :  { %v8787_v8 = vcombine.high %v8786_v10, %v8786_v10  ;;  %v8794_v30 = vrot.slane %v8786_v10, %v19046_v52 }
0x1eaf   :  { %v8801_v31 = vrot.slane %v8787_v8, %v19046_v52  ;;  %v8805_v1 = vrot.slane %v8794_v30, %v19050_v56 }
0x1eb1   :  { %v8809_v22 = vrot.slane %v8801_v31, %v19050_v56  ;;  %v8812_v32 = vsub.f32 %v8680_v60, %v8805_v1  ;;  %v9113_v60 = vld [vmem:[#allocation9 + $0xa0] sm:$0xff] }
0x1eb2   :  { %v17665_v9 = vpack.c.bf16 %v9113_v60, %v9112_v50  ;;  %v9101_v60 = vld [vmem:[#allocation9 + $0x70] sm:$0xff] }
0x1eb3   :  { %v8813_v2 = vsub.f32 %v8681_v59, %v8809_v22  ;;  %v8814_v12 = vmul.f32 %v8812_v32, %v8812_v32 }
0x1eb4   :  { %17666 = vmatpush3.bf16.msra.mxu1 %v17665_v9 }
0x1eb5   :  { %v8815_v19 = vmul.f32 %v8813_v2, %v8813_v2  ;;  %v8816_v33 = vsel %vm8686_vm13, %v8814_v12, 0.0  ;;  %17667 = vmatprep.subr.bf16.mxu1 %v18696_v47 }
0x1eb6   :  { %v8817_v6 = vrot.slane %v8816_v33, 4 }
0x1eb7   :  { %v8823_v36 = vsel %vm8686_vm13, %v8815_v19, 0.0 }
0x1eb8   :  { %v8818_v23 = vadd.f32 %v8817_v6, %v8816_v33  ;;  %v8824_v35 = vrot.slane %v8823_v36, 4  ;;  %v15451_v6 = vld [vmem:[#allocation9 + $0x128] ss:$0 sm:$0xff] }
0x1eba   :  { %v8819_v45 = vrot.slane %v8818_v23, 2  ;;  %v8825_v4 = vadd.f32 %v8824_v35, %v8823_v36 }
0x1ebc   :  { %v8820_v38 = vadd.f32 %v8819_v45, %v8818_v23  ;;  %v8826_v54 = vrot.slane %v8825_v4, 2 }
0x1ebe   :  { %v8821_v42 = vrot.slane %v8820_v38, 1  ;;  %v8827_v44 = vadd.f32 %v8826_v54, %v8825_v4 }
0x1ec0   :  { %v8822_v5 = vadd.f32 %v8821_v42, %v8820_v38  ;;  %v8828_v46 = vrot.slane %v8827_v44, 1 }
0x1ec2   :  { %v8829_v58 = vadd.f32 %v8828_v46, %v8827_v44  ;;  %v8830_v37 = vmul.f32 0.25, %v8822_v5 }
0x1ec4   :  { %v8831_v57 = vmul.f32 0.25, %v8829_v58 }
0x1ec6   :  { %v8834_v55 = vsel %vm945_vm10, %v8831_v57, %v8830_v37 }
0x1ec7   :  { %16759 = vmatmul.mubr.msk.f32.vlgmr.msra.gmra.mrb[46].mxu0 %vm267_vm9, %v8834_v55 }
0x1ec8   :  { %16762 = vmatpush3.msra.mxu0 %v8981_v39  ;;  %16763 = vmatprep.mubr.msk.f32.mxu0 %vm18695_vm0, %v18694_v0 }
0x1ec9   :  { %17691 = vmatprep.subr.bf16.mxu0 %v18696_v47 }
0x1ecb   :  { %16764 = vmatmul.mubr.msk.f32.vlgmr.msra.gmra.mrb[48].mxu0 %vm172_vm1, %v19067_v41 }
0x1ecc   :  { %17693 = vmatpush3.bf16.msra.mxu0 %v19711_v51  ;;  %16829 = vmatprep.mubr.msk.f32.mxu0 %vm18695_vm0, %v18694_v0 }
0x1ecd   :  { %17694 = vmatprep.subr.bf16.mxu0 %v18696_v47 }
0x1ed0   :  { %17696 = vmatpush3.bf16.msra.mxu0 %v19714_v34 }
0x1ed1   :  { %17697 = vmatprep.subr.bf16.mxu0 %v18696_v47 }
0x1f9a   :  { %v8903_v59 = vpop.f32.mrb[46].mxu0 }
0x1f9b   :  { %v8904_v43 = vadd.f32 1e-05, %v8903_v59  ;;  %v16760_v27 = vpop.f32.mrb[47].mxu0 }
0x1f9d   :  { %18390 = vrsqrt.f32 %v8904_v43 }
0x1f9e   :  { %v9053_v62 = vpop.f32.mrb[48].mxu0 }
0x1f9f   :  { %v16765_v48 = vpop.f32.mrb[49].mxu0 }
0x1fa7   :  { %v18391_v17 = vpop.eup %18390 }
0x1fa8   :  { %v8915_v13 = vrot.slane %v18391_v17, %v19046_v52 }
0x1faa   :  { %v8916_v11 = vcombine.high %v8915_v13, %v8915_v13  ;;  %v8923_v14 = vrot.slane %v8915_v13, %v19046_v52  ;;  %v17668_v13 = vpack.c.bf16 %v9101_v60, %v9100_v28 }
0x1fac   :  { %v8930_v7 = vrot.slane %v8916_v11, %v19046_v52  ;;  %v8934_v24 = vrot.slane %v8923_v14, %v19050_v56 }
0x1fae   :  { %v8938_v3 = vrot.slane %v8930_v7, %v19050_v56  ;;  %v8941_v18 = vmul.f32 %v8934_v24, %v8812_v32 }
0x1fb0   :  { %v8942_v15 = vmul.f32 %v8938_v3, %v8813_v2  ;;  %v8948_v29 = vmul.f32 %v15447_v25, %v8941_v18  ;;  %v9054_v2 = vadd.f32 %v15451_v6, %v9053_v62  ;;  %v9267_v6 = vld [vmem:[#allocation9 + $0xc0] sm:$0xff] }
0x1fb2   :  { %v8949_v16 = vmul.f32 %v15447_v25, %v8942_v15  ;;  %v8955_v26 = vadd.f32 %v15448_v20, %v8948_v29  ;;  %v9064_v35 = vrot.slane %v9054_v2, %v19046_v52 }
0x1fb4   :  { %v8956_v10 = vadd.f32 %v15448_v20, %v8949_v16  ;;  %v8957_v21 = vmin.f32 %v8955_v26, 20.0  ;;  %v9065_v45 = vcombine.high %v9064_v35, %v9064_v35  ;;  %v9072_v54 = vrot.slane %v9064_v35, %v19046_v52  ;;  %v9102_v16 = vld [vmem:[#allocation9 + $0x78] sm:$0xff] }
0x1fb5   :  { %vm8975_vm14 = vcmp.gt.f32.partialorder %v8955_v26, 20.0  ;;  %v9350_v35 = vld [vmem:[#allocation9 + $0xd8] sm:$0xff] }
0x1fb6   :  { %v8958_v8 = vmin.f32 %v8956_v10, 20.0  ;;  %v8959_v30 = vmul.f32 1.442695, %v8957_v21  ;;  %v9079_v46 = vrot.slane %v9065_v45, %v19046_v52  ;;  %vm8976_vm15 = vcmp.gt.f32.partialorder %v8956_v10, 20.0  ;;  %v9351_v45 = vld [vmem:[#allocation9 + $0xe0] sm:$0xff] }
0x1fb7   :  { %v9083_v39 = vrot.slane %v9072_v54, %v19050_v56  ;;  %v9435_v54 = vld [vmem:[#allocation9 + $0xf0] sm:$0xff] }
0x1fb8   :  { %18392 = vpow2.f32 %v8959_v30  ;;  %v8961_v31 = vmul.f32 1.442695, %v8958_v8  ;;  %v9087_v53 = vrot.slane %v9079_v46, %v19050_v56 }
0x1fba   :  { %18394 = vpow2.f32 %v8961_v31 }
0x1fc2   :  { %v18393_v1 = vpop.eup %18392 }
0x1fc3   :  { %v8963_v22 = vadd.f32 1.0, %v18393_v1 }
0x1fc4   :  { %v18395_v12 = vpop.eup %18394 }
0x1fc5   :  { %v8964_v19 = vadd.f32 1.0, %v18395_v12  ;;  %v8965_v33 = vmul.f32 %v8963_v22, %v8963_v22  ;;  %v9264_v22 = vld [vmem:[#allocation9 + $0xa8] sm:$0xff]  ;;  %v9265_v12 = vld [vmem:[#allocation9 + $0xb0] sm:$0xff] }
0x1fc7   :  { %v8966_v36 = vmul.f32 %v8964_v19, %v8964_v19  ;;  %v8969_v32 = vadd.f32 1.0, %v8965_v33  ;;  %v15449_v4 = vadd.f32 -1.0, %v8965_v33  ;;  %v17674_v19 = vpack.c.bf16 %v9265_v12, %v9264_v22  ;;  %v9266_v33 = vld [vmem:[#allocation9 + $0xb8] sm:$0xff] }
0x1fc9   :  { %v8970_v23 = vadd.f32 1.0, %v8966_v36  ;;  %18396 = vrcp.f32 %v8969_v32  ;;  %v15450_v42 = vadd.f32 -1.0, %v8966_v36  ;;  %v17677_v36 = vpack.c.bf16 %v9267_v6, %v9266_v33  ;;  %v9348_v32 = vld [vmem:[#allocation9 + $0xc8] sm:$0xff] }
0x1fcb   :  { %18398 = vrcp.f32 %v8970_v23  ;;  %v9349_v23 = vld [vmem:[#allocation9 + $0xd0] sm:$0xff] }
0x1fcc   :  { %v17680_v2 = vpack.c.bf16 %v9349_v23, %v9348_v32 }
0x1fd3   :  { %v18397_v38 = vpop.eup %18396 }
0x1fd4   :  { %v8973_v44 = vmul.f32 %v18397_v38, %v15449_v4  ;;  %v17683_v4 = vpack.c.bf16 %v9351_v45, %v9350_v35  ;;  %v9434_v38 = vld [vmem:[#allocation9 + $0xe8] sm:$0xff] }
0x1fd5   :  { %v18399_v5 = vpop.eup %18398 }
0x1fd6   :  { %v8974_v58 = vmul.f32 %v18399_v5, %v15450_v42  ;;  %v8977_v37 = vsel %vm8975_vm14, 1.0, %v8973_v44  ;;  %v17686_v42 = vpack.c.bf16 %v9435_v54, %v9434_v38  ;;  %v9436_v44 = vld [vmem:[#allocation9 + $0xf8] sm:$0xff]  ;;  %v9437_v5 = vld [vmem:[#allocation9 + $0x100] sm:$0xff]  ;;  %v9817_v38 = vld [vmem:[#allocation9 + $0x130] sm:$0xff]  ;;  %vm12129_vm14 = vcmask 523264  }
0x1fd7   :  { %v8979_v57 = vmul.f32 %v8977_v37, %v8955_v26  ;;  %v9103_v26 = vld [vmem:[#allocation9 + $0x80] sm:$0xff]  ;;  %v17689_v46 = vpack.c.bf16 %v9437_v5, %v9436_v44  ;;  %v9818_v54 = vld [vmem:[#allocation9 + $0x138] sm:$0xff] }
0x1fd8   :  { %v8978_v55 = vsel %vm8976_vm15, 1.0, %v8974_v58  ;;  %v17671_v1 = vpack.c.bf16 %v9103_v26, %v9102_v16  ;;  %v15458_v58 = vld [vmem:[#allocation9 + $0x108] ss:$0 sm:$0xff] }
0x1fd9   :  { %v8980_v61 = vmul.f32 %v8978_v55, %v8956_v10  ;;  %v9090_v50 = vadd.f32 %v9083_v39, %v8979_v57 }
0x1fdb   :  { %v9091_v9 = vadd.f32 %v9087_v53, %v8980_v61  ;;  %v9104_v59 = vrot.slane %v9090_v50, 7  ;;  %v9094_v43 = vrot.slane %v9090_v50, 6  ;;  %v9342_v27 = vrot.slane %v9090_v50, 1 }
0x1fdc   :  { %v9428_v62 = vrot.slane %v9090_v50, 2 }
0x1fdd   :  { %v9105_v48 = vrot.slane %v9091_v9, 7  ;;  %v9108_v17 = vsel %vm373_vm3, 0.0, %v9104_v59  ;;  %v9095_v11 = vrot.slane %v9091_v9, 6  ;;  %v9098_v14 = vsel %vm361_vm5, 0.0, %v9094_v43 }
0x1fde   :  { %v9268_v7 = vcombine.low %v9090_v50, %v9091_v9  ;;  %v9343_v24 = vrot.slane %v9091_v9, 1  ;;  %v9429_v25 = vrot.slane %v9091_v9, 2  ;;  %v9346_v20 = vsel %vm8507_vm6, %v9342_v27, 0.0 }
0x1fdf   :  { %v9109_v3 = vsel %vm373_vm3, 0.0, %v9105_v48  ;;  %v9099_v18 = vsel %vm361_vm5, 0.0, %v9095_v11  ;;  %v9432_v15 = vsel %vm361_vm5, %v9428_v62, 0.0 }
0x1fe0   :  { %v9116_v29 = vcombine.low %v9108_v17, %v9109_v3  ;;  %v9191_v10 = vcombine.low %v9098_v14, %v9099_v18  ;;  %v9347_v21 = vsel %vm8507_vm6, %v9343_v24, 0.0  ;;  %v9433_v8 = vsel %vm361_vm5, %v9429_v25, 0.0 }
0x1fe1   :  { %v9354_v30 = vcombine.low %v9346_v20, %v9347_v21  ;;  %v9440_v31 = vcombine.low %v9432_v15, %v9433_v8 }
0x1fe2   :  { %16775 = vmatmul.mubr.msk.f32.vlgmr.msra.gmra.mrb[42].mxu1 %vm267_vm9, %v9116_v29 }
0x1fe3   :  { %17669 = vmatpush3.bf16.msra.mxu1 %v17668_v13  ;;  %16785 = vmatprep.mubr.msk.f32.mxu1 %vm18695_vm0, %v18694_v0 }
0x1fe4   :  { %17670 = vmatprep.subr.bf16.mxu1 %v18696_v47 }
0x1fe7   :  { %17672 = vmatpush3.bf16.msra.mxu1 %v17671_v1 }
0x1fe8   :  { %17673 = vmatprep.subr.bf16.mxu1 %v18696_v47 }
0x1fea   :  { %16786 = vmatmul.mubr.msk.f32.vlgmr.msra.gmra.mrb[42].mxu1 %vm267_vm9, %v9191_v10 }
0x1feb   :  { %17675 = vmatpush3.bf16.msra.mxu1 %v17674_v19  ;;  %16796 = vmatprep.mubr.msk.f32.mxu1 %vm18695_vm0, %v18694_v0 }
0x1fec   :  { %17676 = vmatprep.subr.bf16.mxu1 %v18696_v47 }
0x1fef   :  { %17678 = vmatpush3.bf16.msra.mxu1 %v17677_v36 }
0x1ff0   :  { %17679 = vmatprep.subr.bf16.mxu1 %v18696_v47 }
0x1ff2   :  { %16797 = vmatmul.mubr.msk.f32.vlgmr.msra.gmra.mrb[42].mxu1 %vm267_vm9, %v9268_v7 }
0x1ff3   :  { %17681 = vmatpush3.bf16.msra.mxu1 %v17680_v2  ;;  %16807 = vmatprep.mubr.msk.f32.mxu1 %vm18695_vm0, %v18694_v0 }
0x1ff4   :  { %17682 = vmatprep.subr.bf16.mxu1 %v18696_v47 }
0x1ff7   :  { %17684 = vmatpush3.bf16.msra.mxu1 %v17683_v4 }
0x1ff8   :  { %17685 = vmatprep.subr.bf16.mxu1 %v18696_v47 }
0x1ffa   :  { %16808 = vmatmul.mubr.msk.f32.vlgmr.msra.gmra.mrb[42].mxu1 %vm267_vm9, %v9354_v30 }
0x1ffb   :  { %17687 = vmatpush3.bf16.msra.mxu1 %v17686_v42  ;;  %16818 = vmatprep.mubr.msk.f32.mxu1 %vm18695_vm0, %v18694_v0 }
0x1ffc   :  { %17688 = vmatprep.subr.bf16.mxu1 %v18696_v47 }
0x1fff   :  { %17690 = vmatpush3.bf16.msra.mxu1 %v17689_v46  ;;  %v17704_v46 = vpack.c.bf16 %v9818_v54, %v9817_v38 }
0x2000   :  { %17736 = vmatprep.subr.bf16.mxu1 %v18696_v47 }
0x2002   :  { %16819 = vmatmul.mubr.msk.f32.vlgmr.msra.gmra.mrb[42].mxu1 %vm267_vm9, %v9440_v31 }
0x2003   :  { %17738 = vmatpush3.bf16.msra.mxu1 %v19711_v51  ;;  %16913 = vmatprep.mubr.msk.f32.mxu1 %vm18695_vm0, %v18694_v0 }
0x2004   :  { %17739 = vmatprep.subr.bf16.mxu1 %v18696_v47 }
0x2007   :  { %17741 = vmatpush3.bf16.msra.mxu1 %v19714_v34 }
0x2008   :  { %17742 = vmatprep.subr.bf16.mxu1 %v18696_v47 }
0x20d5   :  { %v9509_v37 = vpop.f32.mrb[42].mxu1 }
0x20d6   :  { %v9515_v57 = vcombine.high %v9509_v37, %v9509_v37  ;;  %v9522_v39 = vadd.f32 %v15458_v58, %v9509_v37  ;;  %v16820_v55 = vpop.f32.mrb[43].mxu1  ;;  %v9917_v37 = vld [vmem:[#allocation9 + $0x168] sm:$0xff] }
0x20d8   :  { %v9523_v61 = vadd.f32 %v15458_v58, %v9515_v57  ;;  %v9524_v53 = vsel %vm8686_vm13, %v9522_v39, 0.0  ;;  %v9918_v57 = vld [vmem:[#allocation9 + $0x170] sm:$0xff] }
0x20d9   :  { %v9525_v50 = vrot.slane %v9524_v53, 4  ;;  %v17707_v55 = vpack.c.bf16 %v9918_v57, %v9917_v37  ;;  %v9908_v37 = vld [vmem:[#allocation9 + $0x150] sm:$0xff] }
0x20da   :  { %v9531_v28 = vsel %vm8686_vm13, %v9523_v61, 0.0 }
0x20db   :  { %v9526_v60 = vadd.f32 %v9525_v50, %v9524_v53  ;;  %v9532_v9 = vrot.slane %v9531_v28, 4 }
0x20dd   :  { %v9527_v59 = vrot.slane %v9526_v60, 2  ;;  %v9533_v43 = vadd.f32 %v9532_v9, %v9531_v28 }
0x20df   :  { %v9528_v27 = vadd.f32 %v9527_v59, %v9526_v60  ;;  %v9534_v62 = vrot.slane %v9533_v43, 2 }
0x20e1   :  { %v9529_v48 = vrot.slane %v9528_v27, 1  ;;  %v9535_v17 = vadd.f32 %v9534_v62, %v9533_v43 }
0x20e3   :  { %v9530_v13 = vadd.f32 %v9529_v48, %v9528_v27  ;;  %v9536_v11 = vrot.slane %v9535_v17, 1 }
0x20e5   :  { %v9537_v14 = vadd.f32 %v9536_v11, %v9535_v17  ;;  %v9538_v7 = vmul.f32 0.25, %v9530_v13  ;;  %v15461_v13 = vld [vmem:[#allocation9 + $0x110] ss:$0 sm:$0xff] }
0x20e7   :  { %v9539_v24 = vmul.f32 0.25, %v9537_v14 }
0x20e9   :  { %v9542_v25 = vsel %vm945_vm10, %v9539_v24, %v9538_v7  ;;  %v15462_v7 = vld [vmem:[#allocation9 + $0x118] ss:$0 sm:$0xff] }
0x20ea   :  { %16830 = vmatmul.mubr.msk.f32.vlgmr.msra.gmra.mrb[50].mxu0 %vm267_vm9, %v9542_v25 }
0x20eb   :  { %17699 = vmatpush3.bf16.msra.mxu0 %v19711_v51  ;;  %16840 = vmatprep.mubr.msk.f32.mxu0 %vm18695_vm0, %v18694_v0 }
0x20ec   :  { %17700 = vmatprep.subr.bf16.mxu0 %v18696_v47 }
0x20ef   :  { %17702 = vmatpush3.bf16.msra.mxu0 %v19714_v34 }
0x20f0   :  { %17703 = vmatprep.subr.bf16.mxu0 %v18696_v47 }
0x21bd   :  { %v9611_v3 = vpop.f32.mrb[50].mxu0 }
0x21be   :  { %v9622_v18 = vrot.slane %v9611_v3, %v19046_v52  ;;  %v16831_v20 = vpop.f32.mrb[51].mxu0 }
0x21c0   :  { %v9623_v15 = vcombine.high %v9622_v18, %v9622_v18  ;;  %v9630_v29 = vrot.slane %v9622_v18, %v19046_v52 }
0x21c2   :  { %v9637_v16 = vrot.slane %v9623_v15, %v19046_v52  ;;  %v9641_v26 = vrot.slane %v9630_v29, %v19050_v56 }
0x21c4   :  { %v9645_v10 = vrot.slane %v9637_v16, %v19050_v56  ;;  %v9648_v21 = vsub.f32 %v9522_v39, %v9641_v26  ;;  %v9919_v39 = vld [vmem:[#allocation9 + $0x178] sm:$0xff] }
0x21c6   :  { %v9649_v8 = vsub.f32 %v9523_v61, %v9645_v10  ;;  %v9650_v30 = vmul.f32 %v9648_v21, %v9648_v21  ;;  %v9920_v61 = vld [vmem:[#allocation9 + $0x180] sm:$0xff] }
0x21c7   :  { %v17710_v53 = vpack.c.bf16 %v9920_v61, %v9919_v39 }
0x21c8   :  { %v9651_v31 = vmul.f32 %v9649_v8, %v9649_v8  ;;  %v9652_v1 = vsel %vm8686_vm13, %v9650_v30, 0.0 }
0x21c9   :  { %v9653_v22 = vrot.slane %v9652_v1, 4 }
0x21ca   :  { %v9659_v12 = vsel %vm8686_vm13, %v9651_v31, 0.0 }
0x21cb   :  { %v9654_v19 = vadd.f32 %v9653_v22, %v9652_v1  ;;  %v9660_v33 = vrot.slane %v9659_v12, 4 }
0x21cd   :  { %v9655_v6 = vrot.slane %v9654_v19, 2  ;;  %v9661_v36 = vadd.f32 %v9660_v33, %v9659_v12  ;;  %v15465_v33 = vld [vmem:[#allocation9 + $0x140] ss:$0 sm:$0xff] }
0x21cf   :  { %v9656_v32 = vadd.f32 %v9655_v6, %v9654_v19  ;;  %v9662_v23 = vrot.slane %v9661_v36, 2 }
0x21d1   :  { %v9657_v2 = vrot.slane %v9656_v32, 1  ;;  %v9663_v35 = vadd.f32 %v9662_v23, %v9661_v36 }
0x21d3   :  { %v9658_v45 = vadd.f32 %v9657_v2, %v9656_v32  ;;  %v9664_v4 = vrot.slane %v9663_v35, 1 }
0x21d5   :  { %v9665_v42 = vadd.f32 %v9664_v4, %v9663_v35  ;;  %v9666_v44 = vmul.f32 0.25, %v9658_v45 }
0x21d7   :  { %v9667_v5 = vmul.f32 0.25, %v9665_v42 }
0x21d9   :  { %v9670_v58 = vsel %vm945_vm10, %v9667_v5, %v9666_v44 }
0x21da   :  { %16841 = vmatmul.mubr.msk.f32.vlgmr.msra.gmra.mrb[52].mxu0 %vm267_vm9, %v9670_v58  ;;  %v9907_v58 = vld [vmem:[#allocation9 + $0x148] sm:$0xff] }
0x21db   :  { %17705 = vmatpush3.bf16.msra.mxu0 %v17704_v46  ;;  %16847 = vmatprep.mubr.msk.f32.mxu0 %vm18695_vm0, %v18694_v0  ;;  %v17713_v61 = vpack.c.bf16 %v9908_v37, %v9907_v58 }
0x21dc   :  { %17706 = vmatprep.subr.bf16.mxu0 %v18696_v47 }
0x21de   :  { %16848 = vmatmul.mubr.msk.f32.vlgmr.msra.gmra.mrb[54].mxu0 %vm5079_vm8, %v19675_v63 }
0x21df   :  { %16858 = vmatprep.mubr.msk.f32.mxu0 %vm18695_vm0, %v18694_v0  ;;  %17708 = vmatpush3.bf16.msra.mxu0 %v17707_v55 }
0x21e0   :  { %17709 = vmatprep.subr.bf16.mxu0 %v18696_v47 }
0x21e3   :  { %17711 = vmatpush3.bf16.msra.mxu0 %v17710_v53 }
0x21e4   :  { %17712 = vmatprep.subr.bf16.mxu0 %v18696_v47 }
0x22ad   :  { %v9739_v50 = vpop.f32.mrb[52].mxu0 }
0x22ae   :  { %v9740_v28 = vadd.f32 1e-05, %v9739_v50  ;;  %v16842_v60 = vpop.f32.mrb[53].mxu0  ;;  %v9909_v50 = vld [vmem:[#allocation9 + $0x158] sm:$0xff] }
0x22b0   :  { %18400 = vrsqrt.f32 %v9740_v28  ;;  %v9910_v28 = vld [vmem:[#allocation9 + $0x160] sm:$0xff] }
0x22b1   :  { %v9890_v63 = vpop.f32.mrb[54].mxu0 }
0x22b2   :  { %v16849_v9 = vpop.f32.mrb[55].mxu0  ;;  %v9891_v2 = vadd.f32 %v15465_v33, %v9890_v63  ;;  %v17716_v63 = vpack.c.bf16 %v9910_v28, %v9909_v50 }
0x22b4   :  { %v9895_v42 = vcombine.high %v9891_v2, %v9891_v2 }
0x22ba   :  { %v18401_v59 = vpop.eup %18400 }
0x22bb   :  { %v9751_v43 = vrot.slane %v18401_v59, %v19046_v52  ;;  %v10071_v59 = vld [vmem:[#allocation9 + $0x188] sm:$0xff] }
0x22bd   :  { %v9752_v27 = vcombine.high %v9751_v43, %v9751_v43  ;;  %v9759_v62 = vrot.slane %v9751_v43, %v19046_v52  ;;  %v10072_v43 = vld [vmem:[#allocation9 + $0x190] sm:$0xff] }
0x22bf   :  { %v9766_v48 = vrot.slane %v9752_v27, %v19046_v52  ;;  %v9770_v17 = vrot.slane %v9759_v62, %v19050_v56 }
0x22c1   :  { %v9774_v11 = vrot.slane %v9766_v48, %v19050_v56  ;;  %v9777_v14 = vmul.f32 %v9770_v17, %v9648_v21  ;;  %v17719_v48 = vpack.c.bf16 %v10072_v43, %v10071_v59 }
0x22c3   :  { %v9778_v24 = vmul.f32 %v9774_v11, %v9649_v8  ;;  %v9784_v25 = vmul.f32 %v15461_v13, %v9777_v14  ;;  %v10074_v11 = vld [vmem:[#allocation9 + $0x1a0] sm:$0xff] }
0x22c5   :  { %v9785_v3 = vmul.f32 %v15461_v13, %v9778_v24  ;;  %v9791_v18 = vadd.f32 %v15462_v7, %v9784_v25  ;;  %v10073_v13 = vld [vmem:[#allocation9 + $0x198] sm:$0xff]  ;;  %v10156_v24 = vld [vmem:[#allocation9 + $0x1b0] sm:$0xff] }
0x22c6   :  { %v17722_v14 = vpack.c.bf16 %v10074_v11, %v10073_v13 }
0x22c7   :  { %v9792_v20 = vadd.f32 %v15462_v7, %v9785_v3  ;;  %v9793_v15 = vmin.f32 %v9791_v18, 20.0  ;;  %vm9811_vm8 = vcmp.gt.f32.partialorder %v9791_v18, 20.0  ;;  %v10155_v7 = vld [vmem:[#allocation9 + $0x1a8] sm:$0xff] }
0x22c8   :  { %v17725_v25 = vpack.c.bf16 %v10156_v24, %v10155_v7 }
0x22c9   :  { %v9794_v29 = vmin.f32 %v9792_v20, 20.0  ;;  %v9795_v16 = vmul.f32 1.442695, %v9793_v15  ;;  %vm9812_vm11 = vcmp.gt.f32.partialorder %v9792_v20, 20.0 }
0x22cb   :  { %18402 = vpow2.f32 %v9795_v16  ;;  %v9797_v26 = vmul.f32 1.442695, %v9794_v29 }
0x22cd   :  { %18404 = vpow2.f32 %v9797_v26  ;;  %v10241_v26 = vld [vmem:[#allocation9 + $0x1c8] sm:$0xff] }
0x22d5   :  { %v18403_v10 = vpop.eup %18402 }
0x22d6   :  { %v9799_v30 = vadd.f32 1.0, %v18403_v10  ;;  %v10242_v10 = vld [vmem:[#allocation9 + $0x1d0] sm:$0xff] }
0x22d7   :  { %v18405_v31 = vpop.eup %18404 }
0x22d8   :  { %v9800_v1 = vadd.f32 1.0, %v18405_v31  ;;  %v9801_v22 = vmul.f32 %v9799_v30, %v9799_v30 }
0x22da   :  { %v9802_v12 = vmul.f32 %v9800_v1, %v9800_v1  ;;  %v9805_v19 = vadd.f32 1.0, %v9801_v22  ;;  %v15463_v8 = vadd.f32 -1.0, %v9801_v22  ;;  %v17731_v1 = vpack.c.bf16 %v10242_v10, %v10241_v26 }
0x22dc   :  { %v9806_v21 = vadd.f32 1.0, %v9802_v12  ;;  %18406 = vrcp.f32 %v9805_v19  ;;  %v15464_v36 = vadd.f32 -1.0, %v9802_v12  ;;  %v10243_v12 = vld [vmem:[#allocation9 + $0x1d8] sm:$0xff]  ;;  %v10244_v19 = vld [vmem:[#allocation9 + $0x1e0] sm:$0xff] }
0x22de   :  { %18408 = vrcp.f32 %v9806_v21 }
0x22e6   :  { %v18407_v6 = vpop.eup %18406 }
0x22e7   :  { %v9809_v32 = vmul.f32 %v18407_v6, %v15463_v8  ;;  %v17734_v8 = vpack.c.bf16 %v10244_v19, %v10243_v12 }
0x22e8   :  { %v18409_v23 = vpop.eup %18408 }
0x22e9   :  { %v9810_v35 = vmul.f32 %v18409_v23, %v15464_v36  ;;  %v9813_v45 = vsel %vm9811_vm8, 1.0, %v9809_v32  ;;  %v15472_v23 = vld [vmem:[#allocation9 + $0x1e8] ss:$0 sm:$0xff] }
0x22ea   :  { %v9815_v4 = vmul.f32 %v9813_v45, %v9791_v18  ;;  %v10157_v18 = vld [vmem:[#allocation9 + $0x1b8] sm:$0xff] }
0x22eb   :  { %v9814_v38 = vsel %vm9812_vm11, 1.0, %v9810_v35 }
0x22ec   :  { %v9816_v54 = vmul.f32 %v9814_v38, %v9792_v20  ;;  %v19829_v44 = vadd.f32 %v9891_v2, %v9815_v4  ;;  %v10158_v20 = vld [vmem:[#allocation9 + $0x1c0] sm:$0xff] }
0x22ed   :  { %v17728_v29 = vpack.c.bf16 %v10158_v20, %v10157_v18 }
0x22ee   :  { %v19831_v5 = vadd.f32 %v9895_v42, %v9816_v54  ;;  %v9911_v46 = vrot.slane %v19829_v44, 7  ;;  %v9901_v9 = vrot.slane %v19829_v44, 6  ;;  %v10149_v16 = vrot.slane %v19829_v44, 1 }
0x22ef   :  { %v10235_v33 = vrot.slane %v19829_v44, 2 }
0x22f0   :  { %v9912_v57 = vrot.slane %v19831_v5, 7  ;;  %v9915_v39 = vsel %vm373_vm3, 0.0, %v9911_v46  ;;  %v9902_v60 = vrot.slane %v19831_v5, 6  ;;  %v9905_v62 = vsel %vm361_vm5, 0.0, %v9901_v9 }
0x22f1   :  { %v10075_v3 = vcombine.low %v19829_v44, %v19831_v5  ;;  %v10150_v15 = vrot.slane %v19831_v5, 1  ;;  %v10153_v31 = vsel %vm8507_vm6, %v10149_v16, 0.0  ;;  %v10236_v21 = vrot.slane %v19831_v5, 2 }
0x22f2   :  { %v9916_v55 = vsel %vm373_vm3, 0.0, %v9912_v57  ;;  %v9906_v27 = vsel %vm361_vm5, 0.0, %v9902_v60  ;;  %v10239_v36 = vsel %vm361_vm5, %v10235_v33, 0.0 }
0x22f3   :  { %v9923_v53 = vcombine.low %v9915_v39, %v9916_v55  ;;  %v9998_v17 = vcombine.low %v9905_v62, %v9906_v27  ;;  %v10154_v30 = vsel %vm8507_vm6, %v10150_v15, 0.0  ;;  %v10240_v6 = vsel %vm361_vm5, %v10236_v21, 0.0 }
0x22f4   :  { %v10161_v22 = vcombine.low %v10153_v31, %v10154_v30  ;;  %v10247_v32 = vcombine.low %v10239_v36, %v10240_v6  ;;  %v10624_v36 = vld [vmem:[#allocation9 + $0x2b8] sm:$0xff] }
0x22f5   :  { %16859 = vmatmul.mubr.msk.f32.vlgmr.msra.gmra.mrb[56].mxu0 %vm267_vm9, %v9923_v53 }
0x22f6   :  { %17714 = vmatpush3.bf16.msra.mxu0 %v17713_v61  ;;  %16869 = vmatprep.mubr.msk.f32.mxu0 %vm18695_vm0, %v18694_v0 }
0x22f7   :  { %17715 = vmatprep.subr.bf16.mxu0 %v18696_v47 }
0x22fa   :  { %17717 = vmatpush3.bf16.msra.mxu0 %v17716_v63 }
0x22fb   :  { %17718 = vmatprep.subr.bf16.mxu0 %v18696_v47 }
0x22fd   :  { %16870 = vmatmul.mubr.msk.f32.vlgmr.msra.gmra.mrb[56].mxu0 %vm267_vm9, %v9998_v17 }
0x22fe   :  { %17720 = vmatpush3.bf16.msra.mxu0 %v17719_v48  ;;  %16880 = vmatprep.mubr.msk.f32.mxu0 %vm18695_vm0, %v18694_v0 }
0x22ff   :  { %17721 = vmatprep.subr.bf16.mxu0 %v18696_v47 }
0x2302   :  { %17723 = vmatpush3.bf16.msra.mxu0 %v17722_v14 }
0x2303   :  { %17724 = vmatprep.subr.bf16.mxu0 %v18696_v47 }
0x2305   :  { %16881 = vmatmul.mubr.msk.f32.vlgmr.msra.gmra.mrb[56].mxu0 %vm267_vm9, %v10075_v3 }
0x2306   :  { %17726 = vmatpush3.bf16.msra.mxu0 %v17725_v25  ;;  %16891 = vmatprep.mubr.msk.f32.mxu0 %vm18695_vm0, %v18694_v0 }
0x2307   :  { %17727 = vmatprep.subr.bf16.mxu0 %v18696_v47 }
0x230a   :  { %17729 = vmatpush3.bf16.msra.mxu0 %v17728_v29 }
0x230b   :  { %17730 = vmatprep.subr.bf16.mxu0 %v18696_v47 }
0x230d   :  { %16892 = vmatmul.mubr.msk.f32.vlgmr.msra.gmra.mrb[56].mxu0 %vm267_vm9, %v10161_v22 }
0x230e   :  { %17732 = vmatpush3.bf16.msra.mxu0 %v17731_v1  ;;  %16902 = vmatprep.mubr.msk.f32.mxu0 %vm18695_vm0, %v18694_v0 }
0x230f   :  { %17733 = vmatprep.subr.bf16.mxu0 %v18696_v47 }
0x2312   :  { %17735 = vmatpush3.bf16.msra.mxu0 %v17734_v8 }
0x2313   :  { %17778 = vmatprep.subr.bf16.mxu0 %v18696_v47 }
0x2315   :  { %16903 = vmatmul.mubr.msk.f32.vlgmr.msra.gmra.mrb[56].mxu0 %vm267_vm9, %v10247_v32 }
0x2316   :  { %17780 = vmatpush3.bf16.msra.mxu0 %v19711_v51  ;;  %16995 = vmatprep.mubr.msk.f32.mxu0 %vm18695_vm0, %v18694_v0 }
0x2317   :  { %17781 = vmatprep.subr.bf16.mxu0 %v18696_v47 }
0x231a   :  { %17783 = vmatpush3.bf16.msra.mxu0 %v19714_v34 }
0x231b   :  { %17784 = vmatprep.subr.bf16.mxu0 %v18696_v47 }
0x23e8   :  { %v10316_v2 = vpop.f32.mrb[56].mxu0 }
0x23e9   :  { %v10322_v35 = vcombine.high %v10316_v2, %v10316_v2  ;;  %v10329_v45 = vadd.f32 %v15472_v23, %v10316_v2  ;;  %v16904_v4 = vpop.f32.mrb[57].mxu0  ;;  %v10754_v2 = vld [vmem:[#allocation9 + $0x228] sm:$0xff] }
0x23ea   :  { %v10756_v4 = vld [vmem:[#allocation9 + $0x238] sm:$0xff] }
0x23eb   :  { %v10330_v38 = vadd.f32 %v15472_v23, %v10322_v35  ;;  %v10331_v54 = vsel %vm8686_vm13, %v10329_v45, 0.0  ;;  %v10753_v23 = vld [vmem:[#allocation9 + $0x220] sm:$0xff]  ;;  %v10755_v35 = vld [vmem:[#allocation9 + $0x230] sm:$0xff] }
0x23ec   :  { %v10332_v42 = vrot.slane %v10331_v54, 4 }
0x23ed   :  { %v10338_v46 = vsel %vm8686_vm13, %v10330_v38, 0.0 }
0x23ee   :  { %v10333_v58 = vadd.f32 %v10332_v42, %v10331_v54  ;;  %v10339_v37 = vrot.slane %v10338_v46, 4 }
0x23f0   :  { %v10334_v57 = vrot.slane %v10333_v58, 2  ;;  %v10340_v39 = vadd.f32 %v10339_v37, %v10338_v46 }
0x23f2   :  { %v10335_v55 = vadd.f32 %v10334_v57, %v10333_v58  ;;  %v10341_v61 = vrot.slane %v10340_v39, 2 }
0x23f4   :  { %v10336_v53 = vrot.slane %v10335_v55, 1  ;;  %v10342_v50 = vadd.f32 %v10341_v61, %v10340_v39 }
0x23f6   :  { %v10337_v28 = vadd.f32 %v10336_v53, %v10335_v55  ;;  %v10343_v60 = vrot.slane %v10342_v50, 1 }
0x23f8   :  { %v10344_v63 = vadd.f32 %v10343_v60, %v10342_v50  ;;  %v10345_v9 = vmul.f32 0.25, %v10337_v28  ;;  %v15475_v28 = vld [vmem:[#allocation9 + $0x1f0] ss:$0 sm:$0xff] }
0x23fa   :  { %v10346_v59 = vmul.f32 0.25, %v10344_v63 }
0x23fc   :  { %v10349_v43 = vsel %vm945_vm10, %v10346_v59, %v10345_v9  ;;  %v15476_v9 = vld [vmem:[#allocation9 + $0x1f8] ss:$0 sm:$0xff] }
0x23fd   :  { %16914 = vmatmul.mubr.msk.f32.vlgmr.msra.gmra.mrb[44].mxu1 %vm267_vm9, %v10349_v43 }
0x23fe   :  { %17744 = vmatpush3.bf16.msra.mxu1 %v19711_v51  ;;  %16924 = vmatprep.mubr.msk.f32.mxu1 %vm18695_vm0, %v18694_v0 }
0x23ff   :  { %17745 = vmatprep.subr.bf16.mxu1 %v18696_v47 }
0x2402   :  { %17747 = vmatpush3.bf16.msra.mxu1 %v19714_v34 }
0x2403   :  { %16927 = vmatprep.subr.mxu1 %v18694_v0 }
0x24d0   :  { %v10418_v27 = vpop.f32.mrb[44].mxu1 }
0x24d1   :  { %v10429_v62 = vrot.slane %v10418_v27, %v19046_v52  ;;  %v16915_v48 = vpop.f32.mrb[45].mxu1 }
0x24d3   :  { %v10430_v17 = vcombine.high %v10429_v62, %v10429_v62  ;;  %v10437_v13 = vrot.slane %v10429_v62, %v19046_v52 }
0x24d5   :  { %v10444_v11 = vrot.slane %v10430_v17, %v19046_v52  ;;  %v10448_v14 = vrot.slane %v10437_v13, %v19050_v56 }
0x24d7   :  { %v10452_v7 = vrot.slane %v10444_v11, %v19050_v56  ;;  %v10455_v24 = vsub.f32 %v10329_v45, %v10448_v14  ;;  %v17749_v45 = vpack.c.bf16 %v10754_v2, %v10753_v23 }
0x24d9   :  { %v10456_v25 = vsub.f32 %v10330_v38, %v10452_v7  ;;  %v10457_v3 = vmul.f32 %v10455_v24, %v10455_v24  ;;  %v17752_v38 = vpack.c.bf16 %v10756_v4, %v10755_v35  ;;  %v10743_v4 = vld [vmem:[#allocation9 + $0x200] sm:$0xff] }
0x24db   :  { %v10458_v18 = vmul.f32 %v10456_v25, %v10456_v25  ;;  %v10459_v20 = vsel %vm8686_vm13, %v10457_v3, 0.0 }
0x24dc   :  { %v10460_v15 = vrot.slane %v10459_v20, 4 }
0x24dd   :  { %v10466_v29 = vsel %vm8686_vm13, %v10458_v18, 0.0 }
0x24de   :  { %v10461_v16 = vadd.f32 %v10460_v15, %v10459_v20  ;;  %v10467_v26 = vrot.slane %v10466_v29, 4 }
0x24e0   :  { %v10462_v10 = vrot.slane %v10461_v16, 2  ;;  %v10468_v30 = vadd.f32 %v10467_v26, %v10466_v29  ;;  %v15479_v29 = vld [vmem:[#allocation9 + $0x2c0] ss:$0 sm:$0xff] }
0x24e2   :  { %v10463_v31 = vadd.f32 %v10462_v10, %v10461_v16  ;;  %v10469_v1 = vrot.slane %v10468_v30, 2 }
0x24e4   :  { %v10464_v22 = vrot.slane %v10463_v31, 1  ;;  %v10470_v12 = vadd.f32 %v10469_v1, %v10468_v30 }
0x24e6   :  { %v10465_v19 = vadd.f32 %v10464_v22, %v10463_v31  ;;  %v10471_v21 = vrot.slane %v10470_v12, 1 }
0x24e8   :  { %v10472_v8 = vadd.f32 %v10471_v21, %v10470_v12  ;;  %v10473_v33 = vmul.f32 0.25, %v10465_v19 }
0x24ea   :  { %v10474_v6 = vmul.f32 0.25, %v10472_v8 }
0x24ec   :  { %v10477_v32 = vsel %vm945_vm10, %v10474_v6, %v10473_v33 }
0x24ed   :  { %16925 = vmatmul.mubr.msk.f32.vlgmr.msra.gmra.mrb[46].mxu1 %vm267_vm9, %v10477_v32 }
0x24ee   :  { %16928 = vmatpush3.msra.mxu1 %v10624_v36  ;;  %16929 = vmatprep.mubr.msk.f32.mxu1 %vm18695_vm0, %v18694_v0 }
0x24ef   :  { %17748 = vmatprep.subr.bf16.mxu1 %v18696_v47 }
0x24f1   :  { %16930 = vmatmul.mubr.msk.f32.vlgmr.msra.gmra.mrb[48].mxu1 %vm172_vm1, %v19067_v41 }
0x24f2   :  { %16940 = vmatprep.mubr.msk.f32.mxu1 %vm18695_vm0, %v18694_v0  ;;  %17750 = vmatpush3.bf16.msra.mxu1 %v17749_v45 }
0x24f3   :  { %17751 = vmatprep.subr.bf16.mxu1 %v18696_v47 }
0x24f6   :  { %17753 = vmatpush3.bf16.msra.mxu1 %v17752_v38  ;;  %v10744_v38 = vld [vmem:[#allocation9 + $0x208] sm:$0xff] }
0x24f7   :  { %17754 = vmatprep.subr.bf16.mxu1 %v18696_v47 }
0x25c0   :  { %v10546_v54 = vpop.f32.mrb[46].mxu1 }
0x25c1   :  { %v10547_v42 = vadd.f32 1e-05, %v10546_v54  ;;  %v16926_v46 = vpop.f32.mrb[47].mxu1 }
0x25c3   :  { %18410 = vrsqrt.f32 %v10547_v42 }
0x25c4   :  { %v10696_v58 = vpop.f32.mrb[48].mxu1 }
0x25c5   :  { %v16931_v37 = vpop.f32.mrb[49].mxu1 }
0x25cd   :  { %v18411_v57 = vpop.eup %18410 }
0x25ce   :  { %v10558_v39 = vrot.slane %v18411_v57, %v19046_v52 }
0x25d0   :  { %v10559_v55 = vcombine.high %v10558_v39, %v10558_v39  ;;  %v10566_v61 = vrot.slane %v10558_v39, %v19046_v52 }
0x25d2   :  { %v10573_v53 = vrot.slane %v10559_v55, %v19046_v52  ;;  %v10577_v50 = vrot.slane %v10566_v61, %v19050_v56  ;;  %v17755_v55 = vpack.c.bf16 %v10744_v38, %v10743_v4 }
0x25d4   :  { %v10581_v60 = vrot.slane %v10573_v53, %v19050_v56  ;;  %v10584_v63 = vmul.f32 %v10577_v50, %v10455_v24 }
0x25d6   :  { %v10585_v59 = vmul.f32 %v10581_v60, %v10456_v25  ;;  %v10591_v43 = vmul.f32 %v15475_v28, %v10584_v63  ;;  %v10697_v25 = vadd.f32 %v15479_v29, %v10696_v58  ;;  %v10909_v29 = vld [vmem:[#allocation9 + $0x250] sm:$0xff] }
0x25d8   :  { %v10592_v27 = vmul.f32 %v15475_v28, %v10585_v59  ;;  %v10598_v62 = vadd.f32 %v15476_v9, %v10591_v43  ;;  %v10707_v10 = vrot.slane %v10697_v25, %v19046_v52  ;;  %v10992_v25 = vld [vmem:[#allocation9 + $0x268] sm:$0xff] }
0x25da   :  { %v10599_v48 = vadd.f32 %v15476_v9, %v10592_v27  ;;  %v10600_v17 = vmin.f32 %v10598_v62, 20.0  ;;  %v10708_v30 = vcombine.high %v10707_v10, %v10707_v10  ;;  %v10715_v22 = vrot.slane %v10707_v10, %v19046_v52 }
0x25db   :  { %vm10618_vm7 = vcmp.gt.f32.partialorder %v10598_v62, 20.0 }
0x25dc   :  { %v10601_v13 = vmin.f32 %v10599_v48, 20.0  ;;  %v10602_v11 = vmul.f32 1.442695, %v10600_v17  ;;  %v10722_v8 = vrot.slane %v10708_v30, %v19046_v52  ;;  %vm10619_vm12 = vcmp.gt.f32.partialorder %v10599_v48, 20.0  ;;  %v10993_v30 = vld [vmem:[#allocation9 + $0x270] sm:$0xff] }
0x25dd   :  { %v10726_v32 = vrot.slane %v10715_v22, %v19050_v56  ;;  %v11077_v22 = vld [vmem:[#allocation9 + $0x280] sm:$0xff] }
0x25de   :  { %18412 = vpow2.f32 %v10602_v11  ;;  %v10604_v14 = vmul.f32 1.442695, %v10601_v13  ;;  %v10730_v35 = vrot.slane %v10722_v8, %v19050_v56  ;;  %v11080_v8 = vld [vmem:[#allocation9 + $0x298] sm:$0xff] }
0x25e0   :  { %18414 = vpow2.f32 %v10604_v14 }
0x25e8   :  { %v18413_v7 = vpop.eup %18412 }
0x25e9   :  { %v10606_v3 = vadd.f32 1.0, %v18413_v7 }
0x25ea   :  { %v18415_v18 = vpop.eup %18414 }
0x25eb   :  { %v10607_v20 = vadd.f32 1.0, %v18415_v18  ;;  %v10608_v15 = vmul.f32 %v10606_v3, %v10606_v3  ;;  %v10907_v18 = vld [vmem:[#allocation9 + $0x240] sm:$0xff] }
0x25ed   :  { %v10609_v16 = vmul.f32 %v10607_v20, %v10607_v20  ;;  %v10612_v24 = vadd.f32 1.0, %v10608_v15  ;;  %v15477_v31 = vadd.f32 -1.0, %v10608_v15  ;;  %v10908_v20 = vld [vmem:[#allocation9 + $0x248] sm:$0xff] }
0x25ee   :  { %v17761_v15 = vpack.c.bf16 %v10908_v20, %v10907_v18 }
0x25ef   :  { %v10613_v26 = vadd.f32 1.0, %v10609_v16  ;;  %18416 = vrcp.f32 %v10612_v24  ;;  %v15478_v12 = vadd.f32 -1.0, %v10609_v16  ;;  %v10910_v16 = vld [vmem:[#allocation9 + $0x258] sm:$0xff] }
0x25f0   :  { %v17764_v24 = vpack.c.bf16 %v10910_v16, %v10909_v29 }
0x25f1   :  { %18418 = vrcp.f32 %v10613_v26  ;;  %v10991_v26 = vld [vmem:[#allocation9 + $0x260] sm:$0xff] }
0x25f2   :  { %v17767_v10 = vpack.c.bf16 %v10992_v25, %v10991_v26 }
0x25f9   :  { %v18417_v1 = vpop.eup %18416 }
0x25fa   :  { %v10616_v19 = vmul.f32 %v18417_v1, %v15477_v31  ;;  %v10994_v31 = vld [vmem:[#allocation9 + $0x278] sm:$0xff] }
0x25fb   :  { %v18419_v21 = vpop.eup %18418  ;;  %v17770_v1 = vpack.c.bf16 %v10994_v31, %v10993_v30 }
0x25fc   :  { %v10617_v33 = vmul.f32 %v18419_v21, %v15478_v12  ;;  %v10620_v6 = vsel %vm10618_vm7, 1.0, %v10616_v19  ;;  %v11078_v12 = vld [vmem:[#allocation9 + $0x288] sm:$0xff]  ;;  %v11079_v21 = vld [vmem:[#allocation9 + $0x290] sm:$0xff] }
0x25fd   :  { %v10622_v36 = vmul.f32 %v10620_v6, %v10598_v62  ;;  %v10745_v62 = vld [vmem:[#allocation9 + $0x210] sm:$0xff]  ;;  %v17773_v19 = vpack.c.bf16 %v11078_v12, %v11077_v22  ;;  %v15486_v6 = vld [vmem:[#allocation9 + $0x2a0] ss:$0 sm:$0xff] }
0x25fe   :  { %v10621_v23 = vsel %vm10619_vm12, 1.0, %v10617_v33  ;;  %v17776_v33 = vpack.c.bf16 %v11080_v8, %v11079_v21  ;;  %v11474_v21 = vld [vmem:[#allocation9 + $0x2e8] sm:$0xff]  ;;  %v11475_v8 = vld [vmem:[#allocation9 + $0x2f0] sm:$0xff] }
0x25ff   :  { %v10623_v2 = vmul.f32 %v10621_v23, %v10599_v48  ;;  %v10733_v45 = vadd.f32 %v10726_v32, %v10622_v36  ;;  %v10746_v48 = vld [vmem:[#allocation9 + $0x218] sm:$0xff] }
0x2600   :  { %v17758_v3 = vpack.c.bf16 %v10746_v48, %v10745_v62 }
0x2601   :  { %v10734_v54 = vadd.f32 %v10730_v35, %v10623_v2  ;;  %v10747_v42 = vrot.slane %v10733_v45, 7  ;;  %v10737_v46 = vrot.slane %v10733_v45, 6  ;;  %v10985_v58 = vrot.slane %v10733_v45, 1 }
0x2602   :  { %v11071_v37 = vrot.slane %v10733_v45, 2 }
0x2603   :  { %v10748_v57 = vrot.slane %v10734_v54, 7  ;;  %v10751_v39 = vsel %vm373_vm3, 0.0, %v10747_v42  ;;  %v10738_v61 = vrot.slane %v10734_v54, 6  ;;  %v10741_v53 = vsel %vm361_vm5, 0.0, %v10737_v46 }
0x2604   :  { %v10911_v50 = vcombine.low %v10733_v45, %v10734_v54  ;;  %v10986_v28 = vrot.slane %v10734_v54, 1  ;;  %v11072_v60 = vrot.slane %v10734_v54, 2  ;;  %v10989_v59 = vsel %vm8507_vm6, %v10985_v58, 0.0 }
0x2605   :  { %v10752_v63 = vsel %vm373_vm3, 0.0, %v10748_v57  ;;  %v10742_v9 = vsel %vm361_vm5, 0.0, %v10738_v61  ;;  %v11075_v43 = vsel %vm361_vm5, %v11071_v37, 0.0 }
0x2606   :  { %v10759_v27 = vcombine.low %v10751_v39, %v10752_v63  ;;  %v10834_v17 = vcombine.low %v10741_v53, %v10742_v9  ;;  %v10990_v13 = vsel %vm8507_vm6, %v10986_v28, 0.0  ;;  %v11076_v11 = vsel %vm361_vm5, %v11072_v60, 0.0 }
0x2607   :  { %v10997_v14 = vcombine.low %v10989_v59, %v10990_v13  ;;  %v11083_v7 = vcombine.low %v11075_v43, %v11076_v11 }
0x2608   :  { %16941 = vmatmul.mubr.msk.f32.vlgmr.msra.gmra.mrb[50].mxu1 %vm267_vm9, %v10759_v27 }
0x2609   :  { %17756 = vmatpush3.bf16.msra.mxu1 %v17755_v55  ;;  %16951 = vmatprep.mubr.msk.f32.mxu1 %vm18695_vm0, %v18694_v0 }
0x260a   :  { %17757 = vmatprep.subr.bf16.mxu1 %v18696_v47 }
0x260d   :  { %17759 = vmatpush3.bf16.msra.mxu1 %v17758_v3 }
0x260e   :  { %17760 = vmatprep.subr.bf16.mxu1 %v18696_v47 }
0x2610   :  { %16952 = vmatmul.mubr.msk.f32.vlgmr.msra.gmra.mrb[50].mxu1 %vm267_vm9, %v10834_v17 }
0x2611   :  { %17762 = vmatpush3.bf16.msra.mxu1 %v17761_v15  ;;  %16962 = vmatprep.mubr.msk.f32.mxu1 %vm18695_vm0, %v18694_v0 }
0x2612   :  { %17763 = vmatprep.subr.bf16.mxu1 %v18696_v47 }
0x2615   :  { %17765 = vmatpush3.bf16.msra.mxu1 %v17764_v24 }
0x2616   :  { %17766 = vmatprep.subr.bf16.mxu1 %v18696_v47 }
0x2618   :  { %16963 = vmatmul.mubr.msk.f32.vlgmr.msra.gmra.mrb[50].mxu1 %vm267_vm9, %v10911_v50 }
0x2619   :  { %17768 = vmatpush3.bf16.msra.mxu1 %v17767_v10  ;;  %16973 = vmatprep.mubr.msk.f32.mxu1 %vm18695_vm0, %v18694_v0 }
0x261a   :  { %17769 = vmatprep.subr.bf16.mxu1 %v18696_v47 }
0x261d   :  { %17771 = vmatpush3.bf16.msra.mxu1 %v17770_v1 }
0x261e   :  { %17772 = vmatprep.subr.bf16.mxu1 %v18696_v47 }
0x2620   :  { %16974 = vmatmul.mubr.msk.f32.vlgmr.msra.gmra.mrb[50].mxu1 %vm267_vm9, %v10997_v14 }
0x2621   :  { %17774 = vmatpush3.bf16.msra.mxu1 %v17773_v19  ;;  %16984 = vmatprep.mubr.msk.f32.mxu1 %vm18695_vm0, %v18694_v0 }
0x2622   :  { %17775 = vmatprep.subr.bf16.mxu1 %v18696_v47 }
0x2625   :  { %17777 = vmatpush3.bf16.msra.mxu1 %v17776_v33  ;;  %v11476_v33 = vld [vmem:[#allocation9 + $0x2f8] sm:$0xff] }
0x2626   :  { %17042 = vmatprep.subr.mxu1 %v18694_v0 }
0x2628   :  { %16985 = vmatmul.mubr.msk.f32.vlgmr.msra.gmra.mrb[50].mxu1 %vm267_vm9, %v11083_v7 }
0x2629   :  { %17044 = vmatprep.mubr.msk.f32.mxu1 %vm18695_vm0, %v18694_v0 }
0x26fb   :  { %v11152_v36 = vpop.f32.mrb[50].mxu1 }
0x26fc   :  { %v11158_v32 = vcombine.high %v11152_v36, %v11152_v36  ;;  %v11165_v23 = vadd.f32 %v15486_v6, %v11152_v36  ;;  %v16986_v2 = vpop.f32.mrb[51].mxu1  ;;  %v11477_v36 = vld [vmem:[#allocation9 + $0x300] sm:$0xff] }
0x26fe   :  { %v11166_v35 = vadd.f32 %v15486_v6, %v11158_v32  ;;  %v11167_v45 = vsel %vm8686_vm13, %v11165_v23, 0.0  ;;  %v17791_v6 = vpack.c.bf16 %v11475_v8, %v11474_v21  ;;  %v17794_v32 = vpack.c.bf16 %v11477_v36, %v11476_v33  ;;  %v11632_v33 = vld [vmem:[#allocation9 + $0x308] sm:$0xff] }
0x26ff   :  { %v11168_v4 = vrot.slane %v11167_v45, 4 }
0x2700   :  { %v11174_v38 = vsel %vm8686_vm13, %v11166_v35, 0.0 }
0x2701   :  { %v11169_v54 = vadd.f32 %v11168_v4, %v11167_v45  ;;  %v11175_v42 = vrot.slane %v11174_v38, 4 }
0x2703   :  { %v11170_v46 = vrot.slane %v11169_v54, 2  ;;  %v11176_v58 = vadd.f32 %v11175_v42, %v11174_v38 }
0x2705   :  { %v11171_v37 = vadd.f32 %v11170_v46, %v11169_v54  ;;  %v11177_v57 = vrot.slane %v11176_v58, 2 }
0x2707   :  { %v11172_v39 = vrot.slane %v11171_v37, 1  ;;  %v11178_v55 = vadd.f32 %v11177_v57, %v11176_v58  ;;  %v15489_v58 = vld [vmem:[#allocation9 + $0x2a8] ss:$0 sm:$0xff] }
0x2709   :  { %v11173_v61 = vadd.f32 %v11172_v39, %v11171_v37  ;;  %v11179_v53 = vrot.slane %v11178_v55, 1  ;;  %v15490_v39 = vld [vmem:[#allocation9 + $0x2b0] ss:$0 sm:$0xff] }
0x270b   :  { %v11180_v50 = vadd.f32 %v11179_v53, %v11178_v55  ;;  %v11181_v28 = vmul.f32 0.25, %v11173_v61 }
0x270d   :  { %v11182_v60 = vmul.f32 0.25, %v11180_v50 }
0x270f   :  { %v11185_v63 = vsel %vm945_vm10, %v11182_v60, %v11181_v28 }
0x2710   :  { %16996 = vmatmul.mubr.msk.f32.vlgmr.msra.gmra.mrb[58].mxu0 %vm267_vm9, %v11185_v63 }
0x2711   :  { %17786 = vmatpush3.bf16.msra.mxu0 %v19711_v51  ;;  %17006 = vmatprep.mubr.msk.f32.mxu0 %vm18695_vm0, %v18694_v0 }
0x2712   :  { %17787 = vmatprep.subr.bf16.mxu0 %v18696_v47 }
0x2715   :  { %17789 = vmatpush3.bf16.msra.mxu0 %v19714_v34 }
0x2716   :  { %17790 = vmatprep.subr.bf16.mxu0 %v18696_v47 }
0x27e3   :  { %v11254_v9 = vpop.f32.mrb[58].mxu0 }
0x27e4   :  { %v11265_v59 = vrot.slane %v11254_v9, %v19046_v52  ;;  %v16997_v43 = vpop.f32.mrb[59].mxu0 }
0x27e6   :  { %v11266_v27 = vcombine.high %v11265_v59, %v11265_v59  ;;  %v11273_v62 = vrot.slane %v11265_v59, %v19046_v52 }
0x27e8   :  { %v11280_v48 = vrot.slane %v11266_v27, %v19046_v52  ;;  %v11284_v51 = vrot.slane %v11273_v62, %v19050_v56 }
0x27ea   :  { %v11288_v17 = vrot.slane %v11280_v48, %v19050_v56  ;;  %v11291_v13 = vsub.f32 %v11165_v23, %v11284_v51 }
0x27ec   :  { %v11292_v11 = vsub.f32 %v11166_v35, %v11288_v17  ;;  %v11293_v14 = vmul.f32 %v11291_v13, %v11291_v13 }
0x27ee   :  { %v11294_v7 = vmul.f32 %v11292_v11, %v11292_v11  ;;  %v11295_v34 = vsel %vm8686_vm13, %v11293_v14, 0.0 }
0x27ef   :  { %v11296_v3 = vrot.slane %v11295_v34, 4 }
0x27f0   :  { %v11302_v18 = vsel %vm8686_vm13, %v11294_v7, 0.0 }
0x27f1   :  { %v11297_v20 = vadd.f32 %v11296_v3, %v11295_v34  ;;  %v11303_v15 = vrot.slane %v11302_v18, 4 }
0x27f3   :  { %v11298_v29 = vrot.slane %v11297_v20, 2  ;;  %v11304_v16 = vadd.f32 %v11303_v15, %v11302_v18 }
0x27f5   :  { %v11299_v24 = vadd.f32 %v11298_v29, %v11297_v20  ;;  %v11305_v26 = vrot.slane %v11304_v16, 2 }
0x27f7   :  { %v11300_v25 = vrot.slane %v11299_v24, 1  ;;  %v11306_v10 = vadd.f32 %v11305_v26, %v11304_v16  ;;  %v11470_v26 = vld [vmem:[#allocation9 + $0x2c8] sm:$0xff] }
0x27f9   :  { %v11301_v30 = vadd.f32 %v11300_v25, %v11299_v24  ;;  %v11307_v31 = vrot.slane %v11306_v10, 1  ;;  %v11471_v25 = vld [vmem:[#allocation9 + $0x2d0] sm:$0xff] }
0x27fb   :  { %v11308_v1 = vadd.f32 %v11307_v31, %v11306_v10  ;;  %v11309_v22 = vmul.f32 0.25, %v11301_v30  ;;  %v17797_v31 = vpack.c.bf16 %v11471_v25, %v11470_v26  ;;  %v11996_v26 = vld [vmem:[#allocation10 + $0x68] sm:$0xff] }
0x27fd   :  { %v11310_v12 = vmul.f32 0.25, %v11308_v1 }
0x27ff   :  { %v11313_v19 = vsel %vm945_vm10, %v11310_v12, %v11309_v22  ;;  %v11472_v22 = vld [vmem:[#allocation9 + $0x2d8] sm:$0xff]  ;;  %v11473_v12 = vld [vmem:[#allocation9 + $0x2e0] sm:$0xff] }
0x2800   :  { %17007 = vmatmul.mubr.msk.f32.vlgmr.msra.gmra.mrb[60].mxu0 %vm267_vm9, %v11313_v19  ;;  %v17800_v21 = vpack.c.bf16 %v11473_v12, %v11472_v22 }
0x2801   :  { %17017 = vmatprep.mubr.msk.f32.mxu0 %vm18695_vm0, %v18694_v0  ;;  %17792 = vmatpush3.bf16.msra.mxu0 %v17791_v6  ;;  %v11633_v6 = vld [vmem:[#allocation9 + $0x310] sm:$0xff] }
0x2802   :  { %17793 = vmatprep.subr.bf16.mxu0 %v18696_v47  ;;  %v17803_v36 = vpack.c.bf16 %v11633_v6, %v11632_v33 }
0x2805   :  { %17795 = vmatpush3.bf16.msra.mxu0 %v17794_v32 }
0x2806   :  { %17796 = vmatprep.subr.bf16.mxu0 %v18696_v47 }
0x28d3   :  { %v11382_v23 = vpop.f32.mrb[60].mxu0 }
0x28d4   :  { %v11383_v2 = vadd.f32 1e-05, %v11382_v23  ;;  %v17008_v35 = vpop.f32.mrb[61].mxu0  ;;  %v11634_v23 = vld [vmem:[#allocation9 + $0x318] sm:$0xff] }
0x28d6   :  { %18420 = vrsqrt.f32 %v11383_v2  ;;  %v11635_v2 = vld [vmem:[#allocation9 + $0x320] sm:$0xff] }
0x28e0   :  { %v18421_v45 = vpop.eup %18420 }
0x28e1   :  { %v11394_v4 = vrot.slane %v18421_v45, %v19046_v52  ;;  %v17806_v45 = vpack.c.bf16 %v11635_v2, %v11634_v23  ;;  %v12102_v2 = vld [vmem:[#allocation10 + $0x5e0] sm:$0xff] }
0x28e3   :  { %v11395_v38 = vcombine.high %v11394_v4, %v11394_v4  ;;  %v11402_v54 = vrot.slane %v11394_v4, %v19046_v52 }
0x28e5   :  { %v11409_v42 = vrot.slane %v11395_v38, %v19046_v52  ;;  %v11413_v46 = vrot.slane %v11402_v54, %v19050_v56 }
0x28e7   :  { %v11417_v37 = vrot.slane %v11409_v42, %v19050_v56  ;;  %v11420_v57 = vmul.f32 %v11413_v46, %v11291_v13  ;;  %v11825_v46 = vld [vmem:[#allocation10 + $0x40] sm:$0xff] }
0x28e9   :  { %v11421_v55 = vmul.f32 %v11417_v37, %v11292_v11  ;;  %v11427_v61 = vmul.f32 %v15489_v58, %v11420_v57  ;;  %v11827_v37 = vld [vmem:[#allocation10 + $0x50] sm:$0xff] }
0x28eb   :  { %v11428_v53 = vmul.f32 %v15489_v58, %v11421_v55  ;;  %v11434_v50 = vadd.f32 %v15490_v39, %v11427_v61  ;;  %v11826_v58 = vld [vmem:[#allocation10 + $0x48] sm:$0xff] }
0x28ec   :  { %v17809_v57 = vpack.c.bf16 %v11826_v58, %v11825_v46  ;;  %v12107_v46 = vld [vmem:[#allocation10 + $0x608] sm:$0xff] }
0x28ed   :  { %v11436_v28 = vmin.f32 %v11434_v50, 20.0  ;;  %v11435_v60 = vadd.f32 %v15490_v39, %v11428_v53  ;;  %vm11454_vm5 = vcmp.gt.f32.partialorder %v11434_v50, 20.0  ;;  %v11828_v39 = vld [vmem:[#allocation10 + $0x58] sm:$0xff] }
0x28ee   :  { %v17812_v55 = vpack.c.bf16 %v11828_v39, %v11827_v37  ;;  %v15496_v53 = vld [vmem:[#allocation9 + $0x328] ss:$0 sm:$0xff] }
0x28ef   :  { %v11438_v63 = vmul.f32 1.442695, %v11436_v28  ;;  %v11437_v9 = vmin.f32 %v11435_v60, 20.0  ;;  %vm11455_vm13 = vcmp.gt.f32.partialorder %v11435_v60, 20.0 }
0x28f1   :  { %18422 = vpow2.f32 %v11438_v63  ;;  %v11440_v59 = vmul.f32 1.442695, %v11437_v9 }
0x28f3   :  { %18424 = vpow2.f32 %v11440_v59  ;;  %v11722_v59 = vld [vmem:[#allocation12] sm:$0xf] }
0x28fb   :  { %v18423_v43 = vpop.eup %18422 }
0x28fc   :  { %v11442_v27 = vadd.f32 1.0, %v18423_v43  ;;  %v18698_v43 = vmov 1983009808  }
0x28fd   :  { %v18425_v62 = vpop.eup %18424 }
0x28fe   :  { %v11443_v48 = vadd.f32 1.0, %v18425_v62  ;;  %v11444_v51 = vmul.f32 %v11442_v27, %v11442_v27  ;;  %v11802_v27 = vunpack.c.l.s4 %v18698_v43 }
0x2900   :  { %v11445_v17 = vmul.f32 %v11443_v48, %v11443_v48  ;;  %v11448_v14 = vadd.f32 1.0, %v11444_v51  ;;  %v15491_v11 = vadd.f32 -1.0, %v11444_v51  ;;  %v11803_v62 = vunpack.c.0.s8 %v11802_v27  ;;  %v11821_v48 = vld [vmem:[#allocation10 + $0x20] sm:$0xff]  ;;  %v11822_v51 = vld [vmem:[#allocation10 + $0x28] sm:$0xff] }
0x2902   :  { %v11449_v13 = vadd.f32 1.0, %v11445_v17  ;;  %18426 = vrcp.f32 %v11448_v14  ;;  %v15492_v34 = vadd.f32 -1.0, %v11445_v17  ;;  %v20001_v17 = vsub.s32 %v11803_v62, %v19043_v49 }
0x2903   :  { %v17815_v14 = vpack.c.bf16 %v11822_v51, %v11821_v48 }
0x2904   :  { %18428 = vrcp.f32 %v11449_v13  ;;  %v11823_v13 = vld [vmem:[#allocation10 + $0x30] sm:$0xff] }
0x290c   :  { %v18427_v7 = vpop.eup %18426 }
0x290d   :  { %v11452_v3 = vmul.f32 %v18427_v7, %v15491_v11  ;;  %v11824_v11 = vld [vmem:[#allocation10 + $0x38] sm:$0xff] }
0x290e   :  { %v18429_v18 = vpop.eup %18428 }
0x290f   :  { %v11453_v20 = vmul.f32 %v18429_v18, %v15492_v34  ;;  %v11456_v15 = vsel %vm11454_vm5, 1.0, %v11452_v3  ;;  %v17818_v18 = vpack.c.bf16 %v11824_v11, %v11823_v13 }
0x2910   :  { %v11458_v29 = vmul.f32 %v11456_v15, %v11434_v50 }
0x2911   :  { %v11457_v16 = vsel %vm11455_vm13, 1.0, %v11453_v20 }
0x2912   :  { %v11459_v24 = vmul.f32 %v11457_v16, %v11435_v60  ;;  %v11460_v10 = vadd.f32 %v11458_v29, %v19829_v44  ;;  %v20015_v16 = vsub.s32 1, %v19043_v49  ;;  %v11998_v49 = vld [vmem:[#allocation10 + $0x78] sm:$0xff] }
0x2914   :  { %v11461_v30 = vadd.f32 %v11459_v24, %v19831_v5  ;;  %v11464_v8 = vrot.slane %v11460_v10, 7  ;;  %v11626_v4 = vrot.slane %v11460_v10, 1  ;;  %v11995_v24 = vld [vmem:[#allocation10 + $0x60] sm:$0xff] }
0x2915   :  { %v17821_v22 = vpack.c.bf16 %v11996_v26, %v11995_v24 }
0x2916   :  { %v11478_v1 = vcombine.low %v11460_v10, %v11461_v30  ;;  %v11465_v19 = vrot.slane %v11461_v30, 7  ;;  %v11468_v5 = vsel %vm373_vm3, 0.0, %v11464_v8  ;;  %v11627_v35 = vrot.slane %v11461_v30, 1 }
0x2917   :  { %v11630_v54 = vsel %vm8507_vm6, %v11626_v4, 0.0  ;;  %v12104_v4 = vld [vmem:[#allocation10 + $0x5f0] sm:$0xff] }
0x2918   :  { %17018 = vmatmul.mubr.msk.f32.vlgmr.msra.gmra.mrb[62].mxu0 %vm267_vm9, %v11478_v1  ;;  %v11469_v44 = vsel %vm373_vm3, 0.0, %v11465_v19  ;;  %v11631_v38 = vsel %vm8507_vm6, %v11627_v35, 0.0  ;;  %v11997_v19 = vld [vmem:[#allocation10 + $0x70] sm:$0xff]  ;;  %v12103_v35 = vld [vmem:[#allocation10 + $0x5e8] sm:$0xff]  ;;  %vm12108_vm6 = vcmask 517120  }
0x2919   :  { %17798 = vmatpush3.bf16.msra.mxu0 %v17797_v31  ;;  %17028 = vmatprep.mubr.msk.f32.mxu0 %vm18695_vm0, %v18694_v0  ;;  %v11553_v32 = vcombine.low %v11468_v5, %v11469_v44  ;;  %v11638_v42 = vcombine.low %v11630_v54, %v11631_v38  ;;  %v17824_v33 = vpack.c.bf16 %v11998_v49, %v11997_v19  ;;  %v12404_v5 = vld [vmem:[#allocation10 + $0x210] sm:$0xff]  ;;  %v12105_v38 = vld [vmem:[#allocation10 + $0x5f8] sm:$0xff] }
0x291a   :  { %17799 = vmatprep.subr.bf16.mxu0 %v18696_v47  ;;  %v20047_v54 = vpack.c.bf16 %v12105_v38, %v12104_v4 }
0x291d   :  { %17801 = vmatpush3.bf16.msra.mxu0 %v17800_v21 }
0x291e   :  { %17802 = vmatprep.subr.bf16.mxu0 %v18696_v47 }
0x2920   :  { %17029 = vmatmul.mubr.msk.f32.vlgmr.msra.gmra.mrb[62].mxu0 %vm267_vm9, %v11553_v32  ;;  %v12101_v32 = vld [vmem:[#allocation10 + $0x5d8] sm:$0xff] }
0x2921   :  { %17804 = vmatpush3.bf16.msra.mxu0 %v17803_v36  ;;  %17039 = vmatprep.mubr.msk.f32.mxu0 %vm18695_vm0, %v18694_v0  ;;  %v12100_v36 = vld [vmem:[#allocation10 + $0x5d0] sm:$0xff] }
0x2922   :  { %17805 = vmatprep.subr.bf16.mxu0 %v18696_v47  ;;  %v20039_v23 = vpack.c.bf16 %v12101_v32, %v12100_v36 }
0x2925   :  { %17807 = vmatpush3.bf16.msra.mxu0 %v17806_v45  ;;  %v20043_v45 = vpack.c.bf16 %v12103_v35, %v12102_v2 }
0x2926   :  { %17808 = vmatprep.subr.bf16.mxu0 %v18696_v47 }
0x2928   :  { %17040 = vmatmul.mubr.msk.f32.vlgmr.msra.gmra.mrb[62].mxu0 %vm267_vm9, %v11638_v42  ;;  %v12106_v42 = vld [vmem:[#allocation10 + $0x600] sm:$0xff] }
0x2929   :  { %17055 = vmatprep.mubr.msk.f32.mxu0 %vm18695_vm0, %v18694_v0  ;;  %17810 = vmatpush3.bf16.msra.mxu0 %v17809_v57  ;;  %v20050_v58 = vpack.c.bf16 %v12107_v46, %v12106_v42  ;;  %v15501_v57 = vld [vmem:[#allocation10 + $0xa0] ss:$0 sm:$0xff] }
0x292a   :  { %17811 = vmatprep.subr.bf16.mxu0 %v18696_v47 }
0x292d   :  { %17813 = vmatpush3.bf16.msra.mxu0 %v17812_v55 }
0x292e   :  { %17814 = vmatprep.subr.bf16.mxu0 %v18696_v47 }
0x29fb   :  { %v11707_v61 = vpop.f32.mrb[62].mxu0 }
0x29fc   :  { %v11713_v50 = vcombine.high %v11707_v61, %v11707_v61  ;;  %v17041_v28 = vpop.f32.mrb[63].mxu0  ;;  %v11720_v60 = vadd.f32 %v15496_v53, %v11707_v61 }
0x29fe   :  { %v11721_v63 = vadd.f32 %v15496_v53, %v11713_v50 }
0x2a00   :  { %v11725_v9 = vcombine.low %v11720_v60, %v11721_v63 }
0x2a02   :  { %17043 = vmatpush3.msra.mxu1 %v11725_v9 }
0x2a03   :  { %17045 = vmatmul.mubr.msk.f32.vlgmr.msra.gmra.mrb[52].mxu1 %vm172_vm1, %v11722_v59  ;;  %17826 = vmatprep.subr.bf16.mxu1 %v18696_v47 }
0x2a04   :  { %17096 = vmatprep.mubr.msk.f32.mxu1 %vm18695_vm0, %v18694_v0  ;;  %17828 = vmatpush3.bf16.msra.mxu1 %v20039_v23 }
0x2a05   :  { %17829 = vmatprep.subr.bf16.mxu1 %v18696_v47 }
0x2a08   :  { %17831 = vmatpush3.bf16.msra.mxu1 %v20043_v45 }
0x2a09   :  { %17832 = vmatprep.subr.bf16.mxu1 %v18696_v47 }
0x2a0c   :  { %17834 = vmatpush3.bf16.msra.mxu1 %v20047_v54 }
0x2a0d   :  { %17835 = vmatprep.subr.bf16.mxu1 %v18696_v47 }
0x2a10   :  { %17837 = vmatpush3.bf16.msra.mxu1 %v20050_v58 }
0x2a11   :  { %17838 = vmatprep.subr.bf16.mxu1 %v18696_v47 }
0x2ad6   :  { %v20003_v7 = vpop.f32.mrb[52].mxu1 }
0x2ad7   :  { %v11807_v34 = vrot.slane %v20003_v7, %v20001_v17  ;;  %v17046_v3 = vpop.f32.mrb[53].mxu1  ;;  %17056 = vmatmul.mubr.msk.f32.vlgmr.msra.gmra.mrb[64].mxu0 %vm267_vm9, %v20003_v7 }
0x2ad8   :  { %17816 = vmatpush3.bf16.msra.mxu0 %v17815_v14  ;;  %17066 = vmatprep.mubr.msk.f32.mxu0 %vm18695_vm0, %v18694_v0 }
0x2ad9   :  { %v11808_v20 = vcombine.high %v11807_v34, %v11807_v34  ;;  %v11812_v15 = vrot.slane %v11807_v34, %v19050_v56  ;;  %17817 = vmatprep.subr.bf16.mxu0 %v18696_v47  ;;  %v11986_v1 = vrot.slane %v11807_v34, %v20015_v16 }
0x2adb   :  { %v11816_v29 = vrot.slane %v11808_v20, %v19050_v56  ;;  %v11819_v25 = vsel %vm373_vm3, 0.0, %v11812_v15  ;;  %v11990_v30 = vrot.slane %v11808_v20, %v20015_v16  ;;  %v11993_v8 = vsel %vm373_vm3, %v11986_v1, 0.0 }
0x2adc   :  { %17819 = vmatpush3.bf16.msra.mxu0 %v17818_v18 }
0x2add   :  { %v11820_v10 = vsel %vm373_vm3, 0.0, %v11816_v29  ;;  %17820 = vmatprep.subr.bf16.mxu0 %v18696_v47  ;;  %v11994_v21 = vsel %vm373_vm3, %v11990_v30, 0.0 }
0x2ade   :  { %v11903_v31 = vcombine.low %v11819_v25, %v11820_v10  ;;  %v12001_v6 = vcombine.low %v11993_v8, %v11994_v21 }
0x2ae0   :  { %v11910_v12 = vrot.slane %v11903_v31, %v20001_v17  ;;  %v12008_v44 = vrot.slane %v12001_v6, %v20001_v17 }
0x2ae2   :  { %17067 = vmatmul.mubr.msk.f32.vlgmr.msra.gmra.mrb[64].mxu0 %vm267_vm9, %v11910_v12 }
0x2ae3   :  { %17822 = vmatpush3.bf16.msra.mxu0 %v17821_v22  ;;  %17077 = vmatprep.mubr.msk.f32.mxu0 %vm18695_vm0, %v18694_v0 }
0x2ae4   :  { %17823 = vmatprep.subr.bf16.mxu0 %v18696_v47 }
0x2ae7   :  { %17825 = vmatpush3.bf16.msra.mxu0 %v17824_v33 }
0x2ae8   :  { %17118 = vmatprep.subr.mxu0 %v18694_v0 }
0x2aea   :  { %17078 = vmatmul.mubr.msk.f32.vlgmr.msra.gmra.mrb[64].mxu0 %vm267_vm9, %v12008_v44 }
0x2aeb   :  { %17119 = vmatpush3.msra.mxu0 %v12404_v5  ;;  %17120 = vmatprep.mubr.msk.f32.mxu0 %vm18695_vm0, %v18694_v0 }
0x2aec   :  { %17850 = vmatprep.subr.bf16.mxu0 %v18696_v47 }
0x2aee   :  { %17121 = vmatmul.mubr.msk.f32.vlgmr.msra.gmra.mrb[66].mxu0 %vm172_vm1, %v19067_v41 }
0x2aef   :  { %17139 = vmatprep.mubr.msk.f32.mxu0 %vm18695_vm0, %v18694_v0 }
0x2bbd   :  { %v12077_v37 = vpop.f32.mrb[64].mxu0 }
0x2bbe   :  { %v12089_v39 = vrot.slane %v12077_v37, %v20001_v17  ;;  %v17079_v55 = vpop.f32.mrb[65].mxu0 }
0x2bc0   :  { %v12090_v61 = vcombine.high %v12089_v39, %v12089_v39  ;;  %v12098_v53 = vadd.f32 %v15501_v57, %v12089_v39 }
0x2bc1   :  { %v20056_v50 = vpop.f32.mrb[66].mxu0 }
0x2bc2   :  { %v12099_v28 = vadd.f32 %v15501_v57, %v12090_v61  ;;  %v12109_v60 = vsel %vm12108_vm6, %v12098_v53, 0.0  ;;  %v17122_v63 = vpop.f32.mrb[67].mxu0  ;;  %v12537_v61 = vld [vmem:[#allocation10 + $0x138] sm:$0xff] }
0x2bc3   :  { %v12110_v9 = vrot.slane %v12109_v60, 4  ;;  %v12540_v63 = vld [vmem:[#allocation10 + $0x150] sm:$0xff] }
0x2bc4   :  { %v12116_v59 = vsel %vm12108_vm6, %v12099_v28, 0.0 }
0x2bc5   :  { %v12111_v43 = vadd.f32 %v12110_v9, %v12109_v60  ;;  %v12117_v27 = vrot.slane %v12116_v59, 4 }
0x2bc7   :  { %v12112_v62 = vrot.slane %v12111_v43, 2  ;;  %v12118_v48 = vadd.f32 %v12117_v27, %v12116_v59  ;;  %v12541_v59 = vld [vmem:[#allocation10 + $0x158] sm:$0xff] }
0x2bc9   :  { %v12113_v51 = vadd.f32 %v12112_v62, %v12111_v43  ;;  %v12119_v14 = vrot.slane %v12118_v48, 2  ;;  %v12542_v43 = vld [vmem:[#allocation10 + $0x160] sm:$0xff]  ;;  %v12543_v62 = vld [vmem:[#allocation10 + $0x168] sm:$0xff] }
0x2bca   :  { %v17857_v27 = vpack.c.bf16 %v12542_v43, %v12541_v59 }
0x2bcb   :  { %v12114_v13 = vrot.slane %v12113_v51, 1  ;;  %v12120_v11 = vadd.f32 %v12119_v14, %v12118_v48  ;;  %v12544_v48 = vld [vmem:[#allocation10 + $0x170] sm:$0xff] }
0x2bcd   :  { %v12115_v34 = vadd.f32 %v12114_v13, %v12113_v51  ;;  %v12121_v3 = vrot.slane %v12120_v11, 1  ;;  %v17860_v51 = vpack.c.bf16 %v12544_v48, %v12543_v62 }
0x2bcf   :  { %v12122_v18 = vadd.f32 %v12121_v3, %v12120_v11  ;;  %v12124_v20 = vmul.f32 0.5, %v12115_v34 }
0x2bd1   :  { %v12125_v15 = vmul.f32 0.5, %v12122_v18 }
0x2bd3   :  { %v12128_v29 = vsel %vm945_vm10, %v12125_v15, %v12124_v20 }
0x2bd4   :  { %17097 = vmatmul.mubr.msk.f32.vlgmr.msra.gmra.mrb[54].mxu1 %vm12129_vm14, %v12128_v29 }
0x2bd5   :  { %17840 = vmatpush3.bf16.msra.mxu1 %v20039_v23  ;;  %17115 = vmatprep.mubr.msk.f32.mxu1 %vm18695_vm0, %v18694_v0 }
0x2bd6   :  { %17841 = vmatprep.subr.bf16.mxu1 %v18696_v47 }
0x2bd9   :  { %17843 = vmatpush3.bf16.msra.mxu1 %v20043_v45 }
0x2bda   :  { %17844 = vmatprep.subr.bf16.mxu1 %v18696_v47 }
0x2bdd   :  { %17846 = vmatpush3.bf16.msra.mxu1 %v20047_v54 }
0x2bde   :  { %17847 = vmatprep.subr.bf16.mxu1 %v18696_v47 }
0x2be1   :  { %17849 = vmatpush3.bf16.msra.mxu1 %v20050_v58 }
0x2be2   :  { %17886 = vmatprep.subr.bf16.mxu1 %v18696_v47 }
0x2ca7   :  { %v12198_v24 = vpop.f32.mrb[54].mxu1 }
0x2ca8   :  { %v12209_v26 = vrot.slane %v12198_v24, %v19046_v52  ;;  %v17098_v25 = vpop.f32.mrb[55].mxu1  ;;  %v15504_v24 = vld [vmem:[#allocation10 + $0xa8] ss:$0 sm:$0xff] }
0x2caa   :  { %v12210_v10 = vcombine.high %v12209_v26, %v12209_v26  ;;  %v12217_v30 = vrot.slane %v12209_v26, %v19046_v52 }
0x2cac   :  { %v12224_v31 = vrot.slane %v12210_v10, %v19046_v52  ;;  %v12228_v1 = vrot.slane %v12217_v30, %v19050_v56  ;;  %v15505_v10 = vld [vmem:[#allocation10 + $0xb0] ss:$0 sm:$0xff] }
0x2cae   :  { %v12232_v22 = vrot.slane %v12224_v31, %v19050_v56  ;;  %v20077_v12 = vsub.f32 %v12098_v53, %v12228_v1  ;;  %v12538_v53 = vld [vmem:[#allocation10 + $0x140] sm:$0xff] }
0x2caf   :  { %v17851_v60 = vpack.c.bf16 %v12538_v53, %v12537_v61 }
0x2cb0   :  { %v20079_v19 = vsub.f32 %v12099_v28, %v12232_v22  ;;  %v12237_v49 = vmul.f32 %v20077_v12, %v20077_v12  ;;  %v12539_v28 = vld [vmem:[#allocation10 + $0x148] sm:$0xff] }
0x2cb1   :  { %17852 = vmatpush3.bf16.msra.mxu0 %v17851_v60  ;;  %v17854_v9 = vpack.c.bf16 %v12540_v63, %v12539_v28 }
0x2cb2   :  { %v12238_v21 = vmul.f32 %v20079_v19, %v20079_v19  ;;  %v12239_v8 = vsel %vm12108_vm6, %v12237_v49, 0.0  ;;  %17853 = vmatprep.subr.bf16.mxu0 %v18696_v47 }
0x2cb3   :  { %v12240_v33 = vrot.slane %v12239_v8, 4 }
0x2cb4   :  { %v12246_v6 = vsel %vm12108_vm6, %v12238_v21, 0.0 }
0x2cb5   :  { %v12241_v44 = vadd.f32 %v12240_v33, %v12239_v8  ;;  %v12247_v5 = vrot.slane %v12246_v6, 4  ;;  %17855 = vmatpush3.bf16.msra.mxu0 %v17854_v9 }
0x2cb6   :  { %17856 = vmatprep.subr.bf16.mxu0 %v18696_v47 }
0x2cb7   :  { %v12242_v36 = vrot.slane %v12241_v44, 2  ;;  %v12248_v32 = vadd.f32 %v12247_v5, %v12246_v6 }
0x2cb9   :  { %v12243_v2 = vadd.f32 %v12242_v36, %v12241_v44  ;;  %v12249_v35 = vrot.slane %v12248_v32, 2  ;;  %17858 = vmatpush3.bf16.msra.mxu0 %v17857_v27 }
0x2cba   :  { %17859 = vmatprep.subr.bf16.mxu0 %v18696_v47 }
0x2cbb   :  { %v12244_v4 = vrot.slane %v12243_v2, 1  ;;  %v12250_v38 = vadd.f32 %v12249_v35, %v12248_v32  ;;  %v15508_v35 = vld [vmem:[#allocation10 + $0x218] ss:$0 sm:$0xff] }
0x2cbd   :  { %v12245_v42 = vadd.f32 %v12244_v4, %v12243_v2  ;;  %v12251_v46 = vrot.slane %v12250_v38, 1  ;;  %17861 = vmatpush3.bf16.msra.mxu0 %v17860_v51  ;;  %v12529_v51 = vld [vmem:[#allocation10 + $0xf8] sm:$0xff] }
0x2cbe   :  { %17862 = vmatprep.subr.bf16.mxu0 %v18696_v47 }
0x2cbf   :  { %v12252_v37 = vadd.f32 %v12251_v46, %v12250_v38  ;;  %v12253_v57 = vmul.f32 0.5, %v12245_v42 }
0x2cc1   :  { %v12254_v39 = vmul.f32 0.5, %v12252_v37 }
0x2cc3   :  { %v12257_v55 = vsel %vm945_vm10, %v12254_v39, %v12253_v57 }
0x2cc4   :  { %17116 = vmatmul.mubr.msk.f32.vlgmr.msra.gmra.mrb[56].mxu1 %vm12129_vm14, %v12257_v55 }
0x2cc5   :  { %17888 = vmatpush3.bf16.msra.mxu1 %v20039_v23  ;;  %17196 = vmatprep.mubr.msk.f32.mxu1 %vm18695_vm0, %v18694_v0 }
0x2cc6   :  { %17889 = vmatprep.subr.bf16.mxu1 %v18696_v47 }
0x2cc9   :  { %17891 = vmatpush3.bf16.msra.mxu1 %v20043_v45 }
0x2cca   :  { %17892 = vmatprep.subr.bf16.mxu1 %v18696_v47 }
0x2ccd   :  { %17894 = vmatpush3.bf16.msra.mxu1 %v20047_v54 }
0x2cce   :  { %17895 = vmatprep.subr.bf16.mxu1 %v18696_v47 }
0x2cd1   :  { %17897 = vmatpush3.bf16.msra.mxu1 %v20050_v58 }
0x2cd2   :  { %17898 = vmatprep.subr.bf16.mxu1 %v18696_v47 }
0x2d97   :  { %v12326_v14 = vpop.f32.mrb[56].mxu1 }
0x2d98   :  { %v12327_v13 = vadd.f32 1e-05, %v12326_v14  ;;  %v17117_v11 = vpop.f32.mrb[57].mxu1  ;;  %v12530_v14 = vld [vmem:[#allocation10 + $0x100] sm:$0xff] }
0x2d9a   :  { %18430 = vrsqrt.f32 %v12327_v13 }
0x2da4   :  { %v18431_v34 = vpop.eup %18430 }
0x2da5   :  { %v12338_v3 = vrot.slane %v18431_v34, %v19046_v52 }
0x2da7   :  { %v12339_v18 = vcombine.high %v12338_v3, %v12338_v3  ;;  %v12346_v20 = vrot.slane %v12338_v3, %v19046_v52 }
0x2da9   :  { %v12353_v15 = vrot.slane %v12339_v18, %v19046_v52  ;;  %v12357_v29 = vrot.slane %v12346_v20, %v19050_v56  ;;  %v17863_v20 = vpack.c.bf16 %v12530_v14, %v12529_v51 }
0x2dab   :  { %v12361_v26 = vrot.slane %v12353_v15, %v19050_v56  ;;  %v12364_v25 = vmul.f32 %v12357_v29, %v20077_v12 }
0x2dad   :  { %v12365_v30 = vmul.f32 %v12361_v26, %v20079_v19  ;;  %v12371_v31 = vmul.f32 %v15504_v24, %v12364_v25  ;;  %v12477_v19 = vadd.f32 %v15508_v35, %v20056_v50  ;;  %v12532_v26 = vld [vmem:[#allocation10 + $0x110] sm:$0xff]  ;;  %v12721_v35 = vld [vmem:[#allocation10 + $0x188] sm:$0xff] }
0x2daf   :  { %v12372_v1 = vmul.f32 %v15504_v24, %v12365_v30  ;;  %v12378_v22 = vadd.f32 %v15505_v10, %v12371_v31  ;;  %v12487_v42 = vrot.slane %v12477_v19, %v19046_v52  ;;  %v12531_v24 = vld [vmem:[#allocation10 + $0x108] sm:$0xff]  ;;  %v12723_v19 = vld [vmem:[#allocation10 + $0x198] sm:$0xff] }
0x2db1   :  { %v12379_v49 = vadd.f32 %v15505_v10, %v12372_v1  ;;  %v12380_v21 = vmin.f32 %v12378_v22, 20.0  ;;  %v12488_v46 = vcombine.high %v12487_v42, %v12487_v42  ;;  %v12495_v39 = vrot.slane %v12487_v42, %v19046_v52 }
0x2db2   :  { %vm12398_vm15 = vcmp.gt.f32.partialorder %v12378_v22, 20.0 }
0x2db3   :  { %v12381_v8 = vmin.f32 %v12379_v49, 20.0  ;;  %v12382_v33 = vmul.f32 1.442695, %v12380_v21  ;;  %v12502_v28 = vrot.slane %v12488_v46, %v19046_v52  ;;  %v12506_v50 = vrot.slane %v12495_v39, %v19050_v56  ;;  %v12534_v21 = vld [vmem:[#allocation10 + $0x120] sm:$0xff]  ;;  %v12725_v46 = vld [vmem:[#allocation10 + $0x1a8] sm:$0xff] }
0x2db4   :  { %vm12399_vm8 = vcmp.gt.f32.partialorder %v12379_v49, 20.0 }
0x2db5   :  { %18432 = vpow2.f32 %v12382_v33  ;;  %v12384_v6 = vmul.f32 1.442695, %v12381_v8  ;;  %v12510_v43 = vrot.slane %v12502_v28, %v19050_v56  ;;  %v12535_v33 = vld [vmem:[#allocation10 + $0x128] sm:$0xff] }
0x2db7   :  { %18434 = vpow2.f32 %v12384_v6  ;;  %v12536_v6 = vld [vmem:[#allocation10 + $0x130] sm:$0xff] }
0x2dbf   :  { %v18433_v44 = vpop.eup %18432 }
0x2dc0   :  { %v12386_v5 = vadd.f32 1.0, %v18433_v44  ;;  %v17872_v44 = vpack.c.bf16 %v12536_v6, %v12535_v33 }
0x2dc1   :  { %v18435_v36 = vpop.eup %18434 }
0x2dc2   :  { %v12387_v32 = vadd.f32 1.0, %v18435_v36  ;;  %v12388_v2 = vmul.f32 %v12386_v5, %v12386_v5  ;;  %v12719_v5 = vld [vmem:[#allocation10 + $0x178] sm:$0xff]  ;;  %v12720_v36 = vld [vmem:[#allocation10 + $0x180] sm:$0xff] }
0x2dc4   :  { %v12389_v12 = vmul.f32 %v12387_v32, %v12387_v32  ;;  %v12392_v4 = vadd.f32 1.0, %v12388_v2  ;;  %v15506_v37 = vadd.f32 -1.0, %v12388_v2  ;;  %v17875_v32 = vpack.c.bf16 %v12720_v36, %v12719_v5 }
0x2dc6   :  { %v12393_v38 = vadd.f32 1.0, %v12389_v12  ;;  %18436 = vrcp.f32 %v12392_v4  ;;  %v15507_v55 = vadd.f32 -1.0, %v12389_v12  ;;  %v12722_v12 = vld [vmem:[#allocation10 + $0x190] sm:$0xff] }
0x2dc7   :  { %v17878_v4 = vpack.c.bf16 %v12722_v12, %v12721_v35 }
0x2dc8   :  { %18438 = vrcp.f32 %v12393_v38  ;;  %v12724_v38 = vld [vmem:[#allocation10 + $0x1a0] sm:$0xff] }
0x2dc9   :  { %v17881_v42 = vpack.c.bf16 %v12724_v38, %v12723_v19 }
0x2dd0   :  { %v18437_v57 = vpop.eup %18436 }
0x2dd1   :  { %v12396_v61 = vmul.f32 %v18437_v57, %v15506_v37  ;;  %v12726_v37 = vld [vmem:[#allocation10 + $0x1b0] sm:$0xff] }
0x2dd2   :  { %v18439_v53 = vpop.eup %18438  ;;  %v17884_v57 = vpack.c.bf16 %v12726_v37, %v12725_v46 }
0x2dd3   :  { %v12397_v60 = vmul.f32 %v18439_v53, %v15507_v55  ;;  %v12400_v63 = vsel %vm12398_vm15, 1.0, %v12396_v61  ;;  %v15513_v61 = vld [vmem:[#allocation10 + $0x1f8] ss:$0 sm:$0xff] }
0x2dd4   :  { %v12402_v9 = vmul.f32 %v12400_v63, %v12378_v22  ;;  %v17866_v22 = vpack.c.bf16 %v12532_v26, %v12531_v24 }
0x2dd5   :  { %v12401_v59 = vsel %vm12399_vm8, 1.0, %v12397_v60 }
0x2dd6   :  { %v12403_v27 = vmul.f32 %v12401_v59, %v12379_v49  ;;  %v12513_v62 = vadd.f32 %v12506_v50, %v12402_v9  ;;  %v12533_v49 = vld [vmem:[#allocation10 + $0x118] sm:$0xff] }
0x2dd7   :  { %v17869_v8 = vpack.c.bf16 %v12534_v21, %v12533_v49 }
0x2dd8   :  { %v12514_v48 = vadd.f32 %v12510_v43, %v12403_v27  ;;  %v12520_v13 = vrot.slane %v12513_v62, %v19050_v56  ;;  %v12710_v11 = vrot.slane %v12513_v62, %v20015_v16 }
0x2dda   :  { %v12545_v34 = vcombine.low %v12513_v62, %v12514_v48  ;;  %v12524_v3 = vrot.slane %v12514_v48, %v19050_v56  ;;  %v12714_v18 = vrot.slane %v12514_v48, %v20015_v16  ;;  %v12527_v15 = vsel %vm373_vm3, 0.0, %v12520_v13 }
0x2ddb   :  { %v12717_v10 = vsel %vm373_vm3, %v12710_v11, 0.0 }
0x2ddc   :  { %v12552_v29 = vrot.slane %v12545_v34, %v20001_v17  ;;  %v12528_v25 = vsel %vm373_vm3, 0.0, %v12524_v3  ;;  %v12718_v30 = vsel %vm373_vm3, %v12714_v18, 0.0 }
0x2ddd   :  { %v12627_v31 = vcombine.low %v12527_v15, %v12528_v25  ;;  %v12729_v1 = vcombine.low %v12717_v10, %v12718_v30 }
0x2dde   :  { %17140 = vmatmul.mubr.msk.f32.vlgmr.msra.gmra.mrb[68].mxu0 %vm12129_vm14, %v12552_v29 }
0x2ddf   :  { %17864 = vmatpush3.bf16.msra.mxu0 %v17863_v20  ;;  %17158 = vmatprep.mubr.msk.f32.mxu0 %vm18695_vm0, %v18694_v0  ;;  %v12634_v2 = vrot.slane %v12627_v31, %v20001_v17  ;;  %v12736_v39 = vrot.slane %v12729_v1, %v20001_v17 }
0x2de0   :  { %17865 = vmatprep.subr.bf16.mxu0 %v18696_v47 }
0x2de3   :  { %17867 = vmatpush3.bf16.msra.mxu0 %v17866_v22 }
0x2de4   :  { %17868 = vmatprep.subr.bf16.mxu0 %v18696_v47 }
0x2de7   :  { %17870 = vmatpush3.bf16.msra.mxu0 %v17869_v8 }
0x2de8   :  { %17871 = vmatprep.subr.bf16.mxu0 %v18696_v47 }
0x2deb   :  { %17873 = vmatpush3.bf16.msra.mxu0 %v17872_v44 }
0x2dec   :  { %17874 = vmatprep.subr.bf16.mxu0 %v18696_v47 }
0x2dee   :  { %17159 = vmatmul.mubr.msk.f32.vlgmr.msra.gmra.mrb[68].mxu0 %vm12129_vm14, %v12634_v2 }
0x2def   :  { %17876 = vmatpush3.bf16.msra.mxu0 %v17875_v32  ;;  %17177 = vmatprep.mubr.msk.f32.mxu0 %vm18695_vm0, %v18694_v0 }
0x2df0   :  { %17877 = vmatprep.subr.bf16.mxu0 %v18696_v47 }
0x2df3   :  { %17879 = vmatpush3.bf16.msra.mxu0 %v17878_v4 }
0x2df4   :  { %17880 = vmatprep.subr.bf16.mxu0 %v18696_v47 }
0x2df7   :  { %17882 = vmatpush3.bf16.msra.mxu0 %v17881_v42 }
0x2df8   :  { %17883 = vmatprep.subr.bf16.mxu0 %v18696_v47 }
0x2dfb   :  { %17885 = vmatpush3.bf16.msra.mxu0 %v17884_v57  ;;  %v13121_v57 = vld [vmem:[#allocation10 + $0x220] sm:$0xff] }
0x2dfc   :  { %17952 = vmatprep.subr.bf16.mxu0 %v18696_v47 }
0x2dfe   :  { %17178 = vmatmul.mubr.msk.f32.vlgmr.msra.gmra.mrb[68].mxu0 %vm12129_vm14, %v12736_v39  ;;  %v13122_v39 = vld [vmem:[#allocation10 + $0x228] sm:$0xff] }
0x2dff   :  { %17954 = vmatpush3.bf16.msra.mxu0 %v20039_v23  ;;  %17302 = vmatprep.mubr.msk.f32.mxu0 %vm18695_vm0, %v18694_v0 }
0x2e00   :  { %17955 = vmatprep.subr.bf16.mxu0 %v18696_v47 }
0x2e03   :  { %17957 = vmatpush3.bf16.msra.mxu0 %v20043_v45 }
0x2e04   :  { %17958 = vmatprep.subr.bf16.mxu0 %v18696_v47 }
0x2e07   :  { %17960 = vmatpush3.bf16.msra.mxu0 %v20047_v54 }
0x2e08   :  { %17961 = vmatprep.subr.bf16.mxu0 %v18696_v47 }
0x2e0b   :  { %17963 = vmatpush3.bf16.msra.mxu0 %v20050_v58 }
0x2e0c   :  { %17964 = vmatprep.subr.bf16.mxu0 %v18696_v47 }
0x2ed1   :  { %v12805_v55 = vpop.f32.mrb[68].mxu0 }
0x2ed2   :  { %v12817_v53 = vrot.slane %v12805_v55, %v20001_v17  ;;  %v17179_v28 = vpop.f32.mrb[69].mxu0 }
0x2ed3   :  { %v17911_v28 = vpack.c.bf16 %v13122_v39, %v13121_v57 }
0x2ed4   :  { %v12818_v60 = vcombine.high %v12817_v53, %v12817_v53  ;;  %v12826_v63 = vadd.f32 %v15513_v61, %v12817_v53 }
0x2ed6   :  { %v12827_v50 = vadd.f32 %v15513_v61, %v12818_v60  ;;  %v12828_v9 = vsel %vm12108_vm6, %v12826_v63, 0.0  ;;  %v13123_v60 = vld [vmem:[#allocation10 + $0x230] sm:$0xff] }
0x2ed7   :  { %v12829_v59 = vrot.slane %v12828_v9, 4 }
0x2ed8   :  { %v12835_v43 = vsel %vm12108_vm6, %v12827_v50, 0.0 }
0x2ed9   :  { %v12830_v27 = vadd.f32 %v12829_v59, %v12828_v9  ;;  %v12836_v62 = vrot.slane %v12835_v43, 4  ;;  %v13235_v59 = vld [vmem:[#allocation10 + $0x2c8] sm:$0xff] }
0x2edb   :  { %v12831_v48 = vrot.slane %v12830_v27, 2  ;;  %v12837_v51 = vadd.f32 %v12836_v62, %v12835_v43  ;;  %v13236_v43 = vld [vmem:[#allocation10 + $0x2d0] sm:$0xff]  ;;  %v13237_v62 = vld [vmem:[#allocation10 + $0x2d8] sm:$0xff] }
0x2edd   :  { %v12832_v14 = vadd.f32 %v12831_v48, %v12830_v27  ;;  %v12838_v13 = vrot.slane %v12837_v51, 2  ;;  %v17917_v27 = vpack.c.bf16 %v13236_v43, %v13235_v59  ;;  %v13238_v48 = vld [vmem:[#allocation10 + $0x2e0] sm:$0xff] }
0x2edf   :  { %v12833_v11 = vrot.slane %v12832_v14, 1  ;;  %v12839_v34 = vadd.f32 %v12838_v13, %v12837_v51  ;;  %v17920_v51 = vpack.c.bf16 %v13238_v48, %v13237_v62  ;;  %v13240_v13 = vld [vmem:[#allocation10 + $0x2f0] sm:$0xff] }
0x2ee1   :  { %v12834_v3 = vadd.f32 %v12833_v11, %v12832_v14  ;;  %v12840_v18 = vrot.slane %v12839_v34, 1  ;;  %v13239_v14 = vld [vmem:[#allocation10 + $0x2e8] sm:$0xff] }
0x2ee2   :  { %v17923_v11 = vpack.c.bf16 %v13240_v13, %v13239_v14 }
0x2ee3   :  { %v12841_v20 = vadd.f32 %v12840_v18, %v12839_v34  ;;  %v12842_v15 = vmul.f32 0.5, %v12834_v3  ;;  %v13242_v34 = vld [vmem:[#allocation10 + $0x300] sm:$0xff] }
0x2ee5   :  { %v12843_v29 = vmul.f32 0.5, %v12841_v20 }
0x2ee7   :  { %v12846_v24 = vsel %vm945_vm10, %v12843_v29, %v12842_v15 }
0x2ee8   :  { %17197 = vmatmul.mubr.msk.f32.vlgmr.msra.gmra.mrb[58].mxu1 %vm12129_vm14, %v12846_v24 }
0x2ee9   :  { %17900 = vmatpush3.bf16.msra.mxu1 %v20039_v23  ;;  %17215 = vmatprep.mubr.msk.f32.mxu1 %vm18695_vm0, %v18694_v0 }
0x2eea   :  { %17901 = vmatprep.subr.bf16.mxu1 %v18696_v47 }
0x2eed   :  { %17903 = vmatpush3.bf16.msra.mxu1 %v20043_v45 }
0x2eee   :  { %17904 = vmatprep.subr.bf16.mxu1 %v18696_v47 }
0x2ef1   :  { %17906 = vmatpush3.bf16.msra.mxu1 %v20047_v54 }
0x2ef2   :  { %17907 = vmatprep.subr.bf16.mxu1 %v18696_v47 }
0x2ef5   :  { %17909 = vmatpush3.bf16.msra.mxu1 %v20050_v58 }
0x2ef6   :  { %17910 = vmatprep.subr.bf16.mxu1 %v18696_v47 }
0x2fbb   :  { %v12915_v26 = vpop.f32.mrb[58].mxu1 }
0x2fbc   :  { %v12926_v25 = vrot.slane %v12915_v26, %v19046_v52  ;;  %v17198_v10 = vpop.f32.mrb[59].mxu1 }
0x2fbe   :  { %v12927_v30 = vcombine.high %v12926_v25, %v12926_v25  ;;  %v12934_v31 = vrot.slane %v12926_v25, %v19046_v52 }
0x2fc0   :  { %v12941_v1 = vrot.slane %v12927_v30, %v19046_v52  ;;  %v12945_v22 = vrot.slane %v12934_v31, %v19050_v56 }
0x2fc2   :  { %v12949_v49 = vrot.slane %v12941_v1, %v19050_v56  ;;  %v20172_v21 = vsub.f32 %v12826_v63, %v12945_v22  ;;  %v13124_v63 = vld [vmem:[#allocation10 + $0x238] sm:$0xff]  ;;  %v15516_v22 = vld [vmem:[#allocation10 + $0x200] ss:$0 sm:$0xff] }
0x2fc3   :  { %v17914_v9 = vpack.c.bf16 %v13124_v63, %v13123_v60 }
0x2fc4   :  { %v20174_v8 = vsub.f32 %v12827_v50, %v12949_v49  ;;  %v12954_v33 = vmul.f32 %v20172_v21, %v20172_v21 }
0x2fc6   :  { %v12955_v6 = vmul.f32 %v20174_v8, %v20174_v8  ;;  %v12956_v44 = vsel %vm12108_vm6, %v12954_v33, 0.0 }
0x2fc7   :  { %v12957_v5 = vrot.slane %v12956_v44, 4 }
0x2fc8   :  { %v12963_v36 = vsel %vm12108_vm6, %v12955_v6, 0.0  ;;  %v15517_v6 = vld [vmem:[#allocation10 + $0x208] ss:$0 sm:$0xff] }
0x2fc9   :  { %v12958_v32 = vadd.f32 %v12957_v5, %v12956_v44  ;;  %v12964_v2 = vrot.slane %v12963_v36, 4 }
0x2fcb   :  { %v12959_v35 = vrot.slane %v12958_v32, 2  ;;  %v12965_v12 = vadd.f32 %v12964_v2, %v12963_v36 }
0x2fcd   :  { %v12960_v4 = vadd.f32 %v12959_v35, %v12958_v32  ;;  %v12966_v19 = vrot.slane %v12965_v12, 2 }
0x2fcf   :  { %v12961_v38 = vrot.slane %v12960_v4, 1  ;;  %v12967_v42 = vadd.f32 %v12966_v19, %v12965_v12 }
0x2fd1   :  { %v12962_v46 = vadd.f32 %v12961_v38, %v12960_v4  ;;  %v12968_v37 = vrot.slane %v12967_v42, 1 }
0x2fd3   :  { %v12969_v55 = vadd.f32 %v12968_v37, %v12967_v42  ;;  %v12970_v61 = vmul.f32 0.5, %v12962_v46 }
0x2fd5   :  { %v12971_v53 = vmul.f32 0.5, %v12969_v55 }
0x2fd7   :  { %v12974_v50 = vsel %vm945_vm10, %v12971_v53, %v12970_v61 }
0x2fd8   :  { %17216 = vmatmul.mubr.msk.f32.vlgmr.msra.gmra.mrb[60].mxu1 %vm12129_vm14, %v12974_v50 }
0x2fd9   :  { %17912 = vmatpush3.bf16.msra.mxu1 %v17911_v28  ;;  %17226 = vmatprep.mubr.msk.f32.mxu1 %vm18695_vm0, %v18694_v0 }
0x2fda   :  { %17913 = vmatprep.subr.bf16.mxu1 %v18696_v47 }
0x2fdd   :  { %17915 = vmatpush3.bf16.msra.mxu1 %v17914_v9 }
0x2fde   :  { %17916 = vmatprep.subr.bf16.mxu1 %v18696_v47 }
0x2fe0   :  { %17227 = vmatmul.mubr.msk.f32.vlgmr.msra.gmra.mrb[62].mxu1 %vm267_vm9, %v20003_v7  ;;  %v13241_v7 = vld [vmem:[#allocation10 + $0x2f8] sm:$0xff] }
0x2fe1   :  { %17245 = vmatprep.mubr.msk.f32.mxu1 %vm18695_vm0, %v18694_v0  ;;  %17918 = vmatpush3.bf16.msra.mxu1 %v17917_v27  ;;  %v17926_v3 = vpack.c.bf16 %v13242_v34, %v13241_v7  ;;  %v13228_v7 = vld [vmem:[#allocation10 + $0x290] sm:$0xff] }
0x2fe2   :  { %17919 = vmatprep.subr.bf16.mxu1 %v18696_v47 }
0x2fe5   :  { %17921 = vmatpush3.bf16.msra.mxu1 %v17920_v51 }
0x2fe6   :  { %17922 = vmatprep.subr.bf16.mxu1 %v18696_v47 }
0x2fe9   :  { %17924 = vmatpush3.bf16.msra.mxu1 %v17923_v11  ;;  %v13227_v11 = vld [vmem:[#allocation10 + $0x288] sm:$0xff] }
0x2fea   :  { %17925 = vmatprep.subr.bf16.mxu1 %v18696_v47 }
0x2fed   :  { %17927 = vmatpush3.bf16.msra.mxu1 %v17926_v3  ;;  %v17929_v3 = vpack.c.bf16 %v13228_v7, %v13227_v11 }
0x2fee   :  { %17928 = vmatprep.subr.bf16.mxu1 %v18696_v47 }
0x30ab   :  { %v13043_v18 = vpop.f32.mrb[60].mxu1 }
0x30ac   :  { %v13044_v20 = vadd.f32 1e-05, %v13043_v18  ;;  %v17217_v15 = vpop.f32.mrb[61].mxu1 }
0x30ad   :  { %v13230_v15 = vld [vmem:[#allocation10 + $0x2a0] sm:$0xff] }
0x30ae   :  { %18440 = vrsqrt.f32 %v13044_v20  ;;  %v13229_v20 = vld [vmem:[#allocation10 + $0x298] sm:$0xff] }
0x30b3   :  { %v13196_v29 = vpop.f32.mrb[62].mxu1 }
0x30b4   :  { %v17228_v24 = vpop.f32.mrb[63].mxu1 }
0x30b5   :  { %v13231_v24 = vld [vmem:[#allocation10 + $0x2a8] sm:$0xff] }
0x30b8   :  { %v18441_v26 = vpop.eup %18440 }
0x30b9   :  { %v13055_v25 = vrot.slane %v18441_v26, %v19046_v52  ;;  %v13232_v26 = vld [vmem:[#allocation10 + $0x2b0] sm:$0xff] }
0x30bb   :  { %v13056_v10 = vcombine.high %v13055_v25, %v13055_v25  ;;  %v13063_v30 = vrot.slane %v13055_v25, %v19046_v52 }
0x30bd   :  { %v13070_v31 = vrot.slane %v13056_v10, %v19046_v52  ;;  %v13074_v1 = vrot.slane %v13063_v30, %v19050_v56  ;;  %v17935_v30 = vpack.c.bf16 %v13232_v26, %v13231_v24 }
0x30bf   :  { %v13078_v49 = vrot.slane %v13070_v31, %v19050_v56  ;;  %v13081_v33 = vmul.f32 %v13074_v1, %v20172_v21  ;;  %v13233_v31 = vld [vmem:[#allocation10 + $0x2b8] sm:$0xff]  ;;  %v13234_v1 = vld [vmem:[#allocation10 + $0x2c0] sm:$0xff] }
0x30c1   :  { %v13082_v44 = vmul.f32 %v13078_v49, %v20174_v8  ;;  %v13088_v5 = vmul.f32 %v15516_v22, %v13081_v33  ;;  %v15520_v8 = vld [vmem:[#allocation10 + $0x240] ss:$0 sm:$0xff]  ;;  %v17938_v33 = vpack.c.bf16 %v13234_v1, %v13233_v31 }
0x30c2   :  { %v13197_v61 = vadd.f32 %v15520_v8, %v13196_v29  ;;  %v17932_v29 = vpack.c.bf16 %v13230_v15, %v13229_v20 }
0x30c3   :  { %v13089_v36 = vmul.f32 %v15516_v22, %v13082_v44  ;;  %v13095_v32 = vadd.f32 %v15517_v6, %v13088_v5  ;;  %v13417_v44 = vld [vmem:[#allocation10 + $0x308] sm:$0xff]  ;;  %v13418_v5 = vld [vmem:[#allocation10 + $0x310] sm:$0xff] }
0x30c4   :  { %v13207_v9 = vrot.slane %v13197_v61, %v20001_v17 }
0x30c5   :  { %v13096_v2 = vadd.f32 %v15517_v6, %v13089_v36  ;;  %v13097_v35 = vmin.f32 %v13095_v32, 20.0  ;;  %vm13115_vm11 = vcmp.gt.f32.partialorder %v13095_v32, 20.0  ;;  %v17941_v36 = vpack.c.bf16 %v13418_v5, %v13417_v44 }
0x30c6   :  { %v13208_v51 = vcombine.high %v13207_v9, %v13207_v9 }
0x30c7   :  { %v13098_v12 = vmin.f32 %v13096_v2, 20.0  ;;  %v13099_v4 = vmul.f32 1.442695, %v13097_v35  ;;  %vm13116_vm7 = vcmp.gt.f32.partialorder %v13096_v2, 20.0  ;;  %v13420_v35 = vld [vmem:[#allocation10 + $0x320] sm:$0xff] }
0x30c9   :  { %18442 = vpow2.f32 %v13099_v4  ;;  %v13101_v19 = vmul.f32 1.442695, %v13098_v12  ;;  %v13421_v4 = vld [vmem:[#allocation10 + $0x328] sm:$0xff] }
0x30cb   :  { %18444 = vpow2.f32 %v13101_v19  ;;  %v13422_v19 = vld [vmem:[#allocation10 + $0x330] sm:$0xff] }
0x30d3   :  { %v18443_v38 = vpop.eup %18442 }
0x30d4   :  { %v13103_v42 = vadd.f32 1.0, %v18443_v38 }
0x30d5   :  { %v18445_v46 = vpop.eup %18444 }
0x30d6   :  { %v13104_v37 = vadd.f32 1.0, %v18445_v46  ;;  %v13105_v57 = vmul.f32 %v13103_v42, %v13103_v42  ;;  %v17947_v46 = vpack.c.bf16 %v13422_v19, %v13421_v4 }
0x30d8   :  { %v13106_v39 = vmul.f32 %v13104_v37, %v13104_v37  ;;  %v13109_v21 = vadd.f32 1.0, %v13105_v57  ;;  %v15518_v53 = vadd.f32 -1.0, %v13105_v57  ;;  %v13423_v37 = vld [vmem:[#allocation10 + $0x338] sm:$0xff]  ;;  %v13424_v57 = vld [vmem:[#allocation10 + $0x340] sm:$0xff] }
0x30da   :  { %v13110_v55 = vadd.f32 1.0, %v13106_v39  ;;  %18446 = vrcp.f32 %v13109_v21  ;;  %v15519_v60 = vadd.f32 -1.0, %v13106_v39 }
0x30dc   :  { %18448 = vrcp.f32 %v13110_v55  ;;  %v17950_v55 = vpack.c.bf16 %v13424_v57, %v13423_v37 }
0x30e4   :  { %v18447_v28 = vpop.eup %18446 }
0x30e5   :  { %v13113_v63 = vmul.f32 %v18447_v28, %v15518_v53  ;;  %v15525_v28 = vld [vmem:[#allocation10 + $0x388] ss:$0 sm:$0xff] }
0x30e6   :  { %v18449_v50 = vpop.eup %18448 }
0x30e7   :  { %v13114_v59 = vmul.f32 %v18449_v50, %v15519_v60  ;;  %v13117_v43 = vsel %vm13115_vm11, 1.0, %v13113_v63 }
0x30e8   :  { %v13119_v27 = vmul.f32 %v13117_v43, %v13095_v32 }
0x30e9   :  { %v13118_v62 = vsel %vm13116_vm7, 1.0, %v13114_v59 }
0x30ea   :  { %v13120_v48 = vmul.f32 %v13118_v62, %v13096_v2  ;;  %v20204_v14 = vadd.f32 %v13207_v9, %v13119_v27  ;;  %v13419_v2 = vld [vmem:[#allocation10 + $0x318] sm:$0xff] }
0x30eb   :  { %v17944_v12 = vpack.c.bf16 %v13420_v35, %v13419_v2 }
0x30ec   :  { %v20206_v13 = vadd.f32 %v13208_v51, %v13120_v48  ;;  %v13218_v10 = vrot.slane %v20204_v14, %v19050_v56  ;;  %v13408_v42 = vrot.slane %v20204_v14, %v20015_v16 }
0x30ee   :  { %v13243_v34 = vcombine.low %v20204_v14, %v20206_v13  ;;  %v13222_v25 = vrot.slane %v20206_v13, %v19050_v56  ;;  %v13225_v49 = vsel %vm373_vm3, 0.0, %v13218_v10  ;;  %v13412_v38 = vrot.slane %v20206_v13, %v20015_v16 }
0x30ef   :  { %v13415_v21 = vsel %vm373_vm3, %v13408_v42, 0.0 }
0x30f0   :  { %v13250_v18 = vrot.slane %v13243_v34, %v20001_v17  ;;  %v13226_v22 = vsel %vm373_vm3, 0.0, %v13222_v25  ;;  %v13416_v39 = vsel %vm373_vm3, %v13412_v38, 0.0 }
0x30f1   :  { %v13325_v6 = vcombine.low %v13225_v49, %v13226_v22  ;;  %v13427_v8 = vcombine.low %v13415_v21, %v13416_v39 }
0x30f2   :  { %17246 = vmatmul.mubr.msk.f32.vlgmr.msra.gmra.mrb[64].mxu1 %vm12129_vm14, %v13250_v18 }
0x30f3   :  { %17930 = vmatpush3.bf16.msra.mxu1 %v17929_v3  ;;  %17264 = vmatprep.mubr.msk.f32.mxu1 %vm18695_vm0, %v18694_v0  ;;  %v13332_v32 = vrot.slane %v13325_v6, %v20001_v17  ;;  %v13434_v61 = vrot.slane %v13427_v8, %v20001_v17 }
0x30f4   :  { %17931 = vmatprep.subr.bf16.mxu1 %v18696_v47 }
0x30f7   :  { %17933 = vmatpush3.bf16.msra.mxu1 %v17932_v29 }
0x30f8   :  { %17934 = vmatprep.subr.bf16.mxu1 %v18696_v47 }
0x30fb   :  { %17936 = vmatpush3.bf16.msra.mxu1 %v17935_v30 }
0x30fc   :  { %17937 = vmatprep.subr.bf16.mxu1 %v18696_v47 }
0x30ff   :  { %17939 = vmatpush3.bf16.msra.mxu1 %v17938_v33 }
0x3100   :  { %17940 = vmatprep.subr.bf16.mxu1 %v18696_v47 }
0x3102   :  { %17265 = vmatmul.mubr.msk.f32.vlgmr.msra.gmra.mrb[64].mxu1 %vm12129_vm14, %v13332_v32 }
0x3103   :  { %17942 = vmatpush3.bf16.msra.mxu1 %v17941_v36  ;;  %17283 = vmatprep.mubr.msk.f32.mxu1 %vm18695_vm0, %v18694_v0 }
0x3104   :  { %17943 = vmatprep.subr.bf16.mxu1 %v18696_v47 }
0x3107   :  { %17945 = vmatpush3.bf16.msra.mxu1 %v17944_v12 }
0x3108   :  { %17946 = vmatprep.subr.bf16.mxu1 %v18696_v47 }
0x310b   :  { %17948 = vmatpush3.bf16.msra.mxu1 %v17947_v46 }
0x310c   :  { %17949 = vmatprep.subr.bf16.mxu1 %v18696_v47 }
0x310f   :  { %17951 = vmatpush3.bf16.msra.mxu1 %v17950_v55 }
0x3110   :  { %18012 = vmatprep.subr.bf16.mxu1 %v18696_v47 }
0x3112   :  { %17284 = vmatmul.mubr.msk.f32.vlgmr.msra.gmra.mrb[64].mxu1 %vm12129_vm14, %v13434_v61 }
0x3113   :  { %18014 = vmatpush3.bf16.msra.mxu1 %v20039_v23  ;;  %17402 = vmatprep.mubr.msk.f32.mxu1 %vm18695_vm0, %v18694_v0 }
0x3114   :  { %18015 = vmatprep.subr.bf16.mxu1 %v18696_v47 }
0x3117   :  { %18017 = vmatpush3.bf16.msra.mxu1 %v20043_v45 }
0x3118   :  { %18018 = vmatprep.subr.bf16.mxu1 %v18696_v47 }
0x311b   :  { %18020 = vmatpush3.bf16.msra.mxu1 %v20047_v54 }
0x311c   :  { %18021 = vmatprep.subr.bf16.mxu1 %v18696_v47 }
0x311f   :  { %18023 = vmatpush3.bf16.msra.mxu1 %v20050_v58 }
0x3120   :  { %18024 = vmatprep.subr.bf16.mxu1 %v18696_v47 }
0x31e5   :  { %v13503_v53 = vpop.f32.mrb[64].mxu1 }
0x31e6   :  { %v13515_v60 = vrot.slane %v13503_v53, %v20001_v17  ;;  %v17285_v63 = vpop.f32.mrb[65].mxu1 }
0x31e8   :  { %v13516_v50 = vcombine.high %v13515_v60, %v13515_v60  ;;  %v13524_v9 = vadd.f32 %v15525_v28, %v13515_v60  ;;  %v13819_v60 = vld [vmem:[#allocation10 + $0x4f8] sm:$0xff] }
0x31ea   :  { %v13525_v59 = vadd.f32 %v15525_v28, %v13516_v50  ;;  %v13526_v43 = vsel %vm12108_vm6, %v13524_v9, 0.0  ;;  %v13952_v50 = vld [vmem:[#allocation10 + $0x420] sm:$0xff] }
0x31eb   :  { %v13527_v27 = vrot.slane %v13526_v43, 4 }
0x31ec   :  { %v13533_v62 = vsel %vm12108_vm6, %v13525_v59, 0.0 }
0x31ed   :  { %v13528_v48 = vadd.f32 %v13527_v27, %v13526_v43  ;;  %v13534_v51 = vrot.slane %v13533_v62, 4  ;;  %v13954_v43 = vld [vmem:[#allocation10 + $0x430] sm:$0xff]  ;;  %v13955_v27 = vld [vmem:[#allocation10 + $0x438] sm:$0xff] }
0x31ef   :  { %v13529_v11 = vrot.slane %v13528_v48, 2  ;;  %v13535_v7 = vadd.f32 %v13534_v51, %v13533_v62  ;;  %v17980_v62 = vpack.c.bf16 %v13955_v27, %v13954_v43  ;;  %v13957_v51 = vld [vmem:[#allocation10 + $0x448] sm:$0xff] }
0x31f1   :  { %v13530_v34 = vadd.f32 %v13529_v11, %v13528_v48  ;;  %v13536_v3 = vrot.slane %v13535_v7, 2  ;;  %v13956_v48 = vld [vmem:[#allocation10 + $0x440] sm:$0xff] }
0x31f2   :  { %v17983_v11 = vpack.c.bf16 %v13957_v51, %v13956_v48 }
0x31f3   :  { %v13531_v18 = vrot.slane %v13530_v34, 1  ;;  %v13537_v20 = vadd.f32 %v13536_v3, %v13535_v7  ;;  %v13959_v7 = vld [vmem:[#allocation10 + $0x458] sm:$0xff] }
0x31f5   :  { %v13532_v15 = vadd.f32 %v13531_v18, %v13530_v34  ;;  %v13538_v29 = vrot.slane %v13537_v20, 1 }
0x31f7   :  { %v13539_v24 = vadd.f32 %v13538_v29, %v13537_v20  ;;  %v13540_v26 = vmul.f32 0.5, %v13532_v15 }
0x31f9   :  { %v13541_v25 = vmul.f32 0.5, %v13539_v24 }
0x31fb   :  { %v13544_v10 = vsel %vm945_vm10, %v13541_v25, %v13540_v26 }
0x31fc   :  { %17303 = vmatmul.mubr.msk.f32.vlgmr.msra.gmra.mrb[70].mxu0 %vm12129_vm14, %v13544_v10 }
0x31fd   :  { %17966 = vmatpush3.bf16.msra.mxu0 %v20039_v23  ;;  %17321 = vmatprep.mubr.msk.f32.mxu0 %vm18695_vm0, %v18694_v0 }
0x31fe   :  { %17967 = vmatprep.subr.bf16.mxu0 %v18696_v47 }
0x3201   :  { %17969 = vmatpush3.bf16.msra.mxu0 %v20043_v45 }
0x3202   :  { %17970 = vmatprep.subr.bf16.mxu0 %v18696_v47 }
0x3205   :  { %17972 = vmatpush3.bf16.msra.mxu0 %v20047_v54 }
0x3206   :  { %17973 = vmatprep.subr.bf16.mxu0 %v18696_v47 }
0x3209   :  { %17975 = vmatpush3.bf16.msra.mxu0 %v20050_v58 }
0x320a   :  { %17324 = vmatprep.subr.mxu0 %v18694_v0 }
0x32cf   :  { %v13613_v30 = vpop.f32.mrb[70].mxu0 }
0x32d0   :  { %v13624_v31 = vrot.slane %v13613_v30, %v19046_v52  ;;  %v17304_v1 = vpop.f32.mrb[71].mxu0 }
0x32d1   :  { %v15528_v1 = vld [vmem:[#allocation10 + $0x390] ss:$0 sm:$0xff] }
0x32d2   :  { %v13625_v22 = vcombine.high %v13624_v31, %v13624_v31  ;;  %v13632_v49 = vrot.slane %v13624_v31, %v19046_v52 }
0x32d4   :  { %v13639_v33 = vrot.slane %v13625_v22, %v19046_v52  ;;  %v13643_v6 = vrot.slane %v13632_v49, %v19050_v56 }
0x32d6   :  { %v13647_v44 = vrot.slane %v13639_v33, %v19050_v56  ;;  %v13650_v5 = vsub.f32 %v13524_v9, %v13643_v6  ;;  %v13953_v9 = vld [vmem:[#allocation10 + $0x428] sm:$0xff]  ;;  %v15529_v33 = vld [vmem:[#allocation10 + $0x398] ss:$0 sm:$0xff] }
0x32d8   :  { %v20270_v36 = vsub.f32 %v13525_v59, %v13647_v44  ;;  %v13652_v32 = vmul.f32 %v13650_v5, %v13650_v5  ;;  %v17977_v59 = vpack.c.bf16 %v13953_v9, %v13952_v50 }
0x32da   :  { %v13653_v2 = vmul.f32 %v20270_v36, %v20270_v36  ;;  %v13654_v35 = vsel %vm12108_vm6, %v13652_v32, 0.0 }
0x32db   :  { %v13655_v12 = vrot.slane %v13654_v35, 4 }
0x32dc   :  { %v13661_v4 = vsel %vm12108_vm6, %v13653_v2, 0.0 }
0x32dd   :  { %v13656_v19 = vadd.f32 %v13655_v12, %v13654_v35  ;;  %v13662_v38 = vrot.slane %v13661_v4, 4 }
0x32df   :  { %v13657_v42 = vrot.slane %v13656_v19, 2  ;;  %v13663_v46 = vadd.f32 %v13662_v38, %v13661_v4 }
0x32e1   :  { %v13658_v37 = vadd.f32 %v13657_v42, %v13656_v19  ;;  %v13664_v57 = vrot.slane %v13663_v46, 2 }
0x32e3   :  { %v13659_v39 = vrot.slane %v13658_v37, 1  ;;  %v13665_v21 = vadd.f32 %v13664_v57, %v13663_v46 }
0x32e5   :  { %v13660_v55 = vadd.f32 %v13659_v39, %v13658_v37  ;;  %v13666_v8 = vrot.slane %v13665_v21, 1 }
0x32e7   :  { %v13667_v61 = vadd.f32 %v13666_v8, %v13665_v21  ;;  %v13668_v53 = vmul.f32 0.5, %v13660_v55  ;;  %v15532_v21 = vld [vmem:[#allocation10 + $0x500] ss:$0 sm:$0xff] }
0x32e9   :  { %v13669_v28 = vmul.f32 0.5, %v13667_v61 }
0x32eb   :  { %v13672_v63 = vsel %vm945_vm10, %v13669_v28, %v13668_v53 }
0x32ec   :  { %17322 = vmatmul.mubr.msk.f32.vlgmr.msra.gmra.mrb[72].mxu0 %vm12129_vm14, %v13672_v63 }
0x32ed   :  { %17325 = vmatpush3.msra.mxu0 %v13819_v60  ;;  %17326 = vmatprep.mubr.msk.f32.mxu0 %vm18695_vm0, %v18694_v0 }
0x32ee   :  { %17976 = vmatprep.subr.bf16.mxu0 %v18696_v47 }
0x32f0   :  { %17327 = vmatmul.mubr.msk.f32.vlgmr.msra.gmra.mrb[74].mxu0 %vm172_vm1, %v19067_v41  ;;  %v13958_v41 = vld [vmem:[#allocation10 + $0x450] sm:$0xff] }
0x32f1   :  { %17345 = vmatprep.mubr.msk.f32.mxu0 %vm18695_vm0, %v18694_v0  ;;  %17978 = vmatpush3.bf16.msra.mxu0 %v17977_v59  ;;  %v17986_v34 = vpack.c.bf16 %v13959_v7, %v13958_v41 }
0x32f2   :  { %17979 = vmatprep.subr.bf16.mxu0 %v18696_v47 }
0x32f5   :  { %17981 = vmatpush3.bf16.msra.mxu0 %v17980_v62 }
0x32f6   :  { %17982 = vmatprep.subr.bf16.mxu0 %v18696_v47 }
0x32f9   :  { %17984 = vmatpush3.bf16.msra.mxu0 %v17983_v11 }
0x32fa   :  { %17985 = vmatprep.subr.bf16.mxu0 %v18696_v47 }
0x32fd   :  { %17987 = vmatpush3.bf16.msra.mxu0 %v17986_v34 }
0x32fe   :  { %17988 = vmatprep.subr.bf16.mxu0 %v18696_v47 }
0x33bf   :  { %v13741_v3 = vpop.f32.mrb[72].mxu0 }
0x33c0   :  { %v13742_v18 = vadd.f32 1e-05, %v13741_v3  ;;  %v17323_v20 = vpop.f32.mrb[73].mxu0 }
0x33c2   :  { %18450 = vrsqrt.f32 %v13742_v18 }
0x33c3   :  { %v13891_v15 = vpop.f32.mrb[74].mxu0 }
0x33c4   :  { %v17328_v29 = vpop.f32.mrb[75].mxu0 }
0x33c5   :  { %v13945_v29 = vld [vmem:[#allocation10 + $0x3e8] sm:$0xff] }
0x33cc   :  { %v18451_v24 = vpop.eup %18450 }
0x33cd   :  { %v13753_v26 = vrot.slane %v18451_v24, %v19046_v52 }
0x33cf   :  { %v13754_v25 = vcombine.high %v13753_v26, %v13753_v26  ;;  %v13761_v10 = vrot.slane %v13753_v26, %v19046_v52 }
0x33d1   :  { %v13768_v30 = vrot.slane %v13754_v25, %v19046_v52  ;;  %v13772_v31 = vrot.slane %v13761_v10, %v19050_v56 }
0x33d3   :  { %v13776_v22 = vrot.slane %v13768_v30, %v19050_v56  ;;  %v13779_v49 = vmul.f32 %v13772_v31, %v13650_v5 }
0x33d5   :  { %v13780_v6 = vmul.f32 %v13776_v22, %v20270_v36  ;;  %v13786_v44 = vmul.f32 %v15528_v1, %v13779_v49  ;;  %v13892_v36 = vadd.f32 %v15532_v21, %v13891_v15  ;;  %v13944_v15 = vld [vmem:[#allocation10 + $0x3e0] sm:$0xff]  ;;  %v13947_v22 = vld [vmem:[#allocation10 + $0x3f8] sm:$0xff]  ;;  %v14136_v21 = vld [vmem:[#allocation10 + $0x470] sm:$0xff] }
0x33d6   :  { %v17989_v10 = vpack.c.bf16 %v13945_v29, %v13944_v15 }
0x33d7   :  { %v13787_v32 = vmul.f32 %v15528_v1, %v13780_v6  ;;  %v13793_v2 = vadd.f32 %v15529_v33, %v13786_v44  ;;  %v13902_v61 = vrot.slane %v13892_v36, %v19046_v52  ;;  %v13946_v1 = vld [vmem:[#allocation10 + $0x3f0] sm:$0xff]  ;;  %v14139_v36 = vld [vmem:[#allocation10 + $0x488] sm:$0xff] }
0x33d9   :  { %v13794_v35 = vadd.f32 %v15529_v33, %v13787_v32  ;;  %v13795_v12 = vmin.f32 %v13793_v2, 20.0  ;;  %v13903_v53 = vcombine.high %v13902_v61, %v13902_v61  ;;  %v13910_v63 = vrot.slane %v13902_v61, %v19046_v52 }
0x33da   :  { %vm13813_vm12 = vcmp.gt.f32.partialorder %v13793_v2, 20.0 }
0x33db   :  { %v13796_v4 = vmin.f32 %v13794_v35, 20.0  ;;  %v13797_v19 = vmul.f32 1.442695, %v13795_v12  ;;  %v13917_v43 = vrot.slane %v13903_v53, %v19046_v52  ;;  %vm13814_vm5 = vcmp.gt.f32.partialorder %v13794_v35, 20.0  ;;  %v13949_v12 = vld [vmem:[#allocation10 + $0x408] sm:$0xff]  ;;  %v14140_v53 = vld [vmem:[#allocation10 + $0x490] sm:$0xff] }
0x33dc   :  { %v13921_v51 = vrot.slane %v13910_v63, %v19050_v56 }
0x33dd   :  { %18452 = vpow2.f32 %v13797_v19  ;;  %v13799_v38 = vmul.f32 1.442695, %v13796_v4  ;;  %v13925_v7 = vrot.slane %v13917_v43, %v19050_v56  ;;  %v13950_v19 = vld [vmem:[#allocation10 + $0x410] sm:$0xff] }
0x33df   :  { %18454 = vpow2.f32 %v13799_v38  ;;  %v13951_v38 = vld [vmem:[#allocation10 + $0x418] sm:$0xff] }
0x33e7   :  { %v18453_v42 = vpop.eup %18452 }
0x33e8   :  { %v13801_v46 = vadd.f32 1.0, %v18453_v42  ;;  %v17998_v42 = vpack.c.bf16 %v13951_v38, %v13950_v19 }
0x33e9   :  { %v18455_v37 = vpop.eup %18454 }
0x33ea   :  { %v13802_v57 = vadd.f32 1.0, %v18455_v37  ;;  %v13803_v39 = vmul.f32 %v13801_v46, %v13801_v46  ;;  %v14134_v46 = vld [vmem:[#allocation10 + $0x460] sm:$0xff]  ;;  %v14135_v37 = vld [vmem:[#allocation10 + $0x468] sm:$0xff] }
0x33ec   :  { %v13804_v5 = vmul.f32 %v13802_v57, %v13802_v57  ;;  %v13807_v55 = vadd.f32 1.0, %v13803_v39  ;;  %v15530_v28 = vadd.f32 -1.0, %v13803_v39  ;;  %v18001_v57 = vpack.c.bf16 %v14135_v37, %v14134_v46 }
0x33ee   :  { %v13808_v8 = vadd.f32 1.0, %v13804_v5  ;;  %18456 = vrcp.f32 %v13807_v55  ;;  %v15531_v50 = vadd.f32 -1.0, %v13804_v5  ;;  %v14137_v5 = vld [vmem:[#allocation10 + $0x478] sm:$0xff] }
0x33ef   :  { %v18004_v55 = vpack.c.bf16 %v14137_v5, %v14136_v21 }
0x33f0   :  { %18458 = vrcp.f32 %v13808_v8  ;;  %v14138_v8 = vld [vmem:[#allocation10 + $0x480] sm:$0xff] }
0x33f1   :  { %v18007_v61 = vpack.c.bf16 %v14139_v36, %v14138_v8 }
0x33f8   :  { %v18457_v60 = vpop.eup %18456 }
0x33f9   :  { %v13811_v9 = vmul.f32 %v18457_v60, %v15530_v28  ;;  %v14141_v28 = vld [vmem:[#allocation10 + $0x498] sm:$0xff] }
0x33fa   :  { %v18459_v59 = vpop.eup %18458  ;;  %v18010_v60 = vpack.c.bf16 %v14141_v28, %v14140_v53 }
0x33fb   :  { %v13812_v27 = vmul.f32 %v18459_v59, %v15531_v50  ;;  %v13815_v62 = vsel %vm13813_vm12, 1.0, %v13811_v9  ;;  %v15537_v9 = vld [vmem:[#allocation10 + $0x4e0] ss:$0 sm:$0xff] }
0x33fc   :  { %v13817_v48 = vmul.f32 %v13815_v62, %v13793_v2  ;;  %v17992_v2 = vpack.c.bf16 %v13947_v22, %v13946_v1 }
0x33fd   :  { %v13816_v11 = vsel %vm13814_vm5, 1.0, %v13812_v27 }
0x33fe   :  { %v13818_v41 = vmul.f32 %v13816_v11, %v13794_v35  ;;  %v13928_v34 = vadd.f32 %v13921_v51, %v13817_v48  ;;  %v13948_v35 = vld [vmem:[#allocation10 + $0x400] sm:$0xff] }
0x33ff   :  { %v17995_v4 = vpack.c.bf16 %v13949_v12, %v13948_v35 }
0x3400   :  { %v13929_v3 = vadd.f32 %v13925_v7, %v13818_v41  ;;  %v13935_v18 = vrot.slane %v13928_v34, %v19050_v56  ;;  %v14125_v20 = vrot.slane %v13928_v34, %v20015_v16 }
0x3402   :  { %v13939_v24 = vrot.slane %v13929_v3, %v19050_v56  ;;  %v13960_v26 = vcombine.low %v13928_v34, %v13929_v3  ;;  %v14129_v25 = vrot.slane %v13929_v3, %v20015_v16  ;;  %v13942_v30 = vsel %vm373_vm3, 0.0, %v13935_v18 }
0x3403   :  { %v14132_v33 = vsel %vm373_vm3, %v14125_v20, 0.0 }
0x3404   :  { %v13967_v31 = vrot.slane %v13960_v26, %v20001_v17  ;;  %v13943_v49 = vsel %vm373_vm3, 0.0, %v13939_v24  ;;  %v14133_v6 = vsel %vm373_vm3, %v14129_v25, 0.0 }
0x3405   :  { %v14042_v44 = vcombine.low %v13942_v30, %v13943_v49  ;;  %v14144_v32 = vcombine.low %v14132_v33, %v14133_v6 }
0x3406   :  { %17346 = vmatmul.mubr.msk.f32.vlgmr.msra.gmra.mrb[76].mxu0 %vm12129_vm14, %v13967_v31 }
0x3407   :  { %17990 = vmatpush3.bf16.msra.mxu0 %v17989_v10  ;;  %17364 = vmatprep.mubr.msk.f32.mxu0 %vm18695_vm0, %v18694_v0  ;;  %v14049_v39 = vrot.slane %v14042_v44, %v20001_v17  ;;  %v14151_v63 = vrot.slane %v14144_v32, %v20001_v17 }
0x3408   :  { %17991 = vmatprep.subr.bf16.mxu0 %v18696_v47 }
0x340b   :  { %17993 = vmatpush3.bf16.msra.mxu0 %v17992_v2 }
0x340c   :  { %17994 = vmatprep.subr.bf16.mxu0 %v18696_v47 }
0x340f   :  { %17996 = vmatpush3.bf16.msra.mxu0 %v17995_v4 }
0x3410   :  { %17997 = vmatprep.subr.bf16.mxu0 %v18696_v47 }
0x3413   :  { %17999 = vmatpush3.bf16.msra.mxu0 %v17998_v42 }
0x3414   :  { %18000 = vmatprep.subr.bf16.mxu0 %v18696_v47 }
0x3416   :  { %17365 = vmatmul.mubr.msk.f32.vlgmr.msra.gmra.mrb[76].mxu0 %vm12129_vm14, %v14049_v39 }
0x3417   :  { %18002 = vmatpush3.bf16.msra.mxu0 %v18001_v57  ;;  %17383 = vmatprep.mubr.msk.f32.mxu0 %vm18695_vm0, %v18694_v0 }
0x3418   :  { %18003 = vmatprep.subr.bf16.mxu0 %v18696_v47 }
0x341b   :  { %18005 = vmatpush3.bf16.msra.mxu0 %v18004_v55 }
0x341c   :  { %18006 = vmatprep.subr.bf16.mxu0 %v18696_v47 }
0x341f   :  { %18008 = vmatpush3.bf16.msra.mxu0 %v18007_v61 }
0x3420   :  { %18009 = vmatprep.subr.bf16.mxu0 %v18696_v47 }
0x3423   :  { %18011 = vmatpush3.bf16.msra.mxu0 %v18010_v60  ;;  %v14560_v60 = vld [vmem:[#allocation10 + $0x548] sm:$0xff] }
0x3424   :  { %17481 = vmatprep.subr.mxu0 %v18694_v0 }
0x3426   :  { %17384 = vmatmul.mubr.msk.f32.vlgmr.msra.gmra.mrb[76].mxu0 %vm12129_vm14, %v14151_v63  ;;  %v14561_v63 = vld [vmem:[#allocation10 + $0x550] sm:$0xff] }
0x3427   :  { %17483 = vmatprep.mubr.msk.f32.mxu0 %vm18695_vm0, %v18694_v0 }
0x34f9   :  { %v14220_v50 = vpop.f32.mrb[76].mxu0 }
0x34fa   :  { %v14232_v59 = vrot.slane %v14220_v50, %v20001_v17  ;;  %v17385_v43 = vpop.f32.mrb[77].mxu0  ;;  %v14562_v50 = vld [vmem:[#allocation10 + $0x558] sm:$0xff] }
0x34fc   :  { %v14233_v27 = vcombine.high %v14232_v59, %v14232_v59  ;;  %v14241_v62 = vadd.f32 %v15537_v9, %v14232_v59  ;;  %v14563_v59 = vld [vmem:[#allocation10 + $0x560] sm:$0xff] }
0x34fd   :  { %v18040_v43 = vpack.c.bf16 %v14563_v59, %v14562_v50  ;;  %v14555_v59 = vld [vmem:[#allocation10 + $0x520] sm:$0xff] }
0x34fe   :  { %v14242_v48 = vadd.f32 %v15537_v9, %v14233_v27  ;;  %v14243_v51 = vsel %vm12108_vm6, %v14241_v62, 0.0  ;;  %v18037_v9 = vpack.c.bf16 %v14561_v63, %v14560_v60  ;;  %v14564_v27 = vld [vmem:[#allocation10 + $0x568] sm:$0xff] }
0x34ff   :  { %v14244_v11 = vrot.slane %v14243_v51, 4 }
0x3500   :  { %v14250_v41 = vsel %vm12108_vm6, %v14242_v48, 0.0 }
0x3501   :  { %v14245_v7 = vadd.f32 %v14244_v11, %v14243_v51  ;;  %v14251_v34 = vrot.slane %v14250_v41, 4  ;;  %v14566_v51 = vld [vmem:[#allocation10 + $0x578] sm:$0xff]  ;;  %v14567_v11 = vld [vmem:[#allocation10 + $0x580] sm:$0xff] }
0x3503   :  { %v14246_v3 = vrot.slane %v14245_v7, 2  ;;  %v14252_v18 = vadd.f32 %v14251_v34, %v14250_v41  ;;  %v18046_v41 = vpack.c.bf16 %v14567_v11, %v14566_v51  ;;  %v14558_v51 = vld [vmem:[#allocation10 + $0x538] sm:$0xff]  ;;  %v14559_v11 = vld [vmem:[#allocation10 + $0x540] sm:$0xff] }
0x3505   :  { %v14247_v20 = vadd.f32 %v14246_v3, %v14245_v7  ;;  %v14253_v15 = vrot.slane %v14252_v18, 2 }
0x3507   :  { %v14248_v29 = vrot.slane %v14247_v20, 1  ;;  %v14254_v24 = vadd.f32 %v14253_v15, %v14252_v18 }
0x3509   :  { %v14249_v26 = vadd.f32 %v14248_v29, %v14247_v20  ;;  %v14255_v25 = vrot.slane %v14254_v24, 1 }
0x350b   :  { %v14256_v10 = vadd.f32 %v14255_v25, %v14254_v24  ;;  %v14257_v30 = vmul.f32 0.5, %v14249_v26  ;;  %v15540_v25 = vld [vmem:[#allocation10 + $0x4e8] ss:$0 sm:$0xff] }
0x350d   :  { %v14258_v31 = vmul.f32 0.5, %v14256_v10 }
0x350f   :  { %v14261_v1 = vsel %vm945_vm10, %v14258_v31, %v14257_v30  ;;  %v15541_v31 = vld [vmem:[#allocation10 + $0x4f0] ss:$0 sm:$0xff] }
0x3510   :  { %17403 = vmatmul.mubr.msk.f32.vlgmr.msra.gmra.mrb[66].mxu1 %vm12129_vm14, %v14261_v1 }
0x3511   :  { %18026 = vmatpush3.bf16.msra.mxu1 %v20039_v23  ;;  %17421 = vmatprep.mubr.msk.f32.mxu1 %vm18695_vm0, %v18694_v0 }
0x3512   :  { %18027 = vmatprep.subr.bf16.mxu1 %v18696_v47 }
0x3515   :  { %18029 = vmatpush3.bf16.msra.mxu1 %v20043_v45 }
0x3516   :  { %18030 = vmatprep.subr.bf16.mxu1 %v18696_v47 }
0x3519   :  { %18032 = vmatpush3.bf16.msra.mxu1 %v20047_v54 }
0x351a   :  { %18033 = vmatprep.subr.bf16.mxu1 %v18696_v47 }
0x351d   :  { %18035 = vmatpush3.bf16.msra.mxu1 %v20050_v58 }
0x351e   :  { %18036 = vmatprep.subr.bf16.mxu1 %v18696_v47 }
0x35e3   :  { %v14330_v22 = vpop.f32.mrb[66].mxu1 }
0x35e4   :  { %v14341_v23 = vrot.slane %v14330_v22, %v19046_v52  ;;  %v17404_v49 = vpop.f32.mrb[67].mxu1 }
0x35e6   :  { %v14342_v33 = vcombine.high %v14341_v23, %v14341_v23  ;;  %v14349_v6 = vrot.slane %v14341_v23, %v19046_v52 }
0x35e8   :  { %v14356_v44 = vrot.slane %v14342_v33, %v19046_v52  ;;  %v14360_v45 = vrot.slane %v14349_v6, %v19050_v56 }
0x35ea   :  { %v14364_v32 = vrot.slane %v14356_v44, %v19050_v56  ;;  %v14367_v54 = vsub.f32 %v14241_v62, %v14360_v45  ;;  %v14565_v62 = vld [vmem:[#allocation10 + $0x570] sm:$0xff] }
0x35ec   :  { %v14368_v2 = vsub.f32 %v14242_v48, %v14364_v32  ;;  %v14369_v35 = vmul.f32 %v14367_v54, %v14367_v54  ;;  %v18043_v48 = vpack.c.bf16 %v14565_v62, %v14564_v27  ;;  %v14557_v27 = vld [vmem:[#allocation10 + $0x530] sm:$0xff] }
0x35ee   :  { %v14370_v12 = vmul.f32 %v14368_v2, %v14368_v2  ;;  %v14371_v58 = vsel %vm12108_vm6, %v14369_v35, 0.0 }
0x35ef   :  { %v14372_v4 = vrot.slane %v14371_v58, 4 }
0x35f0   :  { %v14378_v19 = vsel %vm12108_vm6, %v14370_v12, 0.0 }
0x35f1   :  { %v14373_v38 = vadd.f32 %v14372_v4, %v14371_v58  ;;  %v14379_v42 = vrot.slane %v14378_v19, 4 }
0x35f3   :  { %v14374_v46 = vrot.slane %v14373_v38, 2  ;;  %v14380_v37 = vadd.f32 %v14379_v42, %v14378_v19 }
0x35f5   :  { %v14375_v57 = vadd.f32 %v14374_v46, %v14373_v38  ;;  %v14381_v39 = vrot.slane %v14380_v37, 2 }
0x35f7   :  { %v14376_v21 = vrot.slane %v14375_v57, 1  ;;  %v14382_v5 = vadd.f32 %v14381_v39, %v14380_v37 }
0x35f9   :  { %v14377_v55 = vadd.f32 %v14376_v21, %v14375_v57  ;;  %v14383_v8 = vrot.slane %v14382_v5, 1 }
0x35fb   :  { %v14384_v36 = vadd.f32 %v14383_v8, %v14382_v5  ;;  %v14385_v61 = vmul.f32 0.5, %v14377_v55 }
0x35fd   :  { %v14386_v53 = vmul.f32 0.5, %v14384_v36 }
0x35ff   :  { %v14389_v28 = vsel %vm945_vm10, %v14386_v53, %v14385_v61  ;;  %v14552_v53 = vld [vmem:[#allocation10 + $0x508] sm:$0xff] }
0x3600   :  { %17422 = vmatmul.mubr.msk.f32.vlgmr.msra.gmra.mrb[68].mxu1 %vm12129_vm14, %v14389_v28  ;;  %v14553_v28 = vld [vmem:[#allocation10 + $0x510] sm:$0xff] }
0x3601   :  { %17440 = vmatprep.mubr.msk.f32.mxu1 %vm18695_vm0, %v18694_v0  ;;  %18038 = vmatpush3.bf16.msra.mxu1 %v18037_v9  ;;  %v18049_v63 = vpack.c.bf16 %v14553_v28, %v14552_v53  ;;  %v14554_v9 = vld [vmem:[#allocation10 + $0x518] sm:$0xff] }
0x3602   :  { %18039 = vmatprep.subr.bf16.mxu1 %v18696_v47 }
0x3605   :  { %18041 = vmatpush3.bf16.msra.mxu1 %v18040_v43  ;;  %v18052_v43 = vpack.c.bf16 %v14555_v59, %v14554_v9  ;;  %v15112_v59 = vld [vmem:[#allocation15 + $0x10] sm:$0xff] }
0x3606   :  { %18042 = vmatprep.subr.bf16.mxu1 %v18696_v47 }
0x3609   :  { %18044 = vmatpush3.bf16.msra.mxu1 %v18043_v48 }
0x360a   :  { %18045 = vmatprep.subr.bf16.mxu1 %v18696_v47 }
0x360d   :  { %18047 = vmatpush3.bf16.msra.mxu1 %v18046_v41 }
0x360e   :  { %18048 = vmatprep.subr.bf16.mxu1 %v18696_v47 }
0x36d3   :  { %v14458_v7 = vpop.f32.mrb[68].mxu1 }
0x36d4   :  { %v14459_v34 = vadd.f32 1e-05, %v14458_v7  ;;  %v17423_v3 = vpop.f32.mrb[69].mxu1  ;;  %v18058_v7 = vpack.c.bf16 %v14559_v11, %v14558_v51 }
0x36d6   :  { %18460 = vrsqrt.f32 %v14459_v34 }
0x36e0   :  { %v18461_v18 = vpop.eup %18460 }
0x36e1   :  { %v14470_v20 = vrot.slane %v18461_v18, %v19046_v52  ;;  %v14742_v18 = vld [vmem:[#allocation10 + $0x588] sm:$0xff] }
0x36e3   :  { %v14471_v15 = vcombine.high %v14470_v20, %v14470_v20  ;;  %v14478_v29 = vrot.slane %v14470_v20, %v19046_v52  ;;  %v14743_v20 = vld [vmem:[#allocation10 + $0x590] sm:$0xff] }
0x36e5   :  { %v14485_v24 = vrot.slane %v14471_v15, %v19046_v52  ;;  %v14489_v26 = vrot.slane %v14478_v29, %v19050_v56  ;;  %v18061_v15 = vpack.c.bf16 %v14743_v20, %v14742_v18 }
0x36e7   :  { %v14493_v10 = vrot.slane %v14485_v24, %v19050_v56  ;;  %v14496_v30 = vmul.f32 %v14489_v26, %v14367_v54  ;;  %v14745_v24 = vld [vmem:[#allocation10 + $0x5a0] sm:$0xff] }
0x36e9   :  { %v14497_v1 = vmul.f32 %v14493_v10, %v14368_v2  ;;  %v14503_v22 = vmul.f32 %v15540_v25, %v14496_v30  ;;  %v14747_v10 = vld [vmem:[#allocation10 + $0x5b0] sm:$0xff] }
0x36eb   :  { %v14504_v23 = vmul.f32 %v15540_v25, %v14497_v1  ;;  %v14510_v49 = vadd.f32 %v15541_v31, %v14503_v22  ;;  %v14746_v25 = vld [vmem:[#allocation10 + $0x5a8] sm:$0xff]  ;;  %v14748_v22 = vld [vmem:[#allocation10 + $0x5b8] sm:$0xff] }
0x36ed   :  { %v14511_v33 = vadd.f32 %v15541_v31, %v14504_v23  ;;  %v14512_v6 = vmin.f32 %v14510_v49, 20.0  ;;  %vm14530_vm10 = vcmp.gt.f32.partialorder %v14510_v49, 20.0  ;;  %v18067_v31 = vpack.c.bf16 %v14747_v10, %v14746_v25  ;;  %v14749_v23 = vld [vmem:[#allocation10 + $0x5c0] sm:$0xff] }
0x36ef   :  { %v14513_v44 = vmin.f32 %v14511_v33, 20.0  ;;  %v14514_v45 = vmul.f32 1.442695, %v14512_v6  ;;  %vm14531_vm13 = vcmp.gt.f32.partialorder %v14511_v33, 20.0 }
0x36f1   :  { %18462 = vpow2.f32 %v14514_v45  ;;  %v14516_v32 = vmul.f32 1.442695, %v14513_v44 }
0x36f3   :  { %18464 = vpow2.f32 %v14516_v32 }
0x36fb   :  { %v18463_v35 = vpop.eup %18462 }
0x36fc   :  { %v14518_v52 = vadd.f32 1.0, %v18463_v35 }
0x36fd   :  { %v18465_v12 = vpop.eup %18464 }
0x36fe   :  { %v14519_v58 = vadd.f32 1.0, %v18465_v12  ;;  %v14520_v4 = vmul.f32 %v14518_v52, %v14518_v52  ;;  %v15547_v52 = vld [vmem:[#allocation10 + $0x5c8] ss:$0 sm:$0xff] }
0x3700   :  { %v14521_v19 = vmul.f32 %v14519_v58, %v14519_v58  ;;  %v14524_v38 = vadd.f32 1.0, %v14520_v4  ;;  %v15542_v2 = vadd.f32 -1.0, %v14520_v4 }
0x3702   :  { %v14525_v54 = vadd.f32 1.0, %v14521_v19  ;;  %18466 = vrcp.f32 %v14524_v38  ;;  %v15543_v46 = vadd.f32 -1.0, %v14521_v19 }
0x3704   :  { %18468 = vrcp.f32 %v14525_v54  ;;  %v14851_v54 = vld [vmem:[#allocation13] sm:$0x3] }
0x370c   :  { %v18467_v42 = vpop.eup %18466 }
0x370d   :  { %v14528_v37 = vmul.f32 %v18467_v42, %v15542_v2  ;;  %v14945_v2 = vld [vmem:[%s20456_s12 + $0x40] sm:$0xff] }
0x370e   :  { %v18469_v57 = vpop.eup %18468  ;;  %v14937_v42 = vld [vmem:[%s20456_s12] sm:$0xff] }
0x370f   :  { %v14529_v39 = vmul.f32 %v18469_v57, %v15543_v46  ;;  %v14532_v21 = vsel %vm14530_vm10, 1.0, %v14528_v37  ;;  %v14938_v46 = vld [vmem:[%s20456_s12 + $0x8] sm:$0xff]  ;;  %v14939_v37 = vld [vmem:[%s20456_s12 + $0x10] sm:$0xff]  ;;  %v14940_v57 = vld [vmem:[%s20456_s12 + $0x18] sm:$0xff] }
0x3710   :  { %v14534_v5 = vmul.f32 %v14532_v21, %v14510_v49  ;;  %v14941_v21 = vld [vmem:[%s20456_s12 + $0x20] sm:$0xff] }
0x3711   :  { %v14533_v55 = vsel %vm14531_vm13, 1.0, %v14529_v39  ;;  %v18076_v39 = vpack.c.bf16 %v14940_v57, %v14939_v37 }
0x3712   :  { %v14535_v8 = vmul.f32 %v14533_v55, %v14511_v33  ;;  %v14536_v36 = vadd.f32 %v14534_v5, %v20204_v14  ;;  %v14556_v14 = vld [vmem:[#allocation10 + $0x528] sm:$0xff]  ;;  %v18070_v33 = vpack.c.bf16 %v14749_v23, %v14748_v22  ;;  %v14942_v5 = vld [vmem:[%s20456_s12 + $0x28] sm:$0xff] }
0x3713   :  { %v18055_v62 = vpack.c.bf16 %v14557_v27, %v14556_v14  ;;  %v18079_v55 = vpack.c.bf16 %v14942_v5, %v14941_v21 }
0x3714   :  { %v14537_v61 = vadd.f32 %v14535_v8, %v20206_v13  ;;  %v14543_v48 = vrot.slane %v14536_v36, %v19050_v56  ;;  %v14733_v1 = vrot.slane %v14536_v36, %v20015_v16  ;;  %v14944_v8 = vld [vmem:[%s20456_s12 + $0x38] sm:$0xff] }
0x3716   :  { %v14568_v60 = vcombine.low %v14536_v36, %v14537_v61  ;;  %v14547_v13 = vrot.slane %v14537_v61, %v19050_v56  ;;  %v14550_v34 = vsel %vm373_vm3, 0.0, %v14543_v48  ;;  %v14744_v56 = vld [vmem:[#allocation10 + $0x598] sm:$0xff]  ;;  %v14737_v30 = vrot.slane %v14537_v61, %v20015_v16 }
0x3717   :  { %v18064_v26 = vpack.c.bf16 %v14745_v24, %v14744_v56  ;;  %v14740_v6 = vsel %vm373_vm3, %v14733_v1, 0.0  ;;  %v15554_v56 = vld [vmem:[#allocation15 + $0x20] ss:$0 sm:$0xff] }
0x3718   :  { %v14575_v50 = vrot.slane %v14568_v60, %v20001_v17  ;;  %v14551_v41 = vsel %vm373_vm3, 0.0, %v14547_v13  ;;  %v14741_v49 = vsel %vm373_vm3, %v14737_v30, 0.0  ;;  %v15552_v13 = vld [vmem:[%s20456_s12 + $0x48] ss:$0 sm:$0xff] }
0x3719   :  { %v14650_v3 = vcombine.low %v14550_v34, %v14551_v41  ;;  %v14752_v44 = vcombine.low %v14740_v6, %v14741_v49 }
0x371a   :  { %17441 = vmatmul.mubr.msk.f32.vlgmr.msra.gmra.mrb[70].mxu1 %vm12129_vm14, %v14575_v50  ;;  %v15111_v50 = vld [vmem:[#allocation15 + $0x8] sm:$0xff] }
0x371b   :  { %18050 = vmatpush3.bf16.msra.mxu1 %v18049_v63  ;;  %17459 = vmatprep.mubr.msk.f32.mxu1 %vm18695_vm0, %v18694_v0  ;;  %v14657_v29 = vrot.slane %v14650_v3, %v20001_v17  ;;  %v14759_v45 = vrot.slane %v14752_v44, %v20001_v17  ;;  %v15110_v63 = vld [vmem:[#allocation15] sm:$0xff] }
0x371c   :  { %18051 = vmatprep.subr.bf16.mxu1 %v18696_v47  ;;  %v18085_v9 = vpack.c.bf16 %v15111_v50, %v15110_v63 }
0x371f   :  { %18053 = vmatpush3.bf16.msra.mxu1 %v18052_v43  ;;  %v15113_v43 = vld [vmem:[#allocation15 + $0x18] sm:$0xff] }
0x3720   :  { %18054 = vmatprep.subr.bf16.mxu1 %v18696_v47  ;;  %v18088_v14 = vpack.c.bf16 %v15113_v43, %v15112_v59 }
0x3723   :  { %18056 = vmatpush3.bf16.msra.mxu1 %v18055_v62 }
0x3724   :  { %18057 = vmatprep.subr.bf16.mxu1 %v18696_v47 }
0x3727   :  { %18059 = vmatpush3.bf16.msra.mxu1 %v18058_v7 }
0x3728   :  { %18060 = vmatprep.subr.bf16.mxu1 %v18696_v47 }
0x372a   :  { %17460 = vmatmul.mubr.msk.f32.vlgmr.msra.gmra.mrb[70].mxu1 %vm12129_vm14, %v14657_v29 }
0x372b   :  { %18062 = vmatpush3.bf16.msra.mxu1 %v18061_v15  ;;  %17478 = vmatprep.mubr.msk.f32.mxu1 %vm18695_vm0, %v18694_v0 }
0x372c   :  { %18063 = vmatprep.subr.bf16.mxu1 %v18696_v47 }
0x372f   :  { %18065 = vmatpush3.bf16.msra.mxu1 %v18064_v26 }
0x3730   :  { %18066 = vmatprep.subr.bf16.mxu1 %v18696_v47 }
0x3733   :  { %18068 = vmatpush3.bf16.msra.mxu1 %v18067_v31 }
0x3734   :  { %18069 = vmatprep.subr.bf16.mxu1 %v18696_v47 }
0x3737   :  { %18071 = vmatpush3.bf16.msra.mxu1 %v18070_v33 }
0x373a   :  { %17479 = vmatmul.mubr.msk.f32.vlgmr.msra.gmra.mrb[70].mxu1 %vm12129_vm14, %v14759_v45 }
0x380d   :  { %v14828_v32 = vpop.f32.mrb[70].mxu1 }
0x380e   :  { %v14840_v16 = vrot.slane %v14828_v32, %v20001_v17  ;;  %v17480_v35 = vpop.f32.mrb[71].mxu1 }
0x3810   :  { %v14841_v12 = vcombine.high %v14840_v16, %v14840_v16  ;;  %v14849_v58 = vadd.f32 %v15547_v52, %v14840_v16 }
0x3812   :  { %v14850_v4 = vadd.f32 %v15547_v52, %v14841_v12 }
0x3814   :  { %v14854_v19 = vcombine.low %v14849_v58, %v14850_v4 }
0x3816   :  { %v14861_v38 = vrot.slane %v14854_v19, %v20001_v17  ;;  %v18073_v17 = vpack.c.bf16 %v14938_v46, %v14937_v42 }
0x3818   :  { %17482 = vmatpush3.msk.msra.mxu0 %vm396_vm2, %v14861_v38 }
0x3819   :  { %17484 = vmatmul.mubr.msk.f32.vlgmr.msra.gmra.mrb[78].mxu0 %vm385_vm4, %v14851_v54  ;;  %17486 = vmatprep.subr.mxu0 %v18694_v0 }
0x381a   :  { %17487 = vmatpush3.msra.mxu0 %v14945_v2  ;;  %17488 = vmatprep.mubr.msk.f32.mxu0 %vm18695_vm0, %v18694_v0 }
0x381b   :  { %18072 = vmatprep.subr.bf16.mxu0 %v18696_v47 }
0x381d   :  { %17489 = vmatmul.mubr.msk.f32.vlgmr.msra.gmra.mrb[80].mxu0 %vm172_vm1, %v19040_v40  ;;  %v14943_v40 = vld [vmem:[%s20456_s12 + $0x30] sm:$0xff]  ;;  %vm15192_vm1 = vcmask 7168  }
0x381e   :  { %18074 = vmatpush3.bf16.msra.mxu0 %v18073_v17  ;;  %17507 = vmatprep.mubr.msk.f32.mxu0 %vm18695_vm0, %v18694_v0  ;;  %v18082_v36 = vpack.c.bf16 %v14944_v8, %v14943_v40 }
0x381f   :  { %18075 = vmatprep.subr.bf16.mxu0 %v18696_v47 }
0x3822   :  { %18077 = vmatpush3.bf16.msra.mxu0 %v18076_v39 }
0x3823   :  { %18078 = vmatprep.subr.bf16.mxu0 %v18696_v47 }
0x3826   :  { %18080 = vmatpush3.bf16.msra.mxu0 %v18079_v55 }
0x3827   :  { %18081 = vmatprep.subr.bf16.mxu0 %v18696_v47 }
0x382a   :  { %18083 = vmatpush3.bf16.msra.mxu0 %v18082_v36 }
0x382b   :  { %18084 = vmatprep.subr.bf16.mxu0 %v18696_v47 }
0x38ec   :  { %v14933_v61 = vpop.f32.mrb[78].mxu0 }
0x38ed   :  { %17508 = vmatmul.mubr.msk.f32.vlgmr.msra.gmra.mrb[82].mxu0 %vm12129_vm14, %v14933_v61  ;;  %v17485_v53 = vpop.f32.mrb[79].mxu0 }
0x38ee   :  { %17518 = vmatprep.mubr.msk.f32.mxu0 %vm18695_vm0, %v18694_v0  ;;  %18086 = vmatpush3.bf16.msra.mxu0 %v18085_v9 }
0x38ef   :  { %18087 = vmatprep.subr.bf16.mxu0 %v18696_v47 }
0x38f0   :  { %v15015_v28 = vpop.f32.mrb[80].mxu0 }
0x38f1   :  { %v17490_v60 = vpop.f32.mrb[81].mxu0 }
0x38f2   :  { %18089 = vmatpush3.bf16.msra.mxu0 %v18088_v14 }
0x39c0   :  { %v15088_v27 = vpop.f32.mrb[82].mxu0 }
0x39c1   :  { %v15089_v62 = vadd.f32 %v15088_v27, %v15015_v28  ;;  %v17509_v48 = vpop.f32.mrb[83].mxu0 }
0x39c3   :  { %v15097_v0 = vadd.f32 %v15552_v13, %v15089_v62 }
0x39c5   :  { %v15098_v51 = vmin.f32 %v15097_v0, 20.0  ;;  %vm15107_vm0 = vcmp.gt.f32.partialorder %v15097_v0, 20.0 }
0x39c7   :  { %v15099_v11 = vmul.f32 1.442695, %v15098_v51 }
0x39c9   :  { %18470 = vpow2.f32 %v15099_v11 }
0x39d3   :  { %v18471_v41 = vpop.eup %18470 }
0x39d4   :  { %v15101_v7 = vadd.f32 1.0, %v18471_v41 }
0x39d6   :  { %v15102_v34 = vmul.f32 %v15101_v7, %v15101_v7 }
0x39d8   :  { %v15104_v3 = vadd.f32 1.0, %v15102_v34  ;;  %v15553_v47 = vadd.f32 -1.0, %v15102_v34 }
0x39da   :  { %18472 = vrcp.f32 %v15104_v3 }
0x39e4   :  { %v18473_v18 = vpop.eup %18472 }
0x39e5   :  { %v15106_v20 = vmul.f32 %v18473_v18, %v15553_v47 }
0x39e7   :  { %v15108_v15 = vsel %vm15107_vm0, 1.0, %v15106_v20 }
0x39e8   :  { %v15109_v29 = vmul.f32 %v15108_v15, %v15097_v0 }
0x39ea   :  { %17519 = vmatmul.mubr.msk.f32.vlgmr.msra.gmra.mrb[84].mxu0 %vm267_vm9, %v15109_v29 }
0x3abd   :  { %v15188_v24 = vpop.f32.mrb[84].mxu0 }
0x3abe   :  { %v15189_v26 = vadd.f32 %v15554_v56, %v15188_v24  ;;  %v17520_v25 = vpop.f32.mrb[85].mxu0 }
0x3ac0   :  { %v15193_v10 = vsel %vm15192_vm1, %v15189_v26, 0.0 }
0x3ac1   :  { %15194 = vst [vmem:[%s20458_s14] sm:$0x3] %v15193_v10 }
0x3ac2   :  { %15199 = vsyncpa [#allocation3], 1 }
0x3ac3   :  { %15200 = vsyncpa [#allocation5], 1 }
0x3ac4   :  { %15201 = vsyncpa [#allocation8], 1 }
0x3ac5   :  { %15202 = vsyncpa [#allocation11], 1 }
0x3ac6   :  { %15203 = vsyncpa [#allocation14], 1 }

</bundles_post_ra>
